<compile_context>
chip_gen: v7x
topology: tpu7x:2x2x1
jax: 0.10.0
libtpu: 0.0.40
codegen_flags: <defaults>
</compile_context>

<pallas_src>
import functools

import jax
import jax.numpy as jnp
from jax import lax
from jax.experimental import pallas as pl
from jax.experimental.pallas import tpu as pltpu

BN_EPS = 1e-5
LANE = 128


def _round_up(x, m):
    return (x + m - 1) // m * m


def _fold_bn(gamma, beta, mean, var):
    scale = gamma / jnp.sqrt(var + BN_EPS)
    bias = beta - mean * scale
    return scale, bias


# ---------------------------------------------------------------------------
# Fused DenseBlock kernel: all layers for one batch element per grid step.
# ---------------------------------------------------------------------------
def _dense_block_kernel(x_ref, s1_ref, b1_ref, w1f_ref, b2_ref, w2_ref,
                        o_ref, colbuf_ref, *, layer_dims):
    # x_ref   : (1, H, W, c_in0_pad) f32  input, channels padded to 128
    # s1/b1   : (L, 1, c_pad)        f32  folded BN1 scale/bias (0 beyond C_in)
    # w1f     : (L, c_pad, c_mid_pad)         bf16, BN2 scale folded
    # b2      : (L, 1, c_mid_pad)    f32
    # w2      : (L, 3, 3*c_mid_pad, g_blk)    bf16, dy row groups, dx along K,
    #                                         output cols at the layer offset
    # o_ref   : (1, H, W, c_pad)     f32  -- resident concatenated features
    # colbuf  : (H+2, Wcb, 3*c_mid_pad) bf16  dx-shifted staging w/ row halo
    _, H, W, c_in0_pad = x_ref.shape
    c_pad = o_ref.shape[-1]
    _, Wcb, KC = colbuf_ref.shape
    c_mid_pad = KC // 3
    g_blk = w2_ref.shape[-1]

    # Output tile doubles as the resident concatenated feature buffer.
    o_ref[0, :, :, :c_in0_pad] = x_ref[0]
    if c_pad > c_in0_pad:
        o_ref[0, :, :, c_in0_pad:] = jnp.zeros(
            (H, W, c_pad - c_in0_pad), o_ref.dtype)

    # Zero the parts of colbuf that are never overwritten by the per-layer
    # interior stores (top/bottom halo rows, the fixed zero edge column of the
    # dx=0 / dx=2 blocks, and any width padding).  Done once per grid step so
    # correctness does not depend on how the batch axis is split across cores.
    zrow = jnp.zeros((1, Wcb, KC), colbuf_ref.dtype)
    colbuf_ref[0:1, :, :] = zrow
    colbuf_ref[H + 1:H + 2, :, :] = zrow
    zcol = jnp.zeros((H, 1, c_mid_pad), colbuf_ref.dtype)
    colbuf_ref[1:H + 1, 0:1, 0:c_mid_pad] = zcol                    # dx=0 left
    colbuf_ref[1:H + 1, W - 1:W, 2 * c_mid_pad:] = zcol             # dx=2 right
    if Wcb > W:
        colbuf_ref[1:H + 1, W:Wcb, :] = jnp.zeros(
            (H, Wcb - W, KC), colbuf_ref.dtype)

    for i, (k_i, start_i) in enumerate(layer_dims):
        # ---- BN1 + ReLU on the live channel prefix only (f32, VPU) --------
        feat = o_ref[0, :, :, :k_i].reshape(H * W, k_i)
        h = jnp.maximum(feat * s1_ref[i, :, :k_i] + b1_ref[i, :, :k_i], 0.0)
        # ---- 1x1 conv (MXU, bf16 in / f32 acc), K = live channels ---------
        y = jnp.dot(h.astype(jnp.bfloat16), w1f_ref[i, :k_i, :],
                    preferred_element_type=jnp.float32)   # (H*W, c_mid_pad)
        # ---- BN2 bias + ReLU ----------------------------------------------
        y = jnp.maximum(y + b2_ref[i], 0.0)
        y = y.reshape(H, W, c_mid_pad).astype(jnp.bfloat16)

        # ---- stage the dx-shifted triplet (no im2col) ----------------------
        # colbuf[p, c, dx_block] = ypad[p, c+dx]; centre store is fully
        # aligned, the two shifted stores are (W-1) wide; fixed zero edges and
        # halo rows were zeroed once above.
        colbuf_ref[1:H + 1, 0:W, c_mid_pad:2 * c_mid_pad] = y        # dx = 1
        colbuf_ref[1:H + 1, 1:W, 0:c_mid_pad] = y[:, :W - 1, :]      # dx = 0
        colbuf_ref[1:H + 1, 0:W - 1, 2 * c_mid_pad:] = y[:, 1:, :]   # dx = 2

        # ---- 3x3 conv = 3 row-group matmuls, K = 3*c_mid_pad ---------------
        # LHS views slice only the leading (row) dim -> contiguous, copy-free
        # reshapes.  Accumulate in f32 values.
        new = jnp.dot(colbuf_ref[0:H, :, :].reshape(H * Wcb, KC),
                      w2_ref[i, 0], preferred_element_type=jnp.float32)
        new = new + jnp.dot(colbuf_ref[1:H + 1, :, :].reshape(H * Wcb, KC),
                            w2_ref[i, 1], preferred_element_type=jnp.float32)
        new = new + jnp.dot(colbuf_ref[2:H + 2, :, :].reshape(H * Wcb, KC),
                            w2_ref[i, 2], preferred_element_type=jnp.float32)
        new = new.reshape(H, Wcb, g_blk)[:, :W, :]

        # ---- in-place concat: accumulate only into the 128-aligned lane
        # block covering this layer's growth channels (w2 is zero elsewhere
        # inside the block, so existing features are preserved exactly).
        cur = o_ref[0, :, :, start_i:start_i + g_blk]
        o_ref[0, :, :, start_i:start_i + g_blk] = cur + new


# ---------------------------------------------------------------------------
# Parameter preparation: fold BN, pad channels to 128, stack layers.
# ---------------------------------------------------------------------------
def prepare_dense_block_params(raw_params, num_input_features, growth_rate):
    num_layers = len(raw_params)
    c_mid = raw_params[0][4].shape[1]
    c_total = num_input_features + num_layers * growth_rate
    c_pad = _round_up(c_total, LANE)
    c_mid_pad = _round_up(c_mid, LANE)
    c_in0_pad = _round_up(num_input_features, LANE)

    offs = [num_input_features + i * growth_rate for i in range(num_layers)]
    covers = [_round_up(o + growth_rate, LANE) - (o // LANE) * LANE
              for o in offs]
    g_blk = max(covers)                                  # uniform output block
    starts = [min((o // LANE) * LANE, c_pad - g_blk) for o in offs]
    k_live = [min(_round_up(o, LANE), c_pad) for o in offs]   # 1x1 live K
    layer_dims = tuple((int(k), int(s)) for k, s in zip(k_live, starts))

    s1_l, b1_l, w1f_l, b2_l, w2_l = [], [], [], [], []
    for i, (g1, be1, m1, v1, w1, g2, be2, m2, v2, w2) in enumerate(raw_params):
        c_in = offs[i]
        s1, b1 = _fold_bn(g1, be1, m1, v1)
        s2, b2 = _fold_bn(g2, be2, m2, v2)
        # Fold BN2 scale into the 1x1 conv weights; cast to bf16 for the MXU.
        w1f = (w1 * s2[None, :]).astype(jnp.bfloat16)

        s1_l.append(jnp.zeros((c_pad,), jnp.float32).at[:c_in].set(s1))
        b1_l.append(jnp.zeros((c_pad,), jnp.float32).at[:c_in].set(b1))
        w1f_l.append(jnp.zeros((c_pad, c_mid_pad), jnp.bfloat16)
                     .at[:c_in, :c_mid].set(w1f))
        b2_l.append(jnp.zeros((c_mid_pad,), jnp.float32).at[:c_mid].set(b2))

        # 3x3 conv HWIO (3,3,c_mid,G) -> (3, 3*c_mid_pad, g_blk): dy row
        # groups, dx tap blocks stacked along K, output columns placed at the
        # layer's offset inside its 128-aligned output lane block.
        col0 = offs[i] - starts[i]
        w2p = (jnp.zeros((3, 3, c_mid_pad, g_blk), jnp.bfloat16)
               .at[:, :, :c_mid, col0:col0 + growth_rate]
               .set(w2.astype(jnp.bfloat16)))
        w2_l.append(w2p.reshape(3, 3 * c_mid_pad, g_blk))

    meta = dict(c_total=c_total, c_pad=c_pad, c_mid_pad=c_mid_pad,
                c_in0_pad=c_in0_pad, num_layers=num_layers, g_blk=g_blk,
                layer_dims=layer_dims)
    return (jnp.stack(s1_l)[:, None, :], jnp.stack(b1_l)[:, None, :],
            jnp.stack(w1f_l), jnp.stack(b2_l)[:, None, :],
            jnp.stack(w2_l), meta)


# ---------------------------------------------------------------------------
# DenseBlock wrapper (NCHW in / NCHW out, like the PyTorch module).
# ---------------------------------------------------------------------------
def dense_block_pallas(x_nchw, prepared):
    s1_all, b1_all, w1f_all, b2_all, w2_all, meta = prepared
    c_total, c_pad = meta["c_total"], meta["c_pad"]
    c_mid_pad, g_blk = meta["c_mid_pad"], meta["g_blk"]
    c_in0_pad, num_layers = meta["c_in0_pad"], meta["num_layers"]
    layer_dims = meta["layer_dims"]

    n, c_in0, h, w = x_nchw.shape
    wcb = _round_up(w, 16)   # bf16 sublane pack = 16 -> copy-free LHS reshapes

    # NCHW -> NHWC, pad channels only to the first layer's live lane width.
    # (The transposes are interface-mandated; they fuse under jit.)
    x = jnp.transpose(x_nchw, (0, 2, 3, 1)).astype(jnp.float32)
    x = jnp.pad(x, ((0, 0), (0, 0), (0, 0), (0, c_in0_pad - c_in0)))

    kernel = functools.partial(_dense_block_kernel, layer_dims=layer_dims)

    grid_spec = pltpu.PrefetchScalarGridSpec(
        num_scalar_prefetch=0,
        grid=(n,),
        in_specs=[
            pl.BlockSpec((1, h, w, c_in0_pad), lambda b: (b, 0, 0, 0)),
            # Weights: constant block index -> resident in VMEM across the
            # whole grid (no per-step re-fetch).
            pl.BlockSpec((num_layers, 1, c_pad), lambda b: (0, 0, 0)),
            pl.BlockSpec((num_layers, 1, c_pad), lambda b: (0, 0, 0)),
            pl.BlockSpec((num_layers, c_pad, c_mid_pad), lambda b: (0, 0, 0)),
            pl.BlockSpec((num_layers, 1, c_mid_pad), lambda b: (0, 0, 0)),
            pl.BlockSpec((num_layers, 3, 3 * c_mid_pad, g_blk),
                         lambda b: (0, 0, 0, 0)),
        ],
        out_specs=pl.BlockSpec((1, h, w, c_pad), lambda b: (b, 0, 0, 0)),
        scratch_shapes=[
            pltpu.VMEM((h + 2, wcb, 3 * c_mid_pad), jnp.bfloat16),
        ],
    )

    out = pl.pallas_call(
        kernel,
        out_shape=jax.ShapeDtypeStruct((n, h, w, c_pad), jnp.float32),
        grid_spec=grid_spec,
        compiler_params=pltpu.CompilerParams(
            dimension_semantics=("parallel",)),
    )(x, s1_all, b1_all, w1f_all, b2_all, w2_all)

    out = out[..., :c_total]                      # strip channel padding
    return jnp.transpose(out, (0, 3, 1, 2))       # NHWC -> NCHW


# ---------------------------------------------------------------------------
# Deterministic raw parameters (same shapes as the PyTorch module).
# ---------------------------------------------------------------------------
def init_dense_block_raw_params(key, num_layers, num_input_features, bn_size,
                                growth_rate):
    params = []
    num_features = num_input_features
    c_mid = bn_size * growth_rate
    for _ in range(num_layers):
        key, *ks = jax.random.split(key, 11)
        g1 = jax.random.uniform(ks[0], (num_features,), jnp.float32, 0.5, 1.5)
        be1 = 0.1 * jax.random.normal(ks[1], (num_features,), jnp.float32)
        m1 = 0.1 * jax.random.normal(ks[2], (num_features,), jnp.float32)
        v1 = jax.random.uniform(ks[3], (num_features,), jnp.float32, 0.5, 1.5)
        # 1x1 conv: torch (c_mid, C_in, 1, 1) stored as (C_in, c_mid)
        w1 = 0.1 * jax.random.normal(ks[4], (num_features, c_mid), jnp.float32)
        g2 = jax.random.uniform(ks[5], (c_mid,), jnp.float32, 0.5, 1.5)
        be2 = 0.1 * jax.random.normal(ks[6], (c_mid,), jnp.float32)
        m2 = 0.1 * jax.random.normal(ks[7], (c_mid,), jnp.float32)
        v2 = jax.random.uniform(ks[8], (c_mid,), jnp.float32, 0.5, 1.5)
        # 3x3 conv: torch (G, c_mid, 3, 3) stored as HWIO (3, 3, c_mid, G)
        w2 = 0.1 * jax.random.normal(ks[9], (3, 3, c_mid, growth_rate),
                                     jnp.float32)
        params.append((g1, be1, m1, v1, w1, g2, be2, m2, v2, w2))
        num_features += growth_rate
    return params


# ---------------------------------------------------------------------------
# Pure-JAX reference (same folded-BN + bf16-matmul math, independent impl).
# ---------------------------------------------------------------------------
def dense_block_ref(x_nchw, raw_params):
    out = jnp.transpose(x_nchw, (0, 2, 3, 1)).astype(jnp.float32)
    for (g1, be1, m1, v1, w1, g2, be2, m2, v2, w2) in raw_params:
        c_in, c_mid = w1.shape
        s1, b1 = _fold_bn(g1, be1, m1, v1)
        s2, b2 = _fold_bn(g2, be2, m2, v2)
        h = jnp.maximum(out * s1 + b1, 0.0)
        w1f = (w1 * s2[None, :]).astype(jnp.bfloat16)
        y = lax.conv_general_dilated(
            h.astype(jnp.bfloat16), w1f.reshape(1, 1, c_in, c_mid),
            (1, 1), "VALID", dimension_numbers=("NHWC", "HWIO", "NHWC"),
            preferred_element_type=jnp.float32)
        y = jnp.maximum(y + b2, 0.0)
        nf = lax.conv_general_dilated(
            y.astype(jnp.bfloat16), w2.astype(jnp.bfloat16),
            (1, 1), "SAME", dimension_numbers=("NHWC", "HWIO", "NHWC"),
            preferred_element_type=jnp.float32)
        out = jnp.concatenate([out, nf], axis=-1)
    return jnp.transpose(out, (0, 3, 1, 2))


# ---------------------------------------------------------------------------
if __name__ == "__main__":
    num_layers = 3
    num_input_features = 4
    bn_size = 2
    growth_rate = 4
    N, H, W = 2, 16, 16

    key = jax.random.PRNGKey(0)
    key, xkey = jax.random.split(key)
    x = jax.random.normal(xkey, (N, num_input_features, H, W), jnp.float32)

    raw_params = init_dense_block_raw_params(key, num_layers,
                                             num_input_features, bn_size,
                                             growth_rate)
    prepared = prepare_dense_block_params(raw_params, num_input_features,
                                          growth_rate)

    fwd = jax.jit(lambda xx: dense_block_pallas(xx, prepared))
    out = jax.block_until_ready(fwd(x))

    expected_channels = num_input_features + num_layers * growth_rate
    assert out.shape == (N, expected_channels, H, W), out.shape

    ref = jax.block_until_ready(dense_block_ref(x, raw_params))
    max_err = float(jnp.max(jnp.abs(out - ref)))
    # bf16 matmul inputs with f32 accumulation on both sides; tolerance covers
    # accumulation-order and occasional bf16 rounding-boundary differences.
    assert max_err < 2e-3, max_err

    print("KERNEL_OK")
</pallas_src>

<mosaic_0001>
module attributes {stable_mosaic.version = 11 : i64} {
  func.func @_dense_block_kernel(%arg0: i32, %arg1: memref<1x16x16x128xf32, #tpu.memory_space<vmem>>, %arg2: memref<3x1x128xf32, #tpu.memory_space<vmem>>, %arg3: memref<3x1x128xf32, #tpu.memory_space<vmem>>, %arg4: memref<3x128x128xbf16, #tpu.memory_space<vmem>>, %arg5: memref<3x1x128xf32, #tpu.memory_space<vmem>>, %arg6: memref<3x3x384x128xbf16, #tpu.memory_space<vmem>>, %arg7: memref<1x16x16x128xf32, #tpu.memory_space<vmem>>, %arg8: memref<18x16x384xbf16, #tpu.memory_space<vmem>>) attributes {dimension_semantics = [#tpu.dimension_semantics<parallel>], iteration_bounds = array<i64: 2>, scalar_prefetch = 0 : i64, scratch_operands = 1 : i64, tpu.core_type = #tpu.core_type<tc>, window_params = [{transform_indices = @transform_0, window_bounds = array<i64: 1, 16, 16, 128>}, {pipeline_mode = #tpu.pipeline_mode<synchronous>, transform_indices = @transform_1, window_bounds = array<i64: 3, 1, 128>}, {pipeline_mode = #tpu.pipeline_mode<synchronous>, transform_indices = @transform_2, window_bounds = array<i64: 3, 1, 128>}, {pipeline_mode = #tpu.pipeline_mode<synchronous>, transform_indices = @transform_3, window_bounds = array<i64: 3, 128, 128>}, {pipeline_mode = #tpu.pipeline_mode<synchronous>, transform_indices = @transform_4, window_bounds = array<i64: 3, 1, 128>}, {pipeline_mode = #tpu.pipeline_mode<synchronous>, transform_indices = @transform_5, window_bounds = array<i64: 3, 3, 384, 128>}, {transform_indices = @transform_6, window_bounds = array<i64: 1, 16, 16, 128>}]} {
    %c0 = arith.constant 0 : index
    %c0_0 = arith.constant 0 : index
    %c0_1 = arith.constant 0 : index
    %c0_2 = arith.constant 0 : index
    %0 = vector.load %arg1[%c0, %c0_0, %c0_1, %c0_2] : memref<1x16x16x128xf32, #tpu.memory_space<vmem>>, vector<1x16x16x128xf32>
    %1 = vector.shape_cast %0 : vector<1x16x16x128xf32> to vector<16x16x128xf32>
    %c0_3 = arith.constant 0 : index
    %c0_4 = arith.constant 0 : index
    %c0_5 = arith.constant 0 : index
    %c0_6 = arith.constant 0 : index
    %2 = vector.load %arg7[%c0_3, %c0_4, %c0_5, %c0_6] : memref<1x16x16x128xf32, #tpu.memory_space<vmem>>, vector<1x16x16x128xf32>
    %3 = vector.shape_cast %2 : vector<1x16x16x128xf32> to vector<16x16x128xf32>
    %4 = vector.shape_cast %1 : vector<16x16x128xf32> to vector<1x16x16x128xf32>
    tpu.vector_store %arg7[%c0_3, %c0_4, %c0_5, %c0_6], %4 {strides = array<i32>} : memref<1x16x16x128xf32, #tpu.memory_space<vmem>>, vector<1x16x16x128xf32>,
    %cst = arith.constant 0.000000e+00 : bf16
    %5 = vector.broadcast %cst : bf16 to vector<1x16x384xbf16>
    %c0_7 = arith.constant 0 : index
    %c0_8 = arith.constant 0 : index
    %c0_9 = arith.constant 0 : index
    %6 = vector.load %arg8[%c0_7, %c0_8, %c0_9] : memref<18x16x384xbf16, #tpu.memory_space<vmem>>, vector<1x16x384xbf16>
    tpu.vector_store %arg8[%c0_7, %c0_8, %c0_9], %5 {strides = array<i32>} : memref<18x16x384xbf16, #tpu.memory_space<vmem>>, vector<1x16x384xbf16>,
    %c17 = arith.constant 17 : index
    %c0_10 = arith.constant 0 : index
    %c0_11 = arith.constant 0 : index
    %7 = vector.load %arg8[%c17, %c0_10, %c0_11] : memref<18x16x384xbf16, #tpu.memory_space<vmem>>, vector<1x16x384xbf16>
    tpu.vector_store %arg8[%c17, %c0_10, %c0_11], %5 {strides = array<i32>} : memref<18x16x384xbf16, #tpu.memory_space<vmem>>, vector<1x16x384xbf16>,
    %cst_12 = arith.constant 0.000000e+00 : bf16
    %8 = vector.broadcast %cst_12 : bf16 to vector<16x1x128xbf16>
    %c1 = arith.constant 1 : index
    %c0_13 = arith.constant 0 : index
    %c0_14 = arith.constant 0 : index
    %9 = vector.load %arg8[%c1, %c0_13, %c0_14] : memref<18x16x384xbf16, #tpu.memory_space<vmem>>, vector<16x1x128xbf16>
    tpu.vector_store %arg8[%c1, %c0_13, %c0_14], %8 {strides = array<i32>} : memref<18x16x384xbf16, #tpu.memory_space<vmem>>, vector<16x1x128xbf16>,
    %c1_15 = arith.constant 1 : index
    %c15 = arith.constant 15 : index
    %c256 = arith.constant 256 : index
    %10 = vector.load %arg8[%c1_15, %c15, %c256] : memref<18x16x384xbf16, #tpu.memory_space<vmem>>, vector<16x1x128xbf16>
    tpu.vector_store %arg8[%c1_15, %c15, %c256], %8 {strides = array<i32>} : memref<18x16x384xbf16, #tpu.memory_space<vmem>>, vector<16x1x128xbf16>,
    %c0_16 = arith.constant 0 : index
    %c0_17 = arith.constant 0 : index
    %c0_18 = arith.constant 0 : index
    %c0_19 = arith.constant 0 : index
    %11 = vector.load %arg7[%c0_16, %c0_17, %c0_18, %c0_19] : memref<1x16x16x128xf32, #tpu.memory_space<vmem>>, vector<1x16x16x128xf32>
    %12 = vector.shape_cast %11 : vector<1x16x16x128xf32> to vector<16x16x128xf32>
    %13 = vector.shape_cast %12 : vector<16x16x128xf32> to vector<256x128xf32>
    %c0_20 = arith.constant 0 : index
    %c0_21 = arith.constant 0 : index
    %c0_22 = arith.constant 0 : index
    %14 = vector.load %arg2[%c0_20, %c0_21, %c0_22] : memref<3x1x128xf32, #tpu.memory_space<vmem>>, vector<1x1x128xf32>
    %15 = vector.shape_cast %14 : vector<1x1x128xf32> to vector<1x128xf32>
    %16 = vector.broadcast %15 : vector<1x128xf32> to vector<256x128xf32>
    %17 = arith.mulf %13, %16 : vector<256x128xf32>
    %c0_23 = arith.constant 0 : index
    %c0_24 = arith.constant 0 : index
    %c0_25 = arith.constant 0 : index
    %18 = vector.load %arg3[%c0_23, %c0_24, %c0_25] : memref<3x1x128xf32, #tpu.memory_space<vmem>>, vector<1x1x128xf32>
    %19 = vector.shape_cast %18 : vector<1x1x128xf32> to vector<1x128xf32>
    %20 = vector.broadcast %19 : vector<1x128xf32> to vector<256x128xf32>
    %21 = arith.addf %17, %20 : vector<256x128xf32>
    %cst_26 = arith.constant 0.000000e+00 : f32
    %22 = vector.broadcast %cst_26 : f32 to vector<256x128xf32>
    %23 = arith.maximumf %21, %22 : vector<256x128xf32>
    %24 = arith.truncf %23 : vector<256x128xf32> to vector<256x128xbf16>
    %c0_27 = arith.constant 0 : index
    %c0_28 = arith.constant 0 : index
    %c0_29 = arith.constant 0 : index
    %25 = vector.load %arg4[%c0_27, %c0_28, %c0_29] : memref<3x128x128xbf16, #tpu.memory_space<vmem>>, vector<1x128x128xbf16>
    %26 = vector.shape_cast %25 : vector<1x128x128xbf16> to vector<128x128xbf16>
    %cst_30 = arith.constant dense<0.000000e+00> : vector<256x128xf32>
    %27 = tpu.matmul %24, %26, %cst_30 {dimension_numbers = #tpu.dot_dimension_numbers<[1], [0], [0], [1], [0, 0, 1, 1], [], []>} : vector<256x128xbf16>, vector<128x128xbf16>, vector<256x128xf32> -> vector<256x128xf32>
    %c0_31 = arith.constant 0 : index
    %c0_32 = arith.constant 0 : index
    %c0_33 = arith.constant 0 : index
    %28 = vector.load %arg5[%c0_31, %c0_32, %c0_33] : memref<3x1x128xf32, #tpu.memory_space<vmem>>, vector<1x1x128xf32>
    %29 = vector.shape_cast %28 : vector<1x1x128xf32> to vector<1x128xf32>
    %30 = vector.broadcast %29 : vector<1x128xf32> to vector<256x128xf32>
    %31 = arith.addf %27, %30 : vector<256x128xf32>
    %cst_34 = arith.constant 0.000000e+00 : f32
    %32 = vector.broadcast %cst_34 : f32 to vector<256x128xf32>
    %33 = arith.maximumf %31, %32 : vector<256x128xf32>
    %34 = vector.shape_cast %33 : vector<256x128xf32> to vector<16x16x128xf32>
    %35 = arith.truncf %34 : vector<16x16x128xf32> to vector<16x16x128xbf16>
    %c1_35 = arith.constant 1 : index
    %c0_36 = arith.constant 0 : index
    %c128 = arith.constant 128 : index
    %36 = vector.load %arg8[%c1_35, %c0_36, %c128] : memref<18x16x384xbf16, #tpu.memory_space<vmem>>, vector<16x16x128xbf16>
    tpu.vector_store %arg8[%c1_35, %c0_36, %c128], %35 {strides = array<i32>} : memref<18x16x384xbf16, #tpu.memory_space<vmem>>, vector<16x16x128xbf16>,
    %37 = vector.extract_strided_slice %35 {offsets = [0, 0, 0], sizes = [16, 15, 128], strides = [1, 1, 1]} : vector<16x16x128xbf16> to vector<16x15x128xbf16>
    %c1_37 = arith.constant 1 : index
    %c1_38 = arith.constant 1 : index
    %c0_39 = arith.constant 0 : index
    %38 = vector.load %arg8[%c1_37, %c1_38, %c0_39] : memref<18x16x384xbf16, #tpu.memory_space<vmem>>, vector<16x15x128xbf16>
    tpu.vector_store %arg8[%c1_37, %c1_38, %c0_39], %37 {strides = array<i32>} : memref<18x16x384xbf16, #tpu.memory_space<vmem>>, vector<16x15x128xbf16>,
    %39 = vector.extract_strided_slice %35 {offsets = [0, 1, 0], sizes = [16, 15, 128], strides = [1, 1, 1]} : vector<16x16x128xbf16> to vector<16x15x128xbf16>
    %c1_40 = arith.constant 1 : index
    %c0_41 = arith.constant 0 : index
    %c256_42 = arith.constant 256 : index
    %40 = vector.load %arg8[%c1_40, %c0_41, %c256_42] : memref<18x16x384xbf16, #tpu.memory_space<vmem>>, vector<16x15x128xbf16>
    tpu.vector_store %arg8[%c1_40, %c0_41, %c256_42], %39 {strides = array<i32>} : memref<18x16x384xbf16, #tpu.memory_space<vmem>>, vector<16x15x128xbf16>,
    %c0_43 = arith.constant 0 : index
    %c0_44 = arith.constant 0 : index
    %c0_45 = arith.constant 0 : index
    %41 = vector.load %arg8[%c0_43, %c0_44, %c0_45] : memref<18x16x384xbf16, #tpu.memory_space<vmem>>, vector<16x16x384xbf16>
    %42 = vector.shape_cast %41 : vector<16x16x384xbf16> to vector<256x384xbf16>
    %c0_46 = arith.constant 0 : index
    %c0_47 = arith.constant 0 : index
    %c0_48 = arith.constant 0 : index
    %c0_49 = arith.constant 0 : index
    %43 = vector.load %arg6[%c0_46, %c0_47, %c0_48, %c0_49] : memref<3x3x384x128xbf16, #tpu.memory_space<vmem>>, vector<1x1x384x128xbf16>
    %44 = vector.shape_cast %43 : vector<1x1x384x128xbf16> to vector<384x128xbf16>
    %cst_50 = arith.constant dense<0.000000e+00> : vector<256x128xf32>
    %45 = tpu.matmul %42, %44, %cst_50 {dimension_numbers = #tpu.dot_dimension_numbers<[1], [0], [0], [1], [0, 0, 1, 1], [], []>} : vector<256x384xbf16>, vector<384x128xbf16>, vector<256x128xf32> -> vector<256x128xf32>
    %c1_51 = arith.constant 1 : index
    %c0_52 = arith.constant 0 : index
    %c0_53 = arith.constant 0 : index
    %46 = vector.load %arg8[%c1_51, %c0_52, %c0_53] : memref<18x16x384xbf16, #tpu.memory_space<vmem>>, vector<16x16x384xbf16>
    %47 = vector.shape_cast %46 : vector<16x16x384xbf16> to vector<256x384xbf16>
    %c0_54 = arith.constant 0 : index
    %c1_55 = arith.constant 1 : index
    %c0_56 = arith.constant 0 : index
    %c0_57 = arith.constant 0 : index
    %48 = vector.load %arg6[%c0_54, %c1_55, %c0_56, %c0_57] : memref<3x3x384x128xbf16, #tpu.memory_space<vmem>>, vector<1x1x384x128xbf16>
    %49 = vector.shape_cast %48 : vector<1x1x384x128xbf16> to vector<384x128xbf16>
    %cst_58 = arith.constant dense<0.000000e+00> : vector<256x128xf32>
    %50 = tpu.matmul %47, %49, %cst_58 {dimension_numbers = #tpu.dot_dimension_numbers<[1], [0], [0], [1], [0, 0, 1, 1], [], []>} : vector<256x384xbf16>, vector<384x128xbf16>, vector<256x128xf32> -> vector<256x128xf32>
    %51 = arith.addf %45, %50 : vector<256x128xf32>
    %c2 = arith.constant 2 : index
    %c0_59 = arith.constant 0 : index
    %c0_60 = arith.constant 0 : index
    %52 = vector.load %arg8[%c2, %c0_59, %c0_60] : memref<18x16x384xbf16, #tpu.memory_space<vmem>>, vector<16x16x384xbf16>
    %53 = vector.shape_cast %52 : vector<16x16x384xbf16> to vector<256x384xbf16>
    %c0_61 = arith.constant 0 : index
    %c2_62 = arith.constant 2 : index
    %c0_63 = arith.constant 0 : index
    %c0_64 = arith.constant 0 : index
    %54 = vector.load %arg6[%c0_61, %c2_62, %c0_63, %c0_64] : memref<3x3x384x128xbf16, #tpu.memory_space<vmem>>, vector<1x1x384x128xbf16>
    %55 = vector.shape_cast %54 : vector<1x1x384x128xbf16> to vector<384x128xbf16>
    %cst_65 = arith.constant dense<0.000000e+00> : vector<256x128xf32>
    %56 = tpu.matmul %53, %55, %cst_65 {dimension_numbers = #tpu.dot_dimension_numbers<[1], [0], [0], [1], [0, 0, 1, 1], [], []>} : vector<256x384xbf16>, vector<384x128xbf16>, vector<256x128xf32> -> vector<256x128xf32>
    %57 = arith.addf %51, %56 : vector<256x128xf32>
    %58 = vector.shape_cast %57 : vector<256x128xf32> to vector<16x16x128xf32>
    %c0_66 = arith.constant 0 : index
    %c0_67 = arith.constant 0 : index
    %c0_68 = arith.constant 0 : index
    %c0_69 = arith.constant 0 : index
    %59 = vector.load %arg7[%c0_66, %c0_67, %c0_68, %c0_69] : memref<1x16x16x128xf32, #tpu.memory_space<vmem>>, vector<1x16x16x128xf32>
    %60 = vector.shape_cast %59 : vector<1x16x16x128xf32> to vector<16x16x128xf32>
    %61 = arith.addf %60, %58 : vector<16x16x128xf32>
    %c0_70 = arith.constant 0 : index
    %c0_71 = arith.constant 0 : index
    %c0_72 = arith.constant 0 : index
    %c0_73 = arith.constant 0 : index
    %62 = vector.load %arg7[%c0_70, %c0_71, %c0_72, %c0_73] : memref<1x16x16x128xf32, #tpu.memory_space<vmem>>, vector<1x16x16x128xf32>
    %63 = vector.shape_cast %62 : vector<1x16x16x128xf32> to vector<16x16x128xf32>
    %64 = vector.shape_cast %61 : vector<16x16x128xf32> to vector<1x16x16x128xf32>
    tpu.vector_store %arg7[%c0_70, %c0_71, %c0_72, %c0_73], %64 {strides = array<i32>} : memref<1x16x16x128xf32, #tpu.memory_space<vmem>>, vector<1x16x16x128xf32>,
    %c0_74 = arith.constant 0 : index
    %c0_75 = arith.constant 0 : index
    %c0_76 = arith.constant 0 : index
    %c0_77 = arith.constant 0 : index
    %65 = vector.load %arg7[%c0_74, %c0_75, %c0_76, %c0_77] : memref<1x16x16x128xf32, #tpu.memory_space<vmem>>, vector<1x16x16x128xf32>
    %66 = vector.shape_cast %65 : vector<1x16x16x128xf32> to vector<16x16x128xf32>
    %67 = vector.shape_cast %66 : vector<16x16x128xf32> to vector<256x128xf32>
    %c1_78 = arith.constant 1 : index
    %c0_79 = arith.constant 0 : index
    %c0_80 = arith.constant 0 : index
    %68 = vector.load %arg2[%c1_78, %c0_79, %c0_80] : memref<3x1x128xf32, #tpu.memory_space<vmem>>, vector<1x1x128xf32>
    %69 = vector.shape_cast %68 : vector<1x1x128xf32> to vector<1x128xf32>
    %70 = vector.broadcast %69 : vector<1x128xf32> to vector<256x128xf32>
    %71 = arith.mulf %67, %70 : vector<256x128xf32>
    %c1_81 = arith.constant 1 : index
    %c0_82 = arith.constant 0 : index
    %c0_83 = arith.constant 0 : index
    %72 = vector.load %arg3[%c1_81, %c0_82, %c0_83] : memref<3x1x128xf32, #tpu.memory_space<vmem>>, vector<1x1x128xf32>
    %73 = vector.shape_cast %72 : vector<1x1x128xf32> to vector<1x128xf32>
    %74 = vector.broadcast %73 : vector<1x128xf32> to vector<256x128xf32>
    %75 = arith.addf %71, %74 : vector<256x128xf32>
    %cst_84 = arith.constant 0.000000e+00 : f32
    %76 = vector.broadcast %cst_84 : f32 to vector<256x128xf32>
    %77 = arith.maximumf %75, %76 : vector<256x128xf32>
    %78 = arith.truncf %77 : vector<256x128xf32> to vector<256x128xbf16>
    %c1_85 = arith.constant 1 : index
    %c0_86 = arith.constant 0 : index
    %c0_87 = arith.constant 0 : index
    %79 = vector.load %arg4[%c1_85, %c0_86, %c0_87] : memref<3x128x128xbf16, #tpu.memory_space<vmem>>, vector<1x128x128xbf16>
    %80 = vector.shape_cast %79 : vector<1x128x128xbf16> to vector<128x128xbf16>
    %cst_88 = arith.constant dense<0.000000e+00> : vector<256x128xf32>
    %81 = tpu.matmul %78, %80, %cst_88 {dimension_numbers = #tpu.dot_dimension_numbers<[1], [0], [0], [1], [0, 0, 1, 1], [], []>} : vector<256x128xbf16>, vector<128x128xbf16>, vector<256x128xf32> -> vector<256x128xf32>
    %c1_89 = arith.constant 1 : index
    %c0_90 = arith.constant 0 : index
    %c0_91 = arith.constant 0 : index
    %82 = vector.load %arg5[%c1_89, %c0_90, %c0_91] : memref<3x1x128xf32, #tpu.memory_space<vmem>>, vector<1x1x128xf32>
    %83 = vector.shape_cast %82 : vector<1x1x128xf32> to vector<1x128xf32>
    %84 = vector.broadcast %83 : vector<1x128xf32> to vector<256x128xf32>
    %85 = arith.addf %81, %84 : vector<256x128xf32>
    %cst_92 = arith.constant 0.000000e+00 : f32
    %86 = vector.broadcast %cst_92 : f32 to vector<256x128xf32>
    %87 = arith.maximumf %85, %86 : vector<256x128xf32>
    %88 = vector.shape_cast %87 : vector<256x128xf32> to vector<16x16x128xf32>
    %89 = arith.truncf %88 : vector<16x16x128xf32> to vector<16x16x128xbf16>
    %c1_93 = arith.constant 1 : index
    %c0_94 = arith.constant 0 : index
    %c128_95 = arith.constant 128 : index
    %90 = vector.load %arg8[%c1_93, %c0_94, %c128_95] : memref<18x16x384xbf16, #tpu.memory_space<vmem>>, vector<16x16x128xbf16>
    tpu.vector_store %arg8[%c1_93, %c0_94, %c128_95], %89 {strides = array<i32>} : memref<18x16x384xbf16, #tpu.memory_space<vmem>>, vector<16x16x128xbf16>,
    %91 = vector.extract_strided_slice %89 {offsets = [0, 0, 0], sizes = [16, 15, 128], strides = [1, 1, 1]} : vector<16x16x128xbf16> to vector<16x15x128xbf16>
    %c1_96 = arith.constant 1 : index
    %c1_97 = arith.constant 1 : index
    %c0_98 = arith.constant 0 : index
    %92 = vector.load %arg8[%c1_96, %c1_97, %c0_98] : memref<18x16x384xbf16, #tpu.memory_space<vmem>>, vector<16x15x128xbf16>
    tpu.vector_store %arg8[%c1_96, %c1_97, %c0_98], %91 {strides = array<i32>} : memref<18x16x384xbf16, #tpu.memory_space<vmem>>, vector<16x15x128xbf16>,
    %93 = vector.extract_strided_slice %89 {offsets = [0, 1, 0], sizes = [16, 15, 128], strides = [1, 1, 1]} : vector<16x16x128xbf16> to vector<16x15x128xbf16>
    %c1_99 = arith.constant 1 : index
    %c0_100 = arith.constant 0 : index
    %c256_101 = arith.constant 256 : index
    %94 = vector.load %arg8[%c1_99, %c0_100, %c256_101] : memref<18x16x384xbf16, #tpu.memory_space<vmem>>, vector<16x15x128xbf16>
    tpu.vector_store %arg8[%c1_99, %c0_100, %c256_101], %93 {strides = array<i32>} : memref<18x16x384xbf16, #tpu.memory_space<vmem>>, vector<16x15x128xbf16>,
    %c0_102 = arith.constant 0 : index
    %c0_103 = arith.constant 0 : index
    %c0_104 = arith.constant 0 : index
    %95 = vector.load %arg8[%c0_102, %c0_103, %c0_104] : memref<18x16x384xbf16, #tpu.memory_space<vmem>>, vector<16x16x384xbf16>
    %96 = vector.shape_cast %95 : vector<16x16x384xbf16> to vector<256x384xbf16>
    %c1_105 = arith.constant 1 : index
    %c0_106 = arith.constant 0 : index
    %c0_107 = arith.constant 0 : index
    %c0_108 = arith.constant 0 : index
    %97 = vector.load %arg6[%c1_105, %c0_106, %c0_107, %c0_108] : memref<3x3x384x128xbf16, #tpu.memory_space<vmem>>, vector<1x1x384x128xbf16>
    %98 = vector.shape_cast %97 : vector<1x1x384x128xbf16> to vector<384x128xbf16>
    %cst_109 = arith.constant dense<0.000000e+00> : vector<256x128xf32>
    %99 = tpu.matmul %96, %98, %cst_109 {dimension_numbers = #tpu.dot_dimension_numbers<[1], [0], [0], [1], [0, 0, 1, 1], [], []>} : vector<256x384xbf16>, vector<384x128xbf16>, vector<256x128xf32> -> vector<256x128xf32>
    %c1_110 = arith.constant 1 : index
    %c0_111 = arith.constant 0 : index
    %c0_112 = arith.constant 0 : index
    %100 = vector.load %arg8[%c1_110, %c0_111, %c0_112] : memref<18x16x384xbf16, #tpu.memory_space<vmem>>, vector<16x16x384xbf16>
    %101 = vector.shape_cast %100 : vector<16x16x384xbf16> to vector<256x384xbf16>
    %c1_113 = arith.constant 1 : index
    %c1_114 = arith.constant 1 : index
    %c0_115 = arith.constant 0 : index
    %c0_116 = arith.constant 0 : index
    %102 = vector.load %arg6[%c1_113, %c1_114, %c0_115, %c0_116] : memref<3x3x384x128xbf16, #tpu.memory_space<vmem>>, vector<1x1x384x128xbf16>
    %103 = vector.shape_cast %102 : vector<1x1x384x128xbf16> to vector<384x128xbf16>
    %cst_117 = arith.constant dense<0.000000e+00> : vector<256x128xf32>
    %104 = tpu.matmul %101, %103, %cst_117 {dimension_numbers = #tpu.dot_dimension_numbers<[1], [0], [0], [1], [0, 0, 1, 1], [], []>} : vector<256x384xbf16>, vector<384x128xbf16>, vector<256x128xf32> -> vector<256x128xf32>
    %105 = arith.addf %99, %104 : vector<256x128xf32>
    %c2_118 = arith.constant 2 : index
    %c0_119 = arith.constant 0 : index
    %c0_120 = arith.constant 0 : index
    %106 = vector.load %arg8[%c2_118, %c0_119, %c0_120] : memref<18x16x384xbf16, #tpu.memory_space<vmem>>, vector<16x16x384xbf16>
    %107 = vector.shape_cast %106 : vector<16x16x384xbf16> to vector<256x384xbf16>
    %c1_121 = arith.constant 1 : index
    %c2_122 = arith.constant 2 : index
    %c0_123 = arith.constant 0 : index
    %c0_124 = arith.constant 0 : index
    %108 = vector.load %arg6[%c1_121, %c2_122, %c0_123, %c0_124] : memref<3x3x384x128xbf16, #tpu.memory_space<vmem>>, vector<1x1x384x128xbf16>
    %109 = vector.shape_cast %108 : vector<1x1x384x128xbf16> to vector<384x128xbf16>
    %cst_125 = arith.constant dense<0.000000e+00> : vector<256x128xf32>
    %110 = tpu.matmul %107, %109, %cst_125 {dimension_numbers = #tpu.dot_dimension_numbers<[1], [0], [0], [1], [0, 0, 1, 1], [], []>} : vector<256x384xbf16>, vector<384x128xbf16>, vector<256x128xf32> -> vector<256x128xf32>
    %111 = arith.addf %105, %110 : vector<256x128xf32>
    %112 = vector.shape_cast %111 : vector<256x128xf32> to vector<16x16x128xf32>
    %c0_126 = arith.constant 0 : index
    %c0_127 = arith.constant 0 : index
    %c0_128 = arith.constant 0 : index
    %c0_129 = arith.constant 0 : index
    %113 = vector.load %arg7[%c0_126, %c0_127, %c0_128, %c0_129] : memref<1x16x16x128xf32, #tpu.memory_space<vmem>>, vector<1x16x16x128xf32>
    %114 = vector.shape_cast %113 : vector<1x16x16x128xf32> to vector<16x16x128xf32>
    %115 = arith.addf %114, %112 : vector<16x16x128xf32>
    %c0_130 = arith.constant 0 : index
    %c0_131 = arith.constant 0 : index
    %c0_132 = arith.constant 0 : index
    %c0_133 = arith.constant 0 : index
    %116 = vector.load %arg7[%c0_130, %c0_131, %c0_132, %c0_133] : memref<1x16x16x128xf32, #tpu.memory_space<vmem>>, vector<1x16x16x128xf32>
    %117 = vector.shape_cast %116 : vector<1x16x16x128xf32> to vector<16x16x128xf32>
    %118 = vector.shape_cast %115 : vector<16x16x128xf32> to vector<1x16x16x128xf32>
    tpu.vector_store %arg7[%c0_130, %c0_131, %c0_132, %c0_133], %118 {strides = array<i32>} : memref<1x16x16x128xf32, #tpu.memory_space<vmem>>, vector<1x16x16x128xf32>,
    %c0_134 = arith.constant 0 : index
    %c0_135 = arith.constant 0 : index
    %c0_136 = arith.constant 0 : index
    %c0_137 = arith.constant 0 : index
    %119 = vector.load %arg7[%c0_134, %c0_135, %c0_136, %c0_137] : memref<1x16x16x128xf32, #tpu.memory_space<vmem>>, vector<1x16x16x128xf32>
    %120 = vector.shape_cast %119 : vector<1x16x16x128xf32> to vector<16x16x128xf32>
    %121 = vector.shape_cast %120 : vector<16x16x128xf32> to vector<256x128xf32>
    %c2_138 = arith.constant 2 : index
    %c0_139 = arith.constant 0 : index
    %c0_140 = arith.constant 0 : index
    %122 = vector.load %arg2[%c2_138, %c0_139, %c0_140] : memref<3x1x128xf32, #tpu.memory_space<vmem>>, vector<1x1x128xf32>
    %123 = vector.shape_cast %122 : vector<1x1x128xf32> to vector<1x128xf32>
    %124 = vector.broadcast %123 : vector<1x128xf32> to vector<256x128xf32>
    %125 = arith.mulf %121, %124 : vector<256x128xf32>
    %c2_141 = arith.constant 2 : index
    %c0_142 = arith.constant 0 : index
    %c0_143 = arith.constant 0 : index
    %126 = vector.load %arg3[%c2_141, %c0_142, %c0_143] : memref<3x1x128xf32, #tpu.memory_space<vmem>>, vector<1x1x128xf32>
    %127 = vector.shape_cast %126 : vector<1x1x128xf32> to vector<1x128xf32>
    %128 = vector.broadcast %127 : vector<1x128xf32> to vector<256x128xf32>
    %129 = arith.addf %125, %128 : vector<256x128xf32>
    %cst_144 = arith.constant 0.000000e+00 : f32
    %130 = vector.broadcast %cst_144 : f32 to vector<256x128xf32>
    %131 = arith.maximumf %129, %130 : vector<256x128xf32>
    %132 = arith.truncf %131 : vector<256x128xf32> to vector<256x128xbf16>
    %c2_145 = arith.constant 2 : index
    %c0_146 = arith.constant 0 : index
    %c0_147 = arith.constant 0 : index
    %133 = vector.load %arg4[%c2_145, %c0_146, %c0_147] : memref<3x128x128xbf16, #tpu.memory_space<vmem>>, vector<1x128x128xbf16>
    %134 = vector.shape_cast %133 : vector<1x128x128xbf16> to vector<128x128xbf16>
    %cst_148 = arith.constant dense<0.000000e+00> : vector<256x128xf32>
    %135 = tpu.matmul %132, %134, %cst_148 {dimension_numbers = #tpu.dot_dimension_numbers<[1], [0], [0], [1], [0, 0, 1, 1], [], []>} : vector<256x128xbf16>, vector<128x128xbf16>, vector<256x128xf32> -> vector<256x128xf32>
    %c2_149 = arith.constant 2 : index
    %c0_150 = arith.constant 0 : index
    %c0_151 = arith.constant 0 : index
    %136 = vector.load %arg5[%c2_149, %c0_150, %c0_151] : memref<3x1x128xf32, #tpu.memory_space<vmem>>, vector<1x1x128xf32>
    %137 = vector.shape_cast %136 : vector<1x1x128xf32> to vector<1x128xf32>
    %138 = vector.broadcast %137 : vector<1x128xf32> to vector<256x128xf32>
    %139 = arith.addf %135, %138 : vector<256x128xf32>
    %cst_152 = arith.constant 0.000000e+00 : f32
    %140 = vector.broadcast %cst_152 : f32 to vector<256x128xf32>
    %141 = arith.maximumf %139, %140 : vector<256x128xf32>
    %142 = vector.shape_cast %141 : vector<256x128xf32> to vector<16x16x128xf32>
    %143 = arith.truncf %142 : vector<16x16x128xf32> to vector<16x16x128xbf16>
    %c1_153 = arith.constant 1 : index
    %c0_154 = arith.constant 0 : index
    %c128_155 = arith.constant 128 : index
    %144 = vector.load %arg8[%c1_153, %c0_154, %c128_155] : memref<18x16x384xbf16, #tpu.memory_space<vmem>>, vector<16x16x128xbf16>
    tpu.vector_store %arg8[%c1_153, %c0_154, %c128_155], %143 {strides = array<i32>} : memref<18x16x384xbf16, #tpu.memory_space<vmem>>, vector<16x16x128xbf16>,
    %145 = vector.extract_strided_slice %143 {offsets = [0, 0, 0], sizes = [16, 15, 128], strides = [1, 1, 1]} : vector<16x16x128xbf16> to vector<16x15x128xbf16>
    %c1_156 = arith.constant 1 : index
    %c1_157 = arith.constant 1 : index
    %c0_158 = arith.constant 0 : index
    %146 = vector.load %arg8[%c1_156, %c1_157, %c0_158] : memref<18x16x384xbf16, #tpu.memory_space<vmem>>, vector<16x15x128xbf16>
    tpu.vector_store %arg8[%c1_156, %c1_157, %c0_158], %145 {strides = array<i32>} : memref<18x16x384xbf16, #tpu.memory_space<vmem>>, vector<16x15x128xbf16>,
    %147 = vector.extract_strided_slice %143 {offsets = [0, 1, 0], sizes = [16, 15, 128], strides = [1, 1, 1]} : vector<16x16x128xbf16> to vector<16x15x128xbf16>
    %c1_159 = arith.constant 1 : index
    %c0_160 = arith.constant 0 : index
    %c256_161 = arith.constant 256 : index
    %148 = vector.load %arg8[%c1_159, %c0_160, %c256_161] : memref<18x16x384xbf16, #tpu.memory_space<vmem>>, vector<16x15x128xbf16>
    tpu.vector_store %arg8[%c1_159, %c0_160, %c256_161], %147 {strides = array<i32>} : memref<18x16x384xbf16, #tpu.memory_space<vmem>>, vector<16x15x128xbf16>,
    %c0_162 = arith.constant 0 : index
    %c0_163 = arith.constant 0 : index
    %c0_164 = arith.constant 0 : index
    %149 = vector.load %arg8[%c0_162, %c0_163, %c0_164] : memref<18x16x384xbf16, #tpu.memory_space<vmem>>, vector<16x16x384xbf16>
    %150 = vector.shape_cast %149 : vector<16x16x384xbf16> to vector<256x384xbf16>
    %c2_165 = arith.constant 2 : index
    %c0_166 = arith.constant 0 : index
    %c0_167 = arith.constant 0 : index
    %c0_168 = arith.constant 0 : index
    %151 = vector.load %arg6[%c2_165, %c0_166, %c0_167, %c0_168] : memref<3x3x384x128xbf16, #tpu.memory_space<vmem>>, vector<1x1x384x128xbf16>
    %152 = vector.shape_cast %151 : vector<1x1x384x128xbf16> to vector<384x128xbf16>
    %cst_169 = arith.constant dense<0.000000e+00> : vector<256x128xf32>
    %153 = tpu.matmul %150, %152, %cst_169 {dimension_numbers = #tpu.dot_dimension_numbers<[1], [0], [0], [1], [0, 0, 1, 1], [], []>} : vector<256x384xbf16>, vector<384x128xbf16>, vector<256x128xf32> -> vector<256x128xf32>
    %c1_170 = arith.constant 1 : index
    %c0_171 = arith.constant 0 : index
    %c0_172 = arith.constant 0 : index
    %154 = vector.load %arg8[%c1_170, %c0_171, %c0_172] : memref<18x16x384xbf16, #tpu.memory_space<vmem>>, vector<16x16x384xbf16>
    %155 = vector.shape_cast %154 : vector<16x16x384xbf16> to vector<256x384xbf16>
    %c2_173 = arith.constant 2 : index
    %c1_174 = arith.constant 1 : index
    %c0_175 = arith.constant 0 : index
    %c0_176 = arith.constant 0 : index
    %156 = vector.load %arg6[%c2_173, %c1_174, %c0_175, %c0_176] : memref<3x3x384x128xbf16, #tpu.memory_space<vmem>>, vector<1x1x384x128xbf16>
    %157 = vector.shape_cast %156 : vector<1x1x384x128xbf16> to vector<384x128xbf16>
    %cst_177 = arith.constant dense<0.000000e+00> : vector<256x128xf32>
    %158 = tpu.matmul %155, %157, %cst_177 {dimension_numbers = #tpu.dot_dimension_numbers<[1], [0], [0], [1], [0, 0, 1, 1], [], []>} : vector<256x384xbf16>, vector<384x128xbf16>, vector<256x128xf32> -> vector<256x128xf32>
    %159 = arith.addf %153, %158 : vector<256x128xf32>
    %c2_178 = arith.constant 2 : index
    %c0_179 = arith.constant 0 : index
    %c0_180 = arith.constant 0 : index
    %160 = vector.load %arg8[%c2_178, %c0_179, %c0_180] : memref<18x16x384xbf16, #tpu.memory_space<vmem>>, vector<16x16x384xbf16>
    %161 = vector.shape_cast %160 : vector<16x16x384xbf16> to vector<256x384xbf16>
    %c2_181 = arith.constant 2 : index
    %c2_182 = arith.constant 2 : index
    %c0_183 = arith.constant 0 : index
    %c0_184 = arith.constant 0 : index
    %162 = vector.load %arg6[%c2_181, %c2_182, %c0_183, %c0_184] : memref<3x3x384x128xbf16, #tpu.memory_space<vmem>>, vector<1x1x384x128xbf16>
    %163 = vector.shape_cast %162 : vector<1x1x384x128xbf16> to vector<384x128xbf16>
    %cst_185 = arith.constant dense<0.000000e+00> : vector<256x128xf32>
    %164 = tpu.matmul %161, %163, %cst_185 {dimension_numbers = #tpu.dot_dimension_numbers<[1], [0], [0], [1], [0, 0, 1, 1], [], []>} : vector<256x384xbf16>, vector<384x128xbf16>, vector<256x128xf32> -> vector<256x128xf32>
    %165 = arith.addf %159, %164 : vector<256x128xf32>
    %166 = vector.shape_cast %165 : vector<256x128xf32> to vector<16x16x128xf32>
    %c0_186 = arith.constant 0 : index
    %c0_187 = arith.constant 0 : index
    %c0_188 = arith.constant 0 : index
    %c0_189 = arith.constant 0 : index
    %167 = vector.load %arg7[%c0_186, %c0_187, %c0_188, %c0_189] : memref<1x16x16x128xf32, #tpu.memory_space<vmem>>, vector<1x16x16x128xf32>
    %168 = vector.shape_cast %167 : vector<1x16x16x128xf32> to vector<16x16x128xf32>
    %169 = arith.addf %168, %166 : vector<16x16x128xf32>
    %c0_190 = arith.constant 0 : index
    %c0_191 = arith.constant 0 : index
    %c0_192 = arith.constant 0 : index
    %c0_193 = arith.constant 0 : index
    %170 = vector.load %arg7[%c0_190, %c0_191, %c0_192, %c0_193] : memref<1x16x16x128xf32, #tpu.memory_space<vmem>>, vector<1x16x16x128xf32>
    %171 = vector.shape_cast %170 : vector<1x16x16x128xf32> to vector<16x16x128xf32>
    %172 = vector.shape_cast %169 : vector<16x16x128xf32> to vector<1x16x16x128xf32>
    tpu.vector_store %arg7[%c0_190, %c0_191, %c0_192, %c0_193], %172 {strides = array<i32>} : memref<1x16x16x128xf32, #tpu.memory_space<vmem>>, vector<1x16x16x128xf32>,
    return
  }
  func.func @transform_0(%arg0: i32) -> (i32, i32, i32, i32) {
    %c0_i32 = arith.constant 0 : i32
    %c0_i32_0 = arith.constant 0 : i32
    %c0_i32_1 = arith.constant 0 : i32
    %c0_i32_2 = arith.constant 0 : i32
    return %arg0, %c0_i32, %c0_i32_0, %c0_i32_1 : i32, i32, i32, i32
  }
  func.func @transform_1(%arg0: i32) -> (i32, i32, i32) {
    %c0_i32 = arith.constant 0 : i32
    %c0_i32_0 = arith.constant 0 : i32
    %c0_i32_1 = arith.constant 0 : i32
    %c0_i32_2 = arith.constant 0 : i32
    return %c0_i32, %c0_i32_0, %c0_i32_1 : i32, i32, i32
  }
  func.func @transform_2(%arg0: i32) -> (i32, i32, i32) {
    %c0_i32 = arith.constant 0 : i32
    %c0_i32_0 = arith.constant 0 : i32
    %c0_i32_1 = arith.constant 0 : i32
    %c0_i32_2 = arith.constant 0 : i32
    return %c0_i32, %c0_i32_0, %c0_i32_1 : i32, i32, i32
  }
  func.func @transform_3(%arg0: i32) -> (i32, i32, i32) {
    %c0_i32 = arith.constant 0 : i32
    %c0_i32_0 = arith.constant 0 : i32
    %c0_i32_1 = arith.constant 0 : i32
    %c0_i32_2 = arith.constant 0 : i32
    return %c0_i32, %c0_i32_0, %c0_i32_1 : i32, i32, i32
  }
  func.func @transform_4(%arg0: i32) -> (i32, i32, i32) {
    %c0_i32 = arith.constant 0 : i32
    %c0_i32_0 = arith.constant 0 : i32
    %c0_i32_1 = arith.constant 0 : i32
    %c0_i32_2 = arith.constant 0 : i32
    return %c0_i32, %c0_i32_0, %c0_i32_1 : i32, i32, i32
  }
  func.func @transform_5(%arg0: i32) -> (i32, i32, i32, i32) {
    %c0_i32 = arith.constant 0 : i32
    %c0_i32_0 = arith.constant 0 : i32
    %c0_i32_1 = arith.constant 0 : i32
    %c0_i32_2 = arith.constant 0 : i32
    %c0_i32_3 = arith.constant 0 : i32
    return %c0_i32, %c0_i32_0, %c0_i32_1, %c0_i32_2 : i32, i32, i32, i32
  }
  func.func @transform_6(%arg0: i32) -> (i32, i32, i32, i32) {
    %c0_i32 = arith.constant 0 : i32
    %c0_i32_0 = arith.constant 0 : i32
    %c0_i32_1 = arith.constant 0 : i32
    %c0_i32_2 = arith.constant 0 : i32
    return %arg0, %c0_i32, %c0_i32_0, %c0_i32_1 : i32, i32, i32, i32
  }
}

</mosaic_0001>

<bundles_post_ra>
// kernel: _lambda_.1
= control target key start
LH: loop header
LB: loop body
LE: loop exit
PB: predicated region body
PF: predicated region fallthrough
CT: control target
= control target key end

     0   :  { %11 = vsyncpa [#allocation4], 0  ;;  %s11149_s21 = smov 0   ;;  %s13953_s0 = inlined_call_operand.vmem [shape: f32[2,16,16,128], index: 0, kind: input, shape index: {}]   ;;  %s13954_s1 = inlined_call_operand.vmem [shape: f32[3,1,128], index: 1, kind: input, shape index: {}]   ;;  %s13955_s2 = inlined_call_operand.vmem [shape: f32[3,1,128], index: 2, kind: input, shape index: {}]   ;;  %s13956_s3 = inlined_call_operand.vmem [shape: bf16[3,128,128], index: 3, kind: input, shape index: {}]   ;;  %s13957_s4 = inlined_call_operand.vmem [shape: f32[3,1,128], index: 4, kind: input, shape index: {}]   ;;  %s13958_s5 = inlined_call_operand.hbm [shape: bf16[3,3,384,128], index: 5, kind: input, shape index: {}]   ;;  %s13959_s6 = inlined_call_operand.vmem [shape: f32[2,16,16,128], index: 6, kind: output, shape index: {}]  }
   0x1 LB: > { %s11155_s22 = sadd.s32 4294967295, %s11108_s21   ;;  %p8153_p0 = scmp.ge.s32.totalorder %s11108_s21, 1  ;;  %s11108_s21 = sphi %s11149_s21, %s17_s21  }
   0x2   : > { %p179_p1 = scmp.lt.s32.totalorder %s11108_s21, 3  ;;  %s11110_s23 = smov [#allocation3]  }
   0x3   : > { %s203_s24 = sshll.u32 %s11110_s23, 4  ;;  %p13960_p3 = scmp.eq.s32.totalorder %s11155_s22, 0  ;;  %s204_s24 = int_to_ptr.vmem [resolvable:$true] %s203_s24 }
   0x4   : > { %p11159_p2 = pnand %p8153_p0, %p179_p1  ;;  %s11070_s29 = scalar_lea.hbm %s13958_s5, 27648 }
   0x5   : > { %p11071_p6 = scmp.ne.s32.totalorder %s13958_s5, %s11070_s29  ;;  %p11077_p10 = scmp.lt.u32.totalorder %s11070_s29, %s13958_s5 }
   0x6   : > { %s13962_s25 = scalar_select %p11159_p2, 1, 0 }
   0x7   : > { %p10809_p4 = pneg %p11159_p2 }
   0x9   : > { %p11168_p5 = pnand %p13960_p3, %p10809_p4 }
   0xb   : > { %p11072_p7 = pneg %p11168_p5 }
   0xd   : > { %p11073_p8 = pnand %p11072_p7, %p11071_p6 }
   0xf   : > { %p11074_p9 = pneg %p11073_p8 }
  0x11   : > { %p11079_p11 = pnand %p11077_p10, %p11074_p9 }
  0x13   : > { %11082 = shalt.err (!%p11079_p11)
}
  0x14   : > { %s11083_s10 = scalar_lea.vmem %s204_s24, 27648  ;;  %p11091_p1 = scmp.lt.s32.totalorder %s204_s24, %s204_s24 }
  0x15   : > { %p11084_p12 = scmp.ne.s32.totalorder %s204_s24, %s11083_s10  ;;  %p11092_p4 = scmp.lt.s32.totalorder %s11083_s10, %s11083_s10 }
  0x17   : > { %p11086_p13 = pnand %p11084_p12, %p11072_p7  ;;  %p11093_p3 = por %p11092_p4, %p11091_p1 }
  0x19   : > { %p11087_p0 = pneg %p11086_p13 }
  0x1b   : > { %p11094_p2 = pnand %p11093_p3, %p11087_p0 }
  0x1d   : > { %11097 = shalt.err (!%p11094_p2)
}
  0x1e   : > { %s11111_s11 = smov 64   ;;  %s11112_s12 = smov 4  }
  0x1f   : > { %10812 = dma.hbm_to_vmem [thread:$0]  (!%p11168_p5), %s13958_s5, 27648, %s204_s24, [#allocation4], %s11111_s11, %s11111_s11, %s11112_s12  }
  0x20   : > { %p13964_p6 = scmp.ne.s32.totalorder %s13962_s25, 0 }
  0x21   : > { %p13965_p8 = scmp.eq.s32.totalorder (!%p13964_p6), %s11155_s22, 0 }
  0x22   : > { %227 = sbr.rel (%p13964_p6) target bundleno = 2265 (0x8d9), region = 44 }
  0x29   : > { %11103 = dma.done.wait (%p13965_p8), [#allocation4], 27648   ;;  %p13966_p7 = pmov %p13965_p8 }
  0x2a   : > { %p257_p2 = scmp.lt.s32.totalorder %s11155_s22, 1  ;;  %v10827_v0 = vld [vmem:[%s13956_s3] sm:$0xff]   ;;  %v10828_v1 = vld [vmem:[%s13956_s3 + $0x8] sm:$0xff]   ;;  %v10829_v2 = vld [vmem:[%s13956_s3 + $0x10] sm:$0xff]   ;;  %vm340_vm0 = vcmask 1040384   ;;  %vm391_vm2 = vcmask 1047559  }
  0x2b   : > { %11105 = vsyncadd (%p13966_p7), [#allocation4], 4294939648  ;;  %9749 = vmatprep.subr.bf16.mxu1 %v10827_v0  ;;  %v10830_v3 = vld [vmem:[%s13956_s3 + $0x18] sm:$0xff]   ;;  %v11223_v6 = vld [vmem:[%s13954_s1] ss:$0 sm:$0xff]  ;;  %vm1024_vm6 = vcmask 1047552  }
  0x2c   : > { %s13976_s22 = smov (!%p257_p2, %s11155_s22), 1  ;;  %9750 = vmatpush3.bf16.msra.mxu1 %v10827_v0  ;;  %v11232_v9 = vld [vmem:[%s13955_s2] ss:$0 sm:$0xff]  ;;  %v11277_v35 = vld [vmem:[%s13956_s3 + $0x28] sm:$0xff]   ;;  %v10833_v59 = vld [vmem:[%s13956_s3 + $0x30] sm:$0xff]  }
  0x2d   : > { %s8451_s19 = sshll.u32 %s13976_s22, 8  ;;  %9751 = vmatprep.subr.bf16.mxu1 %v10828_v1  ;;  %v11239_v12 = vld [vmem:[%s13956_s3 + $0x20] sm:$0xff]   ;;  %vm341_vm1 = vsmask.f32 256  ;;  %vm392_vm4 = vsmask.f32 7966 }
  0x2e   : > { %s11208_s26 = scalar_lea.vmem %s13953_s0, %s8451_s19  ;;  %s11213_s29 = scalar_lea.vmem %s13959_s6, %s8451_s19  ;;  %vm11523_vm3 = vmand %vm340_vm0, %vm341_vm1  ;;  %vm1025_vm7 = vsmask.f32 7938  ;;  %vm1123_vm8 = vsmask.f32 7424 }
  0x2f   : > { %v268_v4 = vld [vmem:[%s11208_s26] sm:$0xff]  ;;  %v269_v5 = vld [vmem:[%s11208_s26 + $0x8] sm:$0xff]  ;;  %v270_v10 = vld [vmem:[%s11208_s26 + $0x10] sm:$0xff] }
  0x30   : > { %9752 = vmatpush3.bf16.msra.mxu1 %v10828_v1  ;;  %300 = vst [vmem:[%s11213_s29] sm:$0xff] %v268_v4  ;;  %301 = vst [vmem:[%s11213_s29 + $0x8] sm:$0xff] %v269_v5  ;;  %v481_v7 = vmul.f32 %v11223_v6, %v268_v4  ;;  %v482_v8 = vmul.f32 %v11223_v6, %v269_v5  ;;  %v271_v11 = vld [vmem:[%s11208_s26 + $0x18] sm:$0xff]  ;;  %v272_v13 = vld [vmem:[%s11208_s26 + $0x20] sm:$0xff]  ;;  %v483_v18 = vmul.f32 %v11223_v6, %v270_v10 }
  0x31   : > { %9753 = vmatprep.subr.bf16.mxu1 %v10829_v2  ;;  %302 = vst [vmem:[%s11213_s29 + $0x10] sm:$0xff] %v270_v10  ;;  %303 = vst [vmem:[%s11213_s29 + $0x18] sm:$0xff] %v271_v11  ;;  %v273_v14 = vld [vmem:[%s11208_s26 + $0x28] sm:$0xff]  ;;  %v274_v15 = vld [vmem:[%s11208_s26 + $0x30] sm:$0xff]  ;;  %v484_v22 = vmul.f32 %v11223_v6, %v271_v11  ;;  %v485_v23 = vmul.f32 %v11223_v6, %v272_v13 }
  0x32   : > { %v520_v16 = vadd.f32 %v11232_v9, %v481_v7  ;;  %v521_v17 = vadd.f32 %v11232_v9, %v482_v8  ;;  %304 = vst [vmem:[%s11213_s29 + $0x20] sm:$0xff] %v272_v13  ;;  %305 = vst [vmem:[%s11213_s29 + $0x28] sm:$0xff] %v273_v14  ;;  %v275_v19 = vld [vmem:[%s11208_s26 + $0x38] sm:$0xff]  ;;  %v276_v20 = vld [vmem:[%s11208_s26 + $0x40] sm:$0xff]  ;;  %v486_v24 = vmul.f32 %v11223_v6, %v273_v14 }
  0x33   : > { %306 = vst [vmem:[%s11213_s29 + $0x30] sm:$0xff] %v274_v15  ;;  %v277_v21 = vld [vmem:[%s11208_s26 + $0x48] sm:$0xff]  ;;  %307 = vst [vmem:[%s11213_s29 + $0x38] sm:$0xff] %v275_v19  ;;  %v278_v25 = vld [vmem:[%s11208_s26 + $0x50] sm:$0xff]  ;;  %v487_v30 = vmul.f32 %v11223_v6, %v274_v15  ;;  %v488_v31 = vmul.f32 %v11223_v6, %v275_v19  ;;  %v11293_v40 = vadd.f32 %v11232_v9, %v483_v18 }
  0x34   : > { %9754 = vmatpush3.bf16.msra.mxu1 %v10829_v2  ;;  %308 = vst [vmem:[%s11213_s29 + $0x40] sm:$0xff] %v276_v20  ;;  %309 = vst [vmem:[%s11213_s29 + $0x48] sm:$0xff] %v277_v21  ;;  %v279_v26 = vld [vmem:[%s11208_s26 + $0x58] sm:$0xff]  ;;  %v280_v27 = vld [vmem:[%s11208_s26 + $0x60] sm:$0xff]  ;;  %v552_v28 = vmax.f32 %v520_v16, 0.0  ;;  %v553_v29 = vmax.f32 %v521_v17, 0.0  ;;  %v489_v41 = vmul.f32 %v11223_v6, %v276_v20  ;;  %v11313_v45 = vadd.f32 %v11232_v9, %v484_v22 }
  0x35   : > { %9755 = vmatprep.subr.bf16.mxu1 %v10830_v3  ;;  %310 = vst [vmem:[%s11213_s29 + $0x50] sm:$0xff] %v278_v25  ;;  %311 = vst [vmem:[%s11213_s29 + $0x58] sm:$0xff] %v279_v26  ;;  %v281_v32 = vld [vmem:[%s11208_s26 + $0x68] sm:$0xff]  ;;  %v282_v33 = vld [vmem:[%s11208_s26 + $0x70] sm:$0xff]  ;;  %v11316_v46 = vadd.f32 %v11232_v9, %v485_v23  ;;  %v11319_v47 = vadd.f32 %v11232_v9, %v486_v24  ;;  %v490_v48 = vmul.f32 %v11223_v6, %v277_v21 }
  0x36   : > { %312 = vst [vmem:[%s11213_s29 + $0x60] sm:$0xff] %v280_v27  ;;  %v11272_v34 = vld [vmem:[%s11208_s26 + $0x78] sm:$0xff]  ;;  %313 = vst [vmem:[%s11213_s29 + $0x68] sm:$0xff] %v281_v32  ;;  %v11284_v36 = vld [vmem:[%s11208_s26 + $0x80] sm:$0xff]  ;;  %v584_v39 = vpack.c.bf16 %v553_v29, %v552_v28  ;;  %v11338_v52 = vadd.f32 %v11232_v9, %v487_v30  ;;  %v11341_v53 = vadd.f32 %v11232_v9, %v488_v31  ;;  %v555_v10 = vmax.f32 %v11313_v45, 0.0 }
  0x37   : > { %314 = vst [vmem:[%s11213_s29 + $0x70] sm:$0xff] %v282_v33  ;;  %315 = vst [vmem:[%s11213_s29 + $0x78] sm:$0xff] %v11272_v34  ;;  %v11287_v37 = vld [vmem:[%s11208_s26 + $0x88] sm:$0xff]  ;;  %v11290_v38 = vld [vmem:[%s11208_s26 + $0x90] sm:$0xff]  ;;  %v491_v54 = vmul.f32 %v11223_v6, %v278_v25  ;;  %v492_v55 = vmul.f32 %v11223_v6, %v279_v26  ;;  %v11364_v60 = vadd.f32 %v11232_v9, %v489_v41  ;;  %v556_v11 = vmax.f32 %v11316_v46, 0.0 }
  0x38   : > { %9756 = vmatpush3.bf16.msra.mxu1 %v10830_v3  ;;  %316 = vst [vmem:[%s11213_s29 + $0x80] sm:$0xff] %v11284_v36  ;;  %317 = vst [vmem:[%s11213_s29 + $0x88] sm:$0xff] %v11287_v37  ;;  %v11301_v42 = vld [vmem:[%s11208_s26 + $0x98] sm:$0xff]  ;;  %v11306_v43 = vld [vmem:[%s11208_s26 + $0xa0] sm:$0xff]  ;;  %9765 = vmatprep.mubr.bf16.mxu1 %v584_v39  ;;  %v11367_v61 = vadd.f32 %v11232_v9, %v490_v48  ;;  %v493_v62 = vmul.f32 %v11223_v6, %v280_v27  ;;  %v554_v3 = vmax.f32 %v11293_v40, 0.0 }
  0x39   : > { %318 = vst [vmem:[%s11213_s29 + $0x90] sm:$0xff] %v11290_v38  ;;  %v11309_v44 = vld [vmem:[%s11208_s26 + $0xa8] sm:$0xff]  ;;  %9757 = vmatprep.subr.bf16.mxu1 %v11239_v12  ;;  %319 = vst [vmem:[%s11213_s29 + $0x98] sm:$0xff] %v11301_v42  ;;  %v11329_v49 = vld [vmem:[%s11208_s26 + $0xb0] sm:$0xff]  ;;  %v494_v63 = vmul.f32 %v11223_v6, %v281_v32  ;;  %v11389_v4 = vadd.f32 %v11232_v9, %v491_v54  ;;  %v11392_v5 = vadd.f32 %v11232_v9, %v492_v55 }
  0x3a   : > { %320 = vst [vmem:[%s11213_s29 + $0xa0] sm:$0xff] %v11306_v43  ;;  %321 = vst [vmem:[%s11213_s29 + $0xa8] sm:$0xff] %v11309_v44  ;;  %v11332_v50 = vld [vmem:[%s11208_s26 + $0xb8] sm:$0xff]  ;;  %v11335_v51 = vld [vmem:[%s11208_s26 + $0xc0] sm:$0xff]  ;;  %v495_v7 = vmul.f32 %v11223_v6, %v282_v33  ;;  %v496_v13 = vmul.f32 %v11223_v6, %v11272_v34  ;;  %v557_v14 = vmax.f32 %v11319_v47, 0.0  ;;  %v558_v15 = vmax.f32 %v11338_v52, 0.0 }
  0x3b   : > { %322 = vst [vmem:[%s11213_s29 + $0xb0] sm:$0xff] %v11329_v49  ;;  %323 = vst [vmem:[%s11213_s29 + $0xb8] sm:$0xff] %v11332_v50  ;;  %v11350_v56 = vld [vmem:[%s11208_s26 + $0xc8] sm:$0xff]  ;;  %v11355_v57 = vld [vmem:[%s11208_s26 + $0xd0] sm:$0xff]  ;;  %v559_v16 = vmax.f32 %v11341_v53, 0.0  ;;  %v497_v17 = vmul.f32 %v11223_v6, %v11284_v36  ;;  %v560_v20 = vmax.f32 %v11364_v60, 0.0  ;;  %v11425_v22 = vadd.f32 %v11232_v9, %v494_v63 }
  0x3c   : > { %324 = vst [vmem:[%s11213_s29 + $0xc0] sm:$0xff] %v11335_v51  ;;  %v11358_v58 = vld [vmem:[%s11208_s26 + $0xd8] sm:$0xff]  ;;  %325 = vst [vmem:[%s11213_s29 + $0xc8] sm:$0xff] %v11350_v56  ;;  %v11378_v0 = vld [vmem:[%s11208_s26 + $0xe0] sm:$0xff]  ;;  %9758 = vmatpush3.bf16.msra.mxu1 %v11239_v12  ;;  %v11408_v12 = vadd.f32 %v11232_v9, %v493_v62  ;;  %v561_v21 = vmax.f32 %v11367_v61, 0.0  ;;  %v562_v23 = vmax.f32 %v11389_v4, 0.0  ;;  %v11431_v25 = vadd.f32 %v11232_v9, %v495_v7 }
  0x3d   : > { %326 = vst [vmem:[%s11213_s29 + $0xd0] sm:$0xff] %v11355_v57  ;;  %327 = vst [vmem:[%s11213_s29 + $0xd8] sm:$0xff] %v11358_v58  ;;  %v11381_v1 = vld [vmem:[%s11208_s26 + $0xe8] sm:$0xff]  ;;  %v11384_v2 = vld [vmem:[%s11208_s26 + $0xf0] sm:$0xff]  ;;  %9759 = vmatprep.subr.bf16.mxu1 %v11277_v35  ;;  %v563_v24 = vmax.f32 %v11392_v5, 0.0  ;;  %v498_v26 = vmul.f32 %v11223_v6, %v11287_v37  ;;  %v11437_v28 = vadd.f32 %v11232_v9, %v496_v13  ;;  %v565_v39 = vmax.f32 %v11425_v22, 0.0 }
  0x3e   : > { %328 = vst [vmem:[%s11213_s29 + $0xe0] sm:$0xff] %v11378_v0  ;;  %329 = vst [vmem:[%s11213_s29 + $0xe8] sm:$0xff] %v11381_v1  ;;  %v11400_v8 = vld [vmem:[%s11208_s26 + $0xf8] sm:$0xff]  ;;  %v10836_v18 = vld [vmem:[#allocation3 + $0x140] sm:$0xff]   ;;  %v564_v27 = vmax.f32 %v11408_v12, 0.0  ;;  %v499_v29 = vmul.f32 %v11223_v6, %v11290_v38  ;;  %v500_v30 = vmul.f32 %v11223_v6, %v11301_v42  ;;  %v11444_v32 = vadd.f32 %v11232_v9, %v497_v17 }
  0x3f   : > { %330 = vst [vmem:[%s11213_s29 + $0xf0] sm:$0xff] %v11384_v2  ;;  %331 = vst [vmem:[%s11213_s29 + $0xf8] sm:$0xff] %v11400_v8  ;;  %v10834_v19 = vld [vmem:[%s13956_s3 + $0x38] sm:$0xff]   ;;  %9797 = vmatprep.subr.bf16.mxu0 %v10836_v18  ;;  %v11447_v33 = vadd.f32 %v11232_v9, %v498_v26  ;;  %v501_v34 = vmul.f32 %v11223_v6, %v11306_v43  ;;  %v503_v38 = vmul.f32 %v11223_v6, %v11329_v49  ;;  %v10835_v43 = vld [vmem:[#allocation3 + $0x100] sm:$0xff]  }
  0x40   : > { %9760 = vmatpush3.bf16.msra.mxu1 %v11277_v35  ;;  %9798 = vmatpush3.bf16.msra.mxu0 %v10836_v18  ;;  %v10839_v31 = vld [vmem:[#allocation3 + $0x148] sm:$0xff]   ;;  %v502_v35 = vmul.f32 %v11223_v6, %v11309_v44  ;;  %v11454_v36 = vadd.f32 %v11232_v9, %v499_v29  ;;  %v11457_v37 = vadd.f32 %v11232_v9, %v500_v30  ;;  %v566_v45 = vmax.f32 %v11431_v25, 0.0  ;;  %v10837_v55 = vld [vmem:[#allocation3 + $0xc0] sm:$0xff]   ;;  %v10841_v5 = vld [vmem:[#allocation3 + $0x110] sm:$0xff]  }
  0x41   : > { %9761 = vmatprep.subr.bf16.mxu1 %v10833_v59  ;;  %9799 = vmatprep.subr.bf16.mxu0 %v10839_v31  ;;  %v11463_v40 = vadd.f32 %v11232_v9, %v501_v34  ;;  %v504_v42 = vmul.f32 %v11223_v6, %v11332_v50  ;;  %v585_v44 = vpack.c.bf16 %v555_v10, %v554_v3  ;;  %v567_v46 = vmax.f32 %v11437_v28, 0.0  ;;  %v10838_v7 = vld [vmem:[#allocation3 + $0x108] sm:$0xff]   ;;  %v10842_v12 = vld [vmem:[#allocation3 + $0x150] sm:$0xff]   ;;  %v10845_v22 = vld [vmem:[#allocation3 + $0x158] sm:$0xff]  }
  0x42   : > { %v11466_v41 = vadd.f32 %v11232_v9, %v502_v35  ;;  %v11473_v47 = vadd.f32 %v11232_v9, %v503_v38  ;;  %v568_v48 = vmax.f32 %v11444_v32, 0.0  ;;  %v569_v49 = vmax.f32 %v11447_v33, 0.0  ;;  %v10840_v29 = vld [vmem:[#allocation3 + $0xc8] sm:$0xff]   ;;  %vm11529_vm5 = vmand %vm391_vm2, %vm392_vm4 }
  0x43   : > { %v543_v54 = vadd.f32 %v11232_v9, %v504_v42  ;;  %v505_v50 = vmul.f32 %v11223_v6, %v11335_v51  ;;  %v570_v62 = vmax.f32 %v11454_v36, 0.0  ;;  %v571_v63 = vmax.f32 %v11457_v37, 0.0  ;;  %vm11614_vm9 = vmand %vm1024_vm6, %vm1025_vm7 }
  0x44   : > { %9762 = vmatpush3.bf16.msra.mxu1 %v10833_v59  ;;  %9800 = vmatpush3.bf16.msra.mxu0 %v10839_v31  ;;  %v586_v59 = vpack.c.bf16 %v557_v14, %v556_v11  ;;  %v506_v3 = vmul.f32 %v11223_v6, %v11350_v56  ;;  %v572_v10 = vmax.f32 %v11463_v40, 0.0  ;;  %v573_v13 = vmax.f32 %v11466_v41, 0.0  ;;  %vm11621_vm10 = vmand %vm1024_vm6, %vm1123_vm8 }
  0x45   : > { %9763 = vmatprep.subr.bf16.mxu1 %v10834_v19  ;;  %v507_v17 = vmul.f32 %v11223_v6, %v11355_v57  ;;  %v508_v51 = vmul.f32 %v11223_v6, %v11358_v58  ;;  %v574_v11 = vmax.f32 %v11473_v47, 0.0  ;;  %v575_v14 = vmax.f32 %v543_v54, 0.0  ;;  %9801 = vmatprep.subr.bf16.mxu0 %v10842_v12  ;;  %v10851_v47 = vld [vmem:[#allocation3 + $0x168] sm:$0xff]  }
  0x46   : > { %v509_v18 = vmul.f32 %v11223_v6, %v11378_v0  ;;  %v510_v56 = vmul.f32 %v11223_v6, %v11381_v1  ;;  %v511_v57 = vmul.f32 %v11223_v6, %v11384_v2  ;;  %v545_v58 = vadd.f32 %v11232_v9, %v506_v3  ;;  %v343_v54 = vld [vmem:[#allocation2 + $0x18] sm:$0x1]  ;;  %v10853_v3 = vld [vmem:[#allocation3 + $0x130] sm:$0xff]  }
  0x47   : > { %v546_v25 = vadd.f32 %v11232_v9, %v507_v17  ;;  %v547_v26 = vadd.f32 %v11232_v9, %v508_v51  ;;  %v512_v1 = vmul.f32 %v11223_v6, %v11400_v8  ;;  %v587_v6 = vpack.c.bf16 %v559_v16, %v558_v15  ;;  %v10857_v17 = vld [vmem:[#allocation3 + $0x178] sm:$0xff]  }
  0x48   : > { %9764 = vmatpush3.bf16.msra.mxu1 %v10834_v19  ;;  %v544_v19 = vadd.f32 %v11232_v9, %v505_v50  ;;  %v548_v28 = vadd.f32 %v11232_v9, %v509_v18  ;;  %v549_v0 = vadd.f32 %v11232_v9, %v510_v56  ;;  %v550_v32 = vadd.f32 %v11232_v9, %v511_v57  ;;  %v394_v50 = vld [vmem:[#allocation2 + $0x28] sm:$0x80]  ;;  %v403_v18 = vld [vmem:[#allocation2 + $0x70] sm:$0x80]  ;;  %v349_v56 = vld [vmem:[#allocation2 + $0x48] sm:$0x1] }
  0x49   : > { %8477 = vmatprep.subr.bf16.mxu1 %v10835_v43  ;;  %v578_v30 = vmax.f32 %v546_v25, 0.0  ;;  %v579_v31 = vmax.f32 %v547_v26, 0.0  ;;  %v551_v2 = vadd.f32 %v11232_v9, %v512_v1  ;;  %v577_v8 = vmax.f32 %v545_v58, 0.0  ;;  %9802 = vmatpush3.bf16.msra.mxu0 %v10842_v12  ;;  %v10850_v43 = vld [vmem:[#allocation3 + $0x128] sm:$0xff]   ;;  %v10858_v51 = vld [vmem:[#allocation3 + $0xf8] sm:$0xff]  }
  0x4a   : > { %v580_v33 = vmax.f32 %v548_v28, 0.0  ;;  %v581_v34 = vmax.f32 %v549_v0, 0.0  ;;  %v576_v35 = vmax.f32 %v544_v19, 0.0  ;;  %v582_v37 = vmax.f32 %v550_v32, 0.0  ;;  %9803 = vmatprep.subr.bf16.mxu0 %v10845_v22  ;;  %v400_v26 = vld [vmem:[#allocation2 + $0x58] sm:$0x80] }
  0x4b   : > { %9766 = vmatmul.mubr.bf16.vlgmr.msra.gmra.mrb[0].mxu1 %v585_v44  ;;  %v597_v36 = vpack.c.bf16 %v579_v31, %v578_v30  ;;  %v583_v40 = vmax.f32 %v551_v2, 0.0  ;;  %v588_v41 = vpack.c.bf16 %v561_v21, %v560_v20  ;;  %v589_v9 = vpack.c.bf16 %v563_v24, %v562_v23  ;;  %v10843_v20 = vld [vmem:[#allocation3 + $0xd0] sm:$0xff]   ;;  %v10844_v21 = vld [vmem:[#allocation3 + $0x118] sm:$0xff]   ;;  %v10847_v24 = vld [vmem:[#allocation3 + $0x120] sm:$0xff]  }
  0x4c   : > { %9769 = vmatprep.mubr.bf16.mxu1 %v586_v59  ;;  %8478 = vmatpush3.bf16.msra.mxu1 %v10837_v55  ;;  %v598_v38 = vpack.c.bf16 %v581_v34, %v580_v33  ;;  %v590_v52 = vpack.c.bf16 %v565_v39, %v564_v27  ;;  %v591_v53 = vpack.c.bf16 %v567_v46, %v566_v45  ;;  %v10846_v23 = vld [vmem:[#allocation3 + $0xd8] sm:$0xff]   ;;  %v10848_v27 = vld [vmem:[#allocation3 + $0x160] sm:$0xff]   ;;  %v397_v46 = vld [vmem:[#allocation2 + $0x40] sm:$0x80]  ;;  %v344_v59 = vsel %vm11523_vm3, 0, %v343_v54 }
  0x4d   : > { %8479 = vmatprep.subr.bf16.mxu1 %v10838_v7  ;;  %v599_v42 = vpack.c.bf16 %v583_v40, %v582_v37  ;;  %v592_v60 = vpack.c.bf16 %v569_v49, %v568_v48  ;;  %v593_v61 = vpack.c.bf16 %v571_v63, %v570_v62  ;;  %v594_v15 = vpack.c.bf16 %v573_v13, %v572_v10  ;;  %v10849_v39 = vld [vmem:[#allocation3 + $0xe0] sm:$0xff]   ;;  %v10852_v63 = vld [vmem:[#allocation3 + $0xe8] sm:$0xff]   ;;  %v10854_v7 = vld [vmem:[#allocation3 + $0x170] sm:$0xff]  }
  0x4e   : > { %v595_v16 = vpack.c.bf16 %v575_v14, %v574_v11  ;;  %v596_v4 = vpack.c.bf16 %v577_v8, %v576_v35  ;;  %9804 = vmatpush3.bf16.msra.mxu0 %v10845_v22  ;;  %v346_v44 = vld [vmem:[#allocation2 + $0x30] sm:$0x1]  ;;  %v398_v55 = vsel %vm11529_vm5, 0, %v397_v46  ;;  %v395_v62 = vsel %vm11529_vm5, 0, %v394_v50  ;;  %345 = vst [vmem:[#allocation2 + $0x18] sm:$0x1] %v344_v59 }
  0x4f   : > { %9805 = vmatprep.subr.bf16.mxu0 %v10848_v27  ;;  %v347_v48 = vsel %vm11523_vm3, 0, %v346_v44  ;;  %399 = vst [vmem:[#allocation2 + $0x40] sm:$0x80] %v398_v55  ;;  %396 = vst [vmem:[#allocation2 + $0x28] sm:$0x80] %v395_v62  ;;  %v10855_v10 = vld [vmem:[#allocation3 + $0xf0] sm:$0xff]  }
  0x50   : > { %8480 = vmatpush3.bf16.msra.mxu1 %v10840_v29  ;;  %348 = vst [vmem:[#allocation2 + $0x30] sm:$0x1] %v347_v48  ;;  %v10856_v13 = vld [vmem:[#allocation3 + $0x138] sm:$0xff]   ;;  %v352_v11 = vld [vmem:[#allocation2 + $0x60] sm:$0x1]  ;;  %v404_v19 = vsel %vm11529_vm5, 0, %v403_v18 }
  0x51   : > { %8481 = vmatprep.subr.bf16.mxu1 %v10841_v5  ;;  %v353_v14 = vsel %vm11523_vm3, 0, %v352_v11  ;;  %v350_v25 = vsel %vm11523_vm3, 0, %v349_v56  ;;  %405 = vst [vmem:[#allocation2 + $0x70] sm:$0x80] %v404_v19  ;;  %v401_v57 = vsel %vm11529_vm5, 0, %v400_v26 }
  0x52   : > { %9806 = vmatpush3.bf16.msra.mxu0 %v10848_v27  ;;  %354 = vst [vmem:[#allocation2 + $0x60] sm:$0x1] %v353_v14  ;;  %351 = vst [vmem:[#allocation2 + $0x48] sm:$0x1] %v350_v25  ;;  %v358_v58 = vld [vmem:[#allocation2 + $0x90] sm:$0x1] }
  0x53   : > { %9770 = vmatmul.mubr.bf16.gmra.mrb[4].mxu1 %v587_v6  ;;  %9807 = vmatprep.subr.bf16.mxu0 %v10851_v47  ;;  %402 = vst [vmem:[#allocation2 + $0x58] sm:$0x80] %v401_v57  ;;  %v409_v28 = vld [vmem:[#allocation2 + $0xa0] sm:$0x80]  ;;  %v359_v0 = vsel %vm11523_vm3, 0, %v358_v58 }
  0x54   : > { %9773 = vmatprep.mubr.bf16.mxu1 %v588_v41  ;;  %8482 = vmatpush3.bf16.msra.mxu1 %v10843_v20  ;;  %v410_v1 = vsel %vm11529_vm5, 0, %v409_v28  ;;  %v355_v29 = vld [vmem:[#allocation2 + $0x78] sm:$0x1]  ;;  %v406_v30 = vld [vmem:[#allocation2 + $0x88] sm:$0x80] }
  0x55   : > { %8483 = vmatprep.subr.bf16.mxu1 %v10844_v21  ;;  %360 = vst [vmem:[#allocation2 + $0x90] sm:$0x1] %v359_v0  ;;  %411 = vst [vmem:[#allocation2 + $0xa0] sm:$0x80] %v410_v1  ;;  %v356_v31 = vsel %vm11523_vm3, 0, %v355_v29  ;;  %v407_v32 = vsel %vm11529_vm5, 0, %v406_v30 }
  0x56   : > { %9808 = vmatpush3.bf16.msra.mxu0 %v10851_v47  ;;  %357 = vst [vmem:[#allocation2 + $0x78] sm:$0x1] %v356_v31  ;;  %408 = vst [vmem:[#allocation2 + $0x88] sm:$0x80] %v407_v32  ;;  %v364_v33 = vld [vmem:[#allocation2 + $0xc0] sm:$0x1] }
  0x57   : > { %9809 = vmatprep.subr.bf16.mxu0 %v10854_v7  ;;  %v415_v34 = vld [vmem:[#allocation2 + $0xd0] sm:$0x80]  ;;  %v365_v2 = vsel %vm11523_vm3, 0, %v364_v33  ;;  %v412_v6 = vld [vmem:[#allocation2 + $0xb8] sm:$0x80] }
  0x58   : > { %8484 = vmatpush3.bf16.msra.mxu1 %v10846_v23  ;;  %v416_v35 = vsel %vm11529_vm5, 0, %v415_v34  ;;  %366 = vst [vmem:[#allocation2 + $0xc0] sm:$0x1] %v365_v2  ;;  %v413_v8 = vsel %vm11529_vm5, 0, %v412_v6  ;;  %v370_v40 = vld [vmem:[#allocation2 + $0xf0] sm:$0x1] }
  0x59   : > { %8485 = vmatprep.subr.bf16.mxu1 %v10847_v24  ;;  %417 = vst [vmem:[#allocation2 + $0xd0] sm:$0x80] %v416_v35  ;;  %414 = vst [vmem:[#allocation2 + $0xb8] sm:$0x80] %v413_v8  ;;  %v421_v41 = vld [vmem:[#allocation2 + $0x100] sm:$0x80] }
  0x5a   : > { %9810 = vmatpush3.bf16.msra.mxu0 %v10854_v7  ;;  %v373_v12 = vld [vmem:[#allocation2 + $0x108] sm:$0x1]  ;;  %v424_v21 = vld [vmem:[#allocation2 + $0x118] sm:$0x80]  ;;  %v382_v23 = vld [vmem:[#allocation2 + $0x150] sm:$0x1] }
  0x5b   : > { %9774 = vmatmul.mubr.bf16.gmra.mrb[8].mxu1 %v589_v9  ;;  %9811 = vmatprep.subr.bf16.mxu0 %v10857_v17  ;;  %v422_v9 = vsel %vm11529_vm5, 0, %v421_v41  ;;  %v374_v20 = vsel %vm11523_vm3, 0, %v373_v12  ;;  %v425_v22 = vsel %vm11529_vm5, 0, %v424_v21  ;;  %v433_v24 = vld [vmem:[#allocation2 + $0x160] sm:$0x80]  ;;  %v383_v27 = vsel %vm11523_vm3, 0, %v382_v23 }
  0x5c   : > { %9777 = vmatprep.mubr.bf16.mxu1 %v590_v52  ;;  %8486 = vmatpush3.bf16.msra.mxu1 %v10849_v39  ;;  %v367_v52 = vld [vmem:[#allocation2 + $0xd8] sm:$0x1]  ;;  %423 = vst [vmem:[#allocation2 + $0x100] sm:$0x80] %v422_v9  ;;  %375 = vst [vmem:[#allocation2 + $0x108] sm:$0x1] %v374_v20 }
  0x5d   : > { %8487 = vmatprep.subr.bf16.mxu1 %v10850_v43  ;;  %426 = vst [vmem:[#allocation2 + $0x118] sm:$0x80] %v425_v22  ;;  %v434_v39 = vsel %vm11529_vm5, 0, %v433_v24  ;;  %v379_v43 = vld [vmem:[#allocation2 + $0x138] sm:$0x1]  ;;  %v10875_v7 = vld [vmem:[#allocation3 + $0x1c0] sm:$0xff]  }
  0x5e   : > { %9812 = vmatpush3.bf16.msra.mxu0 %v10857_v17  ;;  %384 = vst [vmem:[#allocation2 + $0x150] sm:$0x1] %v383_v27  ;;  %435 = vst [vmem:[#allocation2 + $0x160] sm:$0x80] %v434_v39  ;;  %v380_v44 = vsel %vm11523_vm3, 0, %v379_v43  ;;  %v1128_v41 = vld [vmem:[#allocation2 + $0x40] sm:$0xff] }
  0x5f   : > { %v430_v46 = vld [vmem:[#allocation2 + $0x148] sm:$0x80]  ;;  %381 = vst [vmem:[#allocation2 + $0x138] sm:$0x1] %v380_v44  ;;  %v388_v48 = vld [vmem:[#allocation2 + $0x180] sm:$0x1] }
  0x60   : > { %8488 = vmatpush3.bf16.msra.mxu1 %v10852_v63  ;;  %v431_v47 = vsel %vm11529_vm5, 0, %v430_v46  ;;  %v439_v54 = vld [vmem:[#allocation2 + $0x190] sm:$0x80]  ;;  %v389_v50 = vsel %vm11523_vm3, 0, %v388_v48  ;;  %v385_v59 = vld [vmem:[#allocation2 + $0x168] sm:$0x1] }
  0x61   : > { %8489 = vmatprep.subr.bf16.mxu1 %v10853_v3  ;;  %432 = vst [vmem:[#allocation2 + $0x148] sm:$0x80] %v431_v47  ;;  %v440_v55 = vsel %vm11529_vm5, 0, %v439_v54  ;;  %390 = vst [vmem:[#allocation2 + $0x180] sm:$0x1] %v389_v50  ;;  %v386_v62 = vsel %vm11523_vm3, 0, %v385_v59 }
  0x62   : > { %441 = vst [vmem:[#allocation2 + $0x190] sm:$0x80] %v440_v55  ;;  %v436_v63 = vld [vmem:[#allocation2 + $0x178] sm:$0x80]  ;;  %387 = vst [vmem:[#allocation2 + $0x168] sm:$0x1] %v386_v62 }
  0x63   : > { %9778 = vmatmul.mubr.bf16.gmra.mrb[12].mxu1 %v591_v53  ;;  %v368_v53 = vsel %vm11523_vm3, 0, %v367_v52  ;;  %v437_v3 = vsel %vm11529_vm5, 0, %v436_v63  ;;  %v10860_v27 = vld [vmem:[#allocation3] sm:$0xff]   ;;  %v10861_v48 = vld [vmem:[#allocation3 + $0x48] sm:$0xff]  }
  0x64   : > { %9781 = vmatprep.mubr.bf16.mxu1 %v592_v60  ;;  %8490 = vmatpush3.bf16.msra.mxu1 %v10855_v10  ;;  %v418_v60 = vld [vmem:[#allocation2 + $0xe8] sm:$0x80]  ;;  %369 = vst [vmem:[#allocation2 + $0xd8] sm:$0x1] %v368_v53  ;;  %438 = vst [vmem:[#allocation2 + $0x178] sm:$0x80] %v437_v3 }
  0x65   : > { %8491 = vmatprep.subr.bf16.mxu1 %v10856_v13  ;;  %v11113_v10 = vmov 0   ;;  %v11599_v13 = vld [vmem:[%s13957_s4] ss:$0 sm:$0xff]  ;;  %v10876_v39 = vld [vmem:[#allocation3 + $0x180] sm:$0xff]   ;;  %v10878_v54 = vld [vmem:[#allocation3 + $0x1c8] sm:$0xff]  }
  0x66   : > { %333 = vst [vmem:[#allocation2 + $0x8] sm:$0xff] %v11113_v10 }
  0x68   : > { %8492 = vmatpush3.bf16.msra.mxu1 %v10858_v51 }
  0x69   : > { %8749 = vmatprep.subr.bf16.mxu1 %v10875_v7 }
  0x6b   : > { %9782 = vmatmul.mubr.bf16.gmra.mrb[16].mxu1 %v593_v61  ;;  %v419_v61 = vsel %vm11529_vm5, 0, %v418_v60 }
  0x6c   : > { %9785 = vmatprep.mubr.bf16.mxu1 %v594_v15  ;;  %420 = vst [vmem:[#allocation2 + $0xe8] sm:$0x80] %v419_v61  ;;  %v376_v15 = vld [vmem:[#allocation2 + $0x120] sm:$0x1]  ;;  %v1027_v61 = vld [vmem:[#allocation2 + $0x18] sm:$0xff] }
  0x73   : > { %9786 = vmatmul.mubr.bf16.gmra.mrb[20].mxu1 %v595_v16  ;;  %v427_v16 = vld [vmem:[#allocation2 + $0x130] sm:$0x80] }
  0x74   : > { %9789 = vmatprep.mubr.bf16.mxu1 %v596_v4  ;;  %v377_v4 = vsel %vm11523_vm3, 0, %v376_v15  ;;  %v428_v5 = vsel %vm11529_vm5, 0, %v427_v16  ;;  %v1125_v15 = vld [vmem:[#allocation2 + $0x28] sm:$0xff] }
  0x75   : > { %378 = vst [vmem:[#allocation2 + $0x120] sm:$0x1] %v377_v4  ;;  %429 = vst [vmem:[#allocation2 + $0x130] sm:$0x80] %v428_v5 }
  0x7b   : > { %9790 = vmatmul.mubr.bf16.gmra.mrb[24].mxu1 %v597_v36  ;;  %v361_v36 = vld [vmem:[#allocation2 + $0xa8] sm:$0x1] }
  0x7c   : > { %9793 = vmatprep.mubr.bf16.mxu1 %v598_v38  ;;  %v362_v37 = vsel %vm11523_vm3, 0, %v361_v36  ;;  %v10859_v38 = vld [vmem:[#allocation3 + $0x40] sm:$0xff]   ;;  %v11040_v36 = vld [vmem:[#allocation3 + $0x508] sm:$0xff]  }
  0x7d   : > { %363 = vst [vmem:[#allocation2 + $0xa8] sm:$0x1] %v362_v37  ;;  %8613 = vmatprep.subr.bf16.mxu0 %v10859_v38  ;;  %v1030_v38 = vld [vmem:[#allocation2 + $0x30] sm:$0xff] }
  0x83   : > { %9794 = vmatmul.mubr.bf16.gmra.mrb[28].mxu1 %v599_v42  ;;  %v371_v42 = vsel %vm11523_vm3, 0, %v370_v40  ;;  %v11043_v40 = vld [vmem:[#allocation3 + $0x510] sm:$0xff]  }
  0x84   : > { %372 = vst [vmem:[#allocation2 + $0xf0] sm:$0x1] %v371_v42 }
 0x11e   : > { %v9767_v17 = vpop.f32.mrb[0].mxu1 }
 0x11f   : > { %v714_v45 = vadd.f32 %v9767_v17, %v11599_v13  ;;  %v705_v51 = vpop.f32.mrb[1].mxu1 }
 0x120   : > { %v706_v11 = vadd.f32 %v11599_v13, %v705_v51  ;;  %v9768_v14 = vpop.f32.mrb[2].mxu1  ;;  %v1036_v51 = vld [vmem:[#allocation2 + $0x60] sm:$0xff] }
 0x121   : > { %v717_v49 = vadd.f32 %v9768_v14, %v11599_v13  ;;  %v708_v18 = vpop.f32.mrb[3].mxu1  ;;  %v834_v19 = vmax.f32 %v714_v45, 0.0 }
 0x122   : > { %v709_v56 = vadd.f32 %v11599_v13, %v708_v18  ;;  %v832_v26 = vmax.f32 %v706_v11, 0.0  ;;  %v10862_v18 = vld [vmem:[#allocation3 + $0x8] sm:$0xff]  }
 0x123   : > { %v835_v25 = vmax.f32 %v717_v49, 0.0 }
 0x124   : > { %v833_v57 = vmax.f32 %v709_v56, 0.0  ;;  %v10879_v56 = vld [vmem:[#allocation3 + $0x188] sm:$0xff]  }
 0x125   : > { %v11605_v58 = vpack.c.bf16 %v835_v25, %v834_v19  ;;  %v1134_v19 = vld [vmem:[#allocation2 + $0x70] sm:$0xff] }
 0x126   : > { %v864_v28 = vpack.c.bf16 %v833_v57, %v832_v26  ;;  %v9771_v0 = vpop.f32.mrb[4].mxu1 }
 0x127   : > { %881 = vst [vmem:[#allocation2 + $0x38] sm:$0xff] %v11605_v58  ;;  %v904_v1 = vshrl.u32 %v11605_v58, 16  ;;  %v907_v29 = vshll.u32 %v11605_v58, 16  ;;  %v730_v30 = vadd.f32 %v9771_v0, %v11599_v13  ;;  %v721_v31 = vpop.f32.mrb[5].mxu1 }
 0x128   : > { %880 = vst [vmem:[#allocation2 + $0x20] sm:$0xff] %v864_v28  ;;  %v897_v32 = vshrl.u32 %v864_v28, 16  ;;  %v900_v33 = vshll.u32 %v864_v28, 16  ;;  %v722_v34 = vadd.f32 %v11599_v13, %v721_v31  ;;  %v9772_v2 = vpop.f32.mrb[6].mxu1  ;;  %1542 = vmatprep.mubr.bf16.mxu1 %v864_v28  ;;  %v10863_v28 = vld [vmem:[#allocation3 + $0x50] sm:$0xff]  }
 0x129   : > { %v906_v35 = vrot.slane %v904_v1, 7  ;;  %v1077_v37 = vrot.slane %v907_v29, 1  ;;  %v733_v6 = vadd.f32 %v9772_v2, %v11599_v13  ;;  %v724_v8 = vpop.f32.mrb[7].mxu1  ;;  %v838_v16 = vmax.f32 %v730_v30, 0.0  ;;  %v1131_v30 = vld [vmem:[#allocation2 + $0x58] sm:$0xff] }
 0x12a   : > { %v899_v42 = vrot.slane %v897_v32, 7  ;;  %v1075_v9 = vrot.slane %v900_v33, 1  ;;  %v725_v52 = vadd.f32 %v11599_v13, %v724_v8  ;;  %v836_v20 = vmax.f32 %v722_v34, 0.0 }
 0x12b   : > { %v909_v53 = vor.u32 %v907_v29, %v906_v35  ;;  %v1078_v60 = vor.u32 %v1077_v37, %v904_v1  ;;  %v839_v4 = vmax.f32 %v733_v6, 0.0  ;;  %v1033_v29 = vld [vmem:[#allocation2 + $0x48] sm:$0xff] }
 0x12c   : > { %v902_v5 = vor.u32 %v900_v33, %v899_v42  ;;  %v1076_v12 = vor.u32 %v1075_v9, %v897_v32  ;;  %v837_v21 = vmax.f32 %v725_v52, 0.0 }
 0x12d   : > { %v11628_v22 = vsel %vm11614_vm9, %v909_v53, %v1030_v38  ;;  %v1129_v23 = vsel %vm11621_vm10, %v1078_v60, %v1128_v41  ;;  %v11632_v24 = vpack.c.bf16 %v839_v4, %v838_v16  ;;  %v10864_v38 = vld [vmem:[#allocation3 + $0x10] sm:$0xff]   ;;  %v10865_v60 = vld [vmem:[#allocation3 + $0x58] sm:$0xff]  }
 0x12e   : > { %1032 = vst [vmem:[#allocation2 + $0x30] sm:$0xff] %v11628_v22  ;;  %1130 = vst [vmem:[#allocation2 + $0x40] sm:$0xff] %v1129_v23  ;;  %v1028_v43 = vsel %vm11614_vm9, %v902_v5, %v1027_v61  ;;  %v1126_v44 = vsel %vm11621_vm10, %v1076_v12, %v1125_v15  ;;  %v11639_v46 = vpack.c.bf16 %v837_v21, %v836_v20  ;;  %v9775_v47 = vpop.f32.mrb[8].mxu1  ;;  %v10882_v41 = vld [vmem:[#allocation3 + $0x190] sm:$0xff]   ;;  %v10884_v61 = vld [vmem:[#allocation3 + $0x1d8] sm:$0xff]  }
 0x12f   : > { %1029 = vst [vmem:[#allocation2 + $0x18] sm:$0xff] %v1028_v43  ;;  %1127 = vst [vmem:[#allocation2 + $0x28] sm:$0xff] %v1126_v44  ;;  %v918_v50 = vshrl.u32 %v11632_v24, 16  ;;  %v921_v55 = vshll.u32 %v11632_v24, 16  ;;  %v746_v59 = vadd.f32 %v9775_v47, %v11599_v13  ;;  %v737_v62 = vpop.f32.mrb[9].mxu1  ;;  %1543 = vmatmul.mubr.bf16.vlgmr.msra.gmra.mrb[32].mxu1 %v1028_v43  ;;  %9813 = vmatprep.mubr.bf16.mxu0 %v1126_v44 }
 0x130   : > { %883 = vst [vmem:[#allocation2 + $0x68] sm:$0xff] %v11632_v24  ;;  %882 = vst [vmem:[#allocation2 + $0x50] sm:$0xff] %v11639_v46  ;;  %v911_v63 = vshrl.u32 %v11639_v46, 16  ;;  %v914_v3 = vshll.u32 %v11639_v46, 16  ;;  %v738_v7 = vadd.f32 %v11599_v13, %v737_v62  ;;  %v9776_v17 = vpop.f32.mrb[10].mxu1  ;;  %1550 = vmatprep.mubr.bf16.mxu1 %v11605_v58  ;;  %9814 = vmatmul.mubr.bf16.vlgmr.msra.gmra.mrb[0].mxu0 %v1129_v23  ;;  %v10881_v58 = vld [vmem:[#allocation3 + $0x1d0] sm:$0xff]  }
 0x131   : > { %v920_v45 = vrot.slane %v918_v50, 7  ;;  %v1081_v11 = vrot.slane %v921_v55, 1  ;;  %v749_v14 = vadd.f32 %v9776_v17, %v11599_v13  ;;  %v740_v49 = vpop.f32.mrb[11].mxu1  ;;  %8614 = vmatpush3.bf16.msra.mxu0 %v10860_v27  ;;  %8750 = vmatpush3.bf16.msra.mxu1 %v10876_v39  ;;  %v842_v31 = vmax.f32 %v746_v59, 0.0  ;;  %v1042_v39 = vld [vmem:[#allocation2 + $0x90] sm:$0xff]  ;;  %v1137_v17 = vld [vmem:[#allocation2 + $0x88] sm:$0xff] }
 0x132   : > { %v913_v25 = vrot.slane %v911_v63, 7  ;;  %v1079_v26 = vrot.slane %v914_v3, 1  ;;  %v741_v57 = vadd.f32 %v11599_v13, %v740_v49  ;;  %8615 = vmatprep.subr.bf16.mxu0 %v10861_v48  ;;  %8751 = vmatprep.subr.bf16.mxu1 %v10878_v54  ;;  %v840_v2 = vmax.f32 %v738_v7, 0.0  ;;  %v10885_v48 = vld [vmem:[#allocation3 + $0x198] sm:$0xff]   ;;  %v1140_v54 = vld [vmem:[#allocation2 + $0xa0] sm:$0xff]  ;;  %v10867_v62 = vld [vmem:[#allocation3 + $0x60] sm:$0xff]  }
 0x133   : > { %v923_v0 = vor.u32 %v921_v55, %v920_v45  ;;  %v1082_v1 = vor.u32 %v1081_v11, %v918_v50  ;;  %v843_v32 = vmax.f32 %v749_v14, 0.0  ;;  %v1039_v7 = vld [vmem:[#allocation2 + $0x78] sm:$0xff] }
 0x134   : > { %v916_v33 = vor.u32 %v914_v3, %v913_v25  ;;  %v1080_v34 = vor.u32 %v1079_v26, %v911_v63  ;;  %v841_v35 = vmax.f32 %v741_v57, 0.0  ;;  %v10868_v26 = vld [vmem:[#allocation3 + $0x20] sm:$0xff]  }
 0x135   : > { %v11654_v37 = vsel %vm11614_vm9, %v923_v0, %v1036_v51  ;;  %v1135_v6 = vsel %vm11621_vm10, %v1082_v1, %v1134_v19  ;;  %v11658_v8 = vpack.c.bf16 %v843_v32, %v842_v31  ;;  %8616 = vmatpush3.bf16.msra.mxu0 %v10862_v18  ;;  %8752 = vmatpush3.bf16.msra.mxu1 %v10879_v56  ;;  %v10888_v57 = vld [vmem:[#allocation3 + $0x1a0] sm:$0xff]  }
 0x136   : > { %1038 = vst [vmem:[#allocation2 + $0x60] sm:$0xff] %v11654_v37  ;;  %1136 = vst [vmem:[#allocation2 + $0x70] sm:$0xff] %v1135_v6  ;;  %v11663_v42 = vsel %vm11614_vm9, %v916_v33, %v1033_v29  ;;  %v1132_v9 = vsel %vm11621_vm10, %v1080_v34, %v1131_v30  ;;  %v11667_v52 = vpack.c.bf16 %v841_v35, %v840_v2  ;;  %v9779_v53 = vpop.f32.mrb[12].mxu1  ;;  %8617 = vmatprep.subr.bf16.mxu0 %v10863_v28  ;;  %v10869_v29 = vld [vmem:[#allocation3 + $0x68] sm:$0xff]  }
 0x137   : > { %8753 = vmatprep.subr.bf16.mxu1 %v10881_v58  ;;  %1035 = vst [vmem:[#allocation2 + $0x48] sm:$0xff] %v11663_v42  ;;  %1133 = vst [vmem:[#allocation2 + $0x58] sm:$0xff] %v1132_v9  ;;  %v932_v15 = vshrl.u32 %v11658_v8, 16  ;;  %v935_v16 = vshll.u32 %v11658_v8, 16  ;;  %v762_v4 = vadd.f32 %v9779_v53, %v11599_v13  ;;  %v753_v5 = vpop.f32.mrb[13].mxu1  ;;  %1551 = vmatmul.mubr.bf16.gmra.mrb[36].mxu1 %v11628_v22  ;;  %v10866_v22 = vld [vmem:[#allocation3 + $0x18] sm:$0xff]  }
 0x138   : > { %885 = vst [vmem:[#allocation2 + $0x98] sm:$0xff] %v11658_v8  ;;  %9817 = vmatprep.mubr.bf16.mxu0 %v1132_v9  ;;  %884 = vst [vmem:[#allocation2 + $0x80] sm:$0xff] %v11667_v52  ;;  %v925_v12 = vshrl.u32 %v11667_v52, 16  ;;  %v928_v20 = vshll.u32 %v11667_v52, 16  ;;  %v754_v21 = vadd.f32 %v11599_v13, %v753_v5  ;;  %v9780_v23 = vpop.f32.mrb[14].mxu1  ;;  %1558 = vmatprep.mubr.bf16.mxu1 %v11639_v46  ;;  %v10887_v46 = vld [vmem:[#allocation3 + $0x1e0] sm:$0xff]  }
 0x139   : > { %9818 = vmatmul.mubr.bf16.gmra.mrb[4].mxu0 %v1135_v6  ;;  %v934_v27 = vrot.slane %v932_v15, 7  ;;  %v1085_v43 = vrot.slane %v935_v16, 1  ;;  %v765_v44 = vadd.f32 %v9780_v23, %v11599_v13  ;;  %v756_v47 = vpop.f32.mrb[15].mxu1  ;;  %8754 = vmatpush3.bf16.msra.mxu1 %v10882_v41  ;;  %v846_v45 = vmax.f32 %v762_v4, 0.0  ;;  %v10889_v30 = vld [vmem:[#allocation3 + $0x1e8] sm:$0xff]   ;;  %v1048_v9 = vld [vmem:[#allocation2 + $0xc0] sm:$0xff] }
 0x13a   : > { %8618 = vmatpush3.bf16.msra.mxu0 %v10864_v38  ;;  %v927_v50 = vrot.slane %v925_v12, 7  ;;  %v1083_v55 = vrot.slane %v928_v20, 1  ;;  %v757_v59 = vadd.f32 %v11599_v13, %v756_v47  ;;  %8755 = vmatprep.subr.bf16.mxu1 %v10884_v61  ;;  %v844_v49 = vmax.f32 %v754_v21, 0.0 }
 0x13b   : > { %8619 = vmatprep.subr.bf16.mxu0 %v10865_v60  ;;  %v937_v63 = vor.u32 %v935_v16, %v934_v27  ;;  %v1086_v3 = vor.u32 %v1085_v43, %v932_v15  ;;  %v847_v51 = vmax.f32 %v765_v44, 0.0  ;;  %v10890_v15 = vld [vmem:[#allocation3 + $0x1a8] sm:$0xff]   ;;  %v1146_v16 = vld [vmem:[#allocation2 + $0xd0] sm:$0xff]  ;;  %v1045_v27 = vld [vmem:[#allocation2 + $0xa8] sm:$0xff] }
 0x13c   : > { %v930_v11 = vor.u32 %v928_v20, %v927_v50  ;;  %v1084_v14 = vor.u32 %v1083_v55, %v925_v12  ;;  %v845_v18 = vmax.f32 %v757_v59, 0.0  ;;  %v10871_v20 = vld [vmem:[#allocation3 + $0x70] sm:$0xff]  }
 0x13d   : > { %v11684_v56 = vsel %vm11614_vm9, %v937_v63, %v1042_v39  ;;  %v1141_v19 = vsel %vm11621_vm10, %v1086_v3, %v1140_v54  ;;  %v11688_v25 = vpack.c.bf16 %v847_v51, %v846_v45  ;;  %8756 = vmatpush3.bf16.msra.mxu1 %v10885_v48  ;;  %v1143_v39 = vld [vmem:[#allocation2 + $0xb8] sm:$0xff]  ;;  %v10873_v45 = vld [vmem:[#allocation3 + $0x78] sm:$0xff]  }
 0x13e   : > { %8620 = vmatpush3.bf16.msra.mxu0 %v10866_v22  ;;  %1044 = vst [vmem:[#allocation2 + $0x90] sm:$0xff] %v11684_v56  ;;  %1142 = vst [vmem:[#allocation2 + $0xa0] sm:$0xff] %v1141_v19  ;;  %v11693_v28 = vsel %vm11614_vm9, %v930_v11, %v1039_v7  ;;  %v1138_v58 = vsel %vm11621_vm10, %v1084_v14, %v1137_v17  ;;  %v11697_v0 = vpack.c.bf16 %v845_v18, %v844_v49  ;;  %v9783_v1 = vpop.f32.mrb[16].mxu1  ;;  %v10893_v51 = vld [vmem:[#allocation3 + $0x1f8] sm:$0xff]  }
 0x13f   : > { %8621 = vmatprep.subr.bf16.mxu0 %v10867_v62  ;;  %8757 = vmatprep.subr.bf16.mxu1 %v10887_v46  ;;  %1041 = vst [vmem:[#allocation2 + $0x78] sm:$0xff] %v11693_v28  ;;  %1139 = vst [vmem:[#allocation2 + $0x88] sm:$0xff] %v1138_v58  ;;  %v946_v31 = vshrl.u32 %v11688_v25, 16  ;;  %v949_v32 = vshll.u32 %v11688_v25, 16  ;;  %v778_v33 = vadd.f32 %v9783_v1, %v11599_v13  ;;  %v769_v34 = vpop.f32.mrb[17].mxu1  ;;  %v10872_v62 = vld [vmem:[#allocation3 + $0x30] sm:$0xff]  }
 0x140   : > { %887 = vst [vmem:[#allocation2 + $0xc8] sm:$0xff] %v11688_v25  ;;  %1559 = vmatmul.mubr.bf16.gmra.mrb[40].mxu1 %v11663_v42  ;;  %9821 = vmatprep.mubr.bf16.mxu0 %v1138_v58  ;;  %886 = vst [vmem:[#allocation2 + $0xb0] sm:$0xff] %v11697_v0  ;;  %v939_v2 = vshrl.u32 %v11697_v0, 16  ;;  %v942_v35 = vshll.u32 %v11697_v0, 16  ;;  %v770_v6 = vadd.f32 %v11599_v13, %v769_v34  ;;  %v9784_v38 = vpop.f32.mrb[18].mxu1  ;;  %v10870_v42 = vld [vmem:[#allocation3 + $0x28] sm:$0xff]  }
 0x141   : > { %1566 = vmatprep.mubr.bf16.mxu1 %v11632_v24  ;;  %9822 = vmatmul.mubr.bf16.gmra.mrb[8].mxu0 %v1141_v19  ;;  %v948_v41 = vrot.slane %v946_v31, 7  ;;  %v1089_v53 = vrot.slane %v949_v32, 1  ;;  %v781_v60 = vadd.f32 %v9784_v38, %v11599_v13  ;;  %v772_v61 = vpop.f32.mrb[19].mxu1  ;;  %v10891_v24 = vld [vmem:[#allocation3 + $0x1f0] sm:$0xff]   ;;  %v850_v43 = vmax.f32 %v778_v33, 0.0  ;;  %v1054_v33 = vld [vmem:[#allocation2 + $0xf0] sm:$0xff] }
 0x142   : > { %8622 = vmatpush3.bf16.msra.mxu0 %v10868_v26  ;;  %8758 = vmatpush3.bf16.msra.mxu1 %v10888_v57  ;;  %v941_v4 = vrot.slane %v939_v2, 7  ;;  %v1087_v5 = vrot.slane %v942_v35, 1  ;;  %v773_v12 = vadd.f32 %v11599_v13, %v772_v61  ;;  %v848_v48 = vmax.f32 %v770_v6, 0.0  ;;  %v10892_v46 = vld [vmem:[#allocation3 + $0x1b0] sm:$0xff]   ;;  %v11741_v38 = vld [vmem:[#allocation3 + $0x80] sm:$0xff]  }
 0x143   : > { %8623 = vmatprep.subr.bf16.mxu0 %v10869_v29  ;;  %8759 = vmatprep.subr.bf16.mxu1 %v10889_v30  ;;  %v951_v21 = vor.u32 %v949_v32, %v948_v41  ;;  %v1090_v23 = vor.u32 %v1089_v53, %v946_v31  ;;  %v851_v44 = vmax.f32 %v781_v60, 0.0  ;;  %v10874_v32 = vld [vmem:[#allocation3 + $0x38] sm:$0xff]   ;;  %v1152_v34 = vld [vmem:[#allocation2 + $0x100] sm:$0xff]  ;;  %v1051_v53 = vld [vmem:[#allocation2 + $0xd8] sm:$0xff] }
 0x144   : > { %v944_v47 = vor.u32 %v942_v35, %v941_v4  ;;  %v1088_v22 = vor.u32 %v1087_v5, %v939_v2  ;;  %v849_v54 = vmax.f32 %v773_v12, 0.0  ;;  %v1149_v60 = vld [vmem:[#allocation2 + $0xe8] sm:$0xff] }
 0x145   : > { %v11714_v50 = vsel %vm11614_vm9, %v951_v21, %v1048_v9  ;;  %v1147_v55 = vsel %vm11621_vm10, %v1090_v23, %v1146_v16  ;;  %v11718_v59 = vpack.c.bf16 %v851_v44, %v850_v43 }
 0x146   : > { %8624 = vmatpush3.bf16.msra.mxu0 %v10870_v42  ;;  %8760 = vmatpush3.bf16.msra.mxu1 %v10890_v15  ;;  %1050 = vst [vmem:[#allocation2 + $0xc0] sm:$0xff] %v11714_v50  ;;  %1148 = vst [vmem:[#allocation2 + $0xd0] sm:$0xff] %v1147_v55  ;;  %v11723_v63 = vsel %vm11614_vm9, %v944_v47, %v1045_v27  ;;  %v1144_v3 = vsel %vm11621_vm10, %v1088_v22, %v1143_v39  ;;  %v9787_v17 = vpop.f32.mrb[20].mxu1 }
 0x147   : > { %v11727_v7 = vpack.c.bf16 %v849_v54, %v848_v48  ;;  %8625 = vmatprep.subr.bf16.mxu0 %v10871_v20  ;;  %8761 = vmatprep.subr.bf16.mxu1 %v10891_v24  ;;  %1047 = vst [vmem:[#allocation2 + $0xa8] sm:$0xff] %v11723_v63  ;;  %1145 = vst [vmem:[#allocation2 + $0xb8] sm:$0xff] %v1144_v3  ;;  %v960_v11 = vshrl.u32 %v11718_v59, 16  ;;  %v963_v14 = vshll.u32 %v11718_v59, 16  ;;  %v785_v18 = vpop.f32.mrb[21].mxu1 }
 0x148   : > { %889 = vst [vmem:[#allocation2 + $0xf8] sm:$0xff] %v11718_v59  ;;  %v794_v49 = vadd.f32 %v9787_v17, %v11599_v13  ;;  %1567 = vmatmul.mubr.bf16.gmra.mrb[44].mxu1 %v11654_v37  ;;  %9825 = vmatprep.mubr.bf16.mxu0 %v1144_v3  ;;  %v786_v57 = vadd.f32 %v11599_v13, %v785_v18  ;;  %v9788_v58 = vpop.f32.mrb[22].mxu1  ;;  %v10894_v37 = vld [vmem:[#allocation3 + $0x1b8] sm:$0xff]  }
 0x149   : > { %v953_v19 = vshrl.u32 %v11727_v7, 16  ;;  %v956_v26 = vshll.u32 %v11727_v7, 16  ;;  %1574 = vmatprep.mubr.bf16.mxu1 %v11667_v52  ;;  %9826 = vmatmul.mubr.bf16.gmra.mrb[12].mxu0 %v1147_v55  ;;  %v962_v1 = vrot.slane %v960_v11, 7  ;;  %v1093_v29 = vrot.slane %v963_v14, 1  ;;  %v788_v31 = vpop.f32.mrb[23].mxu1 }
 0x14a   : > { %v797_v30 = vadd.f32 %v9788_v58, %v11599_v13  ;;  %8626 = vmatpush3.bf16.msra.mxu0 %v10872_v62  ;;  %8762 = vmatpush3.bf16.msra.mxu1 %v10892_v46  ;;  %v789_v6 = vadd.f32 %v11599_v13, %v788_v31  ;;  %v854_v61 = vmax.f32 %v794_v49, 0.0  ;;  %v852_v4 = vmax.f32 %v786_v57, 0.0  ;;  %v1057_v57 = vld [vmem:[#allocation2 + $0x108] sm:$0xff]  ;;  %v1155_v58 = vld [vmem:[#allocation2 + $0x118] sm:$0xff] }
 0x14b   : > { %v955_v2 = vrot.slane %v953_v19, 7  ;;  %v1091_v35 = vrot.slane %v956_v26, 1  ;;  %8627 = vmatprep.subr.bf16.mxu0 %v10873_v45  ;;  %8763 = vmatprep.subr.bf16.mxu1 %v10893_v51  ;;  %v965_v41 = vor.u32 %v963_v14, %v962_v1  ;;  %v1094_v9 = vor.u32 %v1093_v29, %v960_v11  ;;  %v1060_v51 = vld [vmem:[#allocation2 + $0x120] sm:$0xff]  ;;  %v1158_v11 = vld [vmem:[#allocation2 + $0x130] sm:$0xff] }
 0x14c   : > { %v855_v42 = vmax.f32 %v797_v30, 0.0  ;;  %v853_v5 = vmax.f32 %v789_v6, 0.0 }
 0x14d   : > { %v958_v15 = vor.u32 %v956_v26, %v955_v2  ;;  %v1092_v16 = vor.u32 %v1091_v35, %v953_v19  ;;  %v11745_v12 = vsel %vm11614_vm9, %v965_v41, %v1054_v33  ;;  %v1153_v20 = vsel %vm11621_vm10, %v1094_v9, %v1152_v34 }
 0x14e   : > { %v11749_v24 = vpack.c.bf16 %v855_v42, %v854_v61  ;;  %8628 = vmatpush3.bf16.msra.mxu0 %v10874_v32  ;;  %8764 = vmatpush3.bf16.msra.mxu1 %v10894_v37  ;;  %1056 = vst [vmem:[#allocation2 + $0xf0] sm:$0xff] %v11745_v12  ;;  %1154 = vst [vmem:[#allocation2 + $0x100] sm:$0xff] %v1153_v20  ;;  %v11758_v27 = vpack.c.bf16 %v853_v5, %v852_v4  ;;  %v9791_v39 = vpop.f32.mrb[24].mxu1 }
 0x14f   : > { %v11754_v21 = vsel %vm11614_vm9, %v958_v15, %v1051_v53  ;;  %v1150_v23 = vsel %vm11621_vm10, %v1092_v16, %v1149_v60  ;;  %9845 = vmatprep.subr.bf16.mxu0 %v11741_v38  ;;  %v810_v47 = vadd.f32 %v9791_v39, %v11599_v13  ;;  %v801_v22 = vpop.f32.mrb[25].mxu1 }
 0x150   : > { %1053 = vst [vmem:[#allocation2 + $0xd8] sm:$0xff] %v11754_v21  ;;  %1151 = vst [vmem:[#allocation2 + $0xe8] sm:$0xff] %v1150_v23  ;;  %v974_v43 = vshrl.u32 %v11749_v24, 16  ;;  %v977_v44 = vshll.u32 %v11749_v24, 16  ;;  %1575 = vmatmul.mubr.bf16.gmra.mrb[48].mxu1 %v11693_v28  ;;  %9829 = vmatprep.mubr.bf16.mxu0 %v1150_v23  ;;  %v967_v48 = vshrl.u32 %v11758_v27, 16  ;;  %v970_v54 = vshll.u32 %v11758_v27, 16 }
 0x151   : > { %v802_v55 = vadd.f32 %v11599_v13, %v801_v22  ;;  %v9792_v62 = vpop.f32.mrb[26].mxu1  ;;  %1582 = vmatprep.mubr.bf16.mxu1 %v11658_v8  ;;  %9830 = vmatmul.mubr.bf16.gmra.mrb[16].mxu0 %v1153_v20  ;;  %v858_v1 = vmax.f32 %v810_v47, 0.0 }
 0x152   : > { %v976_v46 = vrot.slane %v974_v43, 7  ;;  %v1097_v3 = vrot.slane %v977_v44, 1  ;;  %v813_v17 = vadd.f32 %v9792_v62, %v11599_v13  ;;  %v804_v45 = vpop.f32.mrb[27].mxu1  ;;  %v969_v14 = vrot.slane %v967_v48, 7  ;;  %v1161_v62 = vld [vmem:[#allocation2 + $0x148] sm:$0xff] }
 0x153   : > { %v1095_v49 = vrot.slane %v970_v54, 1  ;;  %v805_v18 = vadd.f32 %v11599_v13, %v804_v45  ;;  %v856_v31 = vmax.f32 %v802_v55, 0.0  ;;  %v1063_v55 = vld [vmem:[#allocation2 + $0x138] sm:$0xff] }
 0x154   : > { %v979_v19 = vor.u32 %v977_v44, %v976_v46  ;;  %v1098_v26 = vor.u32 %v1097_v3, %v974_v43  ;;  %v859_v29 = vmax.f32 %v813_v17, 0.0  ;;  %v972_v30 = vor.u32 %v970_v54, %v969_v14  ;;  %v1066_v43 = vld [vmem:[#allocation2 + $0x150] sm:$0xff]  ;;  %v1164_v44 = vld [vmem:[#allocation2 + $0x160] sm:$0xff] }
 0x155   : > { %v1096_v8 = vor.u32 %v1095_v49, %v967_v48  ;;  %v857_v32 = vmax.f32 %v805_v18, 0.0 }
 0x156   : > { %v11774_v37 = vsel %vm11614_vm9, %v979_v19, %v1060_v51  ;;  %v1159_v33 = vsel %vm11621_vm10, %v1098_v26, %v1158_v11  ;;  %v11778_v34 = vpack.c.bf16 %v859_v29, %v858_v1  ;;  %v11783_v2 = vsel %vm11614_vm9, %v972_v30, %v1057_v57  ;;  %v9795_v41 = vpop.f32.mrb[28].mxu1 }
 0x157   : > { %1062 = vst [vmem:[#allocation2 + $0x120] sm:$0xff] %v11774_v37  ;;  %1160 = vst [vmem:[#allocation2 + $0x130] sm:$0xff] %v1159_v33  ;;  %v1156_v35 = vsel %vm11621_vm10, %v1096_v8, %v1155_v58  ;;  %v11787_v6 = vpack.c.bf16 %v857_v32, %v856_v31  ;;  %v826_v60 = vadd.f32 %v9795_v41, %v11599_v13  ;;  %v817_v61 = vpop.f32.mrb[29].mxu1  ;;  %v1072_v31 = vld [vmem:[#allocation2 + $0x180] sm:$0xff]  ;;  %v1170_v32 = vld [vmem:[#allocation2 + $0x190] sm:$0xff] }
 0x158   : > { %1059 = vst [vmem:[#allocation2 + $0x108] sm:$0xff] %v11783_v2  ;;  %1157 = vst [vmem:[#allocation2 + $0x118] sm:$0xff] %v1156_v35  ;;  %v988_v9 = vshrl.u32 %v11778_v34, 16  ;;  %v991_v53 = vshll.u32 %v11778_v34, 16  ;;  %1583 = vmatmul.mubr.bf16.gmra.mrb[52].mxu1 %v11684_v56  ;;  %9833 = vmatprep.mubr.bf16.mxu0 %v1156_v35  ;;  %v818_v16 = vadd.f32 %v11599_v13, %v817_v61  ;;  %v9796_v4 = vpop.f32.mrb[30].mxu1 }
 0x159   : > { %v981_v42 = vshrl.u32 %v11787_v6, 16  ;;  %v984_v15 = vshll.u32 %v11787_v6, 16  ;;  %1590 = vmatprep.mubr.bf16.mxu1 %v11697_v0  ;;  %9834 = vmatmul.mubr.bf16.gmra.mrb[20].mxu0 %v1159_v33  ;;  %v829_v23 = vadd.f32 %v9796_v4, %v11599_v13  ;;  %v820_v39 = vpop.f32.mrb[31].mxu1  ;;  %v862_v46 = vmax.f32 %v826_v60, 0.0  ;;  %v1167_v60 = vld [vmem:[#allocation2 + $0x178] sm:$0xff] }
 0x15a   : > { %v990_v5 = vrot.slane %v988_v9, 7  ;;  %v1101_v20 = vrot.slane %v991_v53, 1  ;;  %v821_v22 = vadd.f32 %v11599_v13, %v820_v39  ;;  %v860_v51 = vmax.f32 %v818_v16, 0.0  ;;  %v10886_v39 = vld [vmem:[#allocation3 + $0x98] sm:$0xff]  }
 0x15b   : > { %v983_v47 = vrot.slane %v981_v42, 7  ;;  %v1099_v56 = vrot.slane %v984_v15, 1  ;;  %v863_v3 = vmax.f32 %v829_v23, 0.0  ;;  %v1177_v23 = vld [vmem:[#allocation2 + $0x20] sm:$0xff] }
 0x15c   : > { %v993_v48 = vor.u32 %v991_v53, %v990_v5  ;;  %v1102_v54 = vor.u32 %v1101_v20, %v988_v9  ;;  %v861_v11 = vmax.f32 %v821_v22, 0.0  ;;  %v1069_v53 = vld [vmem:[#allocation2 + $0x168] sm:$0xff]  ;;  %v10880_v20 = vld [vmem:[#allocation3 + $0x88] sm:$0xff]   ;;  %v10897_v22 = vld [vmem:[#allocation3 + $0xb0] sm:$0xff]  }
 0x15d   : > { %v986_v17 = vor.u32 %v984_v15, %v983_v47  ;;  %v1100_v45 = vor.u32 %v1099_v56, %v981_v42  ;;  %v11808_v18 = vpack.c.bf16 %v863_v3, %v862_v46  ;;  %v1179_v47 = vld [vmem:[#allocation2 + $0x30] sm:$0xff]  ;;  %v1185_v46 = vld [vmem:[#allocation2 + $0x60] sm:$0xff]  ;;  %v1192_v3 = vld [vmem:[#allocation2 + $0x98] sm:$0xff] }
 0x15e   : > { %v11802_v14 = vsel %vm11614_vm9, %v993_v48, %v1066_v43  ;;  %v11806_v49 = vsel %vm11621_vm10, %v1102_v54, %v1164_v44  ;;  %v11820_v26 = vpack.c.bf16 %v861_v11, %v860_v51  ;;  %v1176_v43 = vld [vmem:[#allocation2 + $0x18] sm:$0xff]  ;;  %v1183_v56 = vld [vmem:[#allocation2 + $0x50] sm:$0xff]  ;;  %v10898_v48 = vld [vmem:[#allocation3 + $0xb8] sm:$0xff]  }
 0x15f   : > { %1068 = vst [vmem:[#allocation2 + $0x150] sm:$0xff] %v11802_v14  ;;  %1166 = vst [vmem:[#allocation2 + $0x160] sm:$0xff] %v11806_v49  ;;  %v11814_v13 = vsel %vm11614_vm9, %v986_v17, %v1063_v55  ;;  %v11818_v19 = vsel %vm11621_vm10, %v1100_v45, %v1161_v62  ;;  %v1002_v57 = vshrl.u32 %v11808_v18, 16  ;;  %v1005_v58 = vshll.u32 %v11808_v18, 16  ;;  %v1180_v44 = vld [vmem:[#allocation2 + $0x38] sm:$0xff]  ;;  %v1182_v54 = vld [vmem:[#allocation2 + $0x48] sm:$0xff] }
 0x160   : > { %1065 = vst [vmem:[#allocation2 + $0x138] sm:$0xff] %v11814_v13  ;;  %1163 = vst [vmem:[#allocation2 + $0x148] sm:$0xff] %v11818_v19  ;;  %1591 = vmatmul.mubr.bf16.gmra.mrb[56].mxu1 %v11723_v63  ;;  %9837 = vmatprep.mubr.bf16.mxu0 %v11818_v19  ;;  %v995_v1 = vshrl.u32 %v11820_v26, 16  ;;  %v998_v29 = vshll.u32 %v11820_v26, 16  ;;  %v1186_v55 = vld [vmem:[#allocation2 + $0x68] sm:$0xff]  ;;  %v11863_v62 = vld [vmem:[#allocation3 + $0x200] sm:$0xff]  }
 0x161   : > { %1598 = vmatprep.mubr.bf16.mxu1 %v11688_v25  ;;  %9838 = vmatmul.mubr.bf16.gmra.mrb[24].mxu0 %v11806_v49  ;;  %v1004_v30 = vrot.slane %v1002_v57, 7  ;;  %v1105_v8 = vrot.slane %v1005_v58, 1  ;;  %v1191_v17 = vld [vmem:[#allocation2 + $0x90] sm:$0xff]  ;;  %v11894_v45 = vld [vmem:[#allocation2 + $0x8] sm:$0xff]  ;;  %v10900_v11 = vld [vmem:[#allocation3 + $0x208] sm:$0xff]  }
 0x162   : > { %v997_v33 = vrot.slane %v995_v1, 7  ;;  %v1103_v35 = vrot.slane %v998_v29, 1  ;;  %v2323_v51 = vld [vmem:[#allocation2 + $0xf0] sm:$0xff] }
 0x163   : > { %v1007_v41 = vor.u32 %v1005_v58, %v1004_v30  ;;  %v1106_v9 = vor.u32 %v1105_v8, %v1002_v57  ;;  %v1178_v57 = vld [vmem:[#allocation2 + $0x28] sm:$0xff]  ;;  %v10904_v30 = vld [vmem:[#allocation3 + $0x228] sm:$0xff]  }
 0x164   : > { %v1000_v61 = vor.u32 %v998_v29, %v997_v33  ;;  %v1104_v42 = vor.u32 %v1103_v35, %v995_v1  ;;  %v10902_v58 = vld [vmem:[#allocation3 + $0x218] sm:$0xff]   ;;  %v11903_v1 = vld [vmem:[#allocation2 + $0x58] sm:$0xff]  ;;  %v10903_v29 = vld [vmem:[#allocation3 + $0x220] sm:$0xff]  }
 0x165   : > { %v11834_v15 = vsel %vm11614_vm9, %v1007_v41, %v1072_v31  ;;  %v1171_v16 = vsel %vm11621_vm10, %v1106_v9, %v1170_v32  ;;  %v11911_v8 = vld [vmem:[#allocation2 + $0x88] sm:$0xff]  ;;  %v10905_v31 = vld [vmem:[#allocation3 + $0x230] sm:$0xff]  }
 0x166   : > { %1074 = vst [vmem:[#allocation2 + $0x180] sm:$0xff] %v11834_v15  ;;  %1172 = vst [vmem:[#allocation2 + $0x190] sm:$0xff] %v1171_v16  ;;  %v11841_v4 = vsel %vm11614_vm9, %v1000_v61, %v1069_v53  ;;  %v11845_v5 = vsel %vm11621_vm10, %v1104_v42, %v1167_v60  ;;  %v10906_v9 = vld [vmem:[#allocation3 + $0x238] sm:$0xff]   ;;  %v11927_v53 = vld [vmem:[#allocation2 + $0xd0] sm:$0xff] }
 0x167   : > { %1071 = vst [vmem:[#allocation2 + $0x168] sm:$0xff] %v11841_v4  ;;  %1169 = vst [vmem:[#allocation2 + $0x178] sm:$0xff] %v11845_v5  ;;  %9841 = vmatprep.mubr.bf16.mxu0 %v11845_v5 }
 0x168   : > { %1599 = vmatmul.mubr.bf16.gmra.mrb[60].mxu1 %v11714_v50  ;;  %v10883_v50 = vld [vmem:[#allocation3 + $0x90] sm:$0xff]  }
 0x169   : > { %1606 = vmatprep.mubr.bf16.mxu1 %v11727_v7  ;;  %9842 = vmatmul.mubr.bf16.gmra.mrb[28].mxu0 %v1171_v16 }
 0x16a   : > { %2008 = vmatprep.mubr.bf16.mxu0 %v11113_v10 }
 0x170   : > { %1607 = vmatmul.mubr.bf16.gmra.mrb[64].mxu1 %v11754_v21 }
 0x171   : > { %1614 = vmatprep.mubr.bf16.mxu1 %v11718_v59  ;;  %2009 = vmatmul.mubr.bf16.vlgmr.msra.gmra.mrb[32].mxu0 %v11113_v10  ;;  %v10895_v10 = vld [vmem:[#allocation3 + $0xa0] sm:$0xff]  }
 0x172   : > { %9846 = vmatpush3.bf16.msra.mxu0 %v11741_v38  ;;  %2016 = vmatprep.mubr.bf16.mxu0 %v1177_v23  ;;  %v10896_v38 = vld [vmem:[#allocation3 + $0xa8] sm:$0xff]   ;;  %v11935_v23 = vld [vmem:[#allocation2 + $0xe8] sm:$0xff] }
 0x173   : > { %9847 = vmatprep.subr.bf16.mxu0 %v10880_v20 }
 0x176   : > { %9848 = vmatpush3.bf16.msra.mxu0 %v10880_v20 }
 0x177   : > { %9849 = vmatprep.subr.bf16.mxu0 %v10883_v50 }
 0x178   : > { %1615 = vmatmul.mubr.bf16.gmra.mrb[68].mxu1 %v11745_v12 }
 0x179   : > { %1622 = vmatprep.mubr.bf16.mxu1 %v11758_v27  ;;  %2017 = vmatmul.mubr.bf16.gmra.mrb[36].mxu0 %v1176_v43 }
 0x17a   : > { %2024 = vmatprep.mubr.bf16.mxu0 %v1180_v44  ;;  %9850 = vmatpush3.bf16.msra.mxu0 %v10883_v50 }
 0x17b   : > { %9851 = vmatprep.subr.bf16.mxu0 %v10886_v39 }
 0x17e   : > { %9852 = vmatpush3.bf16.msra.mxu0 %v10886_v39 }
 0x17f   : > { %9853 = vmatprep.subr.bf16.mxu0 %v10895_v10 }
 0x180   : > { %1623 = vmatmul.mubr.bf16.gmra.mrb[72].mxu1 %v11783_v2 }
 0x181   : > { %1630 = vmatprep.mubr.bf16.mxu1 %v11749_v24  ;;  %2025 = vmatmul.mubr.bf16.gmra.mrb[40].mxu0 %v1179_v47 }
 0x182   : > { %2032 = vmatprep.mubr.bf16.mxu0 %v1183_v56  ;;  %9854 = vmatpush3.bf16.msra.mxu0 %v10895_v10 }
 0x183   : > { %9855 = vmatprep.subr.bf16.mxu0 %v10896_v38 }
 0x186   : > { %9856 = vmatpush3.bf16.msra.mxu0 %v10896_v38 }
 0x187   : > { %9857 = vmatprep.subr.bf16.mxu0 %v10897_v22 }
 0x188   : > { %1631 = vmatmul.mubr.bf16.gmra.mrb[76].mxu1 %v11774_v37 }
 0x189   : > { %1638 = vmatprep.mubr.bf16.mxu1 %v11787_v6  ;;  %2033 = vmatmul.mubr.bf16.gmra.mrb[44].mxu0 %v1182_v54 }
 0x18a   : > { %2040 = vmatprep.mubr.bf16.mxu0 %v1186_v55  ;;  %9858 = vmatpush3.bf16.msra.mxu0 %v10897_v22 }
 0x18b   : > { %9859 = vmatprep.subr.bf16.mxu0 %v10898_v48 }
 0x18e   : > { %9860 = vmatpush3.bf16.msra.mxu0 %v10898_v48 }
 0x18f   : > { %9893 = vmatprep.subr.bf16.mxu0 %v11863_v62 }
 0x190   : > { %1639 = vmatmul.mubr.bf16.gmra.mrb[80].mxu1 %v11814_v13 }
 0x191   : > { %1646 = vmatprep.mubr.bf16.mxu1 %v11778_v34  ;;  %2041 = vmatmul.mubr.bf16.gmra.mrb[48].mxu0 %v1185_v46 }
 0x192   : > { %2048 = vmatprep.mubr.bf16.mxu0 %v11667_v52  ;;  %v1197_v52 = vld [vmem:[#allocation2 + $0xc0] sm:$0xff] }
 0x198   : > { %1647 = vmatmul.mubr.bf16.gmra.mrb[84].mxu1 %v11802_v14 }
 0x199   : > { %1654 = vmatprep.mubr.bf16.mxu1 %v11820_v26  ;;  %2049 = vmatmul.mubr.bf16.gmra.mrb[52].mxu0 %v11693_v28  ;;  %v2309_v28 = vld [vmem:[#allocation2 + $0x80] sm:$0xff] }
 0x19a   : > { %2056 = vmatprep.mubr.bf16.mxu0 %v1192_v3 }
 0x1a0   : > { %1655 = vmatmul.mubr.bf16.gmra.mrb[88].mxu1 %v11841_v4 }
 0x1a1   : > { %1662 = vmatprep.mubr.bf16.mxu1 %v11808_v18  ;;  %2057 = vmatmul.mubr.bf16.gmra.mrb[56].mxu0 %v1191_v17 }
 0x1a2   : > { %2064 = vmatprep.mubr.bf16.mxu0 %v11697_v0  ;;  %v2315_v0 = vld [vmem:[#allocation2 + $0xb0] sm:$0xff] }
 0x1a8   : > { %1663 = vmatmul.mubr.bf16.gmra.mrb[92].mxu1 %v11834_v15 }
 0x1a9   : > { %2065 = vmatmul.mubr.bf16.gmra.mrb[60].mxu0 %v11723_v63  ;;  %2572 = vmatprep.mubr.bf16.mxu1 %v1180_v44  ;;  %v2318_v63 = vld [vmem:[#allocation2 + $0xc8] sm:$0xff] }
 0x1aa   : > { %2072 = vmatprep.mubr.bf16.mxu0 %v11688_v25  ;;  %v2308_v25 = vld [vmem:[#allocation2 + $0x78] sm:$0xff] }
 0x1b0   : > { %2573 = vmatmul.mubr.bf16.vlgmr.msra.gmra.mrb[96].mxu1 %v1179_v47 }
 0x1b1   : > { %2073 = vmatmul.mubr.bf16.gmra.mrb[64].mxu0 %v1197_v52  ;;  %2580 = vmatprep.mubr.bf16.mxu1 %v1183_v56 }
 0x1b2   : > { %2080 = vmatprep.mubr.bf16.mxu0 %v11727_v7 }
 0x1b8   : > { %2581 = vmatmul.mubr.bf16.gmra.mrb[100].mxu1 %v1182_v54  ;;  %v10907_v54 = vld [vmem:[%s13956_s3 + $0x40] sm:$0xff]  }
 0x1b9   : > { %2081 = vmatmul.mubr.bf16.gmra.mrb[68].mxu0 %v11754_v21  ;;  %2588 = vmatprep.mubr.bf16.mxu1 %v1186_v55 }
 0x1ba   : > { %2088 = vmatprep.mubr.bf16.mxu0 %v11718_v59  ;;  %v2314_v59 = vld [vmem:[#allocation2 + $0xa8] sm:$0xff]  ;;  %9941 = vmatprep.subr.bf16.mxu1 %v10907_v54 }
 0x1bb   : > { %9942 = vmatpush3.bf16.msra.mxu1 %v10907_v54  ;;  %v10910_v54 = vld [vmem:[%s13956_s3 + $0x58] sm:$0xff]  }
 0x1c0   : > { %2589 = vmatmul.mubr.bf16.gmra.mrb[104].mxu1 %v1185_v46 }
 0x1c1   : > { %2089 = vmatmul.mubr.bf16.gmra.mrb[72].mxu0 %v11745_v12  ;;  %2596 = vmatprep.mubr.bf16.mxu1 %v2309_v28  ;;  %v2324_v12 = vld [vmem:[#allocation2 + $0xf8] sm:$0xff] }
 0x1c2   : > { %2096 = vmatprep.mubr.bf16.mxu0 %v11758_v27 }
 0x1c8   : > { %2597 = vmatmul.mubr.bf16.gmra.mrb[108].mxu1 %v2308_v25  ;;  %v10908_v25 = vld [vmem:[%s13956_s3 + $0x48] sm:$0xff]  }
 0x1c9   : > { %2097 = vmatmul.mubr.bf16.gmra.mrb[76].mxu0 %v11783_v2  ;;  %2604 = vmatprep.mubr.bf16.mxu1 %v1192_v3 }
 0x1ca   : > { %2104 = vmatprep.mubr.bf16.mxu0 %v11749_v24  ;;  %9943 = vmatprep.subr.bf16.mxu1 %v10908_v25 }
 0x1cb   : > { %9944 = vmatpush3.bf16.msra.mxu1 %v10908_v25 }
 0x1d0   : > { %2605 = vmatmul.mubr.bf16.gmra.mrb[112].mxu1 %v1191_v17 }
 0x1d1   : > { %2105 = vmatmul.mubr.bf16.gmra.mrb[80].mxu0 %v11774_v37  ;;  %2612 = vmatprep.mubr.bf16.mxu1 %v2315_v0 }
 0x1d2   : > { %2112 = vmatprep.mubr.bf16.mxu0 %v11787_v6 }
 0x1d8   : > { %2613 = vmatmul.mubr.bf16.gmra.mrb[116].mxu1 %v2314_v59 }
 0x1d9   : > { %2113 = vmatmul.mubr.bf16.gmra.mrb[84].mxu0 %v11814_v13  ;;  %2620 = vmatprep.mubr.bf16.mxu1 %v2318_v63 }
 0x1da   : > { %2120 = vmatprep.mubr.bf16.mxu0 %v11778_v34 }
 0x1e0   : > { %2621 = vmatmul.mubr.bf16.gmra.mrb[120].mxu1 %v1197_v52 }
 0x1e1   : > { %2121 = vmatmul.mubr.bf16.gmra.mrb[88].mxu0 %v11802_v14  ;;  %2628 = vmatprep.mubr.bf16.mxu1 %v11727_v7  ;;  %v11898_v7 = vld [vmem:[#allocation2 + $0x40] sm:$0xff] }
 0x1e2   : > { %2128 = vmatprep.mubr.bf16.mxu0 %v11820_v26 }
 0x1e8   : > { %2629 = vmatmul.mubr.bf16.gmra.mrb[124].mxu1 %v11754_v21  ;;  %v10901_v21 = vld [vmem:[#allocation3 + $0x210] sm:$0xff]  }
 0x1e9   : > { %2129 = vmatmul.mubr.bf16.gmra.mrb[92].mxu0 %v11841_v4  ;;  %2636 = vmatprep.mubr.bf16.mxu1 %v2324_v12 }
 0x1ea   : > { %9861 = vmatprep.mubr.bf16.mxu0 %v11894_v45 }
 0x1f0   : > { %2637 = vmatmul.mubr.bf16.gmra.mrb[128].mxu1 %v2323_v51 }
 0x1f1   : > { %9862 = vmatmul.mubr.bf16.vlgmr.msra.gmra.mrb[0].mxu0 %v1178_v57  ;;  %2644 = vmatprep.mubr.bf16.mxu1 %v11758_v27  ;;  %v11907_v27 = vld [vmem:[#allocation2 + $0x70] sm:$0xff] }
 0x1f2   : > { %9894 = vmatpush3.bf16.msra.mxu0 %v11863_v62  ;;  %9865 = vmatprep.mubr.bf16.mxu0 %v11898_v7 }
 0x1f3   : > { %9895 = vmatprep.subr.bf16.mxu0 %v10900_v11 }
 0x1f6   : > { %9896 = vmatpush3.bf16.msra.mxu0 %v10900_v11 }
 0x1f7   : > { %9897 = vmatprep.subr.bf16.mxu0 %v10901_v21 }
 0x1f8   : > { %2645 = vmatmul.mubr.bf16.gmra.mrb[132].mxu1 %v11783_v2  ;;  %v11915_v2 = vld [vmem:[#allocation2 + $0xa0] sm:$0xff] }
 0x1f9   : > { %9866 = vmatmul.mubr.bf16.gmra.mrb[4].mxu0 %v11903_v1  ;;  %2652 = vmatprep.mubr.bf16.mxu1 %v11749_v24 }
 0x1fa   : > { %9869 = vmatprep.mubr.bf16.mxu0 %v11907_v27  ;;  %9898 = vmatpush3.bf16.msra.mxu0 %v10901_v21 }
 0x1fb   : > { %9899 = vmatprep.subr.bf16.mxu0 %v10902_v58 }
 0x1fe   : > { %9900 = vmatpush3.bf16.msra.mxu0 %v10902_v58 }
 0x1ff   : > { %9901 = vmatprep.subr.bf16.mxu0 %v10903_v29 }
 0x200   : > { %2653 = vmatmul.mubr.bf16.gmra.mrb[136].mxu1 %v11774_v37 }
 0x201   : > { %9870 = vmatmul.mubr.bf16.gmra.mrb[8].mxu0 %v11911_v8  ;;  %2660 = vmatprep.mubr.bf16.mxu1 %v11787_v6  ;;  %v11923_v6 = vld [vmem:[#allocation2 + $0xb8] sm:$0xff] }
 0x202   : > { %9873 = vmatprep.mubr.bf16.mxu0 %v11915_v2  ;;  %9902 = vmatpush3.bf16.msra.mxu0 %v10903_v29  ;;  %v8493_v24 = vpop.f32.mrb[32].mxu1 }
 0x203   : > { %9903 = vmatprep.subr.bf16.mxu0 %v10904_v30  ;;  %v8494_v32 = vpop.f32.mrb[33].mxu1 }
 0x204   : > { %v11918_v33 = vadd.f32 %v8494_v32, %v8493_v24  ;;  %v8496_v35 = vpop.f32.mrb[34].mxu1 }
 0x205   : > { %v8497_v41 = vpop.f32.mrb[35].mxu1 }
 0x206   : > { %9904 = vmatpush3.bf16.msra.mxu0 %v10904_v30  ;;  %v11920_v37 = vadd.f32 %v8497_v41, %v8496_v35 }
 0x207   : > { %9905 = vmatprep.subr.bf16.mxu0 %v10905_v31 }
 0x208   : > { %2661 = vmatmul.mubr.bf16.gmra.mrb[140].mxu1 %v11814_v13 }
 0x209   : > { %9874 = vmatmul.mubr.bf16.gmra.mrb[12].mxu0 %v11923_v6  ;;  %2668 = vmatprep.mubr.bf16.mxu1 %v11778_v34  ;;  %v11939_v34 = vld [vmem:[#allocation2 + $0x100] sm:$0xff] }
 0x20a   : > { %9877 = vmatprep.mubr.bf16.mxu0 %v11927_v53  ;;  %9906 = vmatpush3.bf16.msra.mxu0 %v10905_v31  ;;  %v8499_v60 = vpop.f32.mrb[36].mxu1 }
 0x20b   : > { %9907 = vmatprep.subr.bf16.mxu0 %v10906_v9  ;;  %v8500_v61 = vpop.f32.mrb[37].mxu1 }
 0x20c   : > { %v11930_v42 = vadd.f32 %v8500_v61, %v8499_v60  ;;  %v8502_v16 = vpop.f32.mrb[38].mxu1 }
 0x20d   : > { %v8503_v20 = vpop.f32.mrb[39].mxu1 }
 0x20e   : > { %9908 = vmatpush3.bf16.msra.mxu0 %v10906_v9  ;;  %v11932_v13 = vadd.f32 %v8503_v20, %v8502_v16 }
 0x210   : > { %2669 = vmatmul.mubr.bf16.gmra.mrb[144].mxu1 %v11802_v14  ;;  %v11947_v14 = vld [vmem:[#allocation2 + $0x118] sm:$0xff] }
 0x211   : > { %9878 = vmatmul.mubr.bf16.gmra.mrb[16].mxu0 %v11935_v23  ;;  %2676 = vmatprep.mubr.bf16.mxu1 %v11820_v26  ;;  %v11951_v26 = vld [vmem:[#allocation2 + $0x130] sm:$0xff] }
 0x212   : > { %9881 = vmatprep.mubr.bf16.mxu0 %v11939_v34 }
 0x213   : > { %v8505_v50 = vpop.f32.mrb[40].mxu1 }
 0x214   : > { %v8506_v39 = vpop.f32.mrb[41].mxu1 }
 0x215   : > { %v11942_v43 = vadd.f32 %v8506_v39, %v8505_v50  ;;  %v8508_v44 = vpop.f32.mrb[42].mxu1 }
 0x216   : > { %v8509_v10 = vpop.f32.mrb[43].mxu1 }
 0x217   : > { %v11944_v38 = vadd.f32 %v8509_v10, %v8508_v44 }
 0x218   : > { %2677 = vmatmul.mubr.bf16.gmra.mrb[148].mxu1 %v11841_v4 }
 0x219   : > { %9882 = vmatmul.mubr.bf16.gmra.mrb[20].mxu0 %v11947_v14  ;;  %2684 = vmatprep.mubr.bf16.mxu1 %v11808_v18 }
 0x21a   : > { %9885 = vmatprep.mubr.bf16.mxu0 %v11951_v26 }
 0x21b   : > { %v8511_v47 = vpop.f32.mrb[44].mxu1 }
 0x21c   : > { %v8512_v56 = vpop.f32.mrb[45].mxu1 }
 0x21d   : > { %v11954_v22 = vadd.f32 %v8512_v56, %v8511_v47  ;;  %v8514_v48 = vpop.f32.mrb[46].mxu1 }
 0x21e   : > { %v8515_v4 = vpop.f32.mrb[47].mxu1 }
 0x21f   : > { %v11959_v55 = vadd.f32 %v8515_v4, %v8514_v48 }
 0x220   : > { %2685 = vmatmul.mubr.bf16.gmra.mrb[152].mxu1 %v11834_v15 }
 0x221   : > { %9886 = vmatmul.mubr.bf16.gmra.mrb[24].mxu0 %v11818_v19  ;;  %2692 = vmatprep.mubr.bf16.mxu1 %v11894_v45 }
 0x222   : > { %9889 = vmatprep.mubr.bf16.mxu0 %v11806_v49 }
 0x223   : > { %v8517_v18 = vpop.f32.mrb[48].mxu1 }
 0x224   : > { %v8518_v62 = vpop.f32.mrb[49].mxu1 }
 0x225   : > { %v11965_v46 = vadd.f32 %v8518_v62, %v8517_v18  ;;  %v8520_v3 = vpop.f32.mrb[50].mxu1 }
 0x226   : > { %v8521_v17 = vpop.f32.mrb[51].mxu1 }
 0x227   : > { %v11967_v52 = vadd.f32 %v8521_v17, %v8520_v3 }
 0x228   : > { %2693 = vmatmul.mubr.bf16.gmra.mrb[156].mxu1 %v11894_v45 }
 0x229   : > { %9890 = vmatmul.mubr.bf16.gmra.mrb[28].mxu0 %v11845_v5 }
 0x22a   : > { %9909 = vmatprep.mubr.bf16.mxu0 %v11898_v7 }
 0x22b   : > { %v8523_v19 = vpop.f32.mrb[52].mxu1 }
 0x22c   : > { %v8524_v15 = vpop.f32.mrb[53].mxu1 }
 0x22d   : > { %v11972_v28 = vadd.f32 %v8524_v15, %v8523_v19  ;;  %v8526_v49 = vpop.f32.mrb[54].mxu1 }
 0x22e   : > { %v8527_v0 = vpop.f32.mrb[55].mxu1 }
 0x22f   : > { %v11977_v59 = vadd.f32 %v8527_v0, %v8526_v49 }
 0x231   : > { %9910 = vmatmul.mubr.bf16.vlgmr.msra.gmra.mrb[0].mxu0 %v11903_v1  ;;  %v10909_v1 = vld [vmem:[%s13956_s3 + $0x50] sm:$0xff]  }
 0x232   : > { %9913 = vmatprep.mubr.bf16.mxu0 %v11907_v27  ;;  %9945 = vmatprep.subr.bf16.mxu1 %v10909_v1 }
 0x233   : > { %v8529_v63 = vpop.f32.mrb[56].mxu1  ;;  %9946 = vmatpush3.bf16.msra.mxu1 %v10909_v1 }
 0x234   : > { %v8530_v12 = vpop.f32.mrb[57].mxu1  ;;  %9947 = vmatprep.subr.bf16.mxu1 %v10910_v54 }
 0x235   : > { %v11981_v51 = vadd.f32 %v8530_v12, %v8529_v63  ;;  %v8532_v11 = vpop.f32.mrb[58].mxu1 }
 0x236   : > { %v8533_v57 = vpop.f32.mrb[59].mxu1 }
 0x237   : > { %v11983_v7 = vadd.f32 %v8533_v57, %v8532_v11  ;;  %9948 = vmatpush3.bf16.msra.mxu1 %v10910_v54 }
 0x239   : > { %9914 = vmatmul.mubr.bf16.gmra.mrb[4].mxu0 %v11911_v8 }
 0x23a   : > { %9917 = vmatprep.mubr.bf16.mxu0 %v11915_v2 }
 0x23b   : > { %v8535_v21 = vpop.f32.mrb[60].mxu1 }
 0x23c   : > { %v8536_v58 = vpop.f32.mrb[61].mxu1 }
 0x23d   : > { %v11987_v29 = vadd.f32 %v8536_v58, %v8535_v21  ;;  %v8538_v30 = vpop.f32.mrb[62].mxu1 }
 0x23e   : > { %v8539_v27 = vpop.f32.mrb[63].mxu1 }
 0x23f   : > { %v11992_v24 = vadd.f32 %v8539_v27, %v8538_v30 }
 0x241   : > { %9918 = vmatmul.mubr.bf16.gmra.mrb[8].mxu0 %v11923_v6 }
 0x242   : > { %9921 = vmatprep.mubr.bf16.mxu0 %v11927_v53 }
 0x243   : > { %v8541_v8 = vpop.f32.mrb[64].mxu1 }
 0x244   : > { %v8542_v2 = vpop.f32.mrb[65].mxu1  ;;  %v8629_v31 = vpop.f32.mrb[32].mxu0 }
 0x245   : > { %v11996_v32 = vadd.f32 %v8542_v2, %v8541_v8  ;;  %v8544_v35 = vpop.f32.mrb[66].mxu1  ;;  %v8630_v41 = vpop.f32.mrb[33].mxu0 }
 0x246   : > { %v8631_v9 = vadd.f32 %v8630_v41, %v8629_v31  ;;  %v8545_v60 = vpop.f32.mrb[67].mxu1  ;;  %v8632_v61 = vpop.f32.mrb[34].mxu0 }
 0x247   : > { %v11998_v16 = vadd.f32 %v8545_v60, %v8544_v35  ;;  %v8633_v20 = vpop.f32.mrb[35].mxu0  ;;  %v10911_v35 = vld [vmem:[%s13956_s3 + $0x60] sm:$0xff]  }
 0x248   : > { %v8634_v50 = vadd.f32 %v8633_v20, %v8632_v61  ;;  %v12001_v39 = vadd.f32 %v8631_v9, %v11918_v33  ;;  %9949 = vmatprep.subr.bf16.mxu1 %v10911_v35 }
 0x249   : > { %9922 = vmatmul.mubr.bf16.gmra.mrb[12].mxu0 %v11935_v23  ;;  %9950 = vmatpush3.bf16.msra.mxu1 %v10911_v35 }
 0x24a   : > { %9925 = vmatprep.mubr.bf16.mxu0 %v11939_v34  ;;  %v12006_v6 = vadd.f32 %v8634_v50, %v11920_v37  ;;  %v2343_v50 = vld [vmem:[#allocation2 + $0x190] sm:$0xff] }
 0x24b   : > { %v8547_v53 = vpop.f32.mrb[68].mxu1 }
 0x24c   : > { %v8548_v44 = vpop.f32.mrb[69].mxu1  ;;  %v8635_v10 = vpop.f32.mrb[36].mxu0 }
 0x24d   : > { %v12008_v47 = vadd.f32 %v8548_v44, %v8547_v53  ;;  %v8550_v56 = vpop.f32.mrb[70].mxu1  ;;  %v8636_v48 = vpop.f32.mrb[37].mxu0 }
 0x24e   : > { %v8637_v33 = vadd.f32 %v8636_v48, %v8635_v10  ;;  %v8551_v4 = vpop.f32.mrb[71].mxu1  ;;  %v8638_v18 = vpop.f32.mrb[38].mxu0 }
 0x24f   : > { %v12013_v23 = vadd.f32 %v8551_v4, %v8550_v56  ;;  %v8639_v34 = vpop.f32.mrb[39].mxu0 }
 0x250   : > { %v8640_v37 = vadd.f32 %v8639_v34, %v8638_v18  ;;  %v12016_v62 = vadd.f32 %v8637_v33, %v11930_v42 }
 0x251   : > { %9926 = vmatmul.mubr.bf16.gmra.mrb[16].mxu0 %v11947_v14  ;;  %v2334_v14 = vld [vmem:[#allocation2 + $0x148] sm:$0xff] }
 0x252   : > { %9929 = vmatprep.mubr.bf16.mxu0 %v11951_v26  ;;  %v12021_v3 = vadd.f32 %v8640_v37, %v11932_v13  ;;  %v2337_v13 = vld [vmem:[#allocation2 + $0x160] sm:$0xff] }
 0x253   : > { %v8553_v17 = vpop.f32.mrb[72].mxu1 }
 0x254   : > { %v8554_v19 = vpop.f32.mrb[73].mxu1  ;;  %v8641_v15 = vpop.f32.mrb[40].mxu0 }
 0x255   : > { %v12023_v49 = vadd.f32 %v8554_v19, %v8553_v17  ;;  %v8556_v25 = vpop.f32.mrb[74].mxu1  ;;  %v8642_v0 = vpop.f32.mrb[41].mxu0 }
 0x256   : > { %v8643_v63 = vadd.f32 %v8642_v0, %v8641_v15  ;;  %v8557_v12 = vpop.f32.mrb[75].mxu1  ;;  %v8644_v11 = vpop.f32.mrb[42].mxu0 }
 0x257   : > { %v12025_v57 = vadd.f32 %v8557_v12, %v8556_v25  ;;  %v8645_v42 = vpop.f32.mrb[43].mxu0 }
 0x258   : > { %v8646_v21 = vadd.f32 %v8645_v42, %v8644_v11  ;;  %v12028_v26 = vadd.f32 %v8643_v63, %v11942_v43  ;;  %v10912_v11 = vld [vmem:[%s13956_s3 + $0x68] sm:$0xff]  }
 0x259   : > { %9930 = vmatmul.mubr.bf16.gmra.mrb[20].mxu0 %v2334_v14  ;;  %9951 = vmatprep.subr.bf16.mxu1 %v10912_v11 }
 0x25a   : > { %9933 = vmatprep.mubr.bf16.mxu0 %v2337_v13  ;;  %v12031_v58 = vadd.f32 %v8646_v21, %v11944_v38  ;;  %9952 = vmatpush3.bf16.msra.mxu1 %v10912_v11 }
 0x25b   : > { %v8559_v30 = vpop.f32.mrb[76].mxu1 }
 0x25c   : > { %v8560_v1 = vpop.f32.mrb[77].mxu1  ;;  %v8647_v27 = vpop.f32.mrb[44].mxu0 }
 0x25d   : > { %v12033_v8 = vadd.f32 %v8560_v1, %v8559_v30  ;;  %v8562_v2 = vpop.f32.mrb[78].mxu1  ;;  %v8648_v31 = vpop.f32.mrb[45].mxu0 }
 0x25e   : > { %v8649_v41 = vadd.f32 %v8648_v31, %v8647_v27  ;;  %v8563_v43 = vpop.f32.mrb[79].mxu1  ;;  %v8650_v9 = vpop.f32.mrb[46].mxu0 }
 0x25f   : > { %v12038_v60 = vadd.f32 %v8563_v43, %v8562_v2  ;;  %v8651_v61 = vpop.f32.mrb[47].mxu0 }
 0x260   : > { %v8652_v38 = vadd.f32 %v8651_v61, %v8650_v9  ;;  %v12041_v20 = vadd.f32 %v8649_v41, %v11954_v22 }
 0x261   : > { %9934 = vmatmul.mubr.bf16.gmra.mrb[24].mxu0 %v11845_v5 }
 0x262   : > { %9937 = vmatprep.mubr.bf16.mxu0 %v2343_v50  ;;  %v12045_v53 = vadd.f32 %v8652_v38, %v11959_v55 }
 0x263   : > { %v8565_v44 = vpop.f32.mrb[80].mxu1 }
 0x264   : > { %v8566_v10 = vpop.f32.mrb[81].mxu1  ;;  %v8653_v56 = vpop.f32.mrb[48].mxu0 }
 0x265   : > { %v12047_v48 = vadd.f32 %v8566_v10, %v8565_v44  ;;  %v8568_v54 = vpop.f32.mrb[82].mxu1  ;;  %v8654_v33 = vpop.f32.mrb[49].mxu0 }
 0x266   : > { %v8655_v4 = vadd.f32 %v8654_v33, %v8653_v56  ;;  %v8569_v18 = vpop.f32.mrb[83].mxu1  ;;  %v8656_v34 = vpop.f32.mrb[50].mxu0 }
 0x267   : > { %v12049_v37 = vadd.f32 %v8569_v18, %v8568_v54  ;;  %v8657_v22 = vpop.f32.mrb[51].mxu0 }
 0x268   : > { %v8658_v17 = vadd.f32 %v8657_v22, %v8656_v34  ;;  %v12052_v5 = vadd.f32 %v8655_v4, %v11965_v46  ;;  %v10913_v34 = vld [vmem:[%s13956_s3 + $0x70] sm:$0xff]  }
 0x269   : > { %9938 = vmatmul.mubr.bf16.gmra.mrb[28].mxu0 %v11894_v45  ;;  %9953 = vmatprep.subr.bf16.mxu1 %v10913_v34 }
 0x26a   : > { %v12056_v55 = vadd.f32 %v8658_v17, %v11967_v52  ;;  %9954 = vmatpush3.bf16.msra.mxu1 %v10913_v34 }
 0x26b   : > { %v8571_v19 = vpop.f32.mrb[84].mxu1 }
 0x26c   : > { %v8572_v15 = vpop.f32.mrb[85].mxu1  ;;  %v8659_v25 = vpop.f32.mrb[52].mxu0 }
 0x26d   : > { %v12058_v0 = vadd.f32 %v8572_v15, %v8571_v19  ;;  %v8574_v63 = vpop.f32.mrb[86].mxu1  ;;  %v8660_v12 = vpop.f32.mrb[53].mxu0 }
 0x26e   : > { %v8661_v42 = vadd.f32 %v8660_v12, %v8659_v25  ;;  %v8575_v21 = vpop.f32.mrb[87].mxu1  ;;  %v8662_v46 = vpop.f32.mrb[54].mxu0 }
 0x26f   : > { %v12063_v14 = vadd.f32 %v8575_v21, %v8574_v63  ;;  %v8663_v45 = vpop.f32.mrb[55].mxu0 }
 0x270   : > { %v8664_v52 = vadd.f32 %v8663_v45, %v8662_v46  ;;  %v12066_v13 = vadd.f32 %v8661_v42, %v11972_v28 }
 0x272   : > { %v12069_v30 = vadd.f32 %v8664_v52, %v11977_v59 }
 0x273   : > { %v8577_v1 = vpop.f32.mrb[88].mxu1 }
 0x274   : > { %v8578_v27 = vpop.f32.mrb[89].mxu1  ;;  %v8665_v2 = vpop.f32.mrb[56].mxu0 }
 0x275   : > { %v12071_v31 = vadd.f32 %v8578_v27, %v8577_v1  ;;  %v8580_v35 = vpop.f32.mrb[90].mxu1  ;;  %v8666_v41 = vpop.f32.mrb[57].mxu0 }
 0x276   : > { %v8667_v43 = vadd.f32 %v8666_v41, %v8665_v2  ;;  %v8581_v9 = vpop.f32.mrb[91].mxu1  ;;  %v8668_v61 = vpop.f32.mrb[58].mxu0 }
 0x277   : > { %v12073_v38 = vadd.f32 %v8581_v9, %v8580_v35  ;;  %v8669_v50 = vpop.f32.mrb[59].mxu0 }
 0x278   : > { %v8670_v44 = vadd.f32 %v8669_v50, %v8668_v61  ;;  %v12076_v28 = vadd.f32 %v8667_v43, %v11981_v51 }
 0x27a   : > { %v12079_v59 = vadd.f32 %v8670_v44, %v11983_v7 }
 0x27b   : > { %v8583_v10 = vpop.f32.mrb[92].mxu1 }
 0x27c   : > { %v8584_v56 = vpop.f32.mrb[93].mxu1  ;;  %v8671_v54 = vpop.f32.mrb[60].mxu0 }
 0x27d   : > { %v12081_v33 = vadd.f32 %v8584_v56, %v8583_v10  ;;  %v8586_v4 = vpop.f32.mrb[94].mxu1  ;;  %v8672_v18 = vpop.f32.mrb[61].mxu0 }
 0x27e   : > { %v8673_v22 = vadd.f32 %v8672_v18, %v8671_v54  ;;  %v8587_v17 = vpop.f32.mrb[95].mxu1  ;;  %v8674_v19 = vpop.f32.mrb[62].mxu0 }
 0x27f   : > { %v12086_v15 = vadd.f32 %v8587_v17, %v8586_v4  ;;  %v8675_v51 = vpop.f32.mrb[63].mxu0 }
 0x280   : > { %v8676_v7 = vadd.f32 %v8675_v51, %v8674_v19  ;;  %v12089_v25 = vadd.f32 %v8673_v22, %v11987_v29 }
 0x282   : > { %v12092_v63 = vadd.f32 %v8676_v7, %v11992_v24 }
 0x283   : > { %v8765_v12 = vpop.f32.mrb[96].mxu1 }
 0x284   : > { %v8677_v11 = vpop.f32.mrb[64].mxu0  ;;  %v8766_v42 = vpop.f32.mrb[97].mxu1 }
 0x285   : > { %v8767_v21 = vadd.f32 %v8766_v42, %v8765_v12  ;;  %v8678_v46 = vpop.f32.mrb[65].mxu0  ;;  %v8768_v45 = vpop.f32.mrb[98].mxu1 }
 0x286   : > { %v8679_v52 = vadd.f32 %v8678_v46, %v8677_v11  ;;  %v8680_v1 = vpop.f32.mrb[66].mxu0  ;;  %v8769_v27 = vpop.f32.mrb[99].mxu1 }
 0x287   : > { %v8770_v2 = vadd.f32 %v8769_v27, %v8768_v45  ;;  %v8681_v35 = vpop.f32.mrb[67].mxu0  ;;  %v12095_v41 = vadd.f32 %v12001_v39, %v8767_v21 }
 0x288   : > { %v12098_v29 = vadd.f32 %v8679_v52, %v11996_v32  ;;  %v8682_v43 = vadd.f32 %v8681_v35, %v8680_v1 }
 0x289   : > { %v12101_v24 = vadd.f32 %v12006_v6, %v8770_v2  ;;  %v10914_v6 = vld [vmem:[%s13956_s3 + $0x78] sm:$0xff]  }
 0x28a   : > { %v12104_v9 = vadd.f32 %v8682_v43, %v11998_v16  ;;  %9955 = vmatprep.subr.bf16.mxu1 %v10914_v6 }
 0x28b   : > { %v8771_v61 = vpop.f32.mrb[100].mxu1  ;;  %9956 = vmatpush3.bf16.msra.mxu1 %v10914_v6 }
 0x28c   : > { %v8683_v50 = vpop.f32.mrb[68].mxu0  ;;  %v8772_v44 = vpop.f32.mrb[101].mxu1 }
 0x28d   : > { %v8773_v10 = vadd.f32 %v8772_v44, %v8771_v61  ;;  %v8684_v56 = vpop.f32.mrb[69].mxu0  ;;  %v8774_v54 = vpop.f32.mrb[102].mxu1 }
 0x28e   : > { %v8685_v4 = vadd.f32 %v8684_v56, %v8683_v50  ;;  %v8686_v18 = vpop.f32.mrb[70].mxu0  ;;  %v8775_v39 = vpop.f32.mrb[103].mxu1 }
 0x28f   : > { %v8776_v34 = vadd.f32 %v8775_v39, %v8774_v54  ;;  %v8687_v22 = vpop.f32.mrb[71].mxu0  ;;  %v12107_v32 = vadd.f32 %v12016_v62, %v8773_v10 }
 0x290   : > { %v12113_v16 = vadd.f32 %v8685_v4, %v12008_v47  ;;  %v8688_v17 = vadd.f32 %v8687_v22, %v8686_v18 }
 0x291   : > { %v12116_v19 = vadd.f32 %v12021_v3, %v8776_v34 }
 0x292   : > { %v12119_v51 = vadd.f32 %v8688_v17, %v12013_v23 }
 0x293   : > { %v8777_v7 = vpop.f32.mrb[104].mxu1 }
 0x294   : > { %v8689_v12 = vpop.f32.mrb[72].mxu0  ;;  %v8778_v62 = vpop.f32.mrb[105].mxu1 }
 0x295   : > { %v8779_v11 = vadd.f32 %v8778_v62, %v8777_v7  ;;  %v8690_v42 = vpop.f32.mrb[73].mxu0  ;;  %v8780_v21 = vpop.f32.mrb[106].mxu1 }
 0x296   : > { %v8691_v46 = vadd.f32 %v8690_v42, %v8689_v12  ;;  %v8692_v45 = vpop.f32.mrb[74].mxu0  ;;  %v8781_v52 = vpop.f32.mrb[107].mxu1 }
 0x297   : > { %v8782_v47 = vadd.f32 %v8781_v52, %v8780_v21  ;;  %v8693_v1 = vpop.f32.mrb[75].mxu0  ;;  %v12122_v27 = vadd.f32 %v12028_v26, %v8779_v11 }
 0x298   : > { %v12125_v3 = vadd.f32 %v8691_v46, %v12023_v49  ;;  %v8694_v23 = vadd.f32 %v8693_v1, %v8692_v45 }
 0x299   : > { %v12128_v2 = vadd.f32 %v12031_v58, %v8782_v47 }
 0x29a   : > { %v12131_v35 = vadd.f32 %v8694_v23, %v12025_v57 }
 0x29b   : > { %v8783_v43 = vpop.f32.mrb[108].mxu1 }
 0x29c   : > { %v8695_v61 = vpop.f32.mrb[76].mxu0  ;;  %v8784_v50 = vpop.f32.mrb[109].mxu1 }
 0x29d   : > { %v8785_v44 = vadd.f32 %v8784_v50, %v8783_v43  ;;  %v8696_v10 = vpop.f32.mrb[77].mxu0  ;;  %v8786_v56 = vpop.f32.mrb[110].mxu1 }
 0x29e   : > { %v8697_v54 = vadd.f32 %v8696_v10, %v8695_v61  ;;  %v8698_v4 = vpop.f32.mrb[78].mxu0  ;;  %v8787_v26 = vpop.f32.mrb[111].mxu1 }
 0x29f   : > { %v8788_v18 = vadd.f32 %v8787_v26, %v8786_v56  ;;  %v8699_v39 = vpop.f32.mrb[79].mxu0  ;;  %v12134_v49 = vadd.f32 %v12041_v20, %v8785_v44 }
 0x2a0   : > { %v12137_v58 = vadd.f32 %v8697_v54, %v12033_v8  ;;  %v8700_v34 = vadd.f32 %v8699_v39, %v8698_v4 }
 0x2a1   : > { %v12140_v57 = vadd.f32 %v12045_v53, %v8788_v18 }
 0x2a2   : > { %v12143_v22 = vadd.f32 %v8700_v34, %v12038_v60 }
 0x2a3   : > { %v8789_v6 = vpop.f32.mrb[112].mxu1 }
 0x2a4   : > { %v8701_v17 = vpop.f32.mrb[80].mxu0  ;;  %v8790_v7 = vpop.f32.mrb[113].mxu1 }
 0x2a5   : > { %v8791_v12 = vadd.f32 %v8790_v7, %v8789_v6  ;;  %v8702_v62 = vpop.f32.mrb[81].mxu0  ;;  %v8792_v11 = vpop.f32.mrb[114].mxu1 }
 0x2a6   : > { %v8703_v42 = vadd.f32 %v8702_v62, %v8701_v17  ;;  %v8704_v21 = vpop.f32.mrb[82].mxu0  ;;  %v8793_v20 = vpop.f32.mrb[115].mxu1 }
 0x2a7   : > { %v8794_v46 = vadd.f32 %v8793_v20, %v8792_v11  ;;  %v8705_v45 = vpop.f32.mrb[83].mxu0  ;;  %v12146_v8 = vadd.f32 %v12052_v5, %v8791_v12 }
 0x2a8   : > { %v12149_v53 = vadd.f32 %v8703_v42, %v12047_v48  ;;  %v8706_v52 = vadd.f32 %v8705_v45, %v8704_v21 }
 0x2a9   : > { %v12152_v60 = vadd.f32 %v12056_v55, %v8794_v46 }
 0x2aa   : > { %v12155_v47 = vadd.f32 %v8706_v52, %v12049_v37 }
 0x2ab   : > { %v8795_v1 = vpop.f32.mrb[116].mxu1 }
 0x2ac   : > { %v8707_v23 = vpop.f32.mrb[84].mxu0  ;;  %v8796_v43 = vpop.f32.mrb[117].mxu1 }
 0x2ad   : > { %v8797_v61 = vadd.f32 %v8796_v43, %v8795_v1  ;;  %v8708_v50 = vpop.f32.mrb[85].mxu0  ;;  %v8798_v44 = vpop.f32.mrb[118].mxu1 }
 0x2ae   : > { %v8709_v10 = vadd.f32 %v8708_v50, %v8707_v23  ;;  %v8710_v56 = vpop.f32.mrb[86].mxu0  ;;  %v8799_v5 = vpop.f32.mrb[119].mxu1 }
 0x2af   : > { %v8800_v54 = vadd.f32 %v8799_v5, %v8798_v44  ;;  %v8711_v4 = vpop.f32.mrb[87].mxu0  ;;  %v12158_v48 = vadd.f32 %v12066_v13, %v8797_v61 }
 0x2b0   : > { %v12161_v55 = vadd.f32 %v8709_v10, %v12058_v0  ;;  %v8712_v26 = vadd.f32 %v8711_v4, %v8710_v56 }
 0x2b1   : > { %v12164_v37 = vadd.f32 %v12069_v30, %v8800_v54 }
 0x2b2   : > { %v12167_v18 = vadd.f32 %v8712_v26, %v12063_v14 }
 0x2b3   : > { %v8801_v39 = vpop.f32.mrb[120].mxu1 }
 0x2b4   : > { %v8713_v34 = vpop.f32.mrb[88].mxu0  ;;  %v8802_v6 = vpop.f32.mrb[121].mxu1 }
 0x2b5   : > { %v8803_v17 = vadd.f32 %v8802_v6, %v8801_v39  ;;  %v8714_v7 = vpop.f32.mrb[89].mxu0  ;;  %v8804_v12 = vpop.f32.mrb[122].mxu1 }
 0x2b6   : > { %v8715_v62 = vadd.f32 %v8714_v7, %v8713_v34  ;;  %v8716_v11 = vpop.f32.mrb[90].mxu0  ;;  %v8805_v13 = vpop.f32.mrb[123].mxu1 }
 0x2b7   : > { %v8806_v42 = vadd.f32 %v8805_v13, %v8804_v12  ;;  %v8717_v21 = vpop.f32.mrb[91].mxu0  ;;  %v12170_v0 = vadd.f32 %v12076_v28, %v8803_v17  ;;  %v10916_v13 = vld [vmem:[#allocation3 + $0x388] sm:$0xff]  }
 0x2b8   : > { %v12173_v30 = vadd.f32 %v8715_v62, %v12071_v31  ;;  %v8718_v20 = vadd.f32 %v8717_v21, %v8716_v11  ;;  %v10915_v11 = vld [vmem:[#allocation3 + $0x380] sm:$0xff]  }
 0x2b9   : > { %v12176_v14 = vadd.f32 %v12079_v59, %v8806_v42  ;;  %v10919_v42 = vld [vmem:[#allocation3 + $0x340] sm:$0xff]   ;;  %9989 = vmatprep.subr.bf16.mxu0 %v10915_v11 }
 0x2ba   : > { %v12179_v46 = vadd.f32 %v8718_v20, %v12073_v38  ;;  %9990 = vmatpush3.bf16.msra.mxu0 %v10915_v11  ;;  %8909 = vmatprep.subr.bf16.mxu1 %v10919_v42 }
 0x2bb   : > { %v8807_v45 = vpop.f32.mrb[124].mxu1  ;;  %9991 = vmatprep.subr.bf16.mxu0 %v10916_v13 }
 0x2bc   : > { %v8719_v52 = vpop.f32.mrb[92].mxu0  ;;  %v8808_v1 = vpop.f32.mrb[125].mxu1 }
 0x2bd   : > { %v8809_v23 = vadd.f32 %v8808_v1, %v8807_v45  ;;  %v8720_v43 = vpop.f32.mrb[93].mxu0  ;;  %v8810_v61 = vpop.f32.mrb[126].mxu1 }
 0x2be   : > { %v8721_v50 = vadd.f32 %v8720_v43, %v8719_v52  ;;  %v8722_v44 = vpop.f32.mrb[94].mxu0  ;;  %v8811_v28 = vpop.f32.mrb[127].mxu1  ;;  %9992 = vmatpush3.bf16.msra.mxu0 %v10916_v13  ;;  %v10918_v43 = vld [vmem:[#allocation3 + $0x398] sm:$0xff]  }
 0x2bf   : > { %v8812_v10 = vadd.f32 %v8811_v28, %v8810_v61  ;;  %v8723_v56 = vpop.f32.mrb[95].mxu0  ;;  %v12182_v31 = vadd.f32 %v12089_v25, %v8809_v23 }
 0x2c0   : > { %v12185_v59 = vadd.f32 %v8721_v50, %v12081_v33  ;;  %v8724_v5 = vadd.f32 %v8723_v56, %v8722_v44 }
 0x2c1   : > { %v12188_v38 = vadd.f32 %v12092_v63, %v8812_v10 }
 0x2c2   : > { %v12191_v54 = vadd.f32 %v8724_v5, %v12086_v15 }
 0x2c3   : > { %v8813_v4 = vpop.f32.mrb[128].mxu1 }
 0x2c4   : > { %v8814_v26 = vpop.f32.mrb[129].mxu1 }
 0x2c5   : > { %v8815_v39 = vadd.f32 %v8814_v26, %v8813_v4  ;;  %v8816_v34 = vpop.f32.mrb[130].mxu1 }
 0x2c6   : > { %v8817_v6 = vpop.f32.mrb[131].mxu1 }
 0x2c7   : > { %v8818_v17 = vadd.f32 %v8817_v6, %v8816_v34  ;;  %v12194_v7 = vadd.f32 %v12098_v29, %v8815_v39 }
 0x2c9   : > { %v12197_v25 = vadd.f32 %v12104_v9, %v8818_v17  ;;  %v10917_v9 = vld [vmem:[#allocation3 + $0x390] sm:$0xff]  }
 0x2ca   : > { %9993 = vmatprep.subr.bf16.mxu0 %v10917_v9 }
 0x2cb   : > { %v8819_v33 = vpop.f32.mrb[132].mxu1  ;;  %9994 = vmatpush3.bf16.msra.mxu0 %v10917_v9 }
 0x2cc   : > { %v8820_v12 = vpop.f32.mrb[133].mxu1  ;;  %9995 = vmatprep.subr.bf16.mxu0 %v10918_v43 }
 0x2cd   : > { %v8821_v62 = vadd.f32 %v8820_v12, %v8819_v33  ;;  %v8822_v63 = vpop.f32.mrb[134].mxu1 }
 0x2ce   : > { %v8823_v15 = vpop.f32.mrb[135].mxu1 }
 0x2cf   : > { %v8824_v21 = vadd.f32 %v8823_v15, %v8822_v63  ;;  %v12200_v20 = vadd.f32 %v12113_v16, %v8821_v62  ;;  %9996 = vmatpush3.bf16.msra.mxu0 %v10918_v43 }
 0x2d1   : > { %v12203_v29 = vadd.f32 %v12119_v51, %v8824_v21  ;;  %v10920_v51 = vld [vmem:[#allocation3 + $0x3a0] sm:$0xff]  }
 0x2d2   : > { %9997 = vmatprep.subr.bf16.mxu0 %v10920_v51 }
 0x2d3   : > { %v8825_v45 = vpop.f32.mrb[136].mxu1  ;;  %9998 = vmatpush3.bf16.msra.mxu0 %v10920_v51 }
 0x2d4   : > { %v8826_v52 = vpop.f32.mrb[137].mxu1 }
 0x2d5   : > { %v8827_v1 = vadd.f32 %v8826_v52, %v8825_v45  ;;  %v8828_v23 = vpop.f32.mrb[138].mxu1 }
 0x2d6   : > { %v8829_v61 = vpop.f32.mrb[139].mxu1 }
 0x2d7   : > { %v8830_v50 = vadd.f32 %v8829_v61, %v8828_v23  ;;  %v12206_v16 = vadd.f32 %v12125_v3, %v8827_v1 }
 0x2d9   : > { %v12209_v44 = vadd.f32 %v12131_v35, %v8830_v50 }
 0x2db   : > { %v8831_v28 = vpop.f32.mrb[140].mxu1 }
 0x2dc   : > { %v8832_v10 = vpop.f32.mrb[141].mxu1 }
 0x2dd   : > { %v8833_v56 = vadd.f32 %v8832_v10, %v8831_v28  ;;  %v8834_v5 = vpop.f32.mrb[142].mxu1 }
 0x2de   : > { %v8835_v4 = vpop.f32.mrb[143].mxu1 }
 0x2df   : > { %v8836_v26 = vadd.f32 %v8835_v4, %v8834_v5  ;;  %v12212_v39 = vadd.f32 %v12137_v58, %v8833_v56 }
 0x2e1   : > { %v12215_v3 = vadd.f32 %v12143_v22, %v8836_v26 }
 0x2e3   : > { %v8837_v34 = vpop.f32.mrb[144].mxu1 }
 0x2e4   : > { %v8838_v35 = vpop.f32.mrb[145].mxu1 }
 0x2e5   : > { %v8839_v6 = vadd.f32 %v8838_v35, %v8837_v34  ;;  %v8840_v17 = vpop.f32.mrb[146].mxu1  ;;  %v2894_v34 = vld [vmem:[%s11213_s29] sm:$0xff] }
 0x2e6   : > { %v8841_v33 = vpop.f32.mrb[147].mxu1 }
 0x2e7   : > { %v8842_v12 = vadd.f32 %v8841_v33, %v8840_v17  ;;  %v12218_v62 = vadd.f32 %v12149_v53, %v8839_v6  ;;  %v2897_v17 = vld [vmem:[%s11213_s29 + $0x18] sm:$0xff] }
 0x2e9   : > { %v12221_v63 = vadd.f32 %v12155_v47, %v8842_v12 }
 0x2eb   : > { %v8843_v11 = vpop.f32.mrb[148].mxu1 }
 0x2ec   : > { %v8844_v13 = vpop.f32.mrb[149].mxu1 }
 0x2ed   : > { %v8845_v58 = vadd.f32 %v8844_v13, %v8843_v11  ;;  %v8846_v15 = vpop.f32.mrb[150].mxu1 }
 0x2ee   : > { %v8847_v42 = vpop.f32.mrb[151].mxu1 }
 0x2ef   : > { %v8848_v21 = vadd.f32 %v8847_v42, %v8846_v15  ;;  %v12224_v22 = vadd.f32 %v12161_v55, %v8845_v58 }
 0x2f1   : > { %v12227_v9 = vadd.f32 %v12167_v18, %v8848_v21 }
 0x2f3   : > { %v8849_v45 = vpop.f32.mrb[152].mxu1 }
 0x2f4   : > { %v8850_v52 = vpop.f32.mrb[153].mxu1 }
 0x2f5   : > { %v8851_v53 = vadd.f32 %v8850_v52, %v8849_v45  ;;  %v8852_v1 = vpop.f32.mrb[154].mxu1  ;;  %v2900_v52 = vld [vmem:[%s11213_s29 + $0x30] sm:$0xff] }
 0x2f6   : > { %v8853_v23 = vpop.f32.mrb[155].mxu1 }
 0x2f7   : > { %v8854_v47 = vadd.f32 %v8853_v23, %v8852_v1  ;;  %v12230_v43 = vadd.f32 %v12173_v30, %v8851_v53  ;;  %v2896_v30 = vld [vmem:[%s11213_s29 + $0x10] sm:$0xff] }
 0x2f9   : > { %v12233_v61 = vadd.f32 %v12179_v46, %v8854_v47 }
 0x2fb   : > { %v8855_v55 = vpop.f32.mrb[156].mxu1 }
 0x2fc   : > { %v8856_v50 = vpop.f32.mrb[157].mxu1 }
 0x2fd   : > { %v8857_v51 = vadd.f32 %v8856_v50, %v8855_v55  ;;  %v8858_v18 = vpop.f32.mrb[158].mxu1  ;;  %v2898_v55 = vld [vmem:[%s11213_s29 + $0x20] sm:$0xff] }
 0x2fe   : > { %v8859_v28 = vpop.f32.mrb[159].mxu1 }
 0x2ff   : > { %v8860_v10 = vadd.f32 %v8859_v28, %v8858_v18  ;;  %v12236_v56 = vadd.f32 %v12185_v59, %v8857_v51  ;;  %v12249_v59 = vld [vmem:[%s13954_s1 + $0x1] ss:$0 sm:$0xff]  ;;  %v2901_v28 = vld [vmem:[%s11213_s29 + $0x38] sm:$0xff] }
 0x301   : > { %v12239_v5 = vadd.f32 %v12191_v54, %v8860_v10 }
 0x304   : > { %v9911_v4 = vpop.f32.mrb[0].mxu0 }
 0x305   : > { %v10327_v46 = vadd.f32 %v12107_v32, %v9911_v4  ;;  %v2735_v26 = vpop.f32.mrb[1].mxu0  ;;  %v2895_v32 = vld [vmem:[%s11213_s29 + $0x8] sm:$0xff] }
 0x306   : > { %v10330_v35 = vadd.f32 %v12095_v41, %v2735_v26  ;;  %v9912_v6 = vpop.f32.mrb[2].mxu0  ;;  %v12257_v41 = vld [vmem:[%s13955_s2 + $0x1] ss:$0 sm:$0xff]  ;;  %v2899_v26 = vld [vmem:[%s11213_s29 + $0x28] sm:$0xff] }
 0x307   : > { %v2928_v54 = vadd.f32 %v10327_v46, %v2896_v30  ;;  %v10333_v33 = vadd.f32 %v12116_v19, %v9912_v6  ;;  %v2738_v12 = vpop.f32.mrb[3].mxu0 }
 0x308   : > { %v2926_v11 = vadd.f32 %v10330_v35, %v2894_v34  ;;  %v10336_v13 = vadd.f32 %v12101_v24, %v2738_v12 }
 0x309   : > { %2960 = vst [vmem:[%s11213_s29 + $0x10] sm:$0xff] %v2928_v54  ;;  %v2929_v58 = vadd.f32 %v10333_v33, %v2897_v17  ;;  %v3032_v15 = vmul.f32 %v12249_v59, %v2928_v54 }
 0x30a   : > { %2958 = vst [vmem:[%s11213_s29] sm:$0xff] %v2926_v11  ;;  %v2927_v42 = vadd.f32 %v10336_v13, %v2895_v32  ;;  %v3030_v19 = vmul.f32 %v12249_v59, %v2926_v11  ;;  %v10921_v13 = vld [vmem:[#allocation3 + $0x300] sm:$0xff]  }
 0x30b   : > { %2961 = vst [vmem:[%s11213_s29 + $0x18] sm:$0xff] %v2929_v58  ;;  %v3033_v21 = vmul.f32 %v12249_v59, %v2929_v58  ;;  %v3072_v24 = vadd.f32 %v12257_v41, %v3032_v15  ;;  %v10922_v15 = vld [vmem:[#allocation3 + $0x348] sm:$0xff]  }
 0x30c   : > { %2959 = vst [vmem:[%s11213_s29 + $0x8] sm:$0xff] %v2927_v42  ;;  %v9915_v45 = vpop.f32.mrb[4].mxu0  ;;  %v3031_v53 = vmul.f32 %v12249_v59, %v2927_v42  ;;  %v3070_v1 = vadd.f32 %v12257_v41, %v3030_v19  ;;  %v2904_v19 = vld [vmem:[%s11213_s29 + $0x50] sm:$0xff] }
 0x30d   : > { %v10339_v23 = vadd.f32 %v12134_v49, %v9915_v45  ;;  %v2751_v47 = vpop.f32.mrb[5].mxu0  ;;  %v3073_v50 = vadd.f32 %v12257_v41, %v3033_v21  ;;  %v3104_v34 = vmax.f32 %v3072_v24, 0.0 }
 0x30e   : > { %v10342_v51 = vadd.f32 %v12122_v27, %v2751_v47  ;;  %v9916_v18 = vpop.f32.mrb[6].mxu0  ;;  %v3071_v10 = vadd.f32 %v12257_v41, %v3031_v53  ;;  %v3102_v17 = vmax.f32 %v3070_v1, 0.0  ;;  %v2902_v53 = vld [vmem:[%s11213_s29 + $0x40] sm:$0xff] }
 0x30f   : > { %v2932_v4 = vadd.f32 %v10339_v23, %v2900_v52  ;;  %v10345_v30 = vadd.f32 %v12140_v57, %v9916_v18  ;;  %v2754_v46 = vpop.f32.mrb[7].mxu0  ;;  %v3105_v49 = vmax.f32 %v3073_v50, 0.0 }
 0x310   : > { %v2930_v35 = vadd.f32 %v10342_v51, %v2898_v55  ;;  %v10348_v6 = vadd.f32 %v12128_v2, %v2754_v46  ;;  %v3103_v54 = vmax.f32 %v3071_v10, 0.0  ;;  %v2905_v55 = vld [vmem:[%s11213_s29 + $0x58] sm:$0xff] }
 0x311   : > { %2964 = vst [vmem:[%s11213_s29 + $0x30] sm:$0xff] %v2932_v4  ;;  %v2933_v27 = vadd.f32 %v10345_v30, %v2901_v28  ;;  %v3135_v33 = vpack.c.bf16 %v3105_v49, %v3104_v34  ;;  %v3036_v12 = vmul.f32 %v12249_v59, %v2932_v4  ;;  %v10923_v51 = vld [vmem:[#allocation3 + $0x308] sm:$0xff]  }
 0x312   : > { %2962 = vst [vmem:[%s11213_s29 + $0x20] sm:$0xff] %v2930_v35  ;;  %v2931_v32 = vadd.f32 %v10348_v6, %v2899_v26  ;;  %v3134_v57 = vpack.c.bf16 %v3103_v54, %v3102_v17  ;;  %v3034_v11 = vmul.f32 %v12249_v59, %v2930_v35 }
 0x313   : > { %2965 = vst [vmem:[%s11213_s29 + $0x38] sm:$0xff] %v2933_v27  ;;  %v3037_v58 = vmul.f32 %v12249_v59, %v2933_v27  ;;  %v3076_v2 = vadd.f32 %v12257_v41, %v3036_v12  ;;  %v2908_v12 = vld [vmem:[%s11213_s29 + $0x70] sm:$0xff] }
 0x314   : > { %2963 = vst [vmem:[%s11213_s29 + $0x28] sm:$0xff] %v2931_v32  ;;  %v9919_v42 = vpop.f32.mrb[8].mxu0  ;;  %9957 = vmatprep.mubr.bf16.mxu1 %v3134_v57  ;;  %v3035_v21 = vmul.f32 %v12249_v59, %v2931_v32  ;;  %v3074_v24 = vadd.f32 %v12257_v41, %v3034_v11 }
 0x315   : > { %v10351_v45 = vadd.f32 %v12158_v48, %v9919_v42  ;;  %v2767_v52 = vpop.f32.mrb[9].mxu0  ;;  %9958 = vmatmul.mubr.bf16.vlgmr.msra.gmra.mrb[160].mxu1 %v3135_v33  ;;  %v3077_v1 = vadd.f32 %v12257_v41, %v3037_v58  ;;  %v2903_v48 = vld [vmem:[%s11213_s29 + $0x48] sm:$0xff]  ;;  %v3108_v4 = vmax.f32 %v3076_v2, 0.0  ;;  %v2906_v58 = vld [vmem:[%s11213_s29 + $0x60] sm:$0xff] }
 0x316   : > { %v10354_v23 = vadd.f32 %v12146_v8, %v2767_v52  ;;  %v9920_v47 = vpop.f32.mrb[10].mxu0  ;;  %v3075_v50 = vadd.f32 %v12257_v41, %v3035_v21  ;;  %8910 = vmatpush3.bf16.msra.mxu1 %v10921_v13  ;;  %v3106_v26 = vmax.f32 %v3074_v24, 0.0 }
 0x317   : > { %v2936_v18 = vadd.f32 %v10351_v45, %v2904_v19  ;;  %v10357_v28 = vadd.f32 %v12164_v37, %v9920_v47  ;;  %v2770_v10 = vpop.f32.mrb[11].mxu0  ;;  %v3109_v30 = vmax.f32 %v3077_v1, 0.0  ;;  %8911 = vmatprep.subr.bf16.mxu1 %v10922_v15  ;;  %v2909_v19 = vld [vmem:[%s11213_s29 + $0x78] sm:$0xff] }
 0x318   : > { %v2934_v46 = vadd.f32 %v10354_v23, %v2902_v53  ;;  %v10360_v8 = vadd.f32 %v12152_v60, %v2770_v10  ;;  %v3107_v34 = vmax.f32 %v3075_v50, 0.0  ;;  %v2907_v53 = vld [vmem:[%s11213_s29 + $0x68] sm:$0xff] }
 0x319   : > { %2968 = vst [vmem:[%s11213_s29 + $0x50] sm:$0xff] %v2936_v18  ;;  %v2937_v49 = vadd.f32 %v10357_v28, %v2905_v55  ;;  %v3137_v35 = vpack.c.bf16 %v3109_v30, %v3108_v4  ;;  %v3040_v6 = vmul.f32 %v12249_v59, %v2936_v18  ;;  %v2912_v30 = vld [vmem:[%s11213_s29 + $0x90] sm:$0xff] }
 0x31a   : > { %2966 = vst [vmem:[%s11213_s29 + $0x40] sm:$0xff] %v2934_v46  ;;  %v2935_v37 = vadd.f32 %v10360_v8, %v2903_v48  ;;  %v3136_v17 = vpack.c.bf16 %v3107_v34, %v3106_v26  ;;  %v3038_v54 = vmul.f32 %v12249_v59, %v2934_v46  ;;  %8912 = vmatpush3.bf16.msra.mxu1 %v10923_v51 }
 0x31b   : > { %2969 = vst [vmem:[%s11213_s29 + $0x58] sm:$0xff] %v2937_v49  ;;  %v3041_v27 = vmul.f32 %v12249_v59, %v2937_v49  ;;  %v3080_v60 = vadd.f32 %v12257_v41, %v3040_v6  ;;  %v2910_v49 = vld [vmem:[%s11213_s29 + $0x80] sm:$0xff] }
 0x31c   : > { %2967 = vst [vmem:[%s11213_s29 + $0x48] sm:$0xff] %v2935_v37  ;;  %v9923_v33 = vpop.f32.mrb[12].mxu0  ;;  %9961 = vmatprep.mubr.bf16.mxu1 %v3136_v17  ;;  %v3039_v32 = vmul.f32 %v12249_v59, %v2935_v37  ;;  %v3078_v57 = vadd.f32 %v12257_v41, %v3038_v54  ;;  %v2913_v17 = vld [vmem:[%s11213_s29 + $0x98] sm:$0xff] }
 0x31d   : > { %v10363_v11 = vadd.f32 %v12182_v31, %v9923_v33  ;;  %v2783_v13 = vpop.f32.mrb[13].mxu0  ;;  %9962 = vmatmul.mubr.bf16.gmra.mrb[164].mxu1 %v3137_v35  ;;  %v3081_v2 = vadd.f32 %v12257_v41, %v3041_v27  ;;  %v3112_v31 = vmax.f32 %v3080_v60, 0.0 }
 0x31e   : > { %v10366_v15 = vadd.f32 %v12170_v0, %v2783_v13  ;;  %v9924_v42 = vpop.f32.mrb[14].mxu0  ;;  %v3079_v21 = vadd.f32 %v12257_v41, %v3039_v32  ;;  %v3110_v55 = vmax.f32 %v3078_v57, 0.0 }
 0x31f   : > { %v2940_v24 = vadd.f32 %v10363_v11, %v2908_v12  ;;  %v10369_v45 = vadd.f32 %v12188_v38, %v9924_v42  ;;  %v2786_v52 = vpop.f32.mrb[15].mxu0  ;;  %v3113_v1 = vmax.f32 %v3081_v2, 0.0  ;;  %v2911_v12 = vld [vmem:[%s11213_s29 + $0x88] sm:$0xff] }
 0x320   : > { %v2938_v23 = vadd.f32 %v10366_v15, %v2906_v58  ;;  %v10372_v47 = vadd.f32 %v12176_v14, %v2786_v52  ;;  %v3111_v0 = vmax.f32 %v3079_v21, 0.0 }
 0x321   : > { %2972 = vst [vmem:[%s11213_s29 + $0x70] sm:$0xff] %v2940_v24  ;;  %v2941_v50 = vadd.f32 %v10369_v45, %v2909_v19  ;;  %v3139_v51 = vpack.c.bf16 %v3113_v1, %v3112_v31  ;;  %v3044_v18 = vmul.f32 %v12249_v59, %v2940_v24  ;;  %v2916_v45 = vld [vmem:[%s11213_s29 + $0xb0] sm:$0xff] }
 0x322   : > { %2970 = vst [vmem:[%s11213_s29 + $0x60] sm:$0xff] %v2938_v23  ;;  %v2939_v38 = vadd.f32 %v10372_v47, %v2907_v53  ;;  %v3138_v28 = vpack.c.bf16 %v3111_v0, %v3110_v55  ;;  %v3042_v10 = vmul.f32 %v12249_v59, %v2938_v23  ;;  %v2914_v23 = vld [vmem:[%s11213_s29 + $0xa0] sm:$0xff] }
 0x323   : > { %2973 = vst [vmem:[%s11213_s29 + $0x78] sm:$0xff] %v2941_v50  ;;  %v3045_v48 = vmul.f32 %v12249_v59, %v2941_v50  ;;  %v3084_v14 = vadd.f32 %v12257_v41, %v3044_v18  ;;  %v2917_v50 = vld [vmem:[%s11213_s29 + $0xb8] sm:$0xff] }
 0x324   : > { %2971 = vst [vmem:[%s11213_s29 + $0x68] sm:$0xff] %v2939_v38  ;;  %v9927_v4 = vpop.f32.mrb[16].mxu0  ;;  %9965 = vmatprep.mubr.bf16.mxu1 %v3138_v28  ;;  %v3043_v46 = vmul.f32 %v12249_v59, %v2939_v38  ;;  %v3082_v8 = vadd.f32 %v12257_v41, %v3042_v10  ;;  %v2915_v10 = vld [vmem:[%s11213_s29 + $0xa8] sm:$0xff] }
 0x325   : > { %v10375_v26 = vadd.f32 %v12200_v20, %v9927_v4  ;;  %v2799_v34 = vpop.f32.mrb[17].mxu0  ;;  %9966 = vmatmul.mubr.bf16.gmra.mrb[168].mxu1 %v3139_v51  ;;  %v3085_v35 = vadd.f32 %v12257_v41, %v3045_v48  ;;  %v3116_v20 = vmax.f32 %v3084_v14, 0.0 }
 0x326   : > { %v10378_v6 = vadd.f32 %v12194_v7, %v2799_v34  ;;  %v9928_v37 = vpop.f32.mrb[18].mxu0  ;;  %v3083_v54 = vadd.f32 %v12257_v41, %v3043_v46  ;;  %v3114_v13 = vmax.f32 %v3082_v8, 0.0 }
 0x327   : > { %v2944_v27 = vadd.f32 %v10375_v26, %v2912_v30  ;;  %v10381_v60 = vadd.f32 %v12203_v29, %v9928_v37  ;;  %v2802_v33 = vpop.f32.mrb[19].mxu0  ;;  %v3117_v32 = vmax.f32 %v3085_v35, 0.0  ;;  %v2920_v37 = vld [vmem:[%s11213_s29 + $0xd0] sm:$0xff] }
 0x328   : > { %v2942_v57 = vadd.f32 %v10378_v6, %v2910_v49  ;;  %v10384_v11 = vadd.f32 %v12197_v25, %v2802_v33  ;;  %v3115_v7 = vmax.f32 %v3083_v54, 0.0  ;;  %v2918_v33 = vld [vmem:[%s11213_s29 + $0xc0] sm:$0xff] }
 0x329   : > { %2976 = vst [vmem:[%s11213_s29 + $0x90] sm:$0xff] %v2944_v27  ;;  %v2945_v58 = vadd.f32 %v10381_v60, %v2913_v17  ;;  %v3141_v2 = vpack.c.bf16 %v3117_v32, %v3116_v20  ;;  %v3048_v15 = vmul.f32 %v12249_v59, %v2944_v27 }
 0x32a   : > { %2974 = vst [vmem:[%s11213_s29 + $0x80] sm:$0xff] %v2942_v57  ;;  %v2943_v29 = vadd.f32 %v10384_v11, %v2911_v12  ;;  %v3140_v42 = vpack.c.bf16 %v3115_v7, %v3114_v13  ;;  %v3046_v19 = vmul.f32 %v12249_v59, %v2942_v57  ;;  %v2921_v57 = vld [vmem:[%s11213_s29 + $0xd8] sm:$0xff] }
 0x32b   : > { %2977 = vst [vmem:[%s11213_s29 + $0x98] sm:$0xff] %v2945_v58  ;;  %v3049_v21 = vmul.f32 %v12249_v59, %v2945_v58  ;;  %v3088_v25 = vadd.f32 %v12257_v41, %v3048_v15 }
 0x32c   : > { %2975 = vst [vmem:[%s11213_s29 + $0x88] sm:$0xff] %v2943_v29  ;;  %v9931_v24 = vpop.f32.mrb[20].mxu0  ;;  %9969 = vmatprep.mubr.bf16.mxu1 %v3140_v42  ;;  %v3047_v52 = vmul.f32 %v12249_v59, %v2943_v29  ;;  %v3086_v53 = vadd.f32 %v12257_v41, %v3046_v19 }
 0x32d   : > { %v10387_v31 = vadd.f32 %v12212_v39, %v9931_v24  ;;  %v2815_v1 = vpop.f32.mrb[21].mxu0  ;;  %9970 = vmatmul.mubr.bf16.gmra.mrb[172].mxu1 %v3141_v2  ;;  %v3089_v47 = vadd.f32 %v12257_v41, %v3049_v21  ;;  %v3120_v39 = vmax.f32 %v3088_v25, 0.0  ;;  %v2919_v2 = vld [vmem:[%s11213_s29 + $0xc8] sm:$0xff] }
 0x32e   : > { %v10390_v55 = vadd.f32 %v12206_v16, %v2815_v1  ;;  %v9932_v0 = vpop.f32.mrb[22].mxu0  ;;  %v3087_v51 = vadd.f32 %v12257_v41, %v3047_v52  ;;  %v3118_v30 = vmax.f32 %v3086_v53, 0.0  ;;  %v2924_v1 = vld [vmem:[%s11213_s29 + $0xf0] sm:$0xff] }
 0x32f   : > { %v2948_v18 = vadd.f32 %v10387_v31, %v2916_v45  ;;  %v10393_v38 = vadd.f32 %v12215_v3, %v9932_v0  ;;  %v2818_v28 = vpop.f32.mrb[23].mxu0  ;;  %v3121_v48 = vmax.f32 %v3089_v47, 0.0 }
 0x330   : > { %v2946_v14 = vadd.f32 %v10390_v55, %v2914_v23  ;;  %v10396_v4 = vadd.f32 %v12209_v44, %v2818_v28  ;;  %v3119_v16 = vmax.f32 %v3087_v51, 0.0  ;;  %v2925_v28 = vld [vmem:[%s11213_s29 + $0xf8] sm:$0xff] }
 0x331   : > { %2980 = vst [vmem:[%s11213_s29 + $0xb0] sm:$0xff] %v2948_v18  ;;  %v2949_v46 = vadd.f32 %v10393_v38, %v2917_v50  ;;  %v3143_v8 = vpack.c.bf16 %v3121_v48, %v3120_v39  ;;  %v3052_v26 = vmul.f32 %v12249_v59, %v2948_v18  ;;  %v2922_v50 = vld [vmem:[%s11213_s29 + $0xe0] sm:$0xff] }
 0x332   : > { %2978 = vst [vmem:[%s11213_s29 + $0xa0] sm:$0xff] %v2946_v14  ;;  %v2947_v3 = vadd.f32 %v10396_v4, %v2915_v10  ;;  %v3142_v34 = vpack.c.bf16 %v3119_v16, %v3118_v30  ;;  %v3050_v49 = vmul.f32 %v12249_v59, %v2946_v14  ;;  %v2923_v4 = vld [vmem:[%s11213_s29 + $0xe8] sm:$0xff] }
 0x333   : > { %2981 = vst [vmem:[%s11213_s29 + $0xb8] sm:$0xff] %v2949_v46  ;;  %v3053_v35 = vmul.f32 %v12249_v59, %v2949_v46  ;;  %v3092_v44 = vadd.f32 %v12257_v41, %v3052_v26 }
 0x334   : > { %2979 = vst [vmem:[%s11213_s29 + $0xa8] sm:$0xff] %v2947_v3  ;;  %v9935_v6 = vpop.f32.mrb[24].mxu0  ;;  %9973 = vmatprep.mubr.bf16.mxu1 %v3142_v34  ;;  %v3051_v17 = vmul.f32 %v12249_v59, %v2947_v3  ;;  %v3090_v54 = vadd.f32 %v12257_v41, %v3050_v49 }
 0x335   : > { %v10399_v27 = vadd.f32 %v12224_v22, %v9935_v6  ;;  %v2831_v60 = vpop.f32.mrb[25].mxu0  ;;  %9974 = vmatmul.mubr.bf16.gmra.mrb[176].mxu1 %v3143_v8  ;;  %v3093_v12 = vadd.f32 %v12257_v41, %v3053_v35  ;;  %v3124_v22 = vmax.f32 %v3092_v44, 0.0 }
 0x336   : > { %v10402_v20 = vadd.f32 %v12218_v62, %v2831_v60  ;;  %v9936_v32 = vpop.f32.mrb[26].mxu0  ;;  %v3091_v11 = vadd.f32 %v12257_v41, %v3051_v17  ;;  %v3122_v19 = vmax.f32 %v3090_v54, 0.0 }
 0x337   : > { %v2952_v13 = vadd.f32 %v10399_v27, %v2920_v37  ;;  %v10405_v7 = vadd.f32 %v12227_v9, %v9936_v32  ;;  %v2834_v58 = vpop.f32.mrb[27].mxu0  ;;  %v3125_v15 = vmax.f32 %v3093_v12, 0.0 }
 0x338   : > { %v2950_v29 = vadd.f32 %v10402_v20, %v2918_v33  ;;  %v10408_v42 = vadd.f32 %v12221_v63, %v2834_v58  ;;  %v3123_v62 = vmax.f32 %v3091_v11, 0.0  ;;  %v10926_v11 = vld [vmem:[#allocation3 + $0x310] sm:$0xff]   ;;  %v10931_v58 = vld [vmem:[#allocation3 + $0x320] sm:$0xff]  }
 0x339   : > { %2984 = vst [vmem:[%s11213_s29 + $0xd0] sm:$0xff] %v2952_v13  ;;  %v2953_v21 = vadd.f32 %v10405_v7, %v2921_v57  ;;  %v3145_v25 = vpack.c.bf16 %v3125_v15, %v3124_v22  ;;  %v3056_v24 = vmul.f32 %v12249_v59, %v2952_v13  ;;  %v10924_v57 = vld [vmem:[#allocation3 + $0x350] sm:$0xff]   ;;  %v10928_v13 = vld [vmem:[#allocation3 + $0x318] sm:$0xff]   ;;  %v10929_v7 = vld [vmem:[#allocation3 + $0x360] sm:$0xff]  }
 0x33a   : > { %2982 = vst [vmem:[%s11213_s29 + $0xc0] sm:$0xff] %v2950_v29  ;;  %v2951_v9 = vadd.f32 %v10408_v42, %v2919_v2  ;;  %v3144_v45 = vpack.c.bf16 %v3123_v62, %v3122_v19  ;;  %v3054_v52 = vmul.f32 %v12249_v59, %v2950_v29  ;;  %8913 = vmatprep.subr.bf16.mxu1 %v10924_v57  ;;  %v10932_v2 = vld [vmem:[#allocation3 + $0x368] sm:$0xff]   ;;  %v10934_v15 = vld [vmem:[#allocation3 + $0x370] sm:$0xff]   ;;  %v10937_v19 = vld [vmem:[#allocation3 + $0x378] sm:$0xff]  }
 0x33b   : > { %2985 = vst [vmem:[%s11213_s29 + $0xd8] sm:$0xff] %v2953_v21  ;;  %v3057_v53 = vmul.f32 %v12249_v59, %v2953_v21  ;;  %v3096_v63 = vadd.f32 %v12257_v41, %v3056_v24  ;;  %8914 = vmatpush3.bf16.msra.mxu1 %v10926_v11  ;;  %v10933_v22 = vld [vmem:[#allocation3 + $0x328] sm:$0xff]   ;;  %v10930_v29 = vld [vmem:[#allocation3 + $0x3b0] sm:$0xff]   ;;  %v10935_v62 = vld [vmem:[#allocation3 + $0x3b8] sm:$0xff]  }
 0x33c   : > { %2983 = vst [vmem:[%s11213_s29 + $0xc8] sm:$0xff] %v2951_v9  ;;  %v9939_v31 = vpop.f32.mrb[28].mxu0  ;;  %9977 = vmatprep.mubr.bf16.mxu1 %v3144_v45  ;;  %v3055_v23 = vmul.f32 %v12249_v59, %v2951_v9  ;;  %v3094_v47 = vadd.f32 %v12257_v41, %v3054_v52  ;;  %v10936_v42 = vld [vmem:[#allocation3 + $0x330] sm:$0xff]   ;;  %v10938_v21 = vld [vmem:[#allocation3 + $0x338] sm:$0xff]   ;;  %v10955_v24 = vld [vmem:[#allocation3 + $0x400] sm:$0xff]  }
 0x33d   : > { %v10411_v55 = vadd.f32 %v12236_v56, %v9939_v31  ;;  %v2847_v0 = vpop.f32.mrb[29].mxu0  ;;  %9978 = vmatmul.mubr.bf16.gmra.mrb[180].mxu1 %v3145_v25  ;;  %v3097_v51 = vadd.f32 %v12257_v41, %v3057_v53  ;;  %v3128_v56 = vmax.f32 %v3096_v63, 0.0  ;;  %v10939_v25 = vld [vmem:[#allocation3 + $0x280] sm:$0xff]   ;;  %v12414_v9 = vld [vmem:[%s13957_s4 + $0x1] ss:$0 sm:$0xff] }
 0x33e   : > { %v10414_v18 = vadd.f32 %v12230_v43, %v2847_v0  ;;  %v9940_v38 = vpop.f32.mrb[30].mxu0  ;;  %v3095_v10 = vadd.f32 %v12257_v41, %v3055_v23  ;;  %v3126_v8 = vmax.f32 %v3094_v47, 0.0  ;;  %v10940_v11 = vld [vmem:[#allocation3 + $0x240] sm:$0xff]  }
 0x33f   : > { %v2956_v39 = vadd.f32 %v10411_v55, %v2924_v1  ;;  %v10417_v48 = vadd.f32 %v12239_v5, %v9940_v38  ;;  %v2850_v14 = vpop.f32.mrb[31].mxu0  ;;  %v3129_v30 = vmax.f32 %v3097_v51, 0.0 }
 0x340   : > { %v2954_v16 = vadd.f32 %v10414_v18, %v2922_v50  ;;  %v10420_v46 = vadd.f32 %v12233_v61, %v2850_v14  ;;  %v3127_v26 = vmax.f32 %v3095_v10, 0.0 }
 0x341   : > { %2988 = vst [vmem:[%s11213_s29 + $0xf0] sm:$0xff] %v2956_v39  ;;  %v2957_v43 = vadd.f32 %v10417_v48, %v2925_v28  ;;  %v3147_v3 = vpack.c.bf16 %v3129_v30, %v3128_v56  ;;  %v3060_v34 = vmul.f32 %v12249_v59, %v2956_v39 }
 0x342   : > { %2986 = vst [vmem:[%s11213_s29 + $0xe0] sm:$0xff] %v2954_v16  ;;  %v2955_v49 = vadd.f32 %v10420_v46, %v2923_v4  ;;  %v3146_v35 = vpack.c.bf16 %v3127_v26, %v3126_v8  ;;  %v3058_v5 = vmul.f32 %v12249_v59, %v2954_v16 }
 0x343   : > { %2989 = vst [vmem:[%s11213_s29 + $0xf8] sm:$0xff] %v2957_v43  ;;  %v3061_v44 = vmul.f32 %v12249_v59, %v2957_v43  ;;  %v3100_v6 = vadd.f32 %v12257_v41, %v3060_v34 }
 0x344   : > { %2987 = vst [vmem:[%s11213_s29 + $0xe8] sm:$0xff] %v2955_v49  ;;  %9981 = vmatprep.mubr.bf16.mxu1 %v3146_v35  ;;  %v3059_v61 = vmul.f32 %v12249_v59, %v2955_v49  ;;  %v3098_v37 = vadd.f32 %v12257_v41, %v3058_v5  ;;  %v10927_v59 = vld [vmem:[#allocation3 + $0x358] sm:$0xff]  }
 0x345   : > { %9982 = vmatmul.mubr.bf16.gmra.mrb[184].mxu1 %v3147_v3  ;;  %v3101_v17 = vadd.f32 %v12257_v41, %v3061_v44  ;;  %v3132_v27 = vmax.f32 %v3100_v6, 0.0  ;;  %8915 = vmatprep.subr.bf16.mxu1 %v10927_v59  ;;  %v10956_v59 = vld [vmem:[#allocation3 + $0x3c0] sm:$0xff]  }
 0x346   : > { %v3099_v54 = vadd.f32 %v12257_v41, %v3059_v61  ;;  %v3130_v33 = vmax.f32 %v3098_v37, 0.0  ;;  %8916 = vmatpush3.bf16.msra.mxu1 %v10928_v13  ;;  %v10925_v41 = vld [vmem:[#allocation3 + $0x3a8] sm:$0xff]   ;;  %v3579_v61 = vld [vmem:[#allocation2 + $0x30] sm:$0xff]  ;;  %v3675_v37 = vld [vmem:[#allocation2 + $0x40] sm:$0xff] }
 0x347   : > { %v3133_v60 = vmax.f32 %v3101_v17, 0.0  ;;  %8917 = vmatprep.subr.bf16.mxu1 %v10929_v7  ;;  %9999 = vmatprep.subr.bf16.mxu0 %v10925_v41 }
 0x348   : > { %v3131_v12 = vmax.f32 %v3099_v54, 0.0  ;;  %10000 = vmatpush3.bf16.msra.mxu0 %v10925_v41  ;;  %v3576_v54 = vld [vmem:[#allocation2 + $0x18] sm:$0xff] }
 0x349   : > { %v3149_v20 = vpack.c.bf16 %v3133_v60, %v3132_v27  ;;  %10001 = vmatprep.subr.bf16.mxu0 %v10930_v29 }
 0x34a   : > { %v3148_v32 = vpack.c.bf16 %v3131_v12, %v3130_v33  ;;  %8918 = vmatpush3.bf16.msra.mxu1 %v10931_v58 }
 0x34b   : > { %8919 = vmatprep.subr.bf16.mxu1 %v10932_v2  ;;  %v10941_v2 = vld [vmem:[#allocation3 + $0x288] sm:$0xff]  }
 0x34c   : > { %9985 = vmatprep.mubr.bf16.mxu1 %v3148_v32  ;;  %10002 = vmatpush3.bf16.msra.mxu0 %v10930_v29  ;;  %v3672_v32 = vld [vmem:[#allocation2 + $0x28] sm:$0xff] }
 0x34d   : > { %9986 = vmatmul.mubr.bf16.gmra.mrb[188].mxu1 %v3149_v20  ;;  %10003 = vmatprep.subr.bf16.mxu0 %v10935_v62 }
 0x34e   : > { %8920 = vmatpush3.bf16.msra.mxu1 %v10933_v22  ;;  %v10958_v22 = vld [vmem:[#allocation3 + $0x408] sm:$0xff]  }
 0x34f   : > { %8921 = vmatprep.subr.bf16.mxu1 %v10934_v15 }
 0x350   : > { %10004 = vmatpush3.bf16.msra.mxu0 %v10935_v62 }
 0x351   : > { %9045 = vmatprep.subr.bf16.mxu0 %v10939_v25 }
 0x352   : > { %8922 = vmatpush3.bf16.msra.mxu1 %v10936_v42 }
 0x353   : > { %8923 = vmatprep.subr.bf16.mxu1 %v10937_v19 }
 0x356   : > { %8924 = vmatpush3.bf16.msra.mxu1 %v10938_v21 }
 0x357   : > { %9181 = vmatprep.subr.bf16.mxu1 %v10955_v24 }
 0x3e8   : > { %v9959_v45 = vpop.f32.mrb[160].mxu1 }
 0x3e9   : > { %v3266_v52 = vadd.f32 %v9959_v45, %v12414_v9  ;;  %v3257_v53 = vpop.f32.mrb[161].mxu1 }
 0x3ea   : > { %v3258_v63 = vadd.f32 %v12414_v9, %v3257_v53  ;;  %v9960_v31 = vpop.f32.mrb[162].mxu1 }
 0x3eb   : > { %v3269_v1 = vadd.f32 %v9960_v31, %v12414_v9  ;;  %v3260_v23 = vpop.f32.mrb[163].mxu1  ;;  %v3386_v55 = vmax.f32 %v3266_v52, 0.0  ;;  %v10942_v31 = vld [vmem:[#allocation3 + $0x248] sm:$0xff]  }
 0x3ec   : > { %v3261_v47 = vadd.f32 %v12414_v9, %v3260_v23  ;;  %v3384_v50 = vmax.f32 %v3258_v63, 0.0 }
 0x3ed   : > { %v3387_v0 = vmax.f32 %v3269_v1, 0.0  ;;  %v10959_v1 = vld [vmem:[#allocation3 + $0x3c8] sm:$0xff]  }
 0x3ee   : > { %v3385_v51 = vmax.f32 %v3261_v47, 0.0 }
 0x3ef   : > { %v3417_v18 = vpack.c.bf16 %v3387_v0, %v3386_v55  ;;  %v10943_v0 = vld [vmem:[#allocation3 + $0x290] sm:$0xff]  }
 0x3f0   : > { %v12420_v38 = vpack.c.bf16 %v3385_v51, %v3384_v50  ;;  %v9963_v28 = vpop.f32.mrb[164].mxu1  ;;  %v10961_v50 = vld [vmem:[#allocation3 + $0x410] sm:$0xff]  }
 0x3f1   : > { %3433 = vst [vmem:[#allocation2 + $0x38] sm:$0xff] %v3417_v18  ;;  %v3456_v10 = vshrl.u32 %v3417_v18, 16  ;;  %v3459_v39 = vshll.u32 %v3417_v18, 16  ;;  %v3282_v48 = vadd.f32 %v9963_v28, %v12414_v9  ;;  %v3273_v14 = vpop.f32.mrb[165].mxu1 }
 0x3f2   : > { %v3449_v4 = vshrl.u32 %v12420_v38, 16  ;;  %v3452_v56 = vshll.u32 %v12420_v38, 16  ;;  %v3274_v30 = vadd.f32 %v12414_v9, %v3273_v14  ;;  %v9964_v16 = vpop.f32.mrb[166].mxu1  ;;  %4090 = vmatprep.mubr.bf16.mxu1 %v12420_v38 }
 0x3f3   : > { %v3458_v46 = vrot.slane %v3456_v10, 7  ;;  %v3626_v8 = vrot.slane %v3459_v39, 1  ;;  %v3285_v26 = vadd.f32 %v9964_v16, %v12414_v9  ;;  %v3276_v43 = vpop.f32.mrb[167].mxu1  ;;  %v3390_v44 = vmax.f32 %v3282_v48, 0.0  ;;  %v3681_v48 = vld [vmem:[#allocation2 + $0x70] sm:$0xff] }
 0x3f4   : > { %v3451_v3 = vrot.slane %v3449_v4, 7  ;;  %v3624_v34 = vrot.slane %v3452_v56, 1  ;;  %v3277_v49 = vadd.f32 %v12414_v9, %v3276_v43  ;;  %v3388_v60 = vmax.f32 %v3274_v30, 0.0 }
 0x3f5   : > { %v3461_v35 = vor.u32 %v3459_v39, %v3458_v46  ;;  %v3627_v5 = vor.u32 %v3626_v8, %v3456_v10  ;;  %v3391_v6 = vmax.f32 %v3285_v26, 0.0  ;;  %v3585_v39 = vld [vmem:[#allocation2 + $0x60] sm:$0xff]  ;;  %v3678_v26 = vld [vmem:[#allocation2 + $0x58] sm:$0xff] }
 0x3f6   : > { %v3454_v17 = vor.u32 %v3452_v56, %v3451_v3  ;;  %v3625_v27 = vor.u32 %v3624_v34, %v3449_v4  ;;  %v3389_v33 = vmax.f32 %v3277_v49, 0.0  ;;  %v3582_v4 = vld [vmem:[#allocation2 + $0x48] sm:$0xff]  ;;  %v10944_v3 = vld [vmem:[#allocation3 + $0x250] sm:$0xff]  }
 0x3f7   : > { %v12431_v12 = vsel %vm11614_vm9, %v3461_v35, %v3579_v61  ;;  %v3676_v20 = vsel %vm11621_vm10, %v3627_v5, %v3675_v37  ;;  %v12435_v57 = vpack.c.bf16 %v3391_v6, %v3390_v44  ;;  %v10962_v34 = vld [vmem:[#allocation3 + $0x3d0] sm:$0xff]   ;;  %v10945_v6 = vld [vmem:[#allocation3 + $0x298] sm:$0xff]  }
 0x3f8   : > { %3581 = vst [vmem:[#allocation2 + $0x30] sm:$0xff] %v12431_v12  ;;  %3677 = vst [vmem:[#allocation2 + $0x40] sm:$0xff] %v3676_v20  ;;  %v12440_v13 = vsel %vm11614_vm9, %v3454_v17, %v3576_v54  ;;  %v3673_v7 = vsel %vm11621_vm10, %v3625_v27, %v3672_v32  ;;  %v12444_v58 = vpack.c.bf16 %v3389_v33, %v3388_v60  ;;  %v9967_v41 = vpop.f32.mrb[168].mxu1  ;;  %v10964_v61 = vld [vmem:[#allocation3 + $0x418] sm:$0xff]  }
 0x3f9   : > { %3578 = vst [vmem:[#allocation2 + $0x18] sm:$0xff] %v12440_v13  ;;  %3674 = vst [vmem:[#allocation2 + $0x28] sm:$0xff] %v3673_v7  ;;  %v3470_v15 = vshrl.u32 %v12435_v57, 16  ;;  %v3473_v29 = vshll.u32 %v12435_v57, 16  ;;  %v3298_v42 = vadd.f32 %v9967_v41, %v12414_v9  ;;  %v3289_v19 = vpop.f32.mrb[169].mxu1  ;;  %4091 = vmatmul.mubr.bf16.vlgmr.msra.gmra.mrb[192].mxu1 %v12440_v13  ;;  %10005 = vmatprep.mubr.bf16.mxu0 %v3673_v7 }
 0x3fa   : > { %3435 = vst [vmem:[#allocation2 + $0x68] sm:$0xff] %v12435_v57  ;;  %3434 = vst [vmem:[#allocation2 + $0x50] sm:$0xff] %v12444_v58  ;;  %v3463_v62 = vshrl.u32 %v12444_v58, 16  ;;  %v3466_v21 = vshll.u32 %v12444_v58, 16  ;;  %v3290_v25 = vadd.f32 %v12414_v9, %v3289_v19  ;;  %v9968_v24 = vpop.f32.mrb[170].mxu1  ;;  %4098 = vmatprep.mubr.bf16.mxu1 %v3417_v18  ;;  %10006 = vmatmul.mubr.bf16.vlgmr.msra.gmra.mrb[96].mxu0 %v3676_v20  ;;  %v10967_v19 = vld [vmem:[#allocation3 + $0x420] sm:$0xff]  }
 0x3fb   : > { %v3472_v45 = vrot.slane %v3470_v15, 7  ;;  %v3630_v52 = vrot.slane %v3473_v29, 1  ;;  %v3301_v53 = vadd.f32 %v9968_v24, %v12414_v9  ;;  %v3292_v63 = vpop.f32.mrb[171].mxu1  ;;  %9046 = vmatpush3.bf16.msra.mxu0 %v10940_v11  ;;  %9182 = vmatpush3.bf16.msra.mxu1 %v10956_v59  ;;  %v3394_v28 = vmax.f32 %v3298_v42, 0.0  ;;  %v10947_v42 = vld [vmem:[#allocation3 + $0x2a0] sm:$0xff]  }
 0x3fc   : > { %v3465_v23 = vrot.slane %v3463_v62, 7  ;;  %v3628_v47 = vrot.slane %v3466_v21, 1  ;;  %v3293_v55 = vadd.f32 %v12414_v9, %v3292_v63  ;;  %9047 = vmatprep.subr.bf16.mxu0 %v10941_v2  ;;  %9183 = vmatprep.subr.bf16.mxu1 %v10958_v22  ;;  %v3392_v30 = vmax.f32 %v3290_v25, 0.0  ;;  %v10965_v2 = vld [vmem:[#allocation3 + $0x3d8] sm:$0xff]   ;;  %v3588_v63 = vld [vmem:[#allocation2 + $0x78] sm:$0xff] }
 0x3fd   : > { %v3475_v51 = vor.u32 %v3473_v29, %v3472_v45  ;;  %v3631_v18 = vor.u32 %v3630_v52, %v3470_v15  ;;  %v3395_v10 = vmax.f32 %v3301_v53, 0.0  ;;  %v3591_v45 = vld [vmem:[#allocation2 + $0x90] sm:$0xff]  ;;  %v3687_v52 = vld [vmem:[#allocation2 + $0xa0] sm:$0xff] }
 0x3fe   : > { %v3468_v14 = vor.u32 %v3466_v21, %v3465_v23  ;;  %v3629_v56 = vor.u32 %v3628_v47, %v3463_v62  ;;  %v3393_v16 = vmax.f32 %v3293_v55, 0.0 }
 0x3ff   : > { %v12460_v46 = vsel %vm11614_vm9, %v3475_v51, %v3585_v39  ;;  %v3682_v8 = vsel %vm11621_vm10, %v3631_v18, %v3681_v48  ;;  %v12464_v43 = vpack.c.bf16 %v3395_v10, %v3394_v28  ;;  %9048 = vmatpush3.bf16.msra.mxu0 %v10942_v31  ;;  %9184 = vmatpush3.bf16.msra.mxu1 %v10959_v1  ;;  %v10948_v51 = vld [vmem:[#allocation3 + $0x260] sm:$0xff]  }
 0x400   : > { %3587 = vst [vmem:[#allocation2 + $0x60] sm:$0xff] %v12460_v46  ;;  %3683 = vst [vmem:[#allocation2 + $0x70] sm:$0xff] %v3682_v8  ;;  %v12469_v49 = vsel %vm11614_vm9, %v3468_v14, %v3582_v4  ;;  %v3679_v35 = vsel %vm11621_vm10, %v3629_v56, %v3678_v26  ;;  %v12473_v5 = vpack.c.bf16 %v3393_v16, %v3392_v30  ;;  %v9971_v44 = vpop.f32.mrb[172].mxu1  ;;  %9049 = vmatprep.subr.bf16.mxu0 %v10943_v0  ;;  %v3684_v0 = vld [vmem:[#allocation2 + $0x88] sm:$0xff]  ;;  %v10968_v18 = vld [vmem:[#allocation3 + $0x3e0] sm:$0xff]  }
 0x401   : > { %9185 = vmatprep.subr.bf16.mxu1 %v10961_v50  ;;  %3584 = vst [vmem:[#allocation2 + $0x48] sm:$0xff] %v12469_v49  ;;  %3680 = vst [vmem:[#allocation2 + $0x58] sm:$0xff] %v3679_v35  ;;  %v3484_v37 = vshrl.u32 %v12464_v43, 16  ;;  %v3487_v17 = vshll.u32 %v12464_v43, 16  ;;  %v3314_v54 = vadd.f32 %v9971_v44, %v12414_v9  ;;  %v3305_v27 = vpop.f32.mrb[173].mxu1  ;;  %4099 = vmatmul.mubr.bf16.gmra.mrb[196].mxu1 %v12431_v12  ;;  %v10946_v12 = vld [vmem:[#allocation3 + $0x258] sm:$0xff]  }
 0x402   : > { %3437 = vst [vmem:[#allocation2 + $0x98] sm:$0xff] %v12464_v43  ;;  %10009 = vmatprep.mubr.bf16.mxu0 %v3679_v35  ;;  %3436 = vst [vmem:[#allocation2 + $0x80] sm:$0xff] %v12473_v5  ;;  %v3477_v60 = vshrl.u32 %v12473_v5, 16  ;;  %v3480_v33 = vshll.u32 %v12473_v5, 16  ;;  %v3306_v20 = vadd.f32 %v12414_v9, %v3305_v27  ;;  %v9972_v32 = vpop.f32.mrb[174].mxu1  ;;  %4106 = vmatprep.mubr.bf16.mxu1 %v12444_v58  ;;  %v10949_v14 = vld [vmem:[#allocation3 + $0x2a8] sm:$0xff]  }
 0x403   : > { %10010 = vmatmul.mubr.bf16.gmra.mrb[100].mxu0 %v3682_v8  ;;  %v3486_v11 = vrot.slane %v3484_v37, 7  ;;  %v3634_v59 = vrot.slane %v3487_v17, 1  ;;  %v3317_v7 = vadd.f32 %v9972_v32, %v12414_v9  ;;  %v3308_v41 = vpop.f32.mrb[175].mxu1  ;;  %9186 = vmatpush3.bf16.msra.mxu1 %v10962_v34  ;;  %v3398_v25 = vmax.f32 %v3314_v54, 0.0  ;;  %v10969_v4 = vld [vmem:[#allocation3 + $0x428] sm:$0xff]   ;;  %v10971_v32 = vld [vmem:[#allocation3 + $0x430] sm:$0xff]  }
 0x404   : > { %9050 = vmatpush3.bf16.msra.mxu0 %v10944_v3  ;;  %v3479_v22 = vrot.slane %v3477_v60, 7  ;;  %v3632_v15 = vrot.slane %v3480_v33, 1  ;;  %v3309_v29 = vadd.f32 %v12414_v9, %v3308_v41  ;;  %9187 = vmatprep.subr.bf16.mxu1 %v10964_v61  ;;  %v3396_v1 = vmax.f32 %v3306_v20, 0.0  ;;  %v10970_v54 = vld [vmem:[#allocation3 + $0x3e8] sm:$0xff]   ;;  %v10951_v20 = vld [vmem:[#allocation3 + $0x2b0] sm:$0xff]  }
 0x405   : > { %9051 = vmatprep.subr.bf16.mxu0 %v10945_v6  ;;  %v3489_v62 = vor.u32 %v3487_v17, %v3486_v11  ;;  %v3635_v21 = vor.u32 %v3634_v59, %v3484_v37  ;;  %v3399_v24 = vmax.f32 %v3317_v7, 0.0  ;;  %v10950_v17 = vld [vmem:[#allocation3 + $0x268] sm:$0xff]  }
 0x406   : > { %v3482_v53 = vor.u32 %v3480_v33, %v3479_v22  ;;  %v3633_v31 = vor.u32 %v3632_v15, %v3477_v60  ;;  %v3397_v23 = vmax.f32 %v3309_v29, 0.0  ;;  %v3594_v15 = vld [vmem:[#allocation2 + $0xa8] sm:$0xff] }
 0x407   : > { %v12490_v47 = vsel %vm11614_vm9, %v3489_v62, %v3591_v45  ;;  %v3688_v55 = vsel %vm11621_vm10, %v3635_v21, %v3687_v52  ;;  %v12494_v50 = vpack.c.bf16 %v3399_v24, %v3398_v25  ;;  %9188 = vmatpush3.bf16.msra.mxu1 %v10965_v2  ;;  %v3693_v2 = vld [vmem:[#allocation2 + $0xd0] sm:$0xff]  ;;  %v3690_v25 = vld [vmem:[#allocation2 + $0xb8] sm:$0xff]  ;;  %v10952_v45 = vld [vmem:[#allocation3 + $0x270] sm:$0xff]  }
 0x408   : > { %9052 = vmatpush3.bf16.msra.mxu0 %v10946_v12  ;;  %3593 = vst [vmem:[#allocation2 + $0x90] sm:$0xff] %v12490_v47  ;;  %3689 = vst [vmem:[#allocation2 + $0xa0] sm:$0xff] %v3688_v55  ;;  %v12499_v28 = vsel %vm11614_vm9, %v3482_v53, %v3588_v63  ;;  %v3685_v10 = vsel %vm11621_vm10, %v3633_v31, %v3684_v0  ;;  %v12503_v39 = vpack.c.bf16 %v3397_v23, %v3396_v1  ;;  %v9975_v48 = vpop.f32.mrb[176].mxu1  ;;  %v3597_v12 = vld [vmem:[#allocation2 + $0xc0] sm:$0xff]  ;;  %v10953_v23 = vld [vmem:[#allocation3 + $0x2b8] sm:$0xff]  }
 0x409   : > { %9053 = vmatprep.subr.bf16.mxu0 %v10947_v42  ;;  %9189 = vmatprep.subr.bf16.mxu1 %v10967_v19  ;;  %3590 = vst [vmem:[#allocation2 + $0x78] sm:$0xff] %v12499_v28  ;;  %3686 = vst [vmem:[#allocation2 + $0x88] sm:$0xff] %v3685_v10  ;;  %v3498_v56 = vshrl.u32 %v12494_v50, 16  ;;  %v3501_v30 = vshll.u32 %v12494_v50, 16  ;;  %v3330_v16 = vadd.f32 %v9975_v48, %v12414_v9  ;;  %v3321_v8 = vpop.f32.mrb[177].mxu1  ;;  %v10972_v52 = vld [vmem:[#allocation3 + $0x3f0] sm:$0xff]  }
 0x40a   : > { %3439 = vst [vmem:[#allocation2 + $0xc8] sm:$0xff] %v12494_v50  ;;  %4107 = vmatmul.mubr.bf16.gmra.mrb[200].mxu1 %v12469_v49  ;;  %10013 = vmatprep.mubr.bf16.mxu0 %v3685_v10  ;;  %v3491_v26 = vshrl.u32 %v12503_v39, 16  ;;  %v3494_v3 = vshll.u32 %v12503_v39, 16  ;;  %v3322_v34 = vadd.f32 %v12414_v9, %v3321_v8  ;;  %v9976_v35 = vpop.f32.mrb[178].mxu1 }
 0x40b   : > { %4114 = vmatprep.mubr.bf16.mxu1 %v12435_v57  ;;  %10014 = vmatmul.mubr.bf16.gmra.mrb[104].mxu0 %v3688_v55  ;;  %v3500_v44 = vrot.slane %v3498_v56, 7  ;;  %v3638_v6 = vrot.slane %v3501_v30, 1  ;;  %v3333_v61 = vadd.f32 %v9976_v35, %v12414_v9  ;;  %v3324_v37 = vpop.f32.mrb[179].mxu1  ;;  %v3402_v7 = vmax.f32 %v3330_v16, 0.0  ;;  %v10973_v55 = vld [vmem:[#allocation3 + $0x438] sm:$0xff]  }
 0x40c   : > { %9054 = vmatpush3.bf16.msra.mxu0 %v10948_v51  ;;  %9190 = vmatpush3.bf16.msra.mxu1 %v10968_v18  ;;  %v3493_v27 = vrot.slane %v3491_v26, 7  ;;  %v3636_v60 = vrot.slane %v3494_v3, 1  ;;  %v3325_v33 = vadd.f32 %v12414_v9, %v3324_v37  ;;  %v3400_v42 = vmax.f32 %v3322_v34, 0.0  ;;  %v10974_v34 = vld [vmem:[#allocation3 + $0x3f8] sm:$0xff]  }
 0x40d   : > { %9055 = vmatprep.subr.bf16.mxu0 %v10949_v14  ;;  %9191 = vmatprep.subr.bf16.mxu1 %v10969_v4  ;;  %v3503_v11 = vor.u32 %v3501_v30, %v3500_v44  ;;  %v3639_v59 = vor.u32 %v3638_v6, %v3498_v56  ;;  %v3403_v41 = vmax.f32 %v3333_v61, 0.0  ;;  %v12545_v61 = vld [vmem:[#allocation3 + $0x2c0] sm:$0xff]  }
 0x40e   : > { %v3496_v22 = vor.u32 %v3494_v3, %v3493_v27  ;;  %v3637_v29 = vor.u32 %v3636_v60, %v3491_v26  ;;  %v3401_v19 = vmax.f32 %v3325_v33, 0.0  ;;  %v10954_v3 = vld [vmem:[#allocation3 + $0x278] sm:$0xff]   ;;  %v3603_v60 = vld [vmem:[#allocation2 + $0xf0] sm:$0xff]  ;;  %v3699_v33 = vld [vmem:[#allocation2 + $0x100] sm:$0xff] }
 0x40f   : > { %v12519_v62 = vsel %vm11614_vm9, %v3503_v11, %v3597_v12  ;;  %v3694_v21 = vsel %vm11621_vm10, %v3639_v59, %v3693_v2  ;;  %v12523_v24 = vpack.c.bf16 %v3403_v41, %v3402_v7  ;;  %v3600_v12 = vld [vmem:[#allocation2 + $0xd8] sm:$0xff]  ;;  %v3696_v2 = vld [vmem:[#allocation2 + $0xe8] sm:$0xff] }
 0x410   : > { %9056 = vmatpush3.bf16.msra.mxu0 %v10950_v17  ;;  %9192 = vmatpush3.bf16.msra.mxu1 %v10970_v54  ;;  %3599 = vst [vmem:[#allocation2 + $0xc0] sm:$0xff] %v12519_v62  ;;  %3695 = vst [vmem:[#allocation2 + $0xd0] sm:$0xff] %v3694_v21  ;;  %v12528_v53 = vsel %vm11614_vm9, %v3496_v22, %v3594_v15  ;;  %v3691_v63 = vsel %vm11621_vm10, %v3637_v29, %v3690_v25  ;;  %v9979_v1 = vpop.f32.mrb[180].mxu1 }
 0x411   : > { %v12532_v31 = vpack.c.bf16 %v3401_v19, %v3400_v42  ;;  %9057 = vmatprep.subr.bf16.mxu0 %v10951_v20  ;;  %9193 = vmatprep.subr.bf16.mxu1 %v10971_v32  ;;  %3596 = vst [vmem:[#allocation2 + $0xa8] sm:$0xff] %v12528_v53  ;;  %3692 = vst [vmem:[#allocation2 + $0xb8] sm:$0xff] %v3691_v63  ;;  %v3512_v0 = vshrl.u32 %v12523_v24, 16  ;;  %v3515_v51 = vshll.u32 %v12523_v24, 16  ;;  %v3337_v10 = vpop.f32.mrb[181].mxu1 }
 0x412   : > { %v3346_v18 = vadd.f32 %v9979_v1, %v12414_v9  ;;  %4115 = vmatmul.mubr.bf16.gmra.mrb[204].mxu1 %v12460_v46  ;;  %10017 = vmatprep.mubr.bf16.mxu0 %v3691_v63  ;;  %v3338_v4 = vadd.f32 %v12414_v9, %v3337_v10  ;;  %v9980_v56 = vpop.f32.mrb[182].mxu1 }
 0x413   : > { %v3505_v48 = vshrl.u32 %v12532_v31, 16  ;;  %v3508_v14 = vshll.u32 %v12532_v31, 16  ;;  %4122 = vmatprep.mubr.bf16.mxu1 %v12473_v5  ;;  %10018 = vmatmul.mubr.bf16.gmra.mrb[108].mxu0 %v3694_v21  ;;  %v3514_v30 = vrot.slane %v3512_v0, 7  ;;  %v3642_v16 = vrot.slane %v3515_v51, 1  ;;  %v3340_v26 = vpop.f32.mrb[183].mxu1 }
 0x414   : > { %v3349_v8 = vadd.f32 %v9980_v56, %v12414_v9  ;;  %9058 = vmatpush3.bf16.msra.mxu0 %v10952_v45  ;;  %9194 = vmatpush3.bf16.msra.mxu1 %v10972_v52  ;;  %v3341_v6 = vadd.f32 %v12414_v9, %v3340_v26  ;;  %v3406_v54 = vmax.f32 %v3346_v18, 0.0  ;;  %v3404_v11 = vmax.f32 %v3338_v4, 0.0  ;;  %v3609_v26 = vld [vmem:[#allocation2 + $0x120] sm:$0xff] }
 0x415   : > { %v3507_v35 = vrot.slane %v3505_v48, 7  ;;  %v3640_v44 = vrot.slane %v3508_v14, 1  ;;  %9059 = vmatprep.subr.bf16.mxu0 %v10953_v23  ;;  %9195 = vmatprep.subr.bf16.mxu1 %v10973_v55  ;;  %v3517_v37 = vor.u32 %v3515_v51, %v3514_v30  ;;  %v3643_v17 = vor.u32 %v3642_v16, %v3512_v0 }
 0x416   : > { %v3407_v27 = vmax.f32 %v3349_v8, 0.0  ;;  %v3405_v59 = vmax.f32 %v3341_v6, 0.0 }
 0x417   : > { %v3510_v20 = vor.u32 %v3508_v14, %v3507_v35  ;;  %v3641_v32 = vor.u32 %v3640_v44, %v3505_v48  ;;  %v12549_v7 = vsel %vm11614_vm9, %v3517_v37, %v3603_v60  ;;  %v3700_v41 = vsel %vm11621_vm10, %v3643_v17, %v3699_v33 }
 0x418   : > { %v12553_v22 = vpack.c.bf16 %v3407_v27, %v3406_v54  ;;  %9060 = vmatpush3.bf16.msra.mxu0 %v10954_v3  ;;  %9196 = vmatpush3.bf16.msra.mxu1 %v10974_v34  ;;  %3605 = vst [vmem:[#allocation2 + $0xf0] sm:$0xff] %v12549_v7  ;;  %3701 = vst [vmem:[#allocation2 + $0x100] sm:$0xff] %v3700_v41  ;;  %v12562_v42 = vpack.c.bf16 %v3405_v59, %v3404_v11  ;;  %v9983_v19 = vpop.f32.mrb[184].mxu1  ;;  %v3705_v3 = vld [vmem:[#allocation2 + $0x130] sm:$0xff]  ;;  %v3606_v54 = vld [vmem:[#allocation2 + $0x108] sm:$0xff] }
 0x419   : > { %v12558_v15 = vsel %vm11614_vm9, %v3510_v20, %v3600_v12  ;;  %v3697_v29 = vsel %vm11621_vm10, %v3641_v32, %v3696_v2  ;;  %10037 = vmatprep.subr.bf16.mxu0 %v12545_v61  ;;  %v3362_v45 = vadd.f32 %v9983_v19, %v12414_v9  ;;  %v3353_v52 = vpop.f32.mrb[185].mxu1  ;;  %v3702_v27 = vld [vmem:[#allocation2 + $0x118] sm:$0xff] }
 0x41a   : > { %3602 = vst [vmem:[#allocation2 + $0xd8] sm:$0xff] %v12558_v15  ;;  %3698 = vst [vmem:[#allocation2 + $0xe8] sm:$0xff] %v3697_v29  ;;  %v3526_v21 = vshrl.u32 %v12553_v22, 16  ;;  %v3529_v25 = vshll.u32 %v12553_v22, 16  ;;  %4123 = vmatmul.mubr.bf16.gmra.mrb[208].mxu1 %v12499_v28  ;;  %10021 = vmatprep.mubr.bf16.mxu0 %v3697_v29  ;;  %v3519_v63 = vshrl.u32 %v12562_v42, 16  ;;  %v3522_v1 = vshll.u32 %v12562_v42, 16 }
 0x41b   : > { %v3354_v23 = vadd.f32 %v12414_v9, %v3353_v52  ;;  %v9984_v55 = vpop.f32.mrb[186].mxu1  ;;  %4130 = vmatprep.mubr.bf16.mxu1 %v12464_v43  ;;  %10022 = vmatmul.mubr.bf16.gmra.mrb[112].mxu0 %v3700_v41  ;;  %v3410_v16 = vmax.f32 %v3362_v45, 0.0 }
 0x41c   : > { %v3528_v0 = vrot.slane %v3526_v21, 7  ;;  %v3646_v51 = vrot.slane %v3529_v25, 1  ;;  %v3365_v18 = vadd.f32 %v9984_v55, %v12414_v9  ;;  %v3356_v10 = vpop.f32.mrb[187].mxu1  ;;  %v3521_v48 = vrot.slane %v3519_v63, 7 }
 0x41d   : > { %v3644_v14 = vrot.slane %v3522_v1, 1  ;;  %v3357_v4 = vadd.f32 %v12414_v9, %v3356_v10  ;;  %v3408_v44 = vmax.f32 %v3354_v23, 0.0 }
 0x41e   : > { %v3531_v56 = vor.u32 %v3529_v25, %v3528_v0  ;;  %v3647_v30 = vor.u32 %v3646_v51, %v3526_v21  ;;  %v3411_v8 = vmax.f32 %v3365_v18, 0.0  ;;  %v3524_v34 = vor.u32 %v3522_v1, %v3521_v48 }
 0x41f   : > { %v3645_v35 = vor.u32 %v3644_v14, %v3519_v63  ;;  %v3409_v6 = vmax.f32 %v3357_v4, 0.0  ;;  %v3615_v14 = vld [vmem:[#allocation2 + $0x150] sm:$0xff]  ;;  %v3711_v4 = vld [vmem:[#allocation2 + $0x160] sm:$0xff] }
 0x420   : > { %v12578_v37 = vsel %vm11614_vm9, %v3531_v56, %v3609_v26  ;;  %v3706_v17 = vsel %vm11621_vm10, %v3647_v30, %v3705_v3  ;;  %v12582_v60 = vpack.c.bf16 %v3411_v8, %v3410_v16  ;;  %v12587_v33 = vsel %vm11614_vm9, %v3524_v34, %v3606_v54  ;;  %v9987_v11 = vpop.f32.mrb[188].mxu1  ;;  %v3612_v34 = vld [vmem:[#allocation2 + $0x138] sm:$0xff] }
 0x421   : > { %3611 = vst [vmem:[#allocation2 + $0x120] sm:$0xff] %v12578_v37  ;;  %3707 = vst [vmem:[#allocation2 + $0x130] sm:$0xff] %v3706_v17  ;;  %v12591_v20 = vsel %vm11621_vm10, %v3645_v35, %v3702_v27  ;;  %v12593_v32 = vpack.c.bf16 %v3409_v6, %v3408_v44  ;;  %v3378_v12 = vadd.f32 %v9987_v11, %v12414_v9  ;;  %v3369_v2 = vpop.f32.mrb[189].mxu1 }
 0x422   : > { %3608 = vst [vmem:[#allocation2 + $0x108] sm:$0xff] %v12587_v33  ;;  %3704 = vst [vmem:[#allocation2 + $0x118] sm:$0xff] %v12591_v20  ;;  %v3540_v59 = vshrl.u32 %v12582_v60, 16  ;;  %v3543_v41 = vshll.u32 %v12582_v60, 16  ;;  %4131 = vmatmul.mubr.bf16.gmra.mrb[212].mxu1 %v12490_v47  ;;  %10025 = vmatprep.mubr.bf16.mxu0 %v12591_v20  ;;  %v3370_v21 = vadd.f32 %v12414_v9, %v3369_v2  ;;  %v9988_v25 = vpop.f32.mrb[190].mxu1 }
 0x423   : > { %v3533_v29 = vshrl.u32 %v12593_v32, 16  ;;  %v3536_v19 = vshll.u32 %v12593_v32, 16  ;;  %4138 = vmatprep.mubr.bf16.mxu1 %v12503_v39  ;;  %10026 = vmatmul.mubr.bf16.gmra.mrb[116].mxu0 %v3706_v17  ;;  %v3381_v63 = vadd.f32 %v9988_v25, %v12414_v9  ;;  %v3372_v1 = vpop.f32.mrb[191].mxu1  ;;  %v3414_v10 = vmax.f32 %v3378_v12, 0.0  ;;  %v3621_v25 = vld [vmem:[#allocation2 + $0x180] sm:$0xff] }
 0x424   : > { %v3542_v45 = vrot.slane %v3540_v59, 7  ;;  %v3650_v52 = vrot.slane %v3543_v41, 1  ;;  %v3373_v0 = vadd.f32 %v12414_v9, %v3372_v1  ;;  %v3412_v16 = vmax.f32 %v3370_v21, 0.0  ;;  %v3708_v9 = vld [vmem:[#allocation2 + $0x148] sm:$0xff] }
 0x425   : > { %v3535_v23 = vrot.slane %v3533_v29, 7  ;;  %v3648_v55 = vrot.slane %v3536_v19, 1  ;;  %v3415_v48 = vmax.f32 %v3381_v63, 0.0 }
 0x426   : > { %v3545_v51 = vor.u32 %v3543_v41, %v3542_v45  ;;  %v3651_v18 = vor.u32 %v3650_v52, %v3540_v59  ;;  %v3413_v8 = vmax.f32 %v3373_v0, 0.0  ;;  %v3717_v45 = vld [vmem:[#allocation2 + $0x190] sm:$0xff]  ;;  %v3714_v0 = vld [vmem:[#allocation2 + $0x178] sm:$0xff] }
 0x427   : > { %v3538_v56 = vor.u32 %v3536_v19, %v3535_v23  ;;  %v3649_v30 = vor.u32 %v3648_v55, %v3533_v29  ;;  %v12616_v35 = vpack.c.bf16 %v3415_v48, %v3414_v10  ;;  %v3618_v55 = vld [vmem:[#allocation2 + $0x168] sm:$0xff]  ;;  %v10960_v48 = vld [vmem:[#allocation3 + $0x2c8] sm:$0xff]  }
 0x428   : > { %v12610_v26 = vsel %vm11614_vm9, %v3545_v51, %v3615_v14  ;;  %v12614_v3 = vsel %vm11621_vm10, %v3651_v18, %v3711_v4  ;;  %v12628_v17 = vpack.c.bf16 %v3413_v8, %v3412_v16  ;;  %v12660_v10 = vld [vmem:[#allocation2 + $0x8] sm:$0xff]  ;;  %v10963_v14 = vld [vmem:[#allocation3 + $0x2d0] sm:$0xff]   ;;  %v12678_v8 = vld [vmem:[#allocation3 + $0x440] sm:$0xff]  }
 0x429   : > { %3617 = vst [vmem:[#allocation2 + $0x150] sm:$0xff] %v12610_v26  ;;  %3713 = vst [vmem:[#allocation2 + $0x160] sm:$0xff] %v12614_v3  ;;  %v12622_v44 = vsel %vm11614_vm9, %v3538_v56, %v3612_v34  ;;  %v12626_v6 = vsel %vm11621_vm10, %v3649_v30, %v3708_v9  ;;  %v3554_v54 = vshrl.u32 %v12616_v35, 16  ;;  %v3557_v27 = vshll.u32 %v12616_v35, 16  ;;  %v10966_v4 = vld [vmem:[#allocation3 + $0x2d8] sm:$0xff]   ;;  %v3727_v56 = vld [vmem:[#allocation2 + $0x38] sm:$0xff] }
 0x42a   : > { %3614 = vst [vmem:[#allocation2 + $0x138] sm:$0xff] %v12622_v44  ;;  %3710 = vst [vmem:[#allocation2 + $0x148] sm:$0xff] %v12626_v6  ;;  %4139 = vmatmul.mubr.bf16.gmra.mrb[216].mxu1 %v12528_v53  ;;  %10029 = vmatprep.mubr.bf16.mxu0 %v12626_v6  ;;  %v3547_v11 = vshrl.u32 %v12628_v17, 16  ;;  %v3550_v59 = vshll.u32 %v12628_v17, 16  ;;  %v10975_v30 = vld [vmem:[#allocation3 + $0x2e0] sm:$0xff]   ;;  %v10977_v16 = vld [vmem:[#allocation3 + $0x2f0] sm:$0xff]  }
 0x42b   : > { %4146 = vmatprep.mubr.bf16.mxu1 %v12494_v50  ;;  %10030 = vmatmul.mubr.bf16.gmra.mrb[120].mxu0 %v12614_v3  ;;  %v3556_v41 = vrot.slane %v3554_v54, 7  ;;  %v3654_v12 = vrot.slane %v3557_v27, 1  ;;  %v12719_v34 = vld [vmem:[#allocation2 + $0x40] sm:$0xff]  ;;  %v10984_v9 = vld [vmem:[#allocation3 + $0x468] sm:$0xff]  }
 0x42c   : > { %v3549_v2 = vrot.slane %v3547_v11, 7  ;;  %v3652_v29 = vrot.slane %v3550_v59, 1 }
 0x42d   : > { %v3559_v19 = vor.u32 %v3557_v27, %v3556_v41  ;;  %v3655_v21 = vor.u32 %v3654_v12, %v3554_v54  ;;  %v12732_v54 = vld [vmem:[#allocation2 + $0x88] sm:$0xff]  ;;  %v10985_v27 = vld [vmem:[#allocation3 + $0x470] sm:$0xff]  }
 0x42e   : > { %v3552_v52 = vor.u32 %v3550_v59, %v3549_v2  ;;  %v3653_v63 = vor.u32 %v3652_v29, %v3547_v11  ;;  %v10986_v2 = vld [vmem:[#allocation3 + $0x478] sm:$0xff]   ;;  %v12748_v29 = vld [vmem:[#allocation2 + $0xd0] sm:$0xff] }
 0x42f   : > { %v12642_v1 = vsel %vm11614_vm9, %v3559_v19, %v3621_v25  ;;  %v3718_v23 = vsel %vm11621_vm10, %v3655_v21, %v3717_v45 }
 0x430   : > { %3623 = vst [vmem:[#allocation2 + $0x180] sm:$0xff] %v12642_v1  ;;  %3719 = vst [vmem:[#allocation2 + $0x190] sm:$0xff] %v3718_v23  ;;  %v12649_v51 = vsel %vm11614_vm9, %v3552_v52, %v3618_v55  ;;  %v12653_v18 = vsel %vm11621_vm10, %v3653_v63, %v3714_v0  ;;  %v12756_v63 = vld [vmem:[#allocation2 + $0xe8] sm:$0xff] }
 0x431   : > { %3620 = vst [vmem:[#allocation2 + $0x168] sm:$0xff] %v12649_v51  ;;  %3716 = vst [vmem:[#allocation2 + $0x178] sm:$0xff] %v12653_v18  ;;  %10033 = vmatprep.mubr.bf16.mxu0 %v12653_v18 }
 0x432   : > { %4147 = vmatmul.mubr.bf16.gmra.mrb[220].mxu1 %v12519_v62 }
 0x433   : > { %4154 = vmatprep.mubr.bf16.mxu1 %v12532_v31  ;;  %10034 = vmatmul.mubr.bf16.gmra.mrb[124].mxu0 %v3718_v23 }
 0x434   : > { %4556 = vmatprep.mubr.bf16.mxu0 %v12660_v10 }
 0x43a   : > { %4155 = vmatmul.mubr.bf16.gmra.mrb[224].mxu1 %v12558_v15 }
 0x43b   : > { %4162 = vmatprep.mubr.bf16.mxu1 %v12523_v24  ;;  %4557 = vmatmul.mubr.bf16.vlgmr.msra.gmra.mrb[128].mxu0 %v12660_v10 }
 0x43c   : > { %10038 = vmatpush3.bf16.msra.mxu0 %v12545_v61  ;;  %4564 = vmatprep.mubr.bf16.mxu0 %v12420_v38  ;;  %v10976_v61 = vld [vmem:[#allocation3 + $0x2e8] sm:$0xff]   ;;  %v3726_v38 = vld [vmem:[#allocation2 + $0x30] sm:$0xff] }
 0x43d   : > { %10039 = vmatprep.subr.bf16.mxu0 %v10960_v48 }
 0x440   : > { %10040 = vmatpush3.bf16.msra.mxu0 %v10960_v48 }
 0x441   : > { %10041 = vmatprep.subr.bf16.mxu0 %v10963_v14 }
 0x442   : > { %4163 = vmatmul.mubr.bf16.gmra.mrb[228].mxu1 %v12549_v7 }
 0x443   : > { %4170 = vmatprep.mubr.bf16.mxu1 %v12562_v42  ;;  %4565 = vmatmul.mubr.bf16.gmra.mrb[132].mxu0 %v12440_v13  ;;  %v10978_v13 = vld [vmem:[#allocation3 + $0x2f8] sm:$0xff]  }
 0x444   : > { %4572 = vmatprep.mubr.bf16.mxu0 %v3727_v56  ;;  %10042 = vmatpush3.bf16.msra.mxu0 %v10963_v14 }
 0x445   : > { %10043 = vmatprep.subr.bf16.mxu0 %v10966_v4 }
 0x448   : > { %10044 = vmatpush3.bf16.msra.mxu0 %v10966_v4 }
 0x449   : > { %10045 = vmatprep.subr.bf16.mxu0 %v10975_v30 }
 0x44a   : > { %4171 = vmatmul.mubr.bf16.gmra.mrb[232].mxu1 %v12587_v33 }
 0x44b   : > { %4178 = vmatprep.mubr.bf16.mxu1 %v12553_v22  ;;  %4573 = vmatmul.mubr.bf16.gmra.mrb[136].mxu0 %v3726_v38 }
 0x44c   : > { %4580 = vmatprep.mubr.bf16.mxu0 %v12444_v58  ;;  %10046 = vmatpush3.bf16.msra.mxu0 %v10975_v30  ;;  %v4849_v58 = vld [vmem:[#allocation2 + $0x48] sm:$0xff] }
 0x44d   : > { %10047 = vmatprep.subr.bf16.mxu0 %v10976_v61 }
 0x450   : > { %10048 = vmatpush3.bf16.msra.mxu0 %v10976_v61 }
 0x451   : > { %10049 = vmatprep.subr.bf16.mxu0 %v10977_v16 }
 0x452   : > { %4179 = vmatmul.mubr.bf16.gmra.mrb[236].mxu1 %v12578_v37 }
 0x453   : > { %4186 = vmatprep.mubr.bf16.mxu1 %v12593_v32  ;;  %4581 = vmatmul.mubr.bf16.gmra.mrb[140].mxu0 %v12469_v49  ;;  %v4856_v49 = vld [vmem:[#allocation2 + $0x80] sm:$0xff] }
 0x454   : > { %4588 = vmatprep.mubr.bf16.mxu0 %v12435_v57  ;;  %10050 = vmatpush3.bf16.msra.mxu0 %v10977_v16  ;;  %v4850_v57 = vld [vmem:[#allocation2 + $0x50] sm:$0xff] }
 0x455   : > { %10051 = vmatprep.subr.bf16.mxu0 %v10978_v13 }
 0x458   : > { %10052 = vmatpush3.bf16.msra.mxu0 %v10978_v13 }
 0x459   : > { %10085 = vmatprep.subr.bf16.mxu0 %v12678_v8 }
 0x45a   : > { %4187 = vmatmul.mubr.bf16.gmra.mrb[240].mxu1 %v12622_v44 }
 0x45b   : > { %4194 = vmatprep.mubr.bf16.mxu1 %v12582_v60  ;;  %4589 = vmatmul.mubr.bf16.gmra.mrb[144].mxu0 %v12460_v46  ;;  %v4853_v46 = vld [vmem:[#allocation2 + $0x68] sm:$0xff] }
 0x45c   : > { %4596 = vmatprep.mubr.bf16.mxu0 %v12473_v5  ;;  %v4855_v5 = vld [vmem:[#allocation2 + $0x78] sm:$0xff] }
 0x462   : > { %4195 = vmatmul.mubr.bf16.gmra.mrb[244].mxu1 %v12610_v26 }
 0x463   : > { %4202 = vmatprep.mubr.bf16.mxu1 %v12628_v17  ;;  %4597 = vmatmul.mubr.bf16.gmra.mrb[148].mxu0 %v12499_v28  ;;  %v4865_v28 = vld [vmem:[#allocation2 + $0xc8] sm:$0xff] }
 0x464   : > { %4604 = vmatprep.mubr.bf16.mxu0 %v12464_v43  ;;  %v4852_v43 = vld [vmem:[#allocation2 + $0x60] sm:$0xff] }
 0x46a   : > { %4203 = vmatmul.mubr.bf16.gmra.mrb[248].mxu1 %v12649_v51 }
 0x46b   : > { %4210 = vmatprep.mubr.bf16.mxu1 %v12616_v35  ;;  %4605 = vmatmul.mubr.bf16.gmra.mrb[152].mxu0 %v12490_v47  ;;  %v4859_v47 = vld [vmem:[#allocation2 + $0x98] sm:$0xff] }
 0x46c   : > { %4612 = vmatprep.mubr.bf16.mxu0 %v12503_v39 }
 0x472   : > { %4211 = vmatmul.mubr.bf16.gmra.mrb[252].mxu1 %v12642_v1 }
 0x473   : > { %4613 = vmatmul.mubr.bf16.gmra.mrb[156].mxu0 %v12528_v53  ;;  %5119 = vmatprep.mubr.bf16.mxu1 %v3727_v56 }
 0x474   : > { %4620 = vmatprep.mubr.bf16.mxu0 %v12494_v50  ;;  %v4858_v50 = vld [vmem:[#allocation2 + $0x90] sm:$0xff] }
 0x47a   : > { %5120 = vmatmul.mubr.bf16.vlgmr.msra.gmra.mrb[0].mxu1 %v3726_v38  ;;  %v10987_v38 = vld [vmem:[%s13956_s3 + $0x80] sm:$0xff]  }
 0x47b   : > { %4621 = vmatmul.mubr.bf16.gmra.mrb[160].mxu0 %v12519_v62  ;;  %5127 = vmatprep.mubr.bf16.mxu1 %v4850_v57  ;;  %v4864_v62 = vld [vmem:[#allocation2 + $0xc0] sm:$0xff] }
 0x47c   : > { %4628 = vmatprep.mubr.bf16.mxu0 %v12532_v31  ;;  %10133 = vmatprep.subr.bf16.mxu1 %v10987_v38 }
 0x47d   : > { %10134 = vmatpush3.bf16.msra.mxu1 %v10987_v38 }
 0x482   : > { %5128 = vmatmul.mubr.bf16.gmra.mrb[4].mxu1 %v4849_v58 }
 0x483   : > { %4629 = vmatmul.mubr.bf16.gmra.mrb[164].mxu0 %v12558_v15  ;;  %5135 = vmatprep.mubr.bf16.mxu1 %v4853_v46 }
 0x484   : > { %4636 = vmatprep.mubr.bf16.mxu0 %v12523_v24 }
 0x48a   : > { %5136 = vmatmul.mubr.bf16.gmra.mrb[8].mxu1 %v4852_v43  ;;  %v10988_v43 = vld [vmem:[%s13956_s3 + $0x88] sm:$0xff]  }
 0x48b   : > { %4637 = vmatmul.mubr.bf16.gmra.mrb[168].mxu0 %v12549_v7  ;;  %5143 = vmatprep.mubr.bf16.mxu1 %v4856_v49 }
 0x48c   : > { %4644 = vmatprep.mubr.bf16.mxu0 %v12562_v42  ;;  %10135 = vmatprep.subr.bf16.mxu1 %v10988_v43 }
 0x48d   : > { %10136 = vmatpush3.bf16.msra.mxu1 %v10988_v43 }
 0x492   : > { %5144 = vmatmul.mubr.bf16.gmra.mrb[12].mxu1 %v4855_v5 }
 0x493   : > { %4645 = vmatmul.mubr.bf16.gmra.mrb[172].mxu0 %v12587_v33  ;;  %5151 = vmatprep.mubr.bf16.mxu1 %v4859_v47 }
 0x494   : > { %4652 = vmatprep.mubr.bf16.mxu0 %v12553_v22 }
 0x49a   : > { %5152 = vmatmul.mubr.bf16.gmra.mrb[16].mxu1 %v4858_v50 }
 0x49b   : > { %4653 = vmatmul.mubr.bf16.gmra.mrb[176].mxu0 %v12578_v37  ;;  %5159 = vmatprep.mubr.bf16.mxu1 %v12503_v39  ;;  %v10980_v39 = vld [vmem:[#allocation3 + $0x448] sm:$0xff]  }
 0x49c   : > { %4660 = vmatprep.mubr.bf16.mxu0 %v12593_v32 }
 0x4a2   : > { %5160 = vmatmul.mubr.bf16.gmra.mrb[20].mxu1 %v12528_v53  ;;  %v3725_v53 = vld [vmem:[#allocation2 + $0x28] sm:$0xff] }
 0x4a3   : > { %4661 = vmatmul.mubr.bf16.gmra.mrb[180].mxu0 %v12622_v44  ;;  %5167 = vmatprep.mubr.bf16.mxu1 %v4865_v28 }
 0x4a4   : > { %4668 = vmatprep.mubr.bf16.mxu0 %v12582_v60 }
 0x4aa   : > { %5168 = vmatmul.mubr.bf16.gmra.mrb[24].mxu1 %v4864_v62 }
 0x4ab   : > { %4669 = vmatmul.mubr.bf16.gmra.mrb[184].mxu0 %v12610_v26  ;;  %5175 = vmatprep.mubr.bf16.mxu1 %v12532_v31  ;;  %v10981_v31 = vld [vmem:[#allocation3 + $0x450] sm:$0xff]  }
 0x4ac   : > { %4676 = vmatprep.mubr.bf16.mxu0 %v12628_v17 }
 0x4b2   : > { %5176 = vmatmul.mubr.bf16.gmra.mrb[28].mxu1 %v12558_v15  ;;  %v12724_v15 = vld [vmem:[#allocation2 + $0x58] sm:$0xff] }
 0x4b3   : > { %4677 = vmatmul.mubr.bf16.gmra.mrb[188].mxu0 %v12649_v51  ;;  %5183 = vmatprep.mubr.bf16.mxu1 %v12523_v24  ;;  %v10982_v24 = vld [vmem:[#allocation3 + $0x458] sm:$0xff]  }
 0x4b4   : > { %10053 = vmatprep.mubr.bf16.mxu0 %v12660_v10 }
 0x4ba   : > { %5184 = vmatmul.mubr.bf16.gmra.mrb[32].mxu1 %v12549_v7  ;;  %v12728_v7 = vld [vmem:[#allocation2 + $0x70] sm:$0xff] }
 0x4bb   : > { %10054 = vmatmul.mubr.bf16.vlgmr.msra.gmra.mrb[96].mxu0 %v3725_v53  ;;  %5191 = vmatprep.mubr.bf16.mxu1 %v12562_v42  ;;  %v10983_v42 = vld [vmem:[#allocation3 + $0x460] sm:$0xff]  }
 0x4bc   : > { %10086 = vmatpush3.bf16.msra.mxu0 %v12678_v8  ;;  %10057 = vmatprep.mubr.bf16.mxu0 %v12719_v34 }
 0x4bd   : > { %10087 = vmatprep.subr.bf16.mxu0 %v10980_v39 }
 0x4c0   : > { %10088 = vmatpush3.bf16.msra.mxu0 %v10980_v39 }
 0x4c1   : > { %10089 = vmatprep.subr.bf16.mxu0 %v10981_v31 }
 0x4c2   : > { %5192 = vmatmul.mubr.bf16.gmra.mrb[36].mxu1 %v12587_v33  ;;  %v12736_v33 = vld [vmem:[#allocation2 + $0xa0] sm:$0xff] }
 0x4c3   : > { %10058 = vmatmul.mubr.bf16.gmra.mrb[100].mxu0 %v12724_v15  ;;  %5199 = vmatprep.mubr.bf16.mxu1 %v12553_v22 }
 0x4c4   : > { %10061 = vmatprep.mubr.bf16.mxu0 %v12728_v7  ;;  %10090 = vmatpush3.bf16.msra.mxu0 %v10981_v31 }
 0x4c5   : > { %10091 = vmatprep.subr.bf16.mxu0 %v10982_v24 }
 0x4c8   : > { %10092 = vmatpush3.bf16.msra.mxu0 %v10982_v24 }
 0x4c9   : > { %10093 = vmatprep.subr.bf16.mxu0 %v10983_v42 }
 0x4ca   : > { %5200 = vmatmul.mubr.bf16.gmra.mrb[40].mxu1 %v12578_v37 }
 0x4cb   : > { %10062 = vmatmul.mubr.bf16.gmra.mrb[104].mxu0 %v12732_v54  ;;  %5207 = vmatprep.mubr.bf16.mxu1 %v12593_v32  ;;  %v12744_v32 = vld [vmem:[#allocation2 + $0xb8] sm:$0xff] }
 0x4cc   : > { %10065 = vmatprep.mubr.bf16.mxu0 %v12736_v33  ;;  %10094 = vmatpush3.bf16.msra.mxu0 %v10983_v42  ;;  %v8925_v22 = vpop.f32.mrb[192].mxu1 }
 0x4cd   : > { %10095 = vmatprep.subr.bf16.mxu0 %v10984_v9  ;;  %v8926_v11 = vpop.f32.mrb[193].mxu1 }
 0x4ce   : > { %v12739_v59 = vadd.f32 %v8926_v11, %v8925_v22  ;;  %v8928_v41 = vpop.f32.mrb[194].mxu1 }
 0x4cf   : > { %v8929_v12 = vpop.f32.mrb[195].mxu1 }
 0x4d0   : > { %10096 = vmatpush3.bf16.msra.mxu0 %v10984_v9  ;;  %v12741_v37 = vadd.f32 %v8929_v12, %v8928_v41 }
 0x4d1   : > { %10097 = vmatprep.subr.bf16.mxu0 %v10985_v27 }
 0x4d2   : > { %5208 = vmatmul.mubr.bf16.gmra.mrb[44].mxu1 %v12622_v44 }
 0x4d3   : > { %10066 = vmatmul.mubr.bf16.gmra.mrb[108].mxu0 %v12744_v32  ;;  %5215 = vmatprep.mubr.bf16.mxu1 %v12582_v60  ;;  %v12760_v60 = vld [vmem:[#allocation2 + $0x100] sm:$0xff] }
 0x4d4   : > { %10069 = vmatprep.mubr.bf16.mxu0 %v12748_v29  ;;  %10098 = vmatpush3.bf16.msra.mxu0 %v10985_v27  ;;  %v8931_v19 = vpop.f32.mrb[196].mxu1 }
 0x4d5   : > { %10099 = vmatprep.subr.bf16.mxu0 %v10986_v2  ;;  %v8932_v21 = vpop.f32.mrb[197].mxu1 }
 0x4d6   : > { %v12751_v25 = vadd.f32 %v8932_v21, %v8931_v19  ;;  %v8934_v45 = vpop.f32.mrb[198].mxu1 }
 0x4d7   : > { %v8935_v52 = vpop.f32.mrb[199].mxu1 }
 0x4d8   : > { %10100 = vmatpush3.bf16.msra.mxu0 %v10986_v2  ;;  %v12753_v44 = vadd.f32 %v8935_v52, %v8934_v45 }
 0x4da   : > { %5216 = vmatmul.mubr.bf16.gmra.mrb[48].mxu1 %v12610_v26  ;;  %v12770_v26 = vld [vmem:[#allocation2 + $0x130] sm:$0xff] }
 0x4db   : > { %10070 = vmatmul.mubr.bf16.gmra.mrb[112].mxu0 %v12756_v63  ;;  %5223 = vmatprep.mubr.bf16.mxu1 %v12628_v17 }
 0x4dc   : > { %10073 = vmatprep.mubr.bf16.mxu0 %v12760_v60 }
 0x4dd   : > { %v8937_v23 = vpop.f32.mrb[200].mxu1 }
 0x4de   : > { %v8938_v55 = vpop.f32.mrb[201].mxu1 }
 0x4df   : > { %v12763_v0 = vadd.f32 %v8938_v55, %v8937_v23  ;;  %v8940_v48 = vpop.f32.mrb[202].mxu1 }
 0x4e0   : > { %v8941_v14 = vpop.f32.mrb[203].mxu1 }
 0x4e1   : > { %v12765_v4 = vadd.f32 %v8941_v14, %v8940_v48 }
 0x4e2   : > { %5224 = vmatmul.mubr.bf16.gmra.mrb[52].mxu1 %v12649_v51 }
 0x4e3   : > { %10074 = vmatmul.mubr.bf16.gmra.mrb[116].mxu0 %v12591_v20  ;;  %5231 = vmatprep.mubr.bf16.mxu1 %v12616_v35 }
 0x4e4   : > { %10077 = vmatprep.mubr.bf16.mxu0 %v12770_v26 }
 0x4e5   : > { %v8943_v17 = vpop.f32.mrb[204].mxu1 }
 0x4e6   : > { %v8944_v56 = vpop.f32.mrb[205].mxu1 }
 0x4e7   : > { %v12773_v30 = vadd.f32 %v8944_v56, %v8943_v17  ;;  %v8946_v61 = vpop.f32.mrb[206].mxu1 }
 0x4e8   : > { %v8947_v16 = vpop.f32.mrb[207].mxu1 }
 0x4e9   : > { %v12778_v13 = vadd.f32 %v8947_v16, %v8946_v61 }
 0x4ea   : > { %5232 = vmatmul.mubr.bf16.gmra.mrb[56].mxu1 %v12642_v1 }
 0x4eb   : > { %10078 = vmatmul.mubr.bf16.gmra.mrb[120].mxu0 %v12626_v6  ;;  %5239 = vmatprep.mubr.bf16.mxu1 %v12660_v10 }
 0x4ec   : > { %10081 = vmatprep.mubr.bf16.mxu0 %v12614_v3 }
 0x4ed   : > { %v8949_v20 = vpop.f32.mrb[208].mxu1 }
 0x4ee   : > { %v8950_v35 = vpop.f32.mrb[209].mxu1 }
 0x4ef   : > { %v12784_v51 = vadd.f32 %v8950_v35, %v8949_v20  ;;  %v8952_v8 = vpop.f32.mrb[210].mxu1  ;;  %v4875_v20 = vld [vmem:[#allocation2 + $0x118] sm:$0xff] }
 0x4f0   : > { %v8953_v57 = vpop.f32.mrb[211].mxu1 }
 0x4f1   : > { %v12786_v58 = vadd.f32 %v8953_v57, %v8952_v8 }
 0x4f2   : > { %5240 = vmatmul.mubr.bf16.gmra.mrb[60].mxu1 %v12660_v10 }
 0x4f3   : > { %10082 = vmatmul.mubr.bf16.gmra.mrb[124].mxu0 %v12653_v18 }
 0x4f4   : > { %10101 = vmatprep.mubr.bf16.mxu0 %v12719_v34 }
 0x4f5   : > { %v8955_v6 = vpop.f32.mrb[212].mxu1 }
 0x4f6   : > { %v8956_v1 = vpop.f32.mrb[213].mxu1 }
 0x4f7   : > { %v12791_v46 = vadd.f32 %v8956_v1, %v8955_v6  ;;  %v8958_v3 = vpop.f32.mrb[214].mxu1 }
 0x4f8   : > { %v8959_v49 = vpop.f32.mrb[215].mxu1 }
 0x4f9   : > { %v12796_v5 = vadd.f32 %v8959_v49, %v8958_v3 }
 0x4fb   : > { %10102 = vmatmul.mubr.bf16.vlgmr.msra.gmra.mrb[96].mxu0 %v12724_v15  ;;  %v10989_v15 = vld [vmem:[%s13956_s3 + $0x90] sm:$0xff]  }
 0x4fc   : > { %10105 = vmatprep.mubr.bf16.mxu0 %v12728_v7  ;;  %10137 = vmatprep.subr.bf16.mxu1 %v10989_v15 }
 0x4fd   : > { %v8961_v18 = vpop.f32.mrb[216].mxu1  ;;  %10138 = vmatpush3.bf16.msra.mxu1 %v10989_v15 }
 0x4fe   : > { %v8962_v47 = vpop.f32.mrb[217].mxu1 }
 0x4ff   : > { %v12800_v50 = vadd.f32 %v8962_v47, %v8961_v18  ;;  %v8964_v28 = vpop.f32.mrb[218].mxu1 }
 0x500   : > { %v8965_v62 = vpop.f32.mrb[219].mxu1 }
 0x501   : > { %v12802_v39 = vadd.f32 %v8965_v62, %v8964_v28 }
 0x503   : > { %10106 = vmatmul.mubr.bf16.gmra.mrb[100].mxu0 %v12732_v54 }
 0x504   : > { %10109 = vmatprep.mubr.bf16.mxu0 %v12736_v33 }
 0x505   : > { %v8967_v53 = vpop.f32.mrb[220].mxu1 }
 0x506   : > { %v8968_v34 = vpop.f32.mrb[221].mxu1 }
 0x507   : > { %v12806_v31 = vadd.f32 %v8968_v34, %v8967_v53  ;;  %v8970_v24 = vpop.f32.mrb[222].mxu1  ;;  %v4881_v53 = vld [vmem:[#allocation2 + $0x148] sm:$0xff] }
 0x508   : > { %v8971_v7 = vpop.f32.mrb[223].mxu1 }
 0x509   : > { %v12811_v42 = vadd.f32 %v8971_v7, %v8970_v24 }
 0x50b   : > { %10110 = vmatmul.mubr.bf16.gmra.mrb[104].mxu0 %v12744_v32 }
 0x50c   : > { %10113 = vmatprep.mubr.bf16.mxu0 %v12748_v29 }
 0x50d   : > { %v8973_v9 = vpop.f32.mrb[224].mxu1 }
 0x50e   : > { %v8974_v54 = vpop.f32.mrb[225].mxu1  ;;  %v9061_v33 = vpop.f32.mrb[128].mxu0 }
 0x50f   : > { %v12815_v22 = vadd.f32 %v8974_v54, %v8973_v9  ;;  %v8976_v27 = vpop.f32.mrb[226].mxu1  ;;  %v9062_v11 = vpop.f32.mrb[129].mxu0 }
 0x510   : > { %v9063_v41 = vadd.f32 %v9062_v11, %v9061_v33  ;;  %v8977_v12 = vpop.f32.mrb[227].mxu1  ;;  %v9064_v2 = vpop.f32.mrb[130].mxu0 }
 0x511   : > { %v12817_v19 = vadd.f32 %v8977_v12, %v8976_v27  ;;  %v9065_v21 = vpop.f32.mrb[131].mxu0 }
 0x512   : > { %v12820_v45 = vadd.f32 %v9063_v41, %v12739_v59  ;;  %v9066_v52 = vadd.f32 %v9065_v21, %v9064_v2  ;;  %v10990_v59 = vld [vmem:[%s13956_s3 + $0x98] sm:$0xff]  }
 0x513   : > { %10114 = vmatmul.mubr.bf16.gmra.mrb[108].mxu0 %v12756_v63  ;;  %10139 = vmatprep.subr.bf16.mxu1 %v10990_v59 }
 0x514   : > { %v12824_v32 = vadd.f32 %v9066_v52, %v12741_v37  ;;  %10117 = vmatprep.mubr.bf16.mxu0 %v12760_v60  ;;  %10140 = vmatpush3.bf16.msra.mxu1 %v10990_v59  ;;  %v4887_v52 = vld [vmem:[#allocation2 + $0x178] sm:$0xff] }
 0x515   : > { %v8979_v29 = vpop.f32.mrb[228].mxu1 }
 0x516   : > { %v8980_v23 = vpop.f32.mrb[229].mxu1  ;;  %v9067_v55 = vpop.f32.mrb[132].mxu0 }
 0x517   : > { %v12827_v48 = vadd.f32 %v8980_v23, %v8979_v29  ;;  %v8982_v14 = vpop.f32.mrb[230].mxu1  ;;  %v9068_v17 = vpop.f32.mrb[133].mxu0  ;;  %v4890_v29 = vld [vmem:[#allocation2 + $0x190] sm:$0xff] }
 0x518   : > { %v9069_v56 = vadd.f32 %v9068_v17, %v9067_v55  ;;  %v8983_v61 = vpop.f32.mrb[231].mxu1  ;;  %v9070_v38 = vpop.f32.mrb[134].mxu0 }
 0x519   : > { %v12832_v63 = vadd.f32 %v8983_v61, %v8982_v14  ;;  %v9071_v37 = vpop.f32.mrb[135].mxu0 }
 0x51a   : > { %v12835_v60 = vadd.f32 %v9069_v56, %v12751_v25  ;;  %v9072_v16 = vadd.f32 %v9071_v37, %v9070_v38 }
 0x51b   : > { %10118 = vmatmul.mubr.bf16.gmra.mrb[112].mxu0 %v4875_v20 }
 0x51c   : > { %v12838_v35 = vadd.f32 %v9072_v16, %v12753_v44  ;;  %10121 = vmatprep.mubr.bf16.mxu0 %v12770_v26  ;;  %v4884_v26 = vld [vmem:[#allocation2 + $0x160] sm:$0xff] }
 0x51d   : > { %v8985_v8 = vpop.f32.mrb[232].mxu1 }
 0x51e   : > { %v8986_v57 = vpop.f32.mrb[233].mxu1  ;;  %v9073_v6 = vpop.f32.mrb[136].mxu0 }
 0x51f   : > { %v12841_v1 = vadd.f32 %v8986_v57, %v8985_v8  ;;  %v8988_v3 = vpop.f32.mrb[234].mxu1  ;;  %v9074_v43 = vpop.f32.mrb[137].mxu0 }
 0x520   : > { %v9075_v49 = vadd.f32 %v9074_v43, %v9073_v6  ;;  %v8989_v18 = vpop.f32.mrb[235].mxu1  ;;  %v9076_v25 = vpop.f32.mrb[138].mxu0 }
 0x521   : > { %v12843_v47 = vadd.f32 %v8989_v18, %v8988_v3  ;;  %v9077_v28 = vpop.f32.mrb[139].mxu0 }
 0x522   : > { %v12846_v62 = vadd.f32 %v9075_v49, %v12763_v0  ;;  %v9078_v44 = vadd.f32 %v9077_v28, %v9076_v25  ;;  %v10991_v0 = vld [vmem:[%s13956_s3 + $0xa0] sm:$0xff]   ;;  %v10992_v28 = vld [vmem:[%s13956_s3 + $0xa8] sm:$0xff]  }
 0x523   : > { %10122 = vmatmul.mubr.bf16.gmra.mrb[116].mxu0 %v4881_v53  ;;  %10141 = vmatprep.subr.bf16.mxu1 %v10991_v0 }
 0x524   : > { %v12849_v34 = vadd.f32 %v9078_v44, %v12765_v4  ;;  %10125 = vmatprep.mubr.bf16.mxu0 %v4884_v26  ;;  %10142 = vmatpush3.bf16.msra.mxu1 %v10991_v0 }
 0x525   : > { %v8991_v24 = vpop.f32.mrb[236].mxu1  ;;  %10143 = vmatprep.subr.bf16.mxu1 %v10992_v28 }
 0x526   : > { %v8992_v15 = vpop.f32.mrb[237].mxu1  ;;  %v9079_v7 = vpop.f32.mrb[140].mxu0 }
 0x527   : > { %v12851_v9 = vadd.f32 %v8992_v15, %v8991_v24  ;;  %v8994_v54 = vpop.f32.mrb[238].mxu1  ;;  %v9080_v33 = vpop.f32.mrb[141].mxu0 }
 0x528   : > { %v9081_v27 = vadd.f32 %v9080_v33, %v9079_v7  ;;  %v8995_v11 = vpop.f32.mrb[239].mxu1  ;;  %v9082_v41 = vpop.f32.mrb[142].mxu0  ;;  %10144 = vmatpush3.bf16.msra.mxu1 %v10992_v28 }
 0x529   : > { %v12856_v12 = vadd.f32 %v8995_v11, %v8994_v54  ;;  %v9083_v2 = vpop.f32.mrb[143].mxu0 }
 0x52a   : > { %v12859_v4 = vadd.f32 %v9081_v27, %v12773_v30  ;;  %v9084_v21 = vadd.f32 %v9083_v2, %v9082_v41 }
 0x52b   : > { %10126 = vmatmul.mubr.bf16.gmra.mrb[120].mxu0 %v4887_v52 }
 0x52c   : > { %v12862_v23 = vadd.f32 %v9084_v21, %v12778_v13  ;;  %10129 = vmatprep.mubr.bf16.mxu0 %v4890_v29 }
 0x52d   : > { %v8997_v55 = vpop.f32.mrb[240].mxu1 }
 0x52e   : > { %v8998_v14 = vpop.f32.mrb[241].mxu1  ;;  %v9085_v17 = vpop.f32.mrb[144].mxu0 }
 0x52f   : > { %v12864_v59 = vadd.f32 %v8998_v14, %v8997_v55  ;;  %v9000_v56 = vpop.f32.mrb[242].mxu1  ;;  %v9086_v61 = vpop.f32.mrb[145].mxu0 }
 0x530   : > { %v9087_v38 = vadd.f32 %v9086_v61, %v9085_v17  ;;  %v9001_v37 = vpop.f32.mrb[243].mxu1  ;;  %v9088_v30 = vpop.f32.mrb[146].mxu0 }
 0x531   : > { %v12866_v16 = vadd.f32 %v9001_v37, %v9000_v56  ;;  %v9089_v20 = vpop.f32.mrb[147].mxu0 }
 0x532   : > { %v12869_v8 = vadd.f32 %v9087_v38, %v12784_v51  ;;  %v9090_v57 = vadd.f32 %v9089_v20, %v9088_v30  ;;  %v10993_v30 = vld [vmem:[%s13956_s3 + $0xb0] sm:$0xff]  }
 0x533   : > { %10130 = vmatmul.mubr.bf16.gmra.mrb[124].mxu0 %v12660_v10  ;;  %10145 = vmatprep.subr.bf16.mxu1 %v10993_v30 }
 0x534   : > { %v12873_v13 = vadd.f32 %v9090_v57, %v12786_v58  ;;  %10146 = vmatpush3.bf16.msra.mxu1 %v10993_v30 }
 0x535   : > { %v9003_v6 = vpop.f32.mrb[244].mxu1 }
 0x536   : > { %v9004_v3 = vpop.f32.mrb[245].mxu1  ;;  %v9091_v43 = vpop.f32.mrb[148].mxu0 }
 0x537   : > { %v12875_v49 = vadd.f32 %v9004_v3, %v9003_v6  ;;  %v9006_v18 = vpop.f32.mrb[246].mxu1  ;;  %v9092_v25 = vpop.f32.mrb[149].mxu0 }
 0x538   : > { %v9093_v44 = vadd.f32 %v9092_v25, %v9091_v43  ;;  %v9007_v51 = vpop.f32.mrb[247].mxu1  ;;  %v9094_v53 = vpop.f32.mrb[150].mxu0 }
 0x539   : > { %v12880_v26 = vadd.f32 %v9007_v51, %v9006_v18  ;;  %v9095_v10 = vpop.f32.mrb[151].mxu0 }
 0x53a   : > { %v12883_v58 = vadd.f32 %v9093_v44, %v12791_v46  ;;  %v9096_v24 = vadd.f32 %v9095_v10, %v9094_v53 }
 0x53c   : > { %v12886_v15 = vadd.f32 %v9096_v24, %v12796_v5 }
 0x53d   : > { %v9009_v7 = vpop.f32.mrb[248].mxu1 }
 0x53e   : > { %v9010_v54 = vpop.f32.mrb[249].mxu1  ;;  %v9097_v33 = vpop.f32.mrb[152].mxu0 }
 0x53f   : > { %v12888_v0 = vadd.f32 %v9010_v54, %v9009_v7  ;;  %v9012_v27 = vpop.f32.mrb[250].mxu1  ;;  %v9098_v11 = vpop.f32.mrb[153].mxu0 }
 0x540   : > { %v9099_v41 = vadd.f32 %v9098_v11, %v9097_v33  ;;  %v9013_v2 = vpop.f32.mrb[251].mxu1  ;;  %v9100_v21 = vpop.f32.mrb[154].mxu0 }
 0x541   : > { %v12890_v52 = vadd.f32 %v9013_v2, %v9012_v27  ;;  %v9101_v29 = vpop.f32.mrb[155].mxu0 }
 0x542   : > { %v12893_v46 = vadd.f32 %v9099_v41, %v12800_v50  ;;  %v9102_v55 = vadd.f32 %v9101_v29, %v9100_v21 }
 0x544   : > { %v12896_v5 = vadd.f32 %v9102_v55, %v12802_v39 }
 0x545   : > { %v9015_v14 = vpop.f32.mrb[252].mxu1 }
 0x546   : > { %v9016_v17 = vpop.f32.mrb[253].mxu1  ;;  %v9103_v56 = vpop.f32.mrb[156].mxu0 }
 0x547   : > { %v12898_v61 = vadd.f32 %v9016_v17, %v9015_v14  ;;  %v9018_v38 = vpop.f32.mrb[254].mxu1  ;;  %v9104_v37 = vpop.f32.mrb[157].mxu0 }
 0x548   : > { %v9105_v20 = vadd.f32 %v9104_v37, %v9103_v56  ;;  %v9019_v57 = vpop.f32.mrb[255].mxu1  ;;  %v9106_v6 = vpop.f32.mrb[158].mxu0 }
 0x549   : > { %v12903_v50 = vadd.f32 %v9019_v57, %v9018_v38  ;;  %v9107_v3 = vpop.f32.mrb[159].mxu0 }
 0x54a   : > { %v12906_v39 = vadd.f32 %v9105_v20, %v12806_v31  ;;  %v9108_v43 = vadd.f32 %v9107_v3, %v9106_v6  ;;  %v10994_v6 = vld [vmem:[%s13956_s3 + $0xb8] sm:$0xff]  }
 0x54b   : > { %10147 = vmatprep.subr.bf16.mxu1 %v10994_v6 }
 0x54c   : > { %v12909_v18 = vadd.f32 %v9108_v43, %v12811_v42  ;;  %10148 = vmatpush3.bf16.msra.mxu1 %v10994_v6 }
 0x54d   : > { %v9197_v25 = vpop.f32.mrb[0].mxu1 }
 0x54e   : > { %v9109_v28 = vpop.f32.mrb[160].mxu0  ;;  %v9198_v44 = vpop.f32.mrb[1].mxu1 }
 0x54f   : > { %v9199_v51 = vadd.f32 %v9198_v44, %v9197_v25  ;;  %v9110_v53 = vpop.f32.mrb[161].mxu0  ;;  %v9200_v10 = vpop.f32.mrb[2].mxu1 }
 0x550   : > { %v9111_v24 = vadd.f32 %v9110_v53, %v9109_v28  ;;  %v9112_v7 = vpop.f32.mrb[162].mxu0  ;;  %v9201_v54 = vpop.f32.mrb[3].mxu1 }
 0x551   : > { %v9202_v33 = vadd.f32 %v9201_v54, %v9200_v10  ;;  %v9113_v27 = vpop.f32.mrb[163].mxu0  ;;  %v12912_v11 = vadd.f32 %v12820_v45, %v9199_v51 }
 0x552   : > { %v12915_v31 = vadd.f32 %v9111_v24, %v12815_v22  ;;  %v9114_v41 = vadd.f32 %v9113_v27, %v9112_v7 }
 0x553   : > { %v12918_v42 = vadd.f32 %v12824_v32, %v9202_v33 }
 0x554   : > { %v12921_v2 = vadd.f32 %v9114_v41, %v12817_v19 }
 0x555   : > { %v9203_v21 = vpop.f32.mrb[4].mxu1 }
 0x556   : > { %v9115_v29 = vpop.f32.mrb[164].mxu0  ;;  %v9204_v55 = vpop.f32.mrb[5].mxu1 }
 0x557   : > { %v9205_v14 = vadd.f32 %v9204_v55, %v9203_v21  ;;  %v9116_v17 = vpop.f32.mrb[165].mxu0  ;;  %v9206_v56 = vpop.f32.mrb[6].mxu1 }
 0x558   : > { %v9117_v38 = vadd.f32 %v9116_v17, %v9115_v29  ;;  %v9118_v37 = vpop.f32.mrb[166].mxu0  ;;  %v9207_v45 = vpop.f32.mrb[7].mxu1 }
 0x559   : > { %v9208_v30 = vadd.f32 %v9207_v45, %v9206_v56  ;;  %v9119_v20 = vpop.f32.mrb[167].mxu0  ;;  %v12924_v22 = vadd.f32 %v12835_v60, %v9205_v14 }
 0x55a   : > { %v12927_v32 = vadd.f32 %v9117_v38, %v12827_v48  ;;  %v9120_v57 = vadd.f32 %v9119_v20, %v9118_v37 }
 0x55b   : > { %v12930_v19 = vadd.f32 %v12838_v35, %v9208_v30 }
 0x55c   : > { %v12936_v3 = vadd.f32 %v9120_v57, %v12832_v63 }
 0x55d   : > { %v9209_v43 = vpop.f32.mrb[8].mxu1 }
 0x55e   : > { %v9121_v25 = vpop.f32.mrb[168].mxu0  ;;  %v9210_v28 = vpop.f32.mrb[9].mxu1 }
 0x55f   : > { %v9211_v60 = vadd.f32 %v9210_v28, %v9209_v43  ;;  %v9122_v44 = vpop.f32.mrb[169].mxu0  ;;  %v9212_v48 = vpop.f32.mrb[10].mxu1 }
 0x560   : > { %v9123_v51 = vadd.f32 %v9122_v44, %v9121_v25  ;;  %v9124_v53 = vpop.f32.mrb[170].mxu0  ;;  %v9213_v10 = vpop.f32.mrb[11].mxu1 }
 0x561   : > { %v9214_v35 = vadd.f32 %v9213_v10, %v9212_v48  ;;  %v9125_v24 = vpop.f32.mrb[171].mxu0  ;;  %v12939_v7 = vadd.f32 %v12846_v62, %v9211_v60 }
 0x562   : > { %v12942_v54 = vadd.f32 %v9123_v51, %v12841_v1  ;;  %v9126_v63 = vadd.f32 %v9125_v24, %v9124_v53 }
 0x563   : > { %v12945_v33 = vadd.f32 %v12849_v34, %v9214_v35 }
 0x564   : > { %v12948_v27 = vadd.f32 %v9126_v63, %v12843_v47 }
 0x565   : > { %v9215_v41 = vpop.f32.mrb[12].mxu1 }
 0x566   : > { %v9127_v21 = vpop.f32.mrb[172].mxu0  ;;  %v9216_v29 = vpop.f32.mrb[13].mxu1 }
 0x567   : > { %v9217_v55 = vadd.f32 %v9216_v29, %v9215_v41  ;;  %v9128_v14 = vpop.f32.mrb[173].mxu0  ;;  %v9218_v17 = vpop.f32.mrb[14].mxu1 }
 0x568   : > { %v9129_v56 = vadd.f32 %v9128_v14, %v9127_v21  ;;  %v9130_v38 = vpop.f32.mrb[174].mxu0  ;;  %v9219_v62 = vpop.f32.mrb[15].mxu1 }
 0x569   : > { %v9220_v37 = vadd.f32 %v9219_v62, %v9218_v17  ;;  %v9131_v45 = vpop.f32.mrb[175].mxu0  ;;  %v12951_v1 = vadd.f32 %v12859_v4, %v9217_v55 }
 0x56a   : > { %v12954_v34 = vadd.f32 %v9129_v56, %v12851_v9  ;;  %v9132_v30 = vadd.f32 %v9131_v45, %v9130_v38 }
 0x56b   : > { %v12957_v47 = vadd.f32 %v12862_v23, %v9220_v37 }
 0x56c   : > { %v12960_v20 = vadd.f32 %v9132_v30, %v12856_v12 }
 0x56d   : > { %v9221_v57 = vpop.f32.mrb[16].mxu1 }
 0x56e   : > { %v9133_v6 = vpop.f32.mrb[176].mxu0  ;;  %v9222_v43 = vpop.f32.mrb[17].mxu1 }
 0x56f   : > { %v9223_v25 = vadd.f32 %v9222_v43, %v9221_v57  ;;  %v9134_v28 = vpop.f32.mrb[177].mxu0  ;;  %v9224_v60 = vpop.f32.mrb[18].mxu1 }
 0x570   : > { %v9135_v44 = vadd.f32 %v9134_v28, %v9133_v6  ;;  %v9136_v48 = vpop.f32.mrb[178].mxu0  ;;  %v9225_v4 = vpop.f32.mrb[19].mxu1 }
 0x571   : > { %v9226_v51 = vadd.f32 %v9225_v4, %v9224_v60  ;;  %v9137_v53 = vpop.f32.mrb[179].mxu0  ;;  %v12963_v9 = vadd.f32 %v12869_v8, %v9223_v25 }
 0x572   : > { %v12966_v23 = vadd.f32 %v9135_v44, %v12864_v59  ;;  %v9138_v10 = vadd.f32 %v9137_v53, %v9136_v48 }
 0x573   : > { %v12969_v12 = vadd.f32 %v12873_v13, %v9226_v51 }
 0x574   : > { %v12972_v35 = vadd.f32 %v9138_v10, %v12866_v16 }
 0x575   : > { %v9227_v24 = vpop.f32.mrb[20].mxu1 }
 0x576   : > { %v9139_v63 = vpop.f32.mrb[180].mxu0  ;;  %v9228_v41 = vpop.f32.mrb[21].mxu1 }
 0x577   : > { %v9229_v21 = vadd.f32 %v9228_v41, %v9227_v24  ;;  %v9140_v29 = vpop.f32.mrb[181].mxu0  ;;  %v9230_v55 = vpop.f32.mrb[22].mxu1 }
 0x578   : > { %v9141_v14 = vadd.f32 %v9140_v29, %v9139_v63  ;;  %v9142_v17 = vpop.f32.mrb[182].mxu0  ;;  %v9231_v8 = vpop.f32.mrb[23].mxu1 }
 0x579   : > { %v9232_v56 = vadd.f32 %v9231_v8, %v9230_v55  ;;  %v9143_v38 = vpop.f32.mrb[183].mxu0  ;;  %v12975_v59 = vadd.f32 %v12883_v58, %v9229_v21 }
 0x57a   : > { %v12978_v13 = vadd.f32 %v9141_v14, %v12875_v49  ;;  %v9144_v62 = vadd.f32 %v9143_v38, %v9142_v17 }
 0x57b   : > { %v12981_v16 = vadd.f32 %v12886_v15, %v9232_v56 }
 0x57c   : > { %v12984_v37 = vadd.f32 %v9144_v62, %v12880_v26 }
 0x57d   : > { %v9233_v45 = vpop.f32.mrb[24].mxu1 }
 0x57e   : > { %v9145_v30 = vpop.f32.mrb[184].mxu0  ;;  %v9234_v57 = vpop.f32.mrb[25].mxu1 }
 0x57f   : > { %v9235_v6 = vadd.f32 %v9234_v57, %v9233_v45  ;;  %v9146_v43 = vpop.f32.mrb[185].mxu0  ;;  %v9236_v25 = vpop.f32.mrb[26].mxu1 }
 0x580   : > { %v9147_v28 = vadd.f32 %v9146_v43, %v9145_v30  ;;  %v9148_v60 = vpop.f32.mrb[186].mxu0  ;;  %v9237_v58 = vpop.f32.mrb[27].mxu1 }
 0x581   : > { %v9238_v44 = vadd.f32 %v9237_v58, %v9236_v25  ;;  %v9149_v48 = vpop.f32.mrb[187].mxu0  ;;  %v12987_v49 = vadd.f32 %v12893_v46, %v9235_v6  ;;  %v10996_v58 = vld [vmem:[#allocation3 + $0x5c8] sm:$0xff]  }
 0x582   : > { %v12990_v15 = vadd.f32 %v9147_v28, %v12888_v0  ;;  %v9150_v4 = vadd.f32 %v9149_v48, %v9148_v60  ;;  %v10995_v60 = vld [vmem:[#allocation3 + $0x5c0] sm:$0xff]  }
 0x583   : > { %v12993_v26 = vadd.f32 %v12896_v5, %v9238_v44  ;;  %v10999_v44 = vld [vmem:[#allocation3 + $0x580] sm:$0xff]   ;;  %10181 = vmatprep.subr.bf16.mxu0 %v10995_v60 }
 0x584   : > { %v12996_v51 = vadd.f32 %v9150_v4, %v12890_v52  ;;  %10182 = vmatpush3.bf16.msra.mxu0 %v10995_v60  ;;  %9341 = vmatprep.subr.bf16.mxu1 %v10999_v44 }
 0x585   : > { %v9239_v53 = vpop.f32.mrb[28].mxu1  ;;  %10183 = vmatprep.subr.bf16.mxu0 %v10996_v58 }
 0x586   : > { %v9151_v10 = vpop.f32.mrb[188].mxu0  ;;  %v9240_v24 = vpop.f32.mrb[29].mxu1 }
 0x587   : > { %v9241_v63 = vadd.f32 %v9240_v24, %v9239_v53  ;;  %v9152_v41 = vpop.f32.mrb[189].mxu0  ;;  %v9242_v21 = vpop.f32.mrb[30].mxu1 }
 0x588   : > { %v9153_v29 = vadd.f32 %v9152_v41, %v9151_v10  ;;  %v9154_v55 = vpop.f32.mrb[190].mxu0  ;;  %v9243_v46 = vpop.f32.mrb[31].mxu1  ;;  %10184 = vmatpush3.bf16.msra.mxu0 %v10996_v58  ;;  %v10998_v41 = vld [vmem:[#allocation3 + $0x5d8] sm:$0xff]  }
 0x589   : > { %v9244_v14 = vadd.f32 %v9243_v46, %v9242_v21  ;;  %v9155_v17 = vpop.f32.mrb[191].mxu0  ;;  %v12999_v0 = vadd.f32 %v12906_v39, %v9241_v63 }
 0x58a   : > { %v13002_v5 = vadd.f32 %v9153_v29, %v12898_v61  ;;  %v9156_v8 = vadd.f32 %v9155_v17, %v9154_v55 }
 0x58b   : > { %v13005_v52 = vadd.f32 %v12909_v18, %v9244_v14 }
 0x58c   : > { %v13008_v56 = vadd.f32 %v9156_v8, %v12903_v50 }
 0x58d   : > { %v9245_v38 = vpop.f32.mrb[32].mxu1 }
 0x58e   : > { %v9246_v62 = vpop.f32.mrb[33].mxu1 }
 0x58f   : > { %v9247_v45 = vadd.f32 %v9246_v62, %v9245_v38  ;;  %v9248_v30 = vpop.f32.mrb[34].mxu1 }
 0x590   : > { %v9249_v57 = vpop.f32.mrb[35].mxu1 }
 0x591   : > { %v9250_v6 = vadd.f32 %v9249_v57, %v9248_v30  ;;  %v13011_v43 = vadd.f32 %v12915_v31, %v9247_v45 }
 0x593   : > { %v13014_v39 = vadd.f32 %v12921_v2, %v9250_v6  ;;  %v10997_v2 = vld [vmem:[#allocation3 + $0x5d0] sm:$0xff]  }
 0x594   : > { %10185 = vmatprep.subr.bf16.mxu0 %v10997_v2 }
 0x595   : > { %v9251_v61 = vpop.f32.mrb[36].mxu1  ;;  %10186 = vmatpush3.bf16.msra.mxu0 %v10997_v2 }
 0x596   : > { %v9252_v25 = vpop.f32.mrb[37].mxu1  ;;  %10187 = vmatprep.subr.bf16.mxu0 %v10998_v41 }
 0x597   : > { %v9253_v28 = vadd.f32 %v9252_v25, %v9251_v61  ;;  %v9254_v18 = vpop.f32.mrb[38].mxu1 }
 0x598   : > { %v9255_v50 = vpop.f32.mrb[39].mxu1 }
 0x599   : > { %v9256_v48 = vadd.f32 %v9255_v50, %v9254_v18  ;;  %v13017_v4 = vadd.f32 %v12927_v32, %v9253_v28  ;;  %10188 = vmatpush3.bf16.msra.mxu0 %v10998_v41 }
 0x59b   : > { %v13020_v31 = vadd.f32 %v12936_v3, %v9256_v48  ;;  %v11000_v3 = vld [vmem:[#allocation3 + $0x5e0] sm:$0xff]  }
 0x59c   : > { %10189 = vmatprep.subr.bf16.mxu0 %v11000_v3 }
 0x59d   : > { %v9257_v53 = vpop.f32.mrb[40].mxu1  ;;  %10190 = vmatpush3.bf16.msra.mxu0 %v11000_v3 }
 0x59e   : > { %v9258_v10 = vpop.f32.mrb[41].mxu1 }
 0x59f   : > { %v9259_v24 = vadd.f32 %v9258_v10, %v9257_v53  ;;  %v9260_v63 = vpop.f32.mrb[42].mxu1 }
 0x5a0   : > { %v9261_v21 = vpop.f32.mrb[43].mxu1 }
 0x5a1   : > { %v9262_v29 = vadd.f32 %v9261_v21, %v9260_v63  ;;  %v13023_v32 = vadd.f32 %v12942_v54, %v9259_v24 }
 0x5a3   : > { %v13026_v55 = vadd.f32 %v12948_v27, %v9262_v29 }
 0x5a5   : > { %v9263_v46 = vpop.f32.mrb[44].mxu1 }
 0x5a6   : > { %v9264_v14 = vpop.f32.mrb[45].mxu1 }
 0x5a7   : > { %v9265_v17 = vadd.f32 %v9264_v14, %v9263_v46  ;;  %v9266_v8 = vpop.f32.mrb[46].mxu1 }
 0x5a8   : > { %v9267_v38 = vpop.f32.mrb[47].mxu1 }
 0x5a9   : > { %v9268_v62 = vadd.f32 %v9267_v38, %v9266_v8  ;;  %v13029_v45 = vadd.f32 %v12954_v34, %v9265_v17 }
 0x5ab   : > { %v13032_v54 = vadd.f32 %v12960_v20, %v9268_v62  ;;  %v5443_v62 = vld [vmem:[%s11213_s29 + $0x10] sm:$0xff] }
 0x5ad   : > { %v9269_v30 = vpop.f32.mrb[48].mxu1 }
 0x5ae   : > { %v9270_v27 = vpop.f32.mrb[49].mxu1 }
 0x5af   : > { %v9271_v57 = vadd.f32 %v9270_v27, %v9269_v30  ;;  %v9272_v6 = vpop.f32.mrb[50].mxu1 }
 0x5b0   : > { %v9273_v61 = vpop.f32.mrb[51].mxu1 }
 0x5b1   : > { %v9274_v25 = vadd.f32 %v9273_v61, %v9272_v6  ;;  %v13035_v28 = vadd.f32 %v12966_v23, %v9271_v57  ;;  %v13064_v57 = vld [vmem:[%s13954_s1 + $0x2] ss:$0 sm:$0xff] }
 0x5b3   : > { %v13038_v18 = vadd.f32 %v12972_v35, %v9274_v25  ;;  %v5444_v25 = vld [vmem:[%s11213_s29 + $0x18] sm:$0xff] }
 0x5b5   : > { %v9275_v60 = vpop.f32.mrb[52].mxu1 }
 0x5b6   : > { %v9276_v58 = vpop.f32.mrb[53].mxu1 }
 0x5b7   : > { %v9277_v34 = vadd.f32 %v9276_v58, %v9275_v60  ;;  %v9278_v50 = vpop.f32.mrb[54].mxu1 }
 0x5b8   : > { %v9279_v44 = vpop.f32.mrb[55].mxu1 }
 0x5b9   : > { %v9280_v48 = vadd.f32 %v9279_v44, %v9278_v50  ;;  %v13041_v20 = vadd.f32 %v12978_v13, %v9277_v34  ;;  %v5442_v34 = vld [vmem:[%s11213_s29 + $0x8] sm:$0xff] }
 0x5bb   : > { %v13044_v2 = vadd.f32 %v12984_v37, %v9280_v48 }
 0x5bd   : > { %v9281_v53 = vpop.f32.mrb[56].mxu1 }
 0x5be   : > { %v9282_v10 = vpop.f32.mrb[57].mxu1 }
 0x5bf   : > { %v9283_v24 = vadd.f32 %v9282_v10, %v9281_v53  ;;  %v9284_v23 = vpop.f32.mrb[58].mxu1 }
 0x5c0   : > { %v9285_v63 = vpop.f32.mrb[59].mxu1 }
 0x5c1   : > { %v9286_v35 = vadd.f32 %v9285_v63, %v9284_v23  ;;  %v13047_v41 = vadd.f32 %v12990_v15, %v9283_v24 }
 0x5c3   : > { %v13050_v21 = vadd.f32 %v12996_v51, %v9286_v35 }
 0x5c5   : > { %v9287_v29 = vpop.f32.mrb[60].mxu1 }
 0x5c6   : > { %v9288_v13 = vpop.f32.mrb[61].mxu1 }
 0x5c7   : > { %v9289_v3 = vadd.f32 %v9288_v13, %v9287_v29  ;;  %v9290_v46 = vpop.f32.mrb[62].mxu1  ;;  %v5447_v29 = vld [vmem:[%s11213_s29 + $0x30] sm:$0xff] }
 0x5c8   : > { %v9291_v37 = vpop.f32.mrb[63].mxu1 }
 0x5c9   : > { %v9292_v14 = vadd.f32 %v9291_v37, %v9290_v46  ;;  %v13053_v17 = vadd.f32 %v13002_v5, %v9289_v3 }
 0x5cb   : > { %v13056_v8 = vadd.f32 %v13008_v56, %v9292_v14  ;;  %v5441_v56 = vld [vmem:[%s11213_s29] sm:$0xff] }
 0x5cc   : > { %v5445_v14 = vld [vmem:[%s11213_s29 + $0x20] sm:$0xff] }
 0x5ce   : > { %v10103_v15 = vpop.f32.mrb[96].mxu0 }
 0x5cf   : > { %v10423_v38 = vadd.f32 %v12924_v22, %v10103_v15  ;;  %v5282_v51 = vpop.f32.mrb[97].mxu0 }
 0x5d0   : > { %v10426_v30 = vadd.f32 %v12912_v11, %v5282_v51  ;;  %v10104_v27 = vpop.f32.mrb[98].mxu0  ;;  %v13073_v11 = vld [vmem:[%s13955_s2 + $0x2] ss:$0 sm:$0xff] }
 0x5d1   : > { %v5475_v5 = vadd.f32 %v10423_v38, %v5443_v62  ;;  %v10429_v6 = vadd.f32 %v12930_v19, %v10104_v27  ;;  %v5285_v61 = vpop.f32.mrb[99].mxu0 }
 0x5d2   : > { %v5473_v22 = vadd.f32 %v10426_v30, %v5441_v56  ;;  %v10432_v60 = vadd.f32 %v12918_v42, %v5285_v61  ;;  %v5448_v30 = vld [vmem:[%s11213_s29 + $0x38] sm:$0xff] }
 0x5d3   : > { %5507 = vst [vmem:[%s11213_s29 + $0x10] sm:$0xff] %v5475_v5  ;;  %v5476_v58 = vadd.f32 %v10429_v6, %v5444_v25  ;;  %v5579_v50 = vmul.f32 %v13064_v57, %v5475_v5  ;;  %v5446_v6 = vld [vmem:[%s11213_s29 + $0x28] sm:$0xff] }
 0x5d4   : > { %5505 = vst [vmem:[%s11213_s29] sm:$0xff] %v5473_v22  ;;  %v5474_v44 = vadd.f32 %v10432_v60, %v5442_v34  ;;  %v5577_v19 = vmul.f32 %v13064_v57, %v5473_v22 }
 0x5d5   : > { %5508 = vst [vmem:[%s11213_s29 + $0x18] sm:$0xff] %v5476_v58  ;;  %v5580_v48 = vmul.f32 %v13064_v57, %v5476_v58  ;;  %v5619_v42 = vadd.f32 %v13073_v11, %v5579_v50  ;;  %v11001_v58 = vld [vmem:[#allocation3 + $0x540] sm:$0xff]   ;;  %v11002_v50 = vld [vmem:[#allocation3 + $0x588] sm:$0xff]  }
 0x5d6   : > { %5506 = vst [vmem:[%s11213_s29 + $0x8] sm:$0xff] %v5474_v44  ;;  %v10107_v53 = vpop.f32.mrb[100].mxu0  ;;  %v5578_v10 = vmul.f32 %v13064_v57, %v5474_v44  ;;  %v5617_v24 = vadd.f32 %v13073_v11, %v5577_v19 }
 0x5d7   : > { %v10435_v23 = vadd.f32 %v12951_v1, %v10107_v53  ;;  %v5298_v63 = vpop.f32.mrb[101].mxu0  ;;  %v5620_v35 = vadd.f32 %v13073_v11, %v5580_v48  ;;  %v5651_v51 = vmax.f32 %v5619_v42, 0.0 }
 0x5d8   : > { %v10438_v13 = vadd.f32 %v12939_v7, %v5298_v63  ;;  %v10108_v3 = vpop.f32.mrb[102].mxu0  ;;  %v5618_v46 = vadd.f32 %v13073_v11, %v5578_v10  ;;  %v5649_v5 = vmax.f32 %v5617_v24, 0.0  ;;  %v5451_v24 = vld [vmem:[%s11213_s29 + $0x50] sm:$0xff] }
 0x5d9   : > { %v5479_v37 = vadd.f32 %v10435_v23, %v5447_v29  ;;  %v10441_v15 = vadd.f32 %v12957_v47, %v10108_v3  ;;  %v5301_v38 = vpop.f32.mrb[103].mxu0  ;;  %v5652_v62 = vmax.f32 %v5620_v35, 0.0  ;;  %v11003_v29 = vld [vmem:[#allocation3 + $0x548] sm:$0xff]   ;;  %v5449_v3 = vld [vmem:[%s11213_s29 + $0x40] sm:$0xff] }
 0x5da   : > { %v5477_v1 = vadd.f32 %v10438_v13, %v5445_v14  ;;  %v10444_v27 = vadd.f32 %v12945_v33, %v5301_v38  ;;  %v5650_v7 = vmax.f32 %v5618_v46, 0.0  ;;  %v5452_v38 = vld [vmem:[%s11213_s29 + $0x58] sm:$0xff] }
 0x5db   : > { %5511 = vst [vmem:[%s11213_s29 + $0x30] sm:$0xff] %v5479_v37  ;;  %v5480_v56 = vadd.f32 %v10441_v15, %v5448_v30  ;;  %v5682_v61 = vpack.c.bf16 %v5652_v62, %v5651_v51  ;;  %v5583_v22 = vmul.f32 %v13064_v57, %v5479_v37  ;;  %v5450_v30 = vld [vmem:[%s11213_s29 + $0x48] sm:$0xff] }
 0x5dc   : > { %5509 = vst [vmem:[%s11213_s29 + $0x20] sm:$0xff] %v5477_v1  ;;  %v5478_v25 = vadd.f32 %v10444_v27, %v5446_v6  ;;  %v5681_v47 = vpack.c.bf16 %v5650_v7, %v5649_v5  ;;  %v5581_v60 = vmul.f32 %v13064_v57, %v5477_v1 }
 0x5dd   : > { %5512 = vst [vmem:[%s11213_s29 + $0x38] sm:$0xff] %v5480_v56  ;;  %v5584_v34 = vmul.f32 %v13064_v57, %v5480_v56  ;;  %v5623_v33 = vadd.f32 %v13073_v11, %v5583_v22 }
 0x5de   : > { %5510 = vst [vmem:[%s11213_s29 + $0x28] sm:$0xff] %v5478_v25  ;;  %v10111_v44 = vpop.f32.mrb[104].mxu0  ;;  %10149 = vmatprep.mubr.bf16.mxu1 %v5681_v47  ;;  %v5582_v19 = vmul.f32 %v13064_v57, %v5478_v25  ;;  %v5621_v48 = vadd.f32 %v13073_v11, %v5581_v60 }
 0x5df   : > { %v10447_v42 = vadd.f32 %v12975_v59, %v10111_v44  ;;  %v5314_v53 = vpop.f32.mrb[105].mxu0  ;;  %10150 = vmatmul.mubr.bf16.vlgmr.msra.gmra.mrb[64].mxu1 %v5682_v61  ;;  %v5624_v10 = vadd.f32 %v13073_v11, %v5584_v34  ;;  %v5655_v37 = vmax.f32 %v5623_v33, 0.0  ;;  %v5455_v34 = vld [vmem:[%s11213_s29 + $0x70] sm:$0xff] }
 0x5e0   : > { %v10450_v23 = vadd.f32 %v12963_v9, %v5314_v53  ;;  %v10112_v63 = vpop.f32.mrb[106].mxu0  ;;  %v5622_v35 = vadd.f32 %v13073_v11, %v5582_v19  ;;  %9342 = vmatpush3.bf16.msra.mxu1 %v11001_v58  ;;  %v5653_v51 = vmax.f32 %v5621_v48, 0.0  ;;  %v5453_v48 = vld [vmem:[%s11213_s29 + $0x60] sm:$0xff] }
 0x5e1   : > { %v5483_v13 = vadd.f32 %v10447_v42, %v5451_v24  ;;  %v10453_v59 = vadd.f32 %v12981_v16, %v10112_v63  ;;  %v5317_v46 = vpop.f32.mrb[107].mxu0  ;;  %v5656_v14 = vmax.f32 %v5624_v10, 0.0  ;;  %9343 = vmatprep.subr.bf16.mxu1 %v11002_v50 }
 0x5e2   : > { %v5481_v15 = vadd.f32 %v10450_v23, %v5449_v3  ;;  %v10456_v9 = vadd.f32 %v12969_v12, %v5317_v46  ;;  %v5654_v62 = vmax.f32 %v5622_v35, 0.0  ;;  %v5456_v23 = vld [vmem:[%s11213_s29 + $0x78] sm:$0xff] }
 0x5e3   : > { %5515 = vst [vmem:[%s11213_s29 + $0x50] sm:$0xff] %v5483_v13  ;;  %v5484_v1 = vadd.f32 %v10453_v59, %v5452_v38  ;;  %v5684_v27 = vpack.c.bf16 %v5656_v14, %v5655_v37  ;;  %v5587_v5 = vmul.f32 %v13064_v57, %v5483_v13  ;;  %v5454_v13 = vld [vmem:[%s11213_s29 + $0x68] sm:$0xff] }
 0x5e4   : > { %5513 = vst [vmem:[%s11213_s29 + $0x40] sm:$0xff] %v5481_v15  ;;  %v5482_v16 = vadd.f32 %v10456_v9, %v5450_v30  ;;  %v5683_v7 = vpack.c.bf16 %v5654_v62, %v5653_v51  ;;  %v5585_v56 = vmul.f32 %v13064_v57, %v5481_v15  ;;  %9344 = vmatpush3.bf16.msra.mxu1 %v11003_v29  ;;  %v5459_v30 = vld [vmem:[%s11213_s29 + $0x90] sm:$0xff] }
 0x5e5   : > { %5516 = vst [vmem:[%s11213_s29 + $0x58] sm:$0xff] %v5484_v1  ;;  %v5588_v6 = vmul.f32 %v13064_v57, %v5484_v1  ;;  %v5627_v12 = vadd.f32 %v13073_v11, %v5587_v5 }
 0x5e6   : > { %5514 = vst [vmem:[%s11213_s29 + $0x48] sm:$0xff] %v5482_v16  ;;  %v10115_v61 = vpop.f32.mrb[108].mxu0  ;;  %10153 = vmatprep.mubr.bf16.mxu1 %v5683_v7  ;;  %v5586_v22 = vmul.f32 %v13064_v57, %v5482_v16  ;;  %v5625_v25 = vadd.f32 %v13073_v11, %v5585_v56  ;;  %v5457_v56 = vld [vmem:[%s11213_s29 + $0x80] sm:$0xff] }
 0x5e7   : > { %v10459_v47 = vadd.f32 %v12999_v0, %v10115_v61  ;;  %v5330_v60 = vpop.f32.mrb[109].mxu0  ;;  %10154 = vmatmul.mubr.bf16.gmra.mrb[68].mxu1 %v5684_v27  ;;  %v5628_v58 = vadd.f32 %v13073_v11, %v5588_v6  ;;  %v5659_v10 = vmax.f32 %v5627_v12, 0.0 }
 0x5e8   : > { %v10462_v33 = vadd.f32 %v12987_v49, %v5330_v60  ;;  %v10116_v50 = vpop.f32.mrb[110].mxu0  ;;  %v5626_v44 = vadd.f32 %v13073_v11, %v5586_v22  ;;  %v5657_v35 = vmax.f32 %v5625_v25, 0.0  ;;  %v5460_v25 = vld [vmem:[%s11213_s29 + $0x98] sm:$0xff] }
 0x5e9   : > { %v5487_v19 = vadd.f32 %v10459_v47, %v5455_v34  ;;  %v10465_v42 = vadd.f32 %v13005_v52, %v10116_v50  ;;  %v5333_v53 = vpop.f32.mrb[111].mxu0  ;;  %v5660_v0 = vmax.f32 %v5628_v58, 0.0  ;;  %v5458_v34 = vld [vmem:[%s11213_s29 + $0x88] sm:$0xff] }
 0x5ea   : > { %v5485_v24 = vadd.f32 %v10462_v33, %v5453_v48  ;;  %v10468_v63 = vadd.f32 %v12993_v26, %v5333_v53  ;;  %v5658_v49 = vmax.f32 %v5626_v44, 0.0 }
 0x5eb   : > { %5519 = vst [vmem:[%s11213_s29 + $0x70] sm:$0xff] %v5487_v19  ;;  %v5488_v29 = vadd.f32 %v10465_v42, %v5456_v23  ;;  %v5686_v3 = vpack.c.bf16 %v5660_v0, %v5659_v10  ;;  %v5591_v59 = vmul.f32 %v13064_v57, %v5487_v19 }
 0x5ec   : > { %5517 = vst [vmem:[%s11213_s29 + $0x60] sm:$0xff] %v5485_v24  ;;  %v5486_v52 = vadd.f32 %v10468_v63, %v5454_v13  ;;  %v5685_v46 = vpack.c.bf16 %v5658_v49, %v5657_v35  ;;  %v5589_v37 = vmul.f32 %v13064_v57, %v5485_v24  ;;  %v5463_v63 = vld [vmem:[%s11213_s29 + $0xb0] sm:$0xff] }
 0x5ed   : > { %5520 = vst [vmem:[%s11213_s29 + $0x78] sm:$0xff] %v5488_v29  ;;  %v5592_v14 = vmul.f32 %v13064_v57, %v5488_v29  ;;  %v5631_v26 = vadd.f32 %v13073_v11, %v5591_v59 }
 0x5ee   : > { %5518 = vst [vmem:[%s11213_s29 + $0x68] sm:$0xff] %v5486_v52  ;;  %v10119_v15 = vpop.f32.mrb[112].mxu0  ;;  %10157 = vmatprep.mubr.bf16.mxu1 %v5685_v46  ;;  %v5590_v38 = vmul.f32 %v13064_v57, %v5486_v52  ;;  %v5629_v9 = vadd.f32 %v13073_v11, %v5589_v37 }
 0x5ef   : > { %v10471_v51 = vadd.f32 %v13017_v4, %v10119_v15  ;;  %v5346_v62 = vpop.f32.mrb[113].mxu0  ;;  %10158 = vmatmul.mubr.bf16.gmra.mrb[72].mxu1 %v5686_v3  ;;  %v5632_v1 = vadd.f32 %v13073_v11, %v5592_v14  ;;  %v5663_v61 = vmax.f32 %v5631_v26, 0.0  ;;  %v5461_v3 = vld [vmem:[%s11213_s29 + $0xa0] sm:$0xff]  ;;  %v5464_v14 = vld [vmem:[%s11213_s29 + $0xb8] sm:$0xff] }
 0x5f0   : > { %v10474_v27 = vadd.f32 %v13011_v43, %v5346_v62  ;;  %v10120_v5 = vpop.f32.mrb[114].mxu0  ;;  %v5630_v16 = vadd.f32 %v13073_v11, %v5590_v38  ;;  %v5661_v60 = vmax.f32 %v5629_v9, 0.0  ;;  %v5462_v9 = vld [vmem:[%s11213_s29 + $0xa8] sm:$0xff] }
 0x5f1   : > { %v5491_v7 = vadd.f32 %v10471_v51, %v5459_v30  ;;  %v10477_v6 = vadd.f32 %v13020_v31, %v10120_v5  ;;  %v5349_v12 = vpop.f32.mrb[115].mxu0  ;;  %v5664_v4 = vmax.f32 %v5632_v1, 0.0 }
 0x5f2   : > { %v5489_v22 = vadd.f32 %v10474_v27, %v5457_v56  ;;  %v10480_v47 = vadd.f32 %v13014_v39, %v5349_v12  ;;  %v5662_v43 = vmax.f32 %v5630_v16, 0.0 }
 0x5f3   : > { %5523 = vst [vmem:[%s11213_s29 + $0x90] sm:$0xff] %v5491_v7  ;;  %v5492_v58 = vadd.f32 %v10477_v6, %v5460_v25  ;;  %v5688_v33 = vpack.c.bf16 %v5664_v4, %v5663_v61  ;;  %v5595_v50 = vmul.f32 %v13064_v57, %v5491_v7  ;;  %v5467_v61 = vld [vmem:[%s11213_s29 + $0xd0] sm:$0xff] }
 0x5f4   : > { %5521 = vst [vmem:[%s11213_s29 + $0x80] sm:$0xff] %v5489_v22  ;;  %v5490_v31 = vadd.f32 %v10480_v47, %v5458_v34  ;;  %v5687_v44 = vpack.c.bf16 %v5662_v43, %v5661_v60  ;;  %v5593_v19 = vmul.f32 %v13064_v57, %v5489_v22  ;;  %v5465_v60 = vld [vmem:[%s11213_s29 + $0xc0] sm:$0xff] }
 0x5f5   : > { %5524 = vst [vmem:[%s11213_s29 + $0x98] sm:$0xff] %v5492_v58  ;;  %v5596_v48 = vmul.f32 %v13064_v57, %v5492_v58  ;;  %v5635_v39 = vadd.f32 %v13073_v11, %v5595_v50  ;;  %v5468_v50 = vld [vmem:[%s11213_s29 + $0xd8] sm:$0xff] }
 0x5f6   : > { %5522 = vst [vmem:[%s11213_s29 + $0x88] sm:$0xff] %v5490_v31  ;;  %v10123_v42 = vpop.f32.mrb[116].mxu0  ;;  %10161 = vmatprep.mubr.bf16.mxu1 %v5687_v44  ;;  %v5594_v53 = vmul.f32 %v13064_v57, %v5490_v31  ;;  %v5633_v10 = vadd.f32 %v13073_v11, %v5593_v19 }
 0x5f7   : > { %v10483_v0 = vadd.f32 %v13029_v45, %v10123_v42  ;;  %v5362_v24 = vpop.f32.mrb[117].mxu0  ;;  %10162 = vmatmul.mubr.bf16.gmra.mrb[76].mxu1 %v5688_v33  ;;  %v5636_v23 = vadd.f32 %v13073_v11, %v5596_v48  ;;  %v5667_v46 = vmax.f32 %v5635_v39, 0.0  ;;  %v5466_v48 = vld [vmem:[%s11213_s29 + $0xc8] sm:$0xff] }
 0x5f8   : > { %v10486_v35 = vadd.f32 %v13023_v32, %v5362_v24  ;;  %v10124_v49 = vpop.f32.mrb[118].mxu0  ;;  %v5634_v29 = vadd.f32 %v13073_v11, %v5594_v53  ;;  %v5665_v15 = vmax.f32 %v5633_v10, 0.0 }
 0x5f9   : > { %v5495_v13 = vadd.f32 %v10483_v0, %v5463_v63  ;;  %v10489_v59 = vadd.f32 %v13032_v54, %v10124_v49  ;;  %v5365_v52 = vpop.f32.mrb[119].mxu0  ;;  %v5668_v45 = vmax.f32 %v5636_v23, 0.0 }
 0x5fa   : > { %v5493_v37 = vadd.f32 %v10486_v35, %v5461_v3  ;;  %v10492_v26 = vadd.f32 %v13026_v55, %v5365_v52  ;;  %v5666_v32 = vmax.f32 %v5634_v29, 0.0 }
 0x5fb   : > { %5527 = vst [vmem:[%s11213_s29 + $0xb0] sm:$0xff] %v5495_v13  ;;  %v5496_v38 = vadd.f32 %v10489_v59, %v5464_v14  ;;  %v5690_v51 = vpack.c.bf16 %v5668_v45, %v5667_v46  ;;  %v5599_v62 = vmul.f32 %v13064_v57, %v5495_v13  ;;  %v5471_v13 = vld [vmem:[%s11213_s29 + $0xf0] sm:$0xff]  ;;  %v5469_v45 = vld [vmem:[%s11213_s29 + $0xe0] sm:$0xff] }
 0x5fc   : > { %5525 = vst [vmem:[%s11213_s29 + $0xa0] sm:$0xff] %v5493_v37  ;;  %v5494_v54 = vadd.f32 %v10492_v26, %v5462_v9  ;;  %v5689_v1 = vpack.c.bf16 %v5666_v32, %v5665_v15  ;;  %v5597_v30 = vmul.f32 %v13064_v57, %v5493_v37  ;;  %v5472_v32 = vld [vmem:[%s11213_s29 + $0xf8] sm:$0xff] }
 0x5fd   : > { %5528 = vst [vmem:[%s11213_s29 + $0xb8] sm:$0xff] %v5496_v38  ;;  %v5600_v27 = vmul.f32 %v13064_v57, %v5496_v38  ;;  %v5639_v55 = vadd.f32 %v13073_v11, %v5599_v62  ;;  %v5470_v62 = vld [vmem:[%s11213_s29 + $0xe8] sm:$0xff] }
 0x5fe   : > { %5526 = vst [vmem:[%s11213_s29 + $0xa8] sm:$0xff] %v5494_v54  ;;  %v10127_v5 = vpop.f32.mrb[120].mxu0  ;;  %10165 = vmatprep.mubr.bf16.mxu1 %v5689_v1  ;;  %v5598_v16 = vmul.f32 %v13064_v57, %v5494_v54  ;;  %v5637_v7 = vadd.f32 %v13073_v11, %v5597_v30 }
 0x5ff   : > { %v10495_v56 = vadd.f32 %v13041_v20, %v10127_v5  ;;  %v5378_v6 = vpop.f32.mrb[121].mxu0  ;;  %10166 = vmatmul.mubr.bf16.gmra.mrb[80].mxu1 %v5690_v51  ;;  %v5640_v12 = vadd.f32 %v13073_v11, %v5600_v27  ;;  %v5671_v34 = vmax.f32 %v5639_v55, 0.0 }
 0x600   : > { %v10498_v4 = vadd.f32 %v13035_v28, %v5378_v6  ;;  %v10128_v22 = vpop.f32.mrb[122].mxu0  ;;  %v5638_v25 = vadd.f32 %v13073_v11, %v5598_v16  ;;  %v5669_v44 = vmax.f32 %v5637_v7, 0.0 }
 0x601   : > { %v5499_v47 = vadd.f32 %v10495_v56, %v5467_v61  ;;  %v10501_v43 = vadd.f32 %v13044_v2, %v10128_v22  ;;  %v5381_v58 = vpop.f32.mrb[123].mxu0  ;;  %v5672_v20 = vmax.f32 %v5640_v12, 0.0 }
 0x602   : > { %v5497_v33 = vadd.f32 %v10498_v4, %v5465_v60  ;;  %v10504_v31 = vadd.f32 %v13038_v18, %v5381_v58  ;;  %v5670_v28 = vmax.f32 %v5638_v25, 0.0  ;;  %v11006_v60 = vld [vmem:[#allocation3 + $0x550] sm:$0xff]   ;;  %v11009_v58 = vld [vmem:[#allocation3 + $0x5a0] sm:$0xff]  }
 0x603   : > { %5531 = vst [vmem:[%s11213_s29 + $0xd0] sm:$0xff] %v5499_v47  ;;  %v5500_v19 = vadd.f32 %v10501_v43, %v5468_v50  ;;  %v5692_v39 = vpack.c.bf16 %v5672_v20, %v5671_v34  ;;  %v5603_v42 = vmul.f32 %v13064_v57, %v5499_v47  ;;  %v11004_v47 = vld [vmem:[#allocation3 + $0x590] sm:$0xff]   ;;  %v11008_v43 = vld [vmem:[#allocation3 + $0x558] sm:$0xff]   ;;  %v11011_v34 = vld [vmem:[#allocation3 + $0x560] sm:$0xff]  }
 0x604   : > { %5529 = vst [vmem:[%s11213_s29 + $0xc0] sm:$0xff] %v5497_v33  ;;  %v5498_v2 = vadd.f32 %v10504_v31, %v5466_v48  ;;  %v5691_v53 = vpack.c.bf16 %v5670_v28, %v5669_v44  ;;  %v5601_v10 = vmul.f32 %v13064_v57, %v5497_v33  ;;  %9345 = vmatprep.subr.bf16.mxu1 %v11004_v47  ;;  %v11012_v20 = vld [vmem:[#allocation3 + $0x5a8] sm:$0xff]   ;;  %v11014_v50 = vld [vmem:[#allocation3 + $0x5b0] sm:$0xff]   ;;  %v11017_v28 = vld [vmem:[#allocation3 + $0x5b8] sm:$0xff]  }
 0x605   : > { %5532 = vst [vmem:[%s11213_s29 + $0xd8] sm:$0xff] %v5500_v19  ;;  %v5604_v0 = vmul.f32 %v13064_v57, %v5500_v19  ;;  %v5643_v18 = vadd.f32 %v13073_v11, %v5603_v42  ;;  %9346 = vmatpush3.bf16.msra.mxu1 %v11006_v60  ;;  %v11013_v33 = vld [vmem:[#allocation3 + $0x568] sm:$0xff]   ;;  %v11010_v31 = vld [vmem:[#allocation3 + $0x5f0] sm:$0xff]   ;;  %v11015_v19 = vld [vmem:[#allocation3 + $0x5f8] sm:$0xff]  }
 0x606   : > { %5530 = vst [vmem:[%s11213_s29 + $0xc8] sm:$0xff] %v5498_v2  ;;  %v10131_v24 = vpop.f32.mrb[124].mxu0  ;;  %10169 = vmatprep.mubr.bf16.mxu1 %v5691_v53  ;;  %v5602_v23 = vmul.f32 %v13064_v57, %v5498_v2  ;;  %v5641_v63 = vadd.f32 %v13073_v11, %v5601_v10  ;;  %v11016_v44 = vld [vmem:[#allocation3 + $0x570] sm:$0xff]   ;;  %v11018_v48 = vld [vmem:[#allocation3 + $0x578] sm:$0xff]   ;;  %v11035_v42 = vld [vmem:[#allocation3 + $0x640] sm:$0xff]  }
 0x607   : > { %v10507_v35 = vadd.f32 %v13053_v17, %v10131_v24  ;;  %v5394_v49 = vpop.f32.mrb[125].mxu0  ;;  %10170 = vmatmul.mubr.bf16.gmra.mrb[84].mxu1 %v5692_v39  ;;  %v5644_v29 = vadd.f32 %v13073_v11, %v5604_v0  ;;  %v5675_v26 = vmax.f32 %v5643_v18, 0.0  ;;  %v11019_v39 = vld [vmem:[#allocation3 + $0x4c0] sm:$0xff]   ;;  %v13231_v2 = vld [vmem:[%s13957_s4 + $0x2] ss:$0 sm:$0xff] }
 0x608   : > { %v10510_v3 = vadd.f32 %v13047_v41, %v5394_v49  ;;  %v10132_v59 = vpop.f32.mrb[126].mxu0  ;;  %v5642_v52 = vadd.f32 %v13073_v11, %v5602_v23  ;;  %v5673_v9 = vmax.f32 %v5641_v63, 0.0  ;;  %v11020_v60 = vld [vmem:[#allocation3 + $0x480] sm:$0xff]  }
 0x609   : > { %v5503_v46 = vadd.f32 %v10507_v35, %v5471_v13  ;;  %v10513_v37 = vadd.f32 %v13056_v8, %v10132_v59  ;;  %v5397_v14 = vpop.f32.mrb[127].mxu0  ;;  %v5676_v17 = vmax.f32 %v5644_v29, 0.0 }
 0x60a   : > { %v5501_v15 = vadd.f32 %v10510_v3, %v5469_v45  ;;  %v10516_v38 = vadd.f32 %v13050_v21, %v5397_v14  ;;  %v5674_v41 = vmax.f32 %v5642_v52, 0.0 }
 0x60b   : > { %5535 = vst [vmem:[%s11213_s29 + $0xf0] sm:$0xff] %v5503_v46  ;;  %v5504_v51 = vadd.f32 %v10513_v37, %v5472_v32  ;;  %v5694_v54 = vpack.c.bf16 %v5676_v17, %v5675_v26  ;;  %v5607_v1 = vmul.f32 %v13064_v57, %v5503_v46 }
 0x60c   : > { %5533 = vst [vmem:[%s11213_s29 + $0xe0] sm:$0xff] %v5501_v15  ;;  %v5502_v30 = vadd.f32 %v10516_v38, %v5470_v62  ;;  %v5693_v8 = vpack.c.bf16 %v5674_v41, %v5673_v9  ;;  %v5605_v27 = vmul.f32 %v13064_v57, %v5501_v15 }
 0x60d   : > { %5536 = vst [vmem:[%s11213_s29 + $0xf8] sm:$0xff] %v5504_v51  ;;  %v5608_v55 = vmul.f32 %v13064_v57, %v5504_v51  ;;  %v5647_v5 = vadd.f32 %v13073_v11, %v5607_v1 }
 0x60e   : > { %5534 = vst [vmem:[%s11213_s29 + $0xe8] sm:$0xff] %v5502_v30  ;;  %10173 = vmatprep.mubr.bf16.mxu1 %v5693_v8  ;;  %v5606_v21 = vmul.f32 %v13064_v57, %v5502_v30  ;;  %v5645_v16 = vadd.f32 %v13073_v11, %v5605_v27  ;;  %v11007_v57 = vld [vmem:[#allocation3 + $0x598] sm:$0xff]  }
 0x60f   : > { %10174 = vmatmul.mubr.bf16.gmra.mrb[88].mxu1 %v5694_v54  ;;  %v5648_v7 = vadd.f32 %v13073_v11, %v5608_v55  ;;  %v5679_v6 = vmax.f32 %v5647_v5, 0.0  ;;  %9347 = vmatprep.subr.bf16.mxu1 %v11007_v57  ;;  %v11036_v57 = vld [vmem:[#allocation3 + $0x600] sm:$0xff]  }
 0x610   : > { %v5646_v56 = vadd.f32 %v13073_v11, %v5606_v21  ;;  %v5677_v61 = vmax.f32 %v5645_v16, 0.0  ;;  %9348 = vmatpush3.bf16.msra.mxu1 %v11008_v43  ;;  %v11005_v11 = vld [vmem:[#allocation3 + $0x5e8] sm:$0xff]   ;;  %v6126_v21 = vld [vmem:[#allocation2 + $0x30] sm:$0xff]  ;;  %v6222_v16 = vld [vmem:[#allocation2 + $0x40] sm:$0xff] }
 0x611   : > { %v5680_v12 = vmax.f32 %v5648_v7, 0.0  ;;  %9349 = vmatprep.subr.bf16.mxu1 %v11009_v58  ;;  %10191 = vmatprep.subr.bf16.mxu0 %v11005_v11 }
 0x612   : > { %v5678_v4 = vmax.f32 %v5646_v56, 0.0  ;;  %10192 = vmatpush3.bf16.msra.mxu0 %v11005_v11  ;;  %v6123_v56 = vld [vmem:[#allocation2 + $0x18] sm:$0xff] }
 0x613   : > { %v5696_v22 = vpack.c.bf16 %v5680_v12, %v5679_v6  ;;  %10193 = vmatprep.subr.bf16.mxu0 %v11010_v31 }
 0x614   : > { %v5695_v25 = vpack.c.bf16 %v5678_v4, %v5677_v61  ;;  %9350 = vmatpush3.bf16.msra.mxu1 %v11011_v34 }
 0x615   : > { %9351 = vmatprep.subr.bf16.mxu1 %v11012_v20  ;;  %v11021_v20 = vld [vmem:[#allocation3 + $0x4c8] sm:$0xff]  }
 0x616   : > { %10177 = vmatprep.mubr.bf16.mxu1 %v5695_v25  ;;  %10194 = vmatpush3.bf16.msra.mxu0 %v11010_v31  ;;  %v6219_v25 = vld [vmem:[#allocation2 + $0x28] sm:$0xff] }
 0x617   : > { %10178 = vmatmul.mubr.bf16.gmra.mrb[92].mxu1 %v5696_v22  ;;  %10195 = vmatprep.subr.bf16.mxu0 %v11015_v19 }
 0x618   : > { %9352 = vmatpush3.bf16.msra.mxu1 %v11013_v33  ;;  %v11038_v33 = vld [vmem:[#allocation3 + $0x648] sm:$0xff]  }
 0x619   : > { %9353 = vmatprep.subr.bf16.mxu1 %v11014_v50 }
 0x61a   : > { %10196 = vmatpush3.bf16.msra.mxu0 %v11015_v19 }
 0x61b   : > { %9477 = vmatprep.subr.bf16.mxu0 %v11019_v39 }
 0x61c   : > { %9354 = vmatpush3.bf16.msra.mxu1 %v11016_v44 }
 0x61d   : > { %9355 = vmatprep.subr.bf16.mxu1 %v11017_v28 }
 0x620   : > { %9356 = vmatpush3.bf16.msra.mxu1 %v11018_v48 }
 0x621   : > { %9613 = vmatprep.subr.bf16.mxu1 %v11035_v42 }
 0x6b2   : > { %v10151_v53 = vpop.f32.mrb[64].mxu1 }
 0x6b3   : > { %v5813_v10 = vadd.f32 %v10151_v53, %v13231_v2  ;;  %v5804_v0 = vpop.f32.mrb[65].mxu1 }
 0x6b4   : > { %v5805_v18 = vadd.f32 %v13231_v2, %v5804_v0  ;;  %v10152_v24 = vpop.f32.mrb[66].mxu1 }
 0x6b5   : > { %v5816_v23 = vadd.f32 %v10152_v24, %v13231_v2  ;;  %v5807_v63 = vpop.f32.mrb[67].mxu1  ;;  %v5933_v49 = vmax.f32 %v5813_v10, 0.0  ;;  %v11022_v24 = vld [vmem:[#allocation3 + $0x488] sm:$0xff]  }
 0x6b6   : > { %v5808_v35 = vadd.f32 %v13231_v2, %v5807_v63  ;;  %v5931_v13 = vmax.f32 %v5805_v18, 0.0 }
 0x6b7   : > { %v5934_v29 = vmax.f32 %v5816_v23, 0.0  ;;  %v11039_v23 = vld [vmem:[#allocation3 + $0x608] sm:$0xff]  }
 0x6b8   : > { %v5932_v3 = vmax.f32 %v5808_v35, 0.0 }
 0x6b9   : > { %v5964_v59 = vpack.c.bf16 %v5934_v29, %v5933_v49  ;;  %v11023_v29 = vld [vmem:[#allocation3 + $0x4d0] sm:$0xff]  }
 0x6ba   : > { %v13237_v52 = vpack.c.bf16 %v5932_v3, %v5931_v13  ;;  %v10155_v46 = vpop.f32.mrb[68].mxu1  ;;  %v11041_v13 = vld [vmem:[#allocation3 + $0x650] sm:$0xff]  }
 0x6bb   : > { %5980 = vst [vmem:[#allocation2 + $0x38] sm:$0xff] %v5964_v59  ;;  %v6003_v45 = vshrl.u32 %v5964_v59, 16  ;;  %v6006_v37 = vshll.u32 %v5964_v59, 16  ;;  %v5829_v14 = vadd.f32 %v10155_v46, %v13231_v2  ;;  %v5820_v26 = vpop.f32.mrb[69].mxu1 }
 0x6bc   : > { %5979 = vst [vmem:[#allocation2 + $0x20] sm:$0xff] %v13237_v52  ;;  %v5996_v17 = vshrl.u32 %v13237_v52, 16  ;;  %v5999_v15 = vshll.u32 %v13237_v52, 16  ;;  %v5821_v32 = vadd.f32 %v13231_v2, %v5820_v26  ;;  %v10156_v38 = vpop.f32.mrb[70].mxu1  ;;  %6637 = vmatprep.mubr.bf16.mxu1 %v13237_v52 }
 0x6bd   : > { %v6005_v9 = vrot.slane %v6003_v45, 7  ;;  %v6173_v41 = vrot.slane %v6006_v37, 1  ;;  %v5832_v51 = vadd.f32 %v10156_v38, %v13231_v2  ;;  %v5823_v62 = vpop.f32.mrb[71].mxu1  ;;  %v5937_v55 = vmax.f32 %v5829_v14, 0.0  ;;  %v6228_v14 = vld [vmem:[#allocation2 + $0x70] sm:$0xff] }
 0x6be   : > { %v5998_v54 = vrot.slane %v5996_v17, 7  ;;  %v6171_v1 = vrot.slane %v5999_v15, 1  ;;  %v5824_v30 = vadd.f32 %v13231_v2, %v5823_v62  ;;  %v5935_v12 = vmax.f32 %v5821_v32, 0.0 }
 0x6bf   : > { %v6008_v8 = vor.u32 %v6006_v37, %v6005_v9  ;;  %v6174_v27 = vor.u32 %v6173_v41, %v6003_v45  ;;  %v5938_v5 = vmax.f32 %v5832_v51, 0.0  ;;  %v6132_v37 = vld [vmem:[#allocation2 + $0x60] sm:$0xff]  ;;  %v6225_v51 = vld [vmem:[#allocation2 + $0x58] sm:$0xff] }
 0x6c0   : > { %v6001_v7 = vor.u32 %v5999_v15, %v5998_v54  ;;  %v6172_v6 = vor.u32 %v6171_v1, %v5996_v17  ;;  %v5936_v61 = vmax.f32 %v5824_v30, 0.0  ;;  %v6129_v17 = vld [vmem:[#allocation2 + $0x48] sm:$0xff]  ;;  %v11024_v54 = vld [vmem:[#allocation3 + $0x490] sm:$0xff]  }
 0x6c1   : > { %v13249_v4 = vsel %vm11614_vm9, %v6008_v8, %v6126_v21  ;;  %v6223_v22 = vsel %vm11621_vm10, %v6174_v27, %v6222_v16  ;;  %v13253_v47 = vpack.c.bf16 %v5938_v5, %v5937_v55  ;;  %v11042_v1 = vld [vmem:[#allocation3 + $0x610] sm:$0xff]   ;;  %v11025_v5 = vld [vmem:[#allocation3 + $0x4d8] sm:$0xff]  }
 0x6c2   : > { %6128 = vst [vmem:[#allocation2 + $0x30] sm:$0xff] %v13249_v4  ;;  %6224 = vst [vmem:[#allocation2 + $0x40] sm:$0xff] %v6223_v22  ;;  %v13258_v43 = vsel %vm11614_vm9, %v6001_v7, %v6123_v56  ;;  %v6220_v58 = vsel %vm11621_vm10, %v6172_v6, %v6219_v25  ;;  %v13262_v34 = vpack.c.bf16 %v5936_v61, %v5935_v12  ;;  %v10159_v11 = vpop.f32.mrb[72].mxu1  ;;  %v11044_v21 = vld [vmem:[#allocation3 + $0x658] sm:$0xff]  }
 0x6c3   : > { %6125 = vst [vmem:[#allocation2 + $0x18] sm:$0xff] %v13258_v43  ;;  %6221 = vst [vmem:[#allocation2 + $0x28] sm:$0xff] %v6220_v58  ;;  %v6017_v50 = vshrl.u32 %v13253_v47, 16  ;;  %v6020_v31 = vshll.u32 %v13253_v47, 16  ;;  %v5845_v44 = vadd.f32 %v10159_v11, %v13231_v2  ;;  %v5836_v28 = vpop.f32.mrb[73].mxu1  ;;  %6638 = vmatmul.mubr.bf16.vlgmr.msra.gmra.mrb[96].mxu1 %v13258_v43  ;;  %10197 = vmatprep.mubr.bf16.mxu0 %v6220_v58 }
 0x6c4   : > { %5982 = vst [vmem:[#allocation2 + $0x68] sm:$0xff] %v13253_v47  ;;  %5981 = vst [vmem:[#allocation2 + $0x50] sm:$0xff] %v13262_v34  ;;  %v6010_v19 = vshrl.u32 %v13262_v34, 16  ;;  %v6013_v48 = vshll.u32 %v13262_v34, 16  ;;  %v5837_v39 = vadd.f32 %v13231_v2, %v5836_v28  ;;  %v10160_v42 = vpop.f32.mrb[74].mxu1  ;;  %6645 = vmatprep.mubr.bf16.mxu1 %v5964_v59  ;;  %10198 = vmatmul.mubr.bf16.vlgmr.msra.gmra.mrb[192].mxu0 %v6223_v22  ;;  %v11047_v28 = vld [vmem:[#allocation3 + $0x660] sm:$0xff]  }
 0x6c5   : > { %v6019_v53 = vrot.slane %v6017_v50, 7  ;;  %v6177_v10 = vrot.slane %v6020_v31, 1  ;;  %v5848_v0 = vadd.f32 %v10160_v42, %v13231_v2  ;;  %v5839_v18 = vpop.f32.mrb[75].mxu1  ;;  %9478 = vmatpush3.bf16.msra.mxu0 %v11020_v60  ;;  %9614 = vmatpush3.bf16.msra.mxu1 %v11036_v57  ;;  %v5941_v46 = vmax.f32 %v5845_v44, 0.0  ;;  %v11027_v44 = vld [vmem:[#allocation3 + $0x4e0] sm:$0xff]  }
 0x6c6   : > { %v6012_v63 = vrot.slane %v6010_v19, 7  ;;  %v6175_v35 = vrot.slane %v6013_v48, 1  ;;  %v5840_v49 = vadd.f32 %v13231_v2, %v5839_v18  ;;  %9479 = vmatprep.subr.bf16.mxu0 %v11021_v20  ;;  %9615 = vmatprep.subr.bf16.mxu1 %v11038_v33  ;;  %v5939_v32 = vmax.f32 %v5837_v39, 0.0  ;;  %v11045_v20 = vld [vmem:[#allocation3 + $0x618] sm:$0xff]   ;;  %v6135_v18 = vld [vmem:[#allocation2 + $0x78] sm:$0xff] }
 0x6c7   : > { %v6022_v3 = vor.u32 %v6020_v31, %v6019_v53  ;;  %v6178_v59 = vor.u32 %v6177_v10, %v6017_v50  ;;  %v5942_v45 = vmax.f32 %v5848_v0, 0.0  ;;  %v6138_v53 = vld [vmem:[#allocation2 + $0x90] sm:$0xff]  ;;  %v6234_v10 = vld [vmem:[#allocation2 + $0xa0] sm:$0xff] }
 0x6c8   : > { %v6015_v26 = vor.u32 %v6013_v48, %v6012_v63  ;;  %v6176_v15 = vor.u32 %v6175_v35, %v6010_v19  ;;  %v5940_v38 = vmax.f32 %v5840_v49, 0.0 }
 0x6c9   : > { %v13278_v9 = vsel %vm11614_vm9, %v6022_v3, %v6132_v37  ;;  %v6229_v41 = vsel %vm11621_vm10, %v6178_v59, %v6228_v14  ;;  %v13282_v62 = vpack.c.bf16 %v5942_v45, %v5941_v46  ;;  %9480 = vmatpush3.bf16.msra.mxu0 %v11022_v24  ;;  %9616 = vmatpush3.bf16.msra.mxu1 %v11039_v23  ;;  %v11028_v3 = vld [vmem:[#allocation3 + $0x4a0] sm:$0xff]  }
 0x6ca   : > { %6134 = vst [vmem:[#allocation2 + $0x60] sm:$0xff] %v13278_v9  ;;  %6230 = vst [vmem:[#allocation2 + $0x70] sm:$0xff] %v6229_v41  ;;  %v13287_v30 = vsel %vm11614_vm9, %v6015_v26, %v6129_v17  ;;  %v6226_v8 = vsel %vm11621_vm10, %v6176_v15, %v6225_v51  ;;  %v13291_v27 = vpack.c.bf16 %v5940_v38, %v5939_v32  ;;  %v10163_v55 = vpop.f32.mrb[76].mxu1  ;;  %9481 = vmatprep.subr.bf16.mxu0 %v11023_v29  ;;  %v6231_v29 = vld [vmem:[#allocation2 + $0x88] sm:$0xff]  ;;  %v11048_v59 = vld [vmem:[#allocation3 + $0x620] sm:$0xff]  }
 0x6cb   : > { %9617 = vmatprep.subr.bf16.mxu1 %v11041_v13  ;;  %6131 = vst [vmem:[#allocation2 + $0x48] sm:$0xff] %v13287_v30  ;;  %6227 = vst [vmem:[#allocation2 + $0x58] sm:$0xff] %v6226_v8  ;;  %v6031_v16 = vshrl.u32 %v13282_v62, 16  ;;  %v6034_v7 = vshll.u32 %v13282_v62, 16  ;;  %v5861_v56 = vadd.f32 %v10163_v55, %v13231_v2  ;;  %v5852_v6 = vpop.f32.mrb[77].mxu1  ;;  %6646 = vmatmul.mubr.bf16.gmra.mrb[100].mxu1 %v13249_v4  ;;  %v11026_v4 = vld [vmem:[#allocation3 + $0x498] sm:$0xff]  }
 0x6cc   : > { %5984 = vst [vmem:[#allocation2 + $0x98] sm:$0xff] %v13282_v62  ;;  %10201 = vmatprep.mubr.bf16.mxu0 %v6226_v8  ;;  %5983 = vst [vmem:[#allocation2 + $0x80] sm:$0xff] %v13291_v27  ;;  %v6024_v12 = vshrl.u32 %v13291_v27, 16  ;;  %v6027_v61 = vshll.u32 %v13291_v27, 16  ;;  %v5853_v22 = vadd.f32 %v13231_v2, %v5852_v6  ;;  %v10164_v25 = vpop.f32.mrb[78].mxu1  ;;  %6653 = vmatprep.mubr.bf16.mxu1 %v13262_v34  ;;  %v11029_v26 = vld [vmem:[#allocation3 + $0x4e8] sm:$0xff]  }
 0x6cd   : > { %10202 = vmatmul.mubr.bf16.gmra.mrb[196].mxu0 %v6229_v41  ;;  %v6033_v60 = vrot.slane %v6031_v16, 7  ;;  %v6181_v57 = vrot.slane %v6034_v7, 1  ;;  %v5864_v58 = vadd.f32 %v10164_v25, %v13231_v2  ;;  %v5855_v11 = vpop.f32.mrb[79].mxu1  ;;  %9618 = vmatpush3.bf16.msra.mxu1 %v11042_v1  ;;  %v5945_v39 = vmax.f32 %v5861_v56, 0.0  ;;  %v11049_v17 = vld [vmem:[#allocation3 + $0x668] sm:$0xff]   ;;  %v11051_v25 = vld [vmem:[#allocation3 + $0x670] sm:$0xff]  }
 0x6ce   : > { %9482 = vmatpush3.bf16.msra.mxu0 %v11024_v54  ;;  %v6026_v33 = vrot.slane %v6024_v12, 7  ;;  %v6179_v50 = vrot.slane %v6027_v61, 1  ;;  %v5856_v31 = vadd.f32 %v13231_v2, %v5855_v11  ;;  %9619 = vmatprep.subr.bf16.mxu1 %v11044_v21  ;;  %v5943_v23 = vmax.f32 %v5853_v22, 0.0  ;;  %v11050_v56 = vld [vmem:[#allocation3 + $0x628] sm:$0xff]   ;;  %v11031_v22 = vld [vmem:[#allocation3 + $0x4f0] sm:$0xff]  }
 0x6cf   : > { %9483 = vmatprep.subr.bf16.mxu0 %v11025_v5  ;;  %v6036_v19 = vor.u32 %v6034_v7, %v6033_v60  ;;  %v6182_v48 = vor.u32 %v6181_v57, %v6031_v16  ;;  %v5946_v42 = vmax.f32 %v5864_v58, 0.0  ;;  %v11030_v7 = vld [vmem:[#allocation3 + $0x4a8] sm:$0xff]  }
 0x6d0   : > { %v6029_v0 = vor.u32 %v6027_v61, %v6026_v33  ;;  %v6180_v24 = vor.u32 %v6179_v50, %v6024_v12  ;;  %v5944_v63 = vmax.f32 %v5856_v31, 0.0  ;;  %v6141_v50 = vld [vmem:[#allocation2 + $0xa8] sm:$0xff] }
 0x6d1   : > { %v13308_v35 = vsel %vm11614_vm9, %v6036_v19, %v6138_v53  ;;  %v6235_v49 = vsel %vm11621_vm10, %v6182_v48, %v6234_v10  ;;  %v13312_v13 = vpack.c.bf16 %v5946_v42, %v5945_v39  ;;  %9620 = vmatpush3.bf16.msra.mxu1 %v11045_v20  ;;  %v6240_v20 = vld [vmem:[#allocation2 + $0xd0] sm:$0xff]  ;;  %v6237_v39 = vld [vmem:[#allocation2 + $0xb8] sm:$0xff]  ;;  %v11032_v53 = vld [vmem:[#allocation3 + $0x4b0] sm:$0xff]  }
 0x6d2   : > { %9484 = vmatpush3.bf16.msra.mxu0 %v11026_v4  ;;  %6140 = vst [vmem:[#allocation2 + $0x90] sm:$0xff] %v13308_v35  ;;  %6236 = vst [vmem:[#allocation2 + $0xa0] sm:$0xff] %v6235_v49  ;;  %v13317_v46 = vsel %vm11614_vm9, %v6029_v0, %v6135_v18  ;;  %v6232_v45 = vsel %vm11621_vm10, %v6180_v24, %v6231_v29  ;;  %v13321_v37 = vpack.c.bf16 %v5944_v63, %v5943_v23  ;;  %v10167_v14 = vpop.f32.mrb[80].mxu1  ;;  %v6144_v4 = vld [vmem:[#allocation2 + $0xc0] sm:$0xff]  ;;  %v11033_v63 = vld [vmem:[#allocation3 + $0x4f8] sm:$0xff]  }
 0x6d3   : > { %9485 = vmatprep.subr.bf16.mxu0 %v11027_v44  ;;  %9621 = vmatprep.subr.bf16.mxu1 %v11047_v28  ;;  %6137 = vst [vmem:[#allocation2 + $0x78] sm:$0xff] %v13317_v46  ;;  %6233 = vst [vmem:[#allocation2 + $0x88] sm:$0xff] %v6232_v45  ;;  %v6045_v15 = vshrl.u32 %v13312_v13, 16  ;;  %v6048_v32 = vshll.u32 %v13312_v13, 16  ;;  %v5877_v38 = vadd.f32 %v10167_v14, %v13231_v2  ;;  %v5868_v41 = vpop.f32.mrb[81].mxu1  ;;  %v11052_v10 = vld [vmem:[#allocation3 + $0x630] sm:$0xff]  }
 0x6d4   : > { %5986 = vst [vmem:[#allocation2 + $0xc8] sm:$0xff] %v13312_v13  ;;  %6654 = vmatmul.mubr.bf16.gmra.mrb[104].mxu1 %v13287_v30  ;;  %10205 = vmatprep.mubr.bf16.mxu0 %v6232_v45  ;;  %5985 = vst [vmem:[#allocation2 + $0xb0] sm:$0xff] %v13321_v37  ;;  %v6038_v51 = vshrl.u32 %v13321_v37, 16  ;;  %v6041_v54 = vshll.u32 %v13321_v37, 16  ;;  %v5869_v1 = vadd.f32 %v13231_v2, %v5868_v41  ;;  %v10168_v8 = vpop.f32.mrb[82].mxu1 }
 0x6d5   : > { %6661 = vmatprep.mubr.bf16.mxu1 %v13253_v47  ;;  %10206 = vmatmul.mubr.bf16.gmra.mrb[200].mxu0 %v6235_v49  ;;  %v6047_v55 = vrot.slane %v6045_v15, 7  ;;  %v6185_v5 = vrot.slane %v6048_v32, 1  ;;  %v5880_v21 = vadd.f32 %v10168_v8, %v13231_v2  ;;  %v5871_v16 = vpop.f32.mrb[83].mxu1  ;;  %v5949_v58 = vmax.f32 %v5877_v38, 0.0  ;;  %v11053_v49 = vld [vmem:[#allocation3 + $0x678] sm:$0xff]  }
 0x6d6   : > { %9486 = vmatpush3.bf16.msra.mxu0 %v11028_v3  ;;  %9622 = vmatpush3.bf16.msra.mxu1 %v11048_v59  ;;  %v6040_v6 = vrot.slane %v6038_v51, 7  ;;  %v6183_v12 = vrot.slane %v6041_v54, 1  ;;  %v5872_v61 = vadd.f32 %v13231_v2, %v5871_v16  ;;  %v5947_v44 = vmax.f32 %v5869_v1, 0.0  ;;  %v11054_v1 = vld [vmem:[#allocation3 + $0x638] sm:$0xff]  }
 0x6d7   : > { %9487 = vmatprep.subr.bf16.mxu0 %v11029_v26  ;;  %9623 = vmatprep.subr.bf16.mxu1 %v11049_v17  ;;  %v6050_v60 = vor.u32 %v6048_v32, %v6047_v55  ;;  %v6186_v57 = vor.u32 %v6185_v5, %v6045_v15  ;;  %v5950_v11 = vmax.f32 %v5880_v21, 0.0  ;;  %v13365_v21 = vld [vmem:[#allocation3 + $0x500] sm:$0xff]  }
 0x6d8   : > { %v6043_v33 = vor.u32 %v6041_v54, %v6040_v6  ;;  %v6184_v31 = vor.u32 %v6183_v12, %v6038_v51  ;;  %v5948_v28 = vmax.f32 %v5872_v61, 0.0  ;;  %v11034_v54 = vld [vmem:[#allocation3 + $0x4b8] sm:$0xff]   ;;  %v6150_v12 = vld [vmem:[#allocation2 + $0xf0] sm:$0xff]  ;;  %v6246_v61 = vld [vmem:[#allocation2 + $0x100] sm:$0xff] }
 0x6d9   : > { %v13338_v19 = vsel %vm11614_vm9, %v6050_v60, %v6144_v4  ;;  %v6241_v48 = vsel %vm11621_vm10, %v6186_v57, %v6240_v20  ;;  %v13342_v42 = vpack.c.bf16 %v5950_v11, %v5949_v58  ;;  %v6147_v4 = vld [vmem:[#allocation2 + $0xd8] sm:$0xff]  ;;  %v6243_v20 = vld [vmem:[#allocation2 + $0xe8] sm:$0xff] }
 0x6da   : > { %9488 = vmatpush3.bf16.msra.mxu0 %v11030_v7  ;;  %9624 = vmatpush3.bf16.msra.mxu1 %v11050_v56  ;;  %6146 = vst [vmem:[#allocation2 + $0xc0] sm:$0xff] %v13338_v19  ;;  %6242 = vst [vmem:[#allocation2 + $0xd0] sm:$0xff] %v6241_v48  ;;  %v13347_v0 = vsel %vm11614_vm9, %v6043_v33, %v6141_v50  ;;  %v6238_v18 = vsel %vm11621_vm10, %v6184_v31, %v6237_v39  ;;  %v10171_v23 = vpop.f32.mrb[84].mxu1 }
 0x6db   : > { %v13351_v24 = vpack.c.bf16 %v5948_v28, %v5947_v44  ;;  %9489 = vmatprep.subr.bf16.mxu0 %v11031_v22  ;;  %9625 = vmatprep.subr.bf16.mxu1 %v11051_v25  ;;  %6143 = vst [vmem:[#allocation2 + $0xa8] sm:$0xff] %v13347_v0  ;;  %6239 = vst [vmem:[#allocation2 + $0xb8] sm:$0xff] %v6238_v18  ;;  %v6059_v29 = vshrl.u32 %v13342_v42, 16  ;;  %v6062_v3 = vshll.u32 %v13342_v42, 16  ;;  %v5884_v45 = vpop.f32.mrb[85].mxu1 }
 0x6dc   : > { %5988 = vst [vmem:[#allocation2 + $0xf8] sm:$0xff] %v13342_v42  ;;  %v5893_v59 = vadd.f32 %v10171_v23, %v13231_v2  ;;  %6662 = vmatmul.mubr.bf16.gmra.mrb[108].mxu1 %v13278_v9  ;;  %10209 = vmatprep.mubr.bf16.mxu0 %v6238_v18  ;;  %v5885_v17 = vadd.f32 %v13231_v2, %v5884_v45  ;;  %v10172_v15 = vpop.f32.mrb[86].mxu1 }
 0x6dd   : > { %v6052_v14 = vshrl.u32 %v13351_v24, 16  ;;  %v6055_v26 = vshll.u32 %v13351_v24, 16  ;;  %6669 = vmatprep.mubr.bf16.mxu1 %v13291_v27  ;;  %10210 = vmatmul.mubr.bf16.gmra.mrb[204].mxu0 %v6241_v48  ;;  %v6061_v32 = vrot.slane %v6059_v29, 7  ;;  %v6189_v38 = vrot.slane %v6062_v3, 1  ;;  %v5887_v51 = vpop.f32.mrb[87].mxu1 }
 0x6de   : > { %v5896_v41 = vadd.f32 %v10172_v15, %v13231_v2  ;;  %9490 = vmatpush3.bf16.msra.mxu0 %v11032_v53  ;;  %9626 = vmatpush3.bf16.msra.mxu1 %v11052_v10  ;;  %v5888_v5 = vadd.f32 %v13231_v2, %v5887_v51  ;;  %v5953_v56 = vmax.f32 %v5893_v59, 0.0  ;;  %v5951_v60 = vmax.f32 %v5885_v17, 0.0  ;;  %v6156_v51 = vld [vmem:[#allocation2 + $0x120] sm:$0xff] }
 0x6df   : > { %v6054_v8 = vrot.slane %v6052_v14, 7  ;;  %v6187_v55 = vrot.slane %v6055_v26, 1  ;;  %9491 = vmatprep.subr.bf16.mxu0 %v11033_v63  ;;  %9627 = vmatprep.subr.bf16.mxu1 %v11053_v49  ;;  %v6064_v16 = vor.u32 %v6062_v3, %v6061_v32  ;;  %v6190_v7 = vor.u32 %v6189_v38, %v6059_v29 }
 0x6e0   : > { %v5954_v6 = vmax.f32 %v5896_v41, 0.0  ;;  %v5952_v57 = vmax.f32 %v5888_v5, 0.0 }
 0x6e1   : > { %v6057_v22 = vor.u32 %v6055_v26, %v6054_v8  ;;  %v6188_v25 = vor.u32 %v6187_v55, %v6052_v14  ;;  %v13369_v58 = vsel %vm11614_vm9, %v6064_v16, %v6150_v12  ;;  %v6247_v11 = vsel %vm11621_vm10, %v6190_v7, %v6246_v61 }
 0x6e2   : > { %v13373_v33 = vpack.c.bf16 %v5954_v6, %v5953_v56  ;;  %9492 = vmatpush3.bf16.msra.mxu0 %v11034_v54  ;;  %9628 = vmatpush3.bf16.msra.mxu1 %v11054_v1  ;;  %6152 = vst [vmem:[#allocation2 + $0xf0] sm:$0xff] %v13369_v58  ;;  %6248 = vst [vmem:[#allocation2 + $0x100] sm:$0xff] %v6247_v11  ;;  %v13382_v44 = vpack.c.bf16 %v5952_v57, %v5951_v60  ;;  %v10175_v28 = vpop.f32.mrb[88].mxu1  ;;  %v6252_v54 = vld [vmem:[#allocation2 + $0x130] sm:$0xff]  ;;  %v6153_v56 = vld [vmem:[#allocation2 + $0x108] sm:$0xff] }
 0x6e3   : > { %v13378_v50 = vsel %vm11614_vm9, %v6057_v22, %v6147_v4  ;;  %v6244_v31 = vsel %vm11621_vm10, %v6188_v25, %v6243_v20  ;;  %10229 = vmatprep.subr.bf16.mxu0 %v13365_v21  ;;  %v5909_v53 = vadd.f32 %v10175_v28, %v13231_v2  ;;  %v5900_v10 = vpop.f32.mrb[89].mxu1  ;;  %v6249_v6 = vld [vmem:[#allocation2 + $0x118] sm:$0xff] }
 0x6e4   : > { %6149 = vst [vmem:[#allocation2 + $0xd8] sm:$0xff] %v13378_v50  ;;  %6245 = vst [vmem:[#allocation2 + $0xe8] sm:$0xff] %v6244_v31  ;;  %v6073_v48 = vshrl.u32 %v13373_v33, 16  ;;  %v6076_v39 = vshll.u32 %v13373_v33, 16  ;;  %6670 = vmatmul.mubr.bf16.gmra.mrb[112].mxu1 %v13317_v46  ;;  %10213 = vmatprep.mubr.bf16.mxu0 %v6244_v31  ;;  %v6066_v18 = vshrl.u32 %v13382_v44, 16  ;;  %v6069_v23 = vshll.u32 %v13382_v44, 16 }
 0x6e5   : > { %v5901_v63 = vadd.f32 %v13231_v2, %v5900_v10  ;;  %v10176_v49 = vpop.f32.mrb[90].mxu1  ;;  %6677 = vmatprep.mubr.bf16.mxu1 %v13282_v62  ;;  %10214 = vmatmul.mubr.bf16.gmra.mrb[208].mxu0 %v6247_v11  ;;  %v5957_v38 = vmax.f32 %v5909_v53, 0.0 }
 0x6e6   : > { %v6075_v29 = vrot.slane %v6073_v48, 7  ;;  %v6193_v3 = vrot.slane %v6076_v39, 1  ;;  %v5912_v59 = vadd.f32 %v10176_v49, %v13231_v2  ;;  %v5903_v45 = vpop.f32.mrb[91].mxu1  ;;  %v6068_v14 = vrot.slane %v6066_v18, 7 }
 0x6e7   : > { %v6191_v26 = vrot.slane %v6069_v23, 1  ;;  %v5904_v17 = vadd.f32 %v13231_v2, %v5903_v45  ;;  %v5955_v55 = vmax.f32 %v5901_v63, 0.0 }
 0x6e8   : > { %v6078_v15 = vor.u32 %v6076_v39, %v6075_v29  ;;  %v6194_v32 = vor.u32 %v6193_v3, %v6073_v48  ;;  %v5958_v41 = vmax.f32 %v5912_v59, 0.0  ;;  %v6071_v1 = vor.u32 %v6069_v23, %v6068_v14 }
 0x6e9   : > { %v6192_v8 = vor.u32 %v6191_v26, %v6066_v18  ;;  %v5956_v5 = vmax.f32 %v5904_v17, 0.0  ;;  %v6162_v26 = vld [vmem:[#allocation2 + $0x150] sm:$0xff]  ;;  %v6258_v17 = vld [vmem:[#allocation2 + $0x160] sm:$0xff] }
 0x6ea   : > { %v13398_v16 = vsel %vm11614_vm9, %v6078_v15, %v6156_v51  ;;  %v6253_v7 = vsel %vm11621_vm10, %v6194_v32, %v6252_v54  ;;  %v13402_v12 = vpack.c.bf16 %v5958_v41, %v5957_v38  ;;  %v13407_v61 = vsel %vm11614_vm9, %v6071_v1, %v6153_v56  ;;  %v10179_v60 = vpop.f32.mrb[92].mxu1  ;;  %v6159_v1 = vld [vmem:[#allocation2 + $0x138] sm:$0xff] }
 0x6eb   : > { %6158 = vst [vmem:[#allocation2 + $0x120] sm:$0xff] %v13398_v16  ;;  %6254 = vst [vmem:[#allocation2 + $0x130] sm:$0xff] %v6253_v7  ;;  %v13411_v22 = vsel %vm11621_vm10, %v6192_v8, %v6249_v6  ;;  %v13413_v25 = vpack.c.bf16 %v5956_v5, %v5955_v55  ;;  %v5925_v4 = vadd.f32 %v10179_v60, %v13231_v2  ;;  %v5916_v20 = vpop.f32.mrb[93].mxu1 }
 0x6ec   : > { %6155 = vst [vmem:[#allocation2 + $0x108] sm:$0xff] %v13407_v61  ;;  %6251 = vst [vmem:[#allocation2 + $0x118] sm:$0xff] %v13411_v22  ;;  %v6087_v57 = vshrl.u32 %v13402_v12, 16  ;;  %v6090_v11 = vshll.u32 %v13402_v12, 16  ;;  %6678 = vmatmul.mubr.bf16.gmra.mrb[116].mxu1 %v13308_v35  ;;  %10217 = vmatprep.mubr.bf16.mxu0 %v13411_v22  ;;  %v5917_v48 = vadd.f32 %v13231_v2, %v5916_v20  ;;  %v10180_v39 = vpop.f32.mrb[94].mxu1 }
 0x6ed   : > { %v6080_v31 = vshrl.u32 %v13413_v25, 16  ;;  %v6083_v28 = vshll.u32 %v13413_v25, 16  ;;  %6685 = vmatprep.mubr.bf16.mxu1 %v13321_v37  ;;  %10218 = vmatmul.mubr.bf16.gmra.mrb[212].mxu0 %v6253_v7  ;;  %v5928_v18 = vadd.f32 %v10180_v39, %v13231_v2  ;;  %v5919_v23 = vpop.f32.mrb[95].mxu1  ;;  %v5961_v45 = vmax.f32 %v5925_v4, 0.0  ;;  %v6168_v39 = vld [vmem:[#allocation2 + $0x180] sm:$0xff] }
 0x6ee   : > { %v6089_v53 = vrot.slane %v6087_v57, 7  ;;  %v6197_v10 = vrot.slane %v6090_v11, 1  ;;  %v5920_v29 = vadd.f32 %v13231_v2, %v5919_v23  ;;  %v5959_v38 = vmax.f32 %v5917_v48, 0.0  ;;  %v6255_v2 = vld [vmem:[#allocation2 + $0x148] sm:$0xff] }
 0x6ef   : > { %v6082_v63 = vrot.slane %v6080_v31, 7  ;;  %v6195_v49 = vrot.slane %v6083_v28, 1  ;;  %v5962_v14 = vmax.f32 %v5928_v18, 0.0 }
 0x6f0   : > { %v6092_v3 = vor.u32 %v6090_v11, %v6089_v53  ;;  %v6198_v59 = vor.u32 %v6197_v10, %v6087_v57  ;;  %v5960_v41 = vmax.f32 %v5920_v29, 0.0  ;;  %v6264_v53 = vld [vmem:[#allocation2 + $0x190] sm:$0xff]  ;;  %v6261_v29 = vld [vmem:[#allocation2 + $0x178] sm:$0xff] }
 0x6f1   : > { %v6085_v15 = vor.u32 %v6083_v28, %v6082_v63  ;;  %v6196_v32 = vor.u32 %v6195_v49, %v6080_v31  ;;  %v13436_v8 = vpack.c.bf16 %v5962_v14, %v5961_v45  ;;  %v6165_v49 = vld [vmem:[#allocation2 + $0x168] sm:$0xff] }
 0x6f2   : > { %v13430_v51 = vsel %vm11614_vm9, %v6092_v3, %v6162_v26  ;;  %v13434_v54 = vsel %vm11621_vm10, %v6198_v59, %v6258_v17  ;;  %v13448_v7 = vpack.c.bf16 %v5960_v41, %v5959_v38  ;;  %v13480_v45 = vld [vmem:[#allocation2 + $0x8] sm:$0xff]  ;;  %v6274_v26 = vld [vmem:[#allocation2 + $0x38] sm:$0xff]  ;;  %v11055_v17 = vld [vmem:[#allocation3 + $0x520] sm:$0xff]  }
 0x6f3   : > { %6164 = vst [vmem:[#allocation2 + $0x150] sm:$0xff] %v13430_v51  ;;  %6260 = vst [vmem:[#allocation2 + $0x160] sm:$0xff] %v13434_v54  ;;  %v13442_v55 = vsel %vm11614_vm9, %v6085_v15, %v6159_v1  ;;  %v13446_v5 = vsel %vm11621_vm10, %v6196_v32, %v6255_v2  ;;  %v6101_v56 = vshrl.u32 %v13436_v8, 16  ;;  %v6104_v6 = vshll.u32 %v13436_v8, 16  ;;  %v11046_v14 = vld [vmem:[#allocation3 + $0x518] sm:$0xff]   ;;  %v11057_v15 = vld [vmem:[#allocation3 + $0x530] sm:$0xff]  }
 0x6f4   : > { %6161 = vst [vmem:[#allocation2 + $0x138] sm:$0xff] %v13442_v55  ;;  %6257 = vst [vmem:[#allocation2 + $0x148] sm:$0xff] %v13446_v5  ;;  %6686 = vmatmul.mubr.bf16.gmra.mrb[120].mxu1 %v13347_v0  ;;  %10221 = vmatprep.mubr.bf16.mxu0 %v13446_v5  ;;  %v6094_v60 = vshrl.u32 %v13448_v7, 16  ;;  %v6097_v57 = vshll.u32 %v13448_v7, 16  ;;  %v13498_v32 = vld [vmem:[#allocation3 + $0x680] sm:$0xff]   ;;  %v13539_v38 = vld [vmem:[#allocation2 + $0x40] sm:$0xff] }
 0x6f5   : > { %6693 = vmatprep.mubr.bf16.mxu1 %v13312_v13  ;;  %10222 = vmatmul.mubr.bf16.gmra.mrb[216].mxu0 %v13434_v54  ;;  %v6103_v11 = vrot.slane %v6101_v56, 7  ;;  %v6201_v4 = vrot.slane %v6104_v6, 1  ;;  %v11064_v41 = vld [vmem:[#allocation3 + $0x6a8] sm:$0xff]   ;;  %v13552_v1 = vld [vmem:[#allocation2 + $0x88] sm:$0xff]  ;;  %v11065_v2 = vld [vmem:[#allocation3 + $0x6b0] sm:$0xff]  }
 0x6f6   : > { %v6096_v20 = vrot.slane %v6094_v60, 7  ;;  %v6199_v31 = vrot.slane %v6097_v57, 1 }
 0x6f7   : > { %v6106_v28 = vor.u32 %v6104_v6, %v6103_v11  ;;  %v6202_v48 = vor.u32 %v6201_v4, %v6101_v56  ;;  %v11066_v11 = vld [vmem:[#allocation3 + $0x6b8] sm:$0xff]   ;;  %v13568_v4 = vld [vmem:[#allocation2 + $0xd0] sm:$0xff] }
 0x6f8   : > { %v6099_v10 = vor.u32 %v6097_v57, %v6096_v20  ;;  %v6200_v18 = vor.u32 %v6199_v31, %v6094_v60 }
 0x6f9   : > { %v13462_v23 = vsel %vm11614_vm9, %v6106_v28, %v6168_v39  ;;  %v6265_v63 = vsel %vm11621_vm10, %v6202_v48, %v6264_v53  ;;  %v13576_v53 = vld [vmem:[#allocation2 + $0xe8] sm:$0xff] }
 0x6fa   : > { %6170 = vst [vmem:[#allocation2 + $0x180] sm:$0xff] %v13462_v23  ;;  %6266 = vst [vmem:[#allocation2 + $0x190] sm:$0xff] %v6265_v63  ;;  %v13469_v3 = vsel %vm11614_vm9, %v6099_v10, %v6165_v49  ;;  %v13473_v59 = vsel %vm11621_vm10, %v6200_v18, %v6261_v29 }
 0x6fb   : > { %6167 = vst [vmem:[#allocation2 + $0x168] sm:$0xff] %v13469_v3  ;;  %6263 = vst [vmem:[#allocation2 + $0x178] sm:$0xff] %v13473_v59  ;;  %10225 = vmatprep.mubr.bf16.mxu0 %v13473_v59 }
 0x6fc   : > { %6694 = vmatmul.mubr.bf16.gmra.mrb[124].mxu1 %v13338_v19 }
 0x6fd   : > { %6701 = vmatprep.mubr.bf16.mxu1 %v13351_v24  ;;  %10226 = vmatmul.mubr.bf16.gmra.mrb[220].mxu0 %v6265_v63 }
 0x6fe   : > { %7103 = vmatprep.mubr.bf16.mxu0 %v13480_v45 }
 0x704   : > { %6702 = vmatmul.mubr.bf16.gmra.mrb[128].mxu1 %v13378_v50 }
 0x705   : > { %6709 = vmatprep.mubr.bf16.mxu1 %v13342_v42  ;;  %7104 = vmatmul.mubr.bf16.vlgmr.msra.gmra.mrb[224].mxu0 %v13480_v45 }
 0x706   : > { %10230 = vmatpush3.bf16.msra.mxu0 %v13365_v21  ;;  %7111 = vmatprep.mubr.bf16.mxu0 %v13237_v52  ;;  %v11056_v21 = vld [vmem:[#allocation3 + $0x528] sm:$0xff]   ;;  %v6273_v52 = vld [vmem:[#allocation2 + $0x30] sm:$0xff] }
 0x707   : > { %10231 = vmatprep.subr.bf16.mxu0 %v11040_v36 }
 0x70a   : > { %10232 = vmatpush3.bf16.msra.mxu0 %v11040_v36 }
 0x70b   : > { %10233 = vmatprep.subr.bf16.mxu0 %v11043_v40 }
 0x70c   : > { %6710 = vmatmul.mubr.bf16.gmra.mrb[132].mxu1 %v13369_v58 }
 0x70d   : > { %6717 = vmatprep.mubr.bf16.mxu1 %v13382_v44  ;;  %7112 = vmatmul.mubr.bf16.gmra.mrb[228].mxu0 %v13258_v43  ;;  %v11058_v43 = vld [vmem:[#allocation3 + $0x538] sm:$0xff]  }
 0x70e   : > { %7119 = vmatprep.mubr.bf16.mxu0 %v6274_v26  ;;  %10234 = vmatpush3.bf16.msra.mxu0 %v11043_v40 }
 0x70f   : > { %10235 = vmatprep.subr.bf16.mxu0 %v11046_v14 }
 0x712   : > { %10236 = vmatpush3.bf16.msra.mxu0 %v11046_v14 }
 0x713   : > { %10237 = vmatprep.subr.bf16.mxu0 %v11055_v17 }
 0x714   : > { %6718 = vmatmul.mubr.bf16.gmra.mrb[136].mxu1 %v13407_v61 }
 0x715   : > { %6725 = vmatprep.mubr.bf16.mxu1 %v13373_v33  ;;  %7120 = vmatmul.mubr.bf16.gmra.mrb[232].mxu0 %v6273_v52 }
 0x716   : > { %7127 = vmatprep.mubr.bf16.mxu0 %v13262_v34  ;;  %10238 = vmatpush3.bf16.msra.mxu0 %v11055_v17  ;;  %v7396_v34 = vld [vmem:[#allocation2 + $0x48] sm:$0xff] }
 0x717   : > { %10239 = vmatprep.subr.bf16.mxu0 %v11056_v21 }
 0x71a   : > { %10240 = vmatpush3.bf16.msra.mxu0 %v11056_v21 }
 0x71b   : > { %10241 = vmatprep.subr.bf16.mxu0 %v11057_v15 }
 0x71c   : > { %6726 = vmatmul.mubr.bf16.gmra.mrb[140].mxu1 %v13398_v16 }
 0x71d   : > { %6733 = vmatprep.mubr.bf16.mxu1 %v13413_v25  ;;  %7128 = vmatmul.mubr.bf16.gmra.mrb[236].mxu0 %v13287_v30  ;;  %v7403_v30 = vld [vmem:[#allocation2 + $0x80] sm:$0xff] }
 0x71e   : > { %7135 = vmatprep.mubr.bf16.mxu0 %v13253_v47  ;;  %10242 = vmatpush3.bf16.msra.mxu0 %v11057_v15  ;;  %v7397_v47 = vld [vmem:[#allocation2 + $0x50] sm:$0xff] }
 0x71f   : > { %10243 = vmatprep.subr.bf16.mxu0 %v11058_v43 }
 0x722   : > { %10244 = vmatpush3.bf16.msra.mxu0 %v11058_v43 }
 0x723   : > { %10277 = vmatprep.subr.bf16.mxu0 %v13498_v32 }
 0x724   : > { %6734 = vmatmul.mubr.bf16.gmra.mrb[144].mxu1 %v13442_v55 }
 0x725   : > { %6741 = vmatprep.mubr.bf16.mxu1 %v13402_v12  ;;  %7136 = vmatmul.mubr.bf16.gmra.mrb[240].mxu0 %v13278_v9  ;;  %v7400_v9 = vld [vmem:[#allocation2 + $0x68] sm:$0xff] }
 0x726   : > { %7143 = vmatprep.mubr.bf16.mxu0 %v13291_v27  ;;  %v7402_v27 = vld [vmem:[#allocation2 + $0x78] sm:$0xff] }
 0x72c   : > { %6742 = vmatmul.mubr.bf16.gmra.mrb[148].mxu1 %v13430_v51 }
 0x72d   : > { %6749 = vmatprep.mubr.bf16.mxu1 %v13448_v7  ;;  %7144 = vmatmul.mubr.bf16.gmra.mrb[244].mxu0 %v13317_v46  ;;  %v7412_v46 = vld [vmem:[#allocation2 + $0xc8] sm:$0xff] }
 0x72e   : > { %7151 = vmatprep.mubr.bf16.mxu0 %v13282_v62  ;;  %v7399_v62 = vld [vmem:[#allocation2 + $0x60] sm:$0xff] }
 0x734   : > { %6750 = vmatmul.mubr.bf16.gmra.mrb[152].mxu1 %v13469_v3 }
 0x735   : > { %6757 = vmatprep.mubr.bf16.mxu1 %v13436_v8  ;;  %7152 = vmatmul.mubr.bf16.gmra.mrb[248].mxu0 %v13308_v35  ;;  %v7406_v35 = vld [vmem:[#allocation2 + $0x98] sm:$0xff] }
 0x736   : > { %7159 = vmatprep.mubr.bf16.mxu0 %v13321_v37 }
 0x73c   : > { %6758 = vmatmul.mubr.bf16.gmra.mrb[156].mxu1 %v13462_v23 }
 0x73d   : > { %7160 = vmatmul.mubr.bf16.gmra.mrb[252].mxu0 %v13347_v0  ;;  %7666 = vmatprep.mubr.bf16.mxu1 %v6274_v26 }
 0x73e   : > { %7167 = vmatprep.mubr.bf16.mxu0 %v13312_v13  ;;  %v7405_v13 = vld [vmem:[#allocation2 + $0x90] sm:$0xff] }
 0x744   : > { %7667 = vmatmul.mubr.bf16.vlgmr.msra.gmra.mrb[160].mxu1 %v6273_v52 }
 0x745   : > { %7168 = vmatmul.mubr.bf16.gmra.mrb[32].mxu0 %v13338_v19  ;;  %7674 = vmatprep.mubr.bf16.mxu1 %v7397_v47  ;;  %v7411_v19 = vld [vmem:[#allocation2 + $0xc0] sm:$0xff] }
 0x746   : > { %7175 = vmatprep.mubr.bf16.mxu0 %v13351_v24 }
 0x74c   : > { %7675 = vmatmul.mubr.bf16.gmra.mrb[164].mxu1 %v7396_v34 }
 0x74d   : > { %7176 = vmatmul.mubr.bf16.gmra.mrb[36].mxu0 %v13378_v50  ;;  %7682 = vmatprep.mubr.bf16.mxu1 %v7400_v9 }
 0x74e   : > { %7183 = vmatprep.mubr.bf16.mxu0 %v13342_v42 }
 0x754   : > { %7683 = vmatmul.mubr.bf16.gmra.mrb[168].mxu1 %v7399_v62 }
 0x755   : > { %7184 = vmatmul.mubr.bf16.gmra.mrb[40].mxu0 %v13369_v58  ;;  %7690 = vmatprep.mubr.bf16.mxu1 %v7403_v30 }
 0x756   : > { %7191 = vmatprep.mubr.bf16.mxu0 %v13382_v44 }
 0x75c   : > { %7691 = vmatmul.mubr.bf16.gmra.mrb[172].mxu1 %v7402_v27 }
 0x75d   : > { %7192 = vmatmul.mubr.bf16.gmra.mrb[44].mxu0 %v13407_v61  ;;  %7698 = vmatprep.mubr.bf16.mxu1 %v7406_v35 }
 0x75e   : > { %7199 = vmatprep.mubr.bf16.mxu0 %v13373_v33 }
 0x764   : > { %7699 = vmatmul.mubr.bf16.gmra.mrb[176].mxu1 %v7405_v13 }
 0x765   : > { %7200 = vmatmul.mubr.bf16.gmra.mrb[48].mxu0 %v13398_v16  ;;  %7706 = vmatprep.mubr.bf16.mxu1 %v13321_v37  ;;  %v11060_v37 = vld [vmem:[#allocation3 + $0x688] sm:$0xff]  }
 0x766   : > { %7207 = vmatprep.mubr.bf16.mxu0 %v13413_v25 }
 0x76c   : > { %7707 = vmatmul.mubr.bf16.gmra.mrb[180].mxu1 %v13347_v0  ;;  %v6272_v0 = vld [vmem:[#allocation2 + $0x28] sm:$0xff] }
 0x76d   : > { %7208 = vmatmul.mubr.bf16.gmra.mrb[52].mxu0 %v13442_v55  ;;  %7714 = vmatprep.mubr.bf16.mxu1 %v7412_v46 }
 0x76e   : > { %7215 = vmatprep.mubr.bf16.mxu0 %v13402_v12 }
 0x774   : > { %7715 = vmatmul.mubr.bf16.gmra.mrb[184].mxu1 %v7411_v19 }
 0x775   : > { %7216 = vmatmul.mubr.bf16.gmra.mrb[56].mxu0 %v13430_v51  ;;  %7722 = vmatprep.mubr.bf16.mxu1 %v13351_v24  ;;  %v11061_v24 = vld [vmem:[#allocation3 + $0x690] sm:$0xff]  }
 0x776   : > { %7223 = vmatprep.mubr.bf16.mxu0 %v13448_v7 }
 0x77c   : > { %7723 = vmatmul.mubr.bf16.gmra.mrb[188].mxu1 %v13378_v50  ;;  %v13544_v50 = vld [vmem:[#allocation2 + $0x58] sm:$0xff] }
 0x77d   : > { %7224 = vmatmul.mubr.bf16.gmra.mrb[60].mxu0 %v13469_v3  ;;  %7730 = vmatprep.mubr.bf16.mxu1 %v13342_v42  ;;  %v11062_v42 = vld [vmem:[#allocation3 + $0x698] sm:$0xff]  }
 0x77e   : > { %10245 = vmatprep.mubr.bf16.mxu0 %v13480_v45 }
 0x784   : > { %7731 = vmatmul.mubr.bf16.gmra.mrb[192].mxu1 %v13369_v58  ;;  %v13548_v58 = vld [vmem:[#allocation2 + $0x70] sm:$0xff] }
 0x785   : > { %10246 = vmatmul.mubr.bf16.vlgmr.msra.gmra.mrb[192].mxu0 %v6272_v0  ;;  %7738 = vmatprep.mubr.bf16.mxu1 %v13382_v44  ;;  %v11063_v44 = vld [vmem:[#allocation3 + $0x6a0] sm:$0xff]  }
 0x786   : > { %10278 = vmatpush3.bf16.msra.mxu0 %v13498_v32  ;;  %10249 = vmatprep.mubr.bf16.mxu0 %v13539_v38 }
 0x787   : > { %10279 = vmatprep.subr.bf16.mxu0 %v11060_v37 }
 0x78a   : > { %10280 = vmatpush3.bf16.msra.mxu0 %v11060_v37 }
 0x78b   : > { %10281 = vmatprep.subr.bf16.mxu0 %v11061_v24 }
 0x78c   : > { %7739 = vmatmul.mubr.bf16.gmra.mrb[196].mxu1 %v13407_v61  ;;  %v13556_v61 = vld [vmem:[#allocation2 + $0xa0] sm:$0xff] }
 0x78d   : > { %10250 = vmatmul.mubr.bf16.gmra.mrb[196].mxu0 %v13544_v50  ;;  %7746 = vmatprep.mubr.bf16.mxu1 %v13373_v33 }
 0x78e   : > { %10253 = vmatprep.mubr.bf16.mxu0 %v13548_v58  ;;  %10282 = vmatpush3.bf16.msra.mxu0 %v11061_v24 }
 0x78f   : > { %10283 = vmatprep.subr.bf16.mxu0 %v11062_v42 }
 0x792   : > { %10284 = vmatpush3.bf16.msra.mxu0 %v11062_v42 }
 0x793   : > { %10285 = vmatprep.subr.bf16.mxu0 %v11063_v44 }
 0x794   : > { %7747 = vmatmul.mubr.bf16.gmra.mrb[200].mxu1 %v13398_v16 }
 0x795   : > { %10254 = vmatmul.mubr.bf16.gmra.mrb[200].mxu0 %v13552_v1  ;;  %7754 = vmatprep.mubr.bf16.mxu1 %v13413_v25  ;;  %v13564_v25 = vld [vmem:[#allocation2 + $0xb8] sm:$0xff] }
 0x796   : > { %10257 = vmatprep.mubr.bf16.mxu0 %v13556_v61  ;;  %10286 = vmatpush3.bf16.msra.mxu0 %v11063_v44  ;;  %v9357_v33 = vpop.f32.mrb[96].mxu1 }
 0x797   : > { %10287 = vmatprep.subr.bf16.mxu0 %v11064_v41  ;;  %v9358_v56 = vpop.f32.mrb[97].mxu1 }
 0x798   : > { %v13559_v6 = vadd.f32 %v9358_v56, %v9357_v33  ;;  %v9360_v60 = vpop.f32.mrb[98].mxu1 }
 0x799   : > { %v9361_v57 = vpop.f32.mrb[99].mxu1 }
 0x79a   : > { %10288 = vmatpush3.bf16.msra.mxu0 %v11064_v41  ;;  %v13561_v16 = vadd.f32 %v9361_v57, %v9360_v60 }
 0x79b   : > { %10289 = vmatprep.subr.bf16.mxu0 %v11065_v2 }
 0x79c   : > { %7755 = vmatmul.mubr.bf16.gmra.mrb[204].mxu1 %v13442_v55 }
 0x79d   : > { %10258 = vmatmul.mubr.bf16.gmra.mrb[204].mxu0 %v13564_v25  ;;  %7762 = vmatprep.mubr.bf16.mxu1 %v13402_v12  ;;  %v13580_v12 = vld [vmem:[#allocation2 + $0x100] sm:$0xff] }
 0x79e   : > { %10261 = vmatprep.mubr.bf16.mxu0 %v13568_v4  ;;  %10290 = vmatpush3.bf16.msra.mxu0 %v11065_v2  ;;  %v9363_v20 = vpop.f32.mrb[100].mxu1 }
 0x79f   : > { %10291 = vmatprep.subr.bf16.mxu0 %v11066_v11  ;;  %v9364_v31 = vpop.f32.mrb[101].mxu1 }
 0x7a0   : > { %v13571_v28 = vadd.f32 %v9364_v31, %v9363_v20  ;;  %v9366_v48 = vpop.f32.mrb[102].mxu1 }
 0x7a1   : > { %v9367_v39 = vpop.f32.mrb[103].mxu1 }
 0x7a2   : > { %10292 = vmatpush3.bf16.msra.mxu0 %v11066_v11  ;;  %v13573_v55 = vadd.f32 %v9367_v39, %v9366_v48 }
 0x7a4   : > { %7763 = vmatmul.mubr.bf16.gmra.mrb[208].mxu1 %v13430_v51  ;;  %v13590_v51 = vld [vmem:[#allocation2 + $0x130] sm:$0xff] }
 0x7a5   : > { %10262 = vmatmul.mubr.bf16.gmra.mrb[208].mxu0 %v13576_v53  ;;  %7770 = vmatprep.mubr.bf16.mxu1 %v13448_v7 }
 0x7a6   : > { %10265 = vmatprep.mubr.bf16.mxu0 %v13580_v12 }
 0x7a7   : > { %v9369_v10 = vpop.f32.mrb[104].mxu1 }
 0x7a8   : > { %v9370_v18 = vpop.f32.mrb[105].mxu1 }
 0x7a9   : > { %v13583_v63 = vadd.f32 %v9370_v18, %v9369_v10  ;;  %v9372_v49 = vpop.f32.mrb[106].mxu1 }
 0x7aa   : > { %v9373_v29 = vpop.f32.mrb[107].mxu1 }
 0x7ab   : > { %v13585_v36 = vadd.f32 %v9373_v29, %v9372_v49 }
 0x7ac   : > { %7771 = vmatmul.mubr.bf16.gmra.mrb[212].mxu1 %v13469_v3 }
 0x7ad   : > { %10266 = vmatmul.mubr.bf16.gmra.mrb[212].mxu0 %v13411_v22  ;;  %7778 = vmatprep.mubr.bf16.mxu1 %v13436_v8 }
 0x7ae   : > { %10269 = vmatprep.mubr.bf16.mxu0 %v13590_v51 }
 0x7af   : > { %v9375_v7 = vpop.f32.mrb[108].mxu1 }
 0x7b0   : > { %v9376_v40 = vpop.f32.mrb[109].mxu1 }
 0x7b1   : > { %v13593_v14 = vadd.f32 %v9376_v40, %v9375_v7  ;;  %v9378_v26 = vpop.f32.mrb[110].mxu1  ;;  %v7422_v7 = vld [vmem:[#allocation2 + $0x118] sm:$0xff] }
 0x7b2   : > { %v9379_v17 = vpop.f32.mrb[111].mxu1 }
 0x7b3   : > { %v13595_v21 = vadd.f32 %v9379_v17, %v9378_v26 }
 0x7b4   : > { %7779 = vmatmul.mubr.bf16.gmra.mrb[216].mxu1 %v13462_v23 }
 0x7b5   : > { %10270 = vmatmul.mubr.bf16.gmra.mrb[216].mxu0 %v13446_v5  ;;  %7786 = vmatprep.mubr.bf16.mxu1 %v13480_v45 }
 0x7b6   : > { %10273 = vmatprep.mubr.bf16.mxu0 %v13434_v54 }
 0x7b7   : > { %v9381_v22 = vpop.f32.mrb[112].mxu1 }
 0x7b8   : > { %v9382_v8 = vpop.f32.mrb[113].mxu1 }
 0x7b9   : > { %v13601_v3 = vadd.f32 %v9382_v8, %v9381_v22  ;;  %v9384_v52 = vpop.f32.mrb[114].mxu1 }
 0x7ba   : > { %v9385_v15 = vpop.f32.mrb[115].mxu1 }
 0x7bb   : > { %v13603_v43 = vadd.f32 %v9385_v15, %v9384_v52 }
 0x7bc   : > { %7787 = vmatmul.mubr.bf16.gmra.mrb[220].mxu1 %v13480_v45 }
 0x7bd   : > { %10274 = vmatmul.mubr.bf16.gmra.mrb[220].mxu0 %v13473_v59 }
 0x7be   : > { %10293 = vmatprep.mubr.bf16.mxu0 %v13539_v38 }
 0x7bf   : > { %v9387_v23 = vpop.f32.mrb[116].mxu1 }
 0x7c0   : > { %v9388_v5 = vpop.f32.mrb[117].mxu1 }
 0x7c1   : > { %v13608_v32 = vadd.f32 %v9388_v5, %v9387_v23  ;;  %v9390_v47 = vpop.f32.mrb[118].mxu1 }
 0x7c2   : > { %v9391_v54 = vpop.f32.mrb[119].mxu1 }
 0x7c3   : > { %v13610_v34 = vadd.f32 %v9391_v54, %v9390_v47 }
 0x7c5   : > { %10294 = vmatmul.mubr.bf16.vlgmr.msra.gmra.mrb[192].mxu0 %v13544_v50 }
 0x7c6   : > { %10297 = vmatprep.mubr.bf16.mxu0 %v13548_v58 }
 0x7c7   : > { %v9393_v9 = vpop.f32.mrb[120].mxu1 }
 0x7c8   : > { %v9394_v62 = vpop.f32.mrb[121].mxu1 }
 0x7c9   : > { %v13614_v30 = vadd.f32 %v9394_v62, %v9393_v9  ;;  %v9396_v27 = vpop.f32.mrb[122].mxu1  ;;  %v7428_v9 = vld [vmem:[#allocation2 + $0x148] sm:$0xff] }
 0x7ca   : > { %v9397_v59 = vpop.f32.mrb[123].mxu1 }
 0x7cb   : > { %v13616_v35 = vadd.f32 %v9397_v59, %v9396_v27 }
 0x7cd   : > { %10298 = vmatmul.mubr.bf16.gmra.mrb[196].mxu0 %v13552_v1 }
 0x7ce   : > { %10301 = vmatprep.mubr.bf16.mxu0 %v13556_v61 }
 0x7cf   : > { %v9399_v13 = vpop.f32.mrb[124].mxu1 }
 0x7d0   : > { %v9400_v46 = vpop.f32.mrb[125].mxu1 }
 0x7d1   : > { %v13620_v19 = vadd.f32 %v9400_v46, %v9399_v13  ;;  %v9402_v37 = vpop.f32.mrb[126].mxu1 }
 0x7d2   : > { %v9403_v0 = vpop.f32.mrb[127].mxu1 }
 0x7d3   : > { %v13622_v38 = vadd.f32 %v9403_v0, %v9402_v37 }
 0x7d5   : > { %10302 = vmatmul.mubr.bf16.gmra.mrb[200].mxu0 %v13564_v25 }
 0x7d6   : > { %10305 = vmatprep.mubr.bf16.mxu0 %v13568_v4 }
 0x7d7   : > { %v9405_v24 = vpop.f32.mrb[128].mxu1 }
 0x7d8   : > { %v9406_v42 = vpop.f32.mrb[129].mxu1  ;;  %v9493_v50 = vpop.f32.mrb[224].mxu0 }
 0x7d9   : > { %v13626_v58 = vadd.f32 %v9406_v42, %v9405_v24  ;;  %v9408_v44 = vpop.f32.mrb[130].mxu1  ;;  %v9494_v41 = vpop.f32.mrb[225].mxu0 }
 0x7da   : > { %v9495_v1 = vadd.f32 %v9494_v41, %v9493_v50  ;;  %v9409_v61 = vpop.f32.mrb[131].mxu1  ;;  %v9496_v33 = vpop.f32.mrb[226].mxu0 }
 0x7db   : > { %v13628_v2 = vadd.f32 %v9409_v61, %v9408_v44  ;;  %v9497_v56 = vpop.f32.mrb[227].mxu0  ;;  %v7437_v61 = vld [vmem:[#allocation2 + $0x190] sm:$0xff] }
 0x7dc   : > { %v13631_v60 = vadd.f32 %v9495_v1, %v13559_v6  ;;  %v9498_v57 = vadd.f32 %v9497_v56, %v9496_v33 }
 0x7dd   : > { %10306 = vmatmul.mubr.bf16.gmra.mrb[204].mxu0 %v13576_v53 }
 0x7de   : > { %v13635_v11 = vadd.f32 %v9498_v57, %v13561_v16  ;;  %10309 = vmatprep.mubr.bf16.mxu0 %v13580_v12 }
 0x7df   : > { %v9411_v25 = vpop.f32.mrb[132].mxu1 }
 0x7e0   : > { %v9412_v4 = vpop.f32.mrb[133].mxu1  ;;  %v9499_v20 = vpop.f32.mrb[228].mxu0 }
 0x7e1   : > { %v13638_v31 = vadd.f32 %v9412_v4, %v9411_v25  ;;  %v9414_v48 = vpop.f32.mrb[134].mxu1  ;;  %v9500_v39 = vpop.f32.mrb[229].mxu0 }
 0x7e2   : > { %v9501_v10 = vadd.f32 %v9500_v39, %v9499_v20  ;;  %v9415_v18 = vpop.f32.mrb[135].mxu1  ;;  %v9502_v49 = vpop.f32.mrb[230].mxu0 }
 0x7e3   : > { %v13640_v6 = vadd.f32 %v9415_v18, %v9414_v48  ;;  %v9503_v29 = vpop.f32.mrb[231].mxu0 }
 0x7e4   : > { %v13643_v53 = vadd.f32 %v9501_v10, %v13571_v28  ;;  %v9504_v16 = vadd.f32 %v9503_v29, %v9502_v49 }
 0x7e5   : > { %10310 = vmatmul.mubr.bf16.gmra.mrb[208].mxu0 %v7422_v7 }
 0x7e6   : > { %v13646_v12 = vadd.f32 %v9504_v16, %v13573_v55  ;;  %10313 = vmatprep.mubr.bf16.mxu0 %v13590_v51  ;;  %v7431_v51 = vld [vmem:[#allocation2 + $0x160] sm:$0xff] }
 0x7e7   : > { %v9417_v40 = vpop.f32.mrb[136].mxu1 }
 0x7e8   : > { %v9418_v26 = vpop.f32.mrb[137].mxu1  ;;  %v9505_v17 = vpop.f32.mrb[232].mxu0 }
 0x7e9   : > { %v13649_v22 = vadd.f32 %v9418_v26, %v9417_v40  ;;  %v9420_v8 = vpop.f32.mrb[138].mxu1  ;;  %v9506_v52 = vpop.f32.mrb[233].mxu0 }
 0x7ea   : > { %v9507_v15 = vadd.f32 %v9506_v52, %v9505_v17  ;;  %v9421_v23 = vpop.f32.mrb[139].mxu1  ;;  %v9508_v5 = vpop.f32.mrb[234].mxu0 }
 0x7eb   : > { %v13651_v28 = vadd.f32 %v9421_v23, %v9420_v8  ;;  %v9509_v47 = vpop.f32.mrb[235].mxu0 }
 0x7ec   : > { %v13654_v54 = vadd.f32 %v9507_v15, %v13583_v63  ;;  %v9510_v55 = vadd.f32 %v9509_v47, %v9508_v5 }
 0x7ed   : > { %10314 = vmatmul.mubr.bf16.gmra.mrb[212].mxu0 %v7428_v9 }
 0x7ee   : > { %v13657_v62 = vadd.f32 %v9510_v55, %v13585_v36  ;;  %10317 = vmatprep.mubr.bf16.mxu0 %v7431_v51  ;;  %v7434_v36 = vld [vmem:[#allocation2 + $0x178] sm:$0xff] }
 0x7ef   : > { %v9423_v27 = vpop.f32.mrb[140].mxu1 }
 0x7f0   : > { %v9424_v59 = vpop.f32.mrb[141].mxu1  ;;  %v9511_v13 = vpop.f32.mrb[236].mxu0 }
 0x7f1   : > { %v13659_v46 = vadd.f32 %v9424_v59, %v9423_v27  ;;  %v9426_v37 = vpop.f32.mrb[142].mxu1  ;;  %v9512_v0 = vpop.f32.mrb[237].mxu0 }
 0x7f2   : > { %v9513_v24 = vadd.f32 %v9512_v0, %v9511_v13  ;;  %v9427_v42 = vpop.f32.mrb[143].mxu1  ;;  %v9514_v50 = vpop.f32.mrb[238].mxu0 }
 0x7f3   : > { %v13661_v63 = vadd.f32 %v9427_v42, %v9426_v37  ;;  %v9515_v44 = vpop.f32.mrb[239].mxu0 }
 0x7f4   : > { %v13664_v41 = vadd.f32 %v9513_v24, %v13593_v14  ;;  %v9516_v1 = vadd.f32 %v9515_v44, %v9514_v50 }
 0x7f5   : > { %10318 = vmatmul.mubr.bf16.gmra.mrb[216].mxu0 %v7434_v36 }
 0x7f6   : > { %v13667_v33 = vadd.f32 %v9516_v1, %v13595_v21  ;;  %10321 = vmatprep.mubr.bf16.mxu0 %v7437_v61 }
 0x7f7   : > { %v9429_v56 = vpop.f32.mrb[144].mxu1 }
 0x7f8   : > { %v9430_v57 = vpop.f32.mrb[145].mxu1  ;;  %v9517_v25 = vpop.f32.mrb[240].mxu0 }
 0x7f9   : > { %v13669_v4 = vadd.f32 %v9430_v57, %v9429_v56  ;;  %v9432_v20 = vpop.f32.mrb[146].mxu1  ;;  %v9518_v48 = vpop.f32.mrb[241].mxu0 }
 0x7fa   : > { %v9519_v39 = vadd.f32 %v9518_v48, %v9517_v25  ;;  %v9433_v10 = vpop.f32.mrb[147].mxu1  ;;  %v9520_v18 = vpop.f32.mrb[242].mxu0 }
 0x7fb   : > { %v13671_v14 = vadd.f32 %v9433_v10, %v9432_v20  ;;  %v9521_v49 = vpop.f32.mrb[243].mxu0 }
 0x7fc   : > { %v13674_v29 = vadd.f32 %v9519_v39, %v13601_v3  ;;  %v9522_v16 = vadd.f32 %v9521_v49, %v9520_v18 }
 0x7fd   : > { %10322 = vmatmul.mubr.bf16.gmra.mrb[220].mxu0 %v13480_v45 }
 0x7fe   : > { %v13678_v21 = vadd.f32 %v9522_v16, %v13603_v43 }
 0x7ff   : > { %v9435_v7 = vpop.f32.mrb[148].mxu1 }
 0x800   : > { %v9436_v40 = vpop.f32.mrb[149].mxu1  ;;  %v9523_v26 = vpop.f32.mrb[244].mxu0 }
 0x801   : > { %v13680_v17 = vadd.f32 %v9436_v40, %v9435_v7  ;;  %v9438_v8 = vpop.f32.mrb[150].mxu1  ;;  %v9524_v52 = vpop.f32.mrb[245].mxu0 }
 0x802   : > { %v9525_v15 = vadd.f32 %v9524_v52, %v9523_v26  ;;  %v9439_v23 = vpop.f32.mrb[151].mxu1  ;;  %v9526_v5 = vpop.f32.mrb[246].mxu0 }
 0x803   : > { %v13682_v47 = vadd.f32 %v9439_v23, %v9438_v8  ;;  %v9527_v3 = vpop.f32.mrb[247].mxu0 }
 0x804   : > { %v13685_v55 = vadd.f32 %v9525_v15, %v13608_v32  ;;  %v9528_v45 = vadd.f32 %v9527_v3, %v9526_v5 }
 0x806   : > { %v13688_v43 = vadd.f32 %v9528_v45, %v13610_v34 }
 0x807   : > { %v9441_v9 = vpop.f32.mrb[152].mxu1 }
 0x808   : > { %v9442_v51 = vpop.f32.mrb[153].mxu1  ;;  %v9529_v27 = vpop.f32.mrb[248].mxu0 }
 0x809   : > { %v13690_v59 = vadd.f32 %v9442_v51, %v9441_v9  ;;  %v9444_v13 = vpop.f32.mrb[154].mxu1  ;;  %v9530_v37 = vpop.f32.mrb[249].mxu0 }
 0x80a   : > { %v9531_v0 = vadd.f32 %v9530_v37, %v9529_v27  ;;  %v9445_v24 = vpop.f32.mrb[155].mxu1  ;;  %v9532_v42 = vpop.f32.mrb[250].mxu0 }
 0x80b   : > { %v13692_v50 = vadd.f32 %v9445_v24, %v9444_v13  ;;  %v9533_v44 = vpop.f32.mrb[251].mxu0 }
 0x80c   : > { %v13695_v32 = vadd.f32 %v9531_v0, %v13614_v30  ;;  %v9534_v1 = vadd.f32 %v9533_v44, %v9532_v42 }
 0x80e   : > { %v13698_v34 = vadd.f32 %v9534_v1, %v13616_v35 }
 0x80f   : > { %v9447_v36 = vpop.f32.mrb[156].mxu1 }
 0x810   : > { %v9448_v61 = vpop.f32.mrb[157].mxu1  ;;  %v9535_v56 = vpop.f32.mrb[252].mxu0 }
 0x811   : > { %v13700_v57 = vadd.f32 %v9448_v61, %v9447_v36  ;;  %v9450_v25 = vpop.f32.mrb[158].mxu1  ;;  %v9536_v20 = vpop.f32.mrb[253].mxu0 }
 0x812   : > { %v9537_v48 = vadd.f32 %v9536_v20, %v9535_v56  ;;  %v9451_v39 = vpop.f32.mrb[159].mxu1  ;;  %v9538_v10 = vpop.f32.mrb[254].mxu0 }
 0x813   : > { %v13702_v18 = vadd.f32 %v9451_v39, %v9450_v25  ;;  %v9539_v49 = vpop.f32.mrb[255].mxu0 }
 0x814   : > { %v13705_v30 = vadd.f32 %v9537_v48, %v13620_v19  ;;  %v9540_v16 = vadd.f32 %v9539_v49, %v9538_v10 }
 0x816   : > { %v13708_v35 = vadd.f32 %v9540_v16, %v13622_v38 }
 0x817   : > { %v9629_v7 = vpop.f32.mrb[160].mxu1 }
 0x818   : > { %v9541_v40 = vpop.f32.mrb[32].mxu0  ;;  %v9630_v26 = vpop.f32.mrb[161].mxu1 }
 0x819   : > { %v9631_v8 = vadd.f32 %v9630_v26, %v9629_v7  ;;  %v9542_v52 = vpop.f32.mrb[33].mxu0  ;;  %v9632_v15 = vpop.f32.mrb[162].mxu1 }
 0x81a   : > { %v9543_v23 = vadd.f32 %v9542_v52, %v9541_v40  ;;  %v9544_v5 = vpop.f32.mrb[34].mxu0  ;;  %v9633_v3 = vpop.f32.mrb[163].mxu1 }
 0x81b   : > { %v9634_v45 = vadd.f32 %v9633_v3, %v9632_v15  ;;  %v9545_v9 = vpop.f32.mrb[35].mxu0  ;;  %v13711_v51 = vadd.f32 %v13631_v60, %v9631_v8 }
 0x81c   : > { %v13714_v19 = vadd.f32 %v9543_v23, %v13626_v58  ;;  %v9546_v27 = vadd.f32 %v9545_v9, %v9544_v5 }
 0x81d   : > { %v13717_v38 = vadd.f32 %v13635_v11, %v9634_v45 }
 0x81e   : > { %v13720_v13 = vadd.f32 %v9546_v27, %v13628_v2 }
 0x81f   : > { %v9635_v37 = vpop.f32.mrb[164].mxu1 }
 0x820   : > { %v9547_v0 = vpop.f32.mrb[36].mxu0  ;;  %v9636_v24 = vpop.f32.mrb[165].mxu1 }
 0x821   : > { %v9637_v42 = vadd.f32 %v9636_v24, %v9635_v37  ;;  %v9548_v44 = vpop.f32.mrb[37].mxu0  ;;  %v9638_v1 = vpop.f32.mrb[166].mxu1 }
 0x822   : > { %v9549_v36 = vadd.f32 %v9548_v44, %v9547_v0  ;;  %v9550_v61 = vpop.f32.mrb[38].mxu0  ;;  %v9639_v60 = vpop.f32.mrb[167].mxu1 }
 0x823   : > { %v9640_v56 = vadd.f32 %v9639_v60, %v9638_v1  ;;  %v9551_v25 = vpop.f32.mrb[39].mxu0  ;;  %v13723_v58 = vadd.f32 %v13643_v53, %v9637_v42 }
 0x824   : > { %v13726_v11 = vadd.f32 %v9549_v36, %v13638_v31  ;;  %v9552_v20 = vadd.f32 %v9551_v25, %v9550_v61 }
 0x825   : > { %v13729_v2 = vadd.f32 %v13646_v12, %v9640_v56 }
 0x826   : > { %v13732_v48 = vadd.f32 %v9552_v20, %v13640_v6 }
 0x827   : > { %v9641_v39 = vpop.f32.mrb[168].mxu1 }
 0x828   : > { %v9553_v10 = vpop.f32.mrb[40].mxu0  ;;  %v9642_v49 = vpop.f32.mrb[169].mxu1 }
 0x829   : > { %v9643_v16 = vadd.f32 %v9642_v49, %v9641_v39  ;;  %v9554_v7 = vpop.f32.mrb[41].mxu0  ;;  %v9644_v40 = vpop.f32.mrb[170].mxu1 }
 0x82a   : > { %v9555_v26 = vadd.f32 %v9554_v7, %v9553_v10  ;;  %v9556_v8 = vpop.f32.mrb[42].mxu0  ;;  %v9645_v53 = vpop.f32.mrb[171].mxu1 }
 0x82b   : > { %v9646_v52 = vadd.f32 %v9645_v53, %v9644_v40  ;;  %v9557_v15 = vpop.f32.mrb[43].mxu0  ;;  %v13735_v31 = vadd.f32 %v13654_v54, %v9643_v16 }
 0x82c   : > { %v13738_v12 = vadd.f32 %v9555_v26, %v13649_v22  ;;  %v9558_v23 = vadd.f32 %v9557_v15, %v9556_v8 }
 0x82d   : > { %v13741_v6 = vadd.f32 %v13657_v62, %v9646_v52 }
 0x82e   : > { %v13744_v5 = vadd.f32 %v9558_v23, %v13651_v28 }
 0x82f   : > { %v9647_v3 = vpop.f32.mrb[172].mxu1 }
 0x830   : > { %v9559_v45 = vpop.f32.mrb[44].mxu0  ;;  %v9648_v9 = vpop.f32.mrb[173].mxu1 }
 0x831   : > { %v9649_v27 = vadd.f32 %v9648_v9, %v9647_v3  ;;  %v9560_v37 = vpop.f32.mrb[45].mxu0  ;;  %v9650_v0 = vpop.f32.mrb[174].mxu1 }
 0x832   : > { %v9561_v24 = vadd.f32 %v9560_v37, %v9559_v45  ;;  %v9562_v42 = vpop.f32.mrb[46].mxu0  ;;  %v9651_v54 = vpop.f32.mrb[175].mxu1 }
 0x833   : > { %v9652_v44 = vadd.f32 %v9651_v54, %v9650_v0  ;;  %v9563_v1 = vpop.f32.mrb[47].mxu0  ;;  %v13747_v22 = vadd.f32 %v13664_v41, %v9649_v27 }
 0x834   : > { %v13750_v62 = vadd.f32 %v9561_v24, %v13659_v46  ;;  %v9564_v36 = vadd.f32 %v9563_v1, %v9562_v42 }
 0x835   : > { %v13753_v28 = vadd.f32 %v13667_v33, %v9652_v44 }
 0x836   : > { %v13756_v61 = vadd.f32 %v9564_v36, %v13661_v63 }
 0x837   : > { %v9653_v60 = vpop.f32.mrb[176].mxu1 }
 0x838   : > { %v9565_v56 = vpop.f32.mrb[48].mxu0  ;;  %v9654_v25 = vpop.f32.mrb[177].mxu1 }
 0x839   : > { %v9655_v20 = vadd.f32 %v9654_v25, %v9653_v60  ;;  %v9566_v39 = vpop.f32.mrb[49].mxu0  ;;  %v9656_v10 = vpop.f32.mrb[178].mxu1 }
 0x83a   : > { %v9567_v49 = vadd.f32 %v9566_v39, %v9565_v56  ;;  %v9568_v16 = vpop.f32.mrb[50].mxu0  ;;  %v9657_v41 = vpop.f32.mrb[179].mxu1 }
 0x83b   : > { %v9658_v7 = vadd.f32 %v9657_v41, %v9656_v10  ;;  %v9569_v40 = vpop.f32.mrb[51].mxu0  ;;  %v13759_v46 = vadd.f32 %v13674_v29, %v9655_v20 }
 0x83c   : > { %v13762_v33 = vadd.f32 %v9567_v49, %v13669_v4  ;;  %v9570_v26 = vadd.f32 %v9569_v40, %v9568_v16 }
 0x83d   : > { %v13765_v63 = vadd.f32 %v13678_v21, %v9658_v7 }
 0x83e   : > { %v13768_v8 = vadd.f32 %v9570_v26, %v13671_v14 }
 0x83f   : > { %v9659_v53 = vpop.f32.mrb[180].mxu1 }
 0x840   : > { %v9571_v52 = vpop.f32.mrb[52].mxu0  ;;  %v9660_v15 = vpop.f32.mrb[181].mxu1 }
 0x841   : > { %v9661_v23 = vadd.f32 %v9660_v15, %v9659_v53  ;;  %v9572_v3 = vpop.f32.mrb[53].mxu0  ;;  %v9662_v45 = vpop.f32.mrb[182].mxu1 }
 0x842   : > { %v9573_v9 = vadd.f32 %v9572_v3, %v9571_v52  ;;  %v9574_v27 = vpop.f32.mrb[54].mxu0  ;;  %v9663_v29 = vpop.f32.mrb[183].mxu1 }
 0x843   : > { %v9664_v37 = vadd.f32 %v9663_v29, %v9662_v45  ;;  %v9575_v0 = vpop.f32.mrb[55].mxu0  ;;  %v13771_v4 = vadd.f32 %v13685_v55, %v9661_v23 }
 0x844   : > { %v13774_v21 = vadd.f32 %v9573_v9, %v13680_v17  ;;  %v9576_v24 = vadd.f32 %v9575_v0, %v9574_v27 }
 0x845   : > { %v13777_v14 = vadd.f32 %v13688_v43, %v9664_v37 }
 0x846   : > { %v13780_v42 = vadd.f32 %v9576_v24, %v13682_v47 }
 0x847   : > { %v9665_v54 = vpop.f32.mrb[184].mxu1 }
 0x848   : > { %v9577_v44 = vpop.f32.mrb[56].mxu0  ;;  %v9666_v1 = vpop.f32.mrb[185].mxu1 }
 0x849   : > { %v9667_v36 = vadd.f32 %v9666_v1, %v9665_v54  ;;  %v9578_v60 = vpop.f32.mrb[57].mxu0  ;;  %v9668_v56 = vpop.f32.mrb[186].mxu1 }
 0x84a   : > { %v9579_v25 = vadd.f32 %v9578_v60, %v9577_v44  ;;  %v9580_v20 = vpop.f32.mrb[58].mxu0  ;;  %v9669_v55 = vpop.f32.mrb[187].mxu1 }
 0x84b   : > { %v9670_v39 = vadd.f32 %v9669_v55, %v9668_v56  ;;  %v9581_v10 = vpop.f32.mrb[59].mxu0  ;;  %v13783_v17 = vadd.f32 %v13695_v32, %v9667_v36 }
 0x84c   : > { %v13786_v43 = vadd.f32 %v9579_v25, %v13690_v59  ;;  %v9582_v49 = vadd.f32 %v9581_v10, %v9580_v20 }
 0x84d   : > { %v13789_v47 = vadd.f32 %v13698_v34, %v9670_v39 }
 0x84e   : > { %v13792_v16 = vadd.f32 %v9582_v49, %v13692_v50 }
 0x84f   : > { %v9671_v41 = vpop.f32.mrb[188].mxu1 }
 0x850   : > { %v9583_v7 = vpop.f32.mrb[60].mxu0  ;;  %v9672_v40 = vpop.f32.mrb[189].mxu1 }
 0x851   : > { %v9673_v26 = vadd.f32 %v9672_v40, %v9671_v41  ;;  %v9584_v53 = vpop.f32.mrb[61].mxu0  ;;  %v9674_v52 = vpop.f32.mrb[190].mxu1 }
 0x852   : > { %v9585_v15 = vadd.f32 %v9584_v53, %v9583_v7  ;;  %v9586_v23 = vpop.f32.mrb[62].mxu0  ;;  %v9675_v32 = vpop.f32.mrb[191].mxu1 }
 0x853   : > { %v9676_v3 = vadd.f32 %v9675_v32, %v9674_v52  ;;  %v9587_v45 = vpop.f32.mrb[63].mxu0  ;;  %v13795_v59 = vadd.f32 %v13705_v30, %v9673_v26 }
 0x854   : > { %v13798_v34 = vadd.f32 %v9585_v15, %v13700_v57  ;;  %v9588_v9 = vadd.f32 %v9587_v45, %v9586_v23 }
 0x855   : > { %v13801_v50 = vadd.f32 %v13708_v35, %v9676_v3 }
 0x856   : > { %v13804_v27 = vadd.f32 %v9588_v9, %v13702_v18 }
 0x857   : > { %v9677_v29 = vpop.f32.mrb[192].mxu1 }
 0x858   : > { %v9678_v37 = vpop.f32.mrb[193].mxu1 }
 0x859   : > { %v9679_v0 = vadd.f32 %v9678_v37, %v9677_v29  ;;  %v9680_v24 = vpop.f32.mrb[194].mxu1 }
 0x85a   : > { %v9681_v54 = vpop.f32.mrb[195].mxu1 }
 0x85b   : > { %v9682_v44 = vadd.f32 %v9681_v54, %v9680_v24  ;;  %v13807_v1 = vadd.f32 %v13714_v19, %v9679_v0 }
 0x85d   : > { %v13810_v30 = vadd.f32 %v13720_v13, %v9682_v44 }
 0x85f   : > { %v9683_v57 = vpop.f32.mrb[196].mxu1 }
 0x860   : > { %v9684_v36 = vpop.f32.mrb[197].mxu1 }
 0x861   : > { %v9685_v60 = vadd.f32 %v9684_v36, %v9683_v57  ;;  %v9686_v35 = vpop.f32.mrb[198].mxu1 }
 0x862   : > { %v9687_v56 = vpop.f32.mrb[199].mxu1 }
 0x863   : > { %v9688_v25 = vadd.f32 %v9687_v56, %v9686_v35  ;;  %v13813_v18 = vadd.f32 %v13726_v11, %v9685_v60 }
 0x865   : > { %v13816_v20 = vadd.f32 %v13732_v48, %v9688_v25 }
 0x867   : > { %v9689_v55 = vpop.f32.mrb[200].mxu1 }
 0x868   : > { %v9690_v39 = vpop.f32.mrb[201].mxu1 }
 0x869   : > { %v9691_v10 = vadd.f32 %v9690_v39, %v9689_v55  ;;  %v9692_v19 = vpop.f32.mrb[202].mxu1 }
 0x86a   : > { %v9693_v49 = vpop.f32.mrb[203].mxu1 }
 0x86b   : > { %v9694_v41 = vadd.f32 %v9693_v49, %v9692_v19  ;;  %v13819_v13 = vadd.f32 %v13738_v12, %v9691_v10 }
 0x86d   : > { %v13822_v7 = vadd.f32 %v13744_v5, %v9694_v41 }
 0x86f   : > { %v9695_v40 = vpop.f32.mrb[204].mxu1 }
 0x870   : > { %v9696_v26 = vpop.f32.mrb[205].mxu1 }
 0x871   : > { %v9697_v53 = vadd.f32 %v9696_v26, %v9695_v40  ;;  %v9698_v11 = vpop.f32.mrb[206].mxu1 }
 0x872   : > { %v9699_v52 = vpop.f32.mrb[207].mxu1 }
 0x873   : > { %v9700_v15 = vadd.f32 %v9699_v52, %v9698_v11  ;;  %v13825_v48 = vadd.f32 %v13750_v62, %v9697_v53  ;;  %v7990_v11 = vld [vmem:[%s11213_s29 + $0x10] sm:$0xff] }
 0x875   : > { %v13828_v23 = vadd.f32 %v13756_v61, %v9700_v15 }
 0x877   : > { %v9701_v32 = vpop.f32.mrb[208].mxu1 }
 0x878   : > { %v9702_v3 = vpop.f32.mrb[209].mxu1 }
 0x879   : > { %v9703_v45 = vadd.f32 %v9702_v3, %v9701_v32  ;;  %v9704_v12 = vpop.f32.mrb[210].mxu1  ;;  %v7988_v3 = vld [vmem:[%s11213_s29] sm:$0xff] }
 0x87a   : > { %v9705_v9 = vpop.f32.mrb[211].mxu1 }
 0x87b   : > { %v9706_v29 = vadd.f32 %v9705_v9, %v9704_v12  ;;  %v13831_v5 = vadd.f32 %v13762_v33, %v9703_v45  ;;  %v7991_v12 = vld [vmem:[%s11213_s29 + $0x18] sm:$0xff] }
 0x87d   : > { %v13834_v37 = vadd.f32 %v13768_v8, %v9706_v29  ;;  %v7989_v29 = vld [vmem:[%s11213_s29 + $0x8] sm:$0xff] }
 0x87f   : > { %v9707_v0 = vpop.f32.mrb[212].mxu1 }
 0x880   : > { %v9708_v24 = vpop.f32.mrb[213].mxu1 }
 0x881   : > { %v9709_v54 = vadd.f32 %v9708_v24, %v9707_v0  ;;  %v9710_v62 = vpop.f32.mrb[214].mxu1 }
 0x882   : > { %v9711_v44 = vpop.f32.mrb[215].mxu1 }
 0x883   : > { %v9712_v57 = vadd.f32 %v9711_v44, %v9710_v62  ;;  %v13837_v61 = vadd.f32 %v13774_v21, %v9709_v54  ;;  %v7994_v54 = vld [vmem:[%s11213_s29 + $0x30] sm:$0xff] }
 0x885   : > { %v13840_v36 = vadd.f32 %v13780_v42, %v9712_v57  ;;  %v7992_v57 = vld [vmem:[%s11213_s29 + $0x20] sm:$0xff] }
 0x887   : > { %v9713_v60 = vpop.f32.mrb[216].mxu1 }
 0x888   : > { %v9714_v35 = vpop.f32.mrb[217].mxu1 }
 0x889   : > { %v9715_v56 = vadd.f32 %v9714_v35, %v9713_v60  ;;  %v9716_v33 = vpop.f32.mrb[218].mxu1 }
 0x88a   : > { %v9717_v25 = vpop.f32.mrb[219].mxu1 }
 0x88b   : > { %v9718_v8 = vadd.f32 %v9717_v25, %v9716_v33  ;;  %v13843_v55 = vadd.f32 %v13786_v43, %v9715_v56  ;;  %v7995_v33 = vld [vmem:[%s11213_s29 + $0x38] sm:$0xff] }
 0x88d   : > { %v13846_v39 = vadd.f32 %v13792_v16, %v9718_v8  ;;  %v7993_v8 = vld [vmem:[%s11213_s29 + $0x28] sm:$0xff] }
 0x88f   : > { %v9719_v10 = vpop.f32.mrb[220].mxu1 }
 0x890   : > { %v9720_v21 = vpop.f32.mrb[221].mxu1 }
 0x891   : > { %v9721_v19 = vadd.f32 %v9720_v21, %v9719_v10  ;;  %v9722_v49 = vpop.f32.mrb[222].mxu1 }
 0x892   : > { %v9723_v42 = vpop.f32.mrb[223].mxu1 }
 0x893   : > { %v9724_v41 = vadd.f32 %v9723_v42, %v9722_v49  ;;  %v13849_v40 = vadd.f32 %v13798_v34, %v9721_v19  ;;  %v7998_v19 = vld [vmem:[%s11213_s29 + $0x50] sm:$0xff] }
 0x895   : > { %v13852_v26 = vadd.f32 %v13804_v27, %v9724_v41  ;;  %v7996_v41 = vld [vmem:[%s11213_s29 + $0x40] sm:$0xff] }
 0x898   : > { %v10295_v43 = vpop.f32.mrb[192].mxu0 }
 0x899   : > { %v10519_v16 = vadd.f32 %v13723_v58, %v10295_v43  ;;  %v7829_v53 = vpop.f32.mrb[193].mxu0 }
 0x89a   : > { %v10522_v52 = vadd.f32 %v13711_v51, %v7829_v53  ;;  %v10296_v15 = vpop.f32.mrb[194].mxu0 }
 0x89b   : > { %v8022_v32 = vadd.f32 %v10519_v16, %v7990_v11  ;;  %v10525_v34 = vadd.f32 %v13729_v2, %v10296_v15  ;;  %v7832_v45 = vpop.f32.mrb[195].mxu0  ;;  %v7999_v11 = vld [vmem:[%s11213_s29 + $0x58] sm:$0xff]  ;;  %v7997_v15 = vld [vmem:[%s11213_s29 + $0x48] sm:$0xff] }
 0x89c   : > { %v8020_v27 = vadd.f32 %v10522_v52, %v7988_v3  ;;  %v10528_v9 = vadd.f32 %v13717_v38, %v7832_v45 }
 0x89d   : > { %8054 = vst [vmem:[%s11213_s29 + $0x10] sm:$0xff] %v8022_v32  ;;  %v8023_v58 = vadd.f32 %v10525_v34, %v7991_v12  ;;  %v8002_v34 = vld [vmem:[%s11213_s29 + $0x70] sm:$0xff]  ;;  %v8000_v12 = vld [vmem:[%s11213_s29 + $0x60] sm:$0xff] }
 0x89e   : > { %8052 = vst [vmem:[%s11213_s29] sm:$0xff] %v8020_v27  ;;  %v8021_v0 = vadd.f32 %v10528_v9, %v7989_v29 }
 0x89f   : > { %8055 = vst [vmem:[%s11213_s29 + $0x18] sm:$0xff] %v8023_v58 }
 0x8a0   : > { %8053 = vst [vmem:[%s11213_s29 + $0x8] sm:$0xff] %v8021_v0  ;;  %v10299_v51 = vpop.f32.mrb[196].mxu0  ;;  %v8003_v0 = vld [vmem:[%s11213_s29 + $0x78] sm:$0xff] }
 0x8a1   : > { %v10531_v2 = vadd.f32 %v13747_v22, %v10299_v51  ;;  %v7845_v24 = vpop.f32.mrb[197].mxu0 }
 0x8a2   : > { %v10534_v38 = vadd.f32 %v13735_v31, %v7845_v24  ;;  %v10300_v62 = vpop.f32.mrb[198].mxu0 }
 0x8a3   : > { %v8026_v44 = vadd.f32 %v10531_v2, %v7994_v54  ;;  %v10537_v60 = vadd.f32 %v13753_v28, %v10300_v62  ;;  %v7848_v35 = vpop.f32.mrb[199].mxu0  ;;  %v8001_v2 = vld [vmem:[%s11213_s29 + $0x68] sm:$0xff] }
 0x8a4   : > { %v8024_v56 = vadd.f32 %v10534_v38, %v7992_v57  ;;  %v10540_v25 = vadd.f32 %v13741_v6, %v7848_v35  ;;  %v8006_v38 = vld [vmem:[%s11213_s29 + $0x90] sm:$0xff]  ;;  %v8004_v57 = vld [vmem:[%s11213_s29 + $0x80] sm:$0xff] }
 0x8a5   : > { %8058 = vst [vmem:[%s11213_s29 + $0x30] sm:$0xff] %v8026_v44  ;;  %v8027_v22 = vadd.f32 %v10537_v60, %v7995_v33  ;;  %v8007_v33 = vld [vmem:[%s11213_s29 + $0x98] sm:$0xff] }
 0x8a6   : > { %8056 = vst [vmem:[%s11213_s29 + $0x20] sm:$0xff] %v8024_v56  ;;  %v8025_v10 = vadd.f32 %v10540_v25, %v7993_v8 }
 0x8a7   : > { %8059 = vst [vmem:[%s11213_s29 + $0x38] sm:$0xff] %v8027_v22  ;;  %v8005_v22 = vld [vmem:[%s11213_s29 + $0x88] sm:$0xff] }
 0x8a8   : > { %8057 = vst [vmem:[%s11213_s29 + $0x28] sm:$0xff] %v8025_v10  ;;  %v10303_v31 = vpop.f32.mrb[200].mxu0 }
 0x8a9   : > { %v10543_v28 = vadd.f32 %v13771_v4, %v10303_v31  ;;  %v7861_v21 = vpop.f32.mrb[201].mxu0  ;;  %v8010_v31 = vld [vmem:[%s11213_s29 + $0xb0] sm:$0xff] }
 0x8aa   : > { %v10546_v6 = vadd.f32 %v13759_v46, %v7861_v21  ;;  %v10304_v49 = vpop.f32.mrb[202].mxu0 }
 0x8ab   : > { %v8030_v42 = vadd.f32 %v10543_v28, %v7998_v19  ;;  %v10549_v43 = vadd.f32 %v13777_v14, %v10304_v49  ;;  %v7864_v16 = vpop.f32.mrb[203].mxu0  ;;  %v8008_v19 = vld [vmem:[%s11213_s29 + $0xa0] sm:$0xff] }
 0x8ac   : > { %v8028_v53 = vadd.f32 %v10546_v6, %v7996_v41  ;;  %v10552_v52 = vadd.f32 %v13765_v63, %v7864_v16  ;;  %v8011_v41 = vld [vmem:[%s11213_s29 + $0xb8] sm:$0xff]  ;;  %v8009_v16 = vld [vmem:[%s11213_s29 + $0xa8] sm:$0xff] }
 0x8ad   : > { %8062 = vst [vmem:[%s11213_s29 + $0x50] sm:$0xff] %v8030_v42  ;;  %v8031_v4 = vadd.f32 %v10549_v43, %v7999_v11 }
 0x8ae   : > { %8060 = vst [vmem:[%s11213_s29 + $0x40] sm:$0xff] %v8028_v53  ;;  %v8029_v32 = vadd.f32 %v10552_v52, %v7997_v15  ;;  %v8014_v52 = vld [vmem:[%s11213_s29 + $0xd0] sm:$0xff] }
 0x8af   : > { %8063 = vst [vmem:[%s11213_s29 + $0x58] sm:$0xff] %v8031_v4 }
 0x8b0   : > { %8061 = vst [vmem:[%s11213_s29 + $0x48] sm:$0xff] %v8029_v32  ;;  %v10307_v46 = vpop.f32.mrb[204].mxu0  ;;  %v8012_v32 = vld [vmem:[%s11213_s29 + $0xc0] sm:$0xff] }
 0x8b1   : > { %v10555_v14 = vadd.f32 %v13795_v59, %v10307_v46  ;;  %v7877_v3 = vpop.f32.mrb[205].mxu0 }
 0x8b2   : > { %v10558_v63 = vadd.f32 %v13783_v17, %v7877_v3  ;;  %v10308_v45 = vpop.f32.mrb[206].mxu0 }
 0x8b3   : > { %v8034_v27 = vadd.f32 %v10555_v14, %v8002_v34  ;;  %v10561_v9 = vadd.f32 %v13801_v50, %v10308_v45  ;;  %v7880_v58 = vpop.f32.mrb[207].mxu0  ;;  %v8015_v34 = vld [vmem:[%s11213_s29 + $0xd8] sm:$0xff]  ;;  %v8013_v45 = vld [vmem:[%s11213_s29 + $0xc8] sm:$0xff] }
 0x8b4   : > { %v8032_v29 = vadd.f32 %v10558_v63, %v8000_v12  ;;  %v10564_v51 = vadd.f32 %v13789_v47, %v7880_v58 }
 0x8b5   : > { %8066 = vst [vmem:[%s11213_s29 + $0x70] sm:$0xff] %v8034_v27  ;;  %v8035_v59 = vadd.f32 %v10561_v9, %v8003_v0  ;;  %v8018_v9 = vld [vmem:[%s11213_s29 + $0xf0] sm:$0xff]  ;;  %v8016_v0 = vld [vmem:[%s11213_s29 + $0xe0] sm:$0xff] }
 0x8b6   : > { %8064 = vst [vmem:[%s11213_s29 + $0x60] sm:$0xff] %v8032_v29  ;;  %v8033_v24 = vadd.f32 %v10564_v51, %v8001_v2 }
 0x8b7   : > { %8067 = vst [vmem:[%s11213_s29 + $0x78] sm:$0xff] %v8035_v59 }
 0x8b8   : > { %8065 = vst [vmem:[%s11213_s29 + $0x68] sm:$0xff] %v8033_v24  ;;  %v10311_v17 = vpop.f32.mrb[208].mxu0  ;;  %v8019_v24 = vld [vmem:[%s11213_s29 + $0xf8] sm:$0xff] }
 0x8b9   : > { %v10567_v50 = vadd.f32 %v13813_v18, %v10311_v17  ;;  %v7893_v54 = vpop.f32.mrb[209].mxu0 }
 0x8ba   : > { %v10570_v47 = vadd.f32 %v13807_v1, %v7893_v54  ;;  %v10312_v62 = vpop.f32.mrb[210].mxu0  ;;  %v8017_v54 = vld [vmem:[%s11213_s29 + $0xe8] sm:$0xff] }
 0x8bb   : > { %v8038_v44 = vadd.f32 %v10567_v50, %v8006_v38  ;;  %v10573_v60 = vadd.f32 %v13816_v20, %v10312_v62  ;;  %v7896_v35 = vpop.f32.mrb[211].mxu0 }
 0x8bc   : > { %v8036_v56 = vadd.f32 %v10570_v47, %v8004_v57  ;;  %v10576_v25 = vadd.f32 %v13810_v30, %v7896_v35 }
 0x8bd   : > { %8070 = vst [vmem:[%s11213_s29 + $0x90] sm:$0xff] %v8038_v44  ;;  %v8039_v18 = vadd.f32 %v10573_v60, %v8007_v33 }
 0x8be   : > { %8068 = vst [vmem:[%s11213_s29 + $0x80] sm:$0xff] %v8036_v56  ;;  %v8037_v8 = vadd.f32 %v10576_v25, %v8005_v22 }
 0x8bf   : > { %8071 = vst [vmem:[%s11213_s29 + $0x98] sm:$0xff] %v8039_v18 }
 0x8c0   : > { %8069 = vst [vmem:[%s11213_s29 + $0x88] sm:$0xff] %v8037_v8  ;;  %v10315_v1 = vpop.f32.mrb[212].mxu0 }
 0x8c1   : > { %v10579_v20 = vadd.f32 %v13825_v48, %v10315_v1  ;;  %v7909_v10 = vpop.f32.mrb[213].mxu0 }
 0x8c2   : > { %v10582_v30 = vadd.f32 %v13819_v13, %v7909_v10  ;;  %v10316_v28 = vpop.f32.mrb[214].mxu0 }
 0x8c3   : > { %v8042_v21 = vadd.f32 %v10579_v20, %v8010_v31  ;;  %v10585_v6 = vadd.f32 %v13828_v23, %v10316_v28  ;;  %v7912_v49 = vpop.f32.mrb[215].mxu0 }
 0x8c4   : > { %v8040_v42 = vadd.f32 %v10582_v30, %v8008_v19  ;;  %v10588_v43 = vadd.f32 %v13822_v7, %v7912_v49 }
 0x8c5   : > { %8074 = vst [vmem:[%s11213_s29 + $0xb0] sm:$0xff] %v8042_v21  ;;  %v8043_v48 = vadd.f32 %v10585_v6, %v8011_v41 }
 0x8c6   : > { %8072 = vst [vmem:[%s11213_s29 + $0xa0] sm:$0xff] %v8040_v42  ;;  %v8041_v53 = vadd.f32 %v10588_v43, %v8009_v16 }
 0x8c7   : > { %8075 = vst [vmem:[%s11213_s29 + $0xb8] sm:$0xff] %v8043_v48 }
 0x8c8   : > { %8073 = vst [vmem:[%s11213_s29 + $0xa8] sm:$0xff] %v8041_v53  ;;  %v10319_v13 = vpop.f32.mrb[216].mxu0 }
 0x8c9   : > { %v10591_v23 = vadd.f32 %v13837_v61, %v10319_v13  ;;  %v7925_v11 = vpop.f32.mrb[217].mxu0 }
 0x8ca   : > { %v10594_v7 = vadd.f32 %v13831_v5, %v7925_v11  ;;  %v10320_v4 = vpop.f32.mrb[218].mxu0 }
 0x8cb   : > { %v8046_v15 = vadd.f32 %v10591_v23, %v8014_v52  ;;  %v10597_v46 = vadd.f32 %v13840_v36, %v10320_v4  ;;  %v7928_v14 = vpop.f32.mrb[219].mxu0 }
 0x8cc   : > { %v8044_v3 = vadd.f32 %v10594_v7, %v8012_v32  ;;  %v10600_v63 = vadd.f32 %v13834_v37, %v7928_v14 }
 0x8cd   : > { %8078 = vst [vmem:[%s11213_s29 + $0xd0] sm:$0xff] %v8046_v15  ;;  %v8047_v61 = vadd.f32 %v10597_v46, %v8015_v34 }
 0x8ce   : > { %8076 = vst [vmem:[%s11213_s29 + $0xc0] sm:$0xff] %v8044_v3  ;;  %v8045_v27 = vadd.f32 %v10600_v63, %v8013_v45 }
 0x8cf   : > { %8079 = vst [vmem:[%s11213_s29 + $0xd8] sm:$0xff] %v8047_v61 }
 0x8d0   : > { %8077 = vst [vmem:[%s11213_s29 + $0xc8] sm:$0xff] %v8045_v27  ;;  %v10323_v5 = vpop.f32.mrb[220].mxu0 }
 0x8d1   : > { %v10603_v36 = vadd.f32 %v13849_v40, %v10323_v5  ;;  %v7941_v12 = vpop.f32.mrb[221].mxu0 }
 0x8d2   : > { %v10606_v37 = vadd.f32 %v13843_v55, %v7941_v12  ;;  %v10324_v58 = vpop.f32.mrb[222].mxu0 }
 0x8d3   : > { %v8050_v29 = vadd.f32 %v10603_v36, %v8018_v9  ;;  %v10609_v51 = vadd.f32 %v13852_v26, %v10324_v58  ;;  %v7944_v59 = vpop.f32.mrb[223].mxu0 }
 0x8d4   : > { %v8048_v2 = vadd.f32 %v10606_v37, %v8016_v0  ;;  %v10612_v17 = vadd.f32 %v13846_v39, %v7944_v59 }
 0x8d5   : > { %8082 = vst [vmem:[%s11213_s29 + $0xf0] sm:$0xff] %v8050_v29  ;;  %v8051_v50 = vadd.f32 %v10609_v51, %v8019_v24 }
 0x8d6   : > { %8080 = vst [vmem:[%s11213_s29 + $0xe0] sm:$0xff] %v8048_v2  ;;  %v8049_v40 = vadd.f32 %v10612_v17, %v8017_v54 }
 0x8d7   : > { %8083 = vst [vmem:[%s11213_s29 + $0xf8] sm:$0xff] %v8051_v50 }
 0x8d8   : > { %8081 = vst [vmem:[%s11213_s29 + $0xe8] sm:$0xff] %v8049_v40 }
 0x8d9 PF: > { %s17_s21 = sadd.s32 1, %s11108_s21  }
 0x8da   : > { %p14_p3 = scmp.ge.s32.totalorder %s17_s21, 4  }
 0x8dc   :  { %16 = sbr.rel (!%p14_p3) target bundleno = 1 (0x1), region = 98 }
 0x8e3   :  { %8105 = vsyncpa [#allocation4], 1 }
 0x8e4   :  { %8107 = vsyncpa [#allocation4 + $0x1], 1 }

</bundles_post_ra>
